<compile_context>
chip_gen: v5e
topology: v5e:2x2
jax: 0.10.0
libtpu: 0.0.40
codegen_flags: <defaults>
</compile_context>

<pallas_src>
import numpy as np
import jax
import jax.numpy as jnp
from jax.experimental import pallas as pl
from jax.experimental.pallas import tpu as pltpu

# ---------------- problem configuration (small, module-consistent) -----------
BATCH = 2
NUM_OBJECTS = 4
INPUT_DIM = 8
HIDDEN_DIM = 32
OUTPUT_SIZE = (3, 20, 20)                     # (C, H, W) of decoded image
C_OUT = OUTPUT_SIZE[0]
MAP_W = OUTPUT_SIZE[1] // 5                   # 4
MAP_H = OUTPUT_SIZE[2] // 5                   # 4
OUTPUT_DIM = MAP_W * MAP_H                    # 16
IMG_H = MAP_W * 5                             # 20 (first spatial axis)
IMG_W = MAP_H * 5                             # 20 (second spatial axis)
NVALID_PER_B = IMG_H * IMG_W                  # 400 valid flat pixels per image
PB = 512                                      # lane-padded pixels per image (128-aligned)
PPIX = BATCH * PB                             # 1024 padded flat pixels (b, y, x), x innermost
NVALID = BATCH * NVALID_PER_B                 # 800
EPS = 1e-5

# Geometry invariants the in-kernel roll / zero-halo tricks rely on.
assert PB % 128 == 0 and PB >= NVALID_PER_B
# deconv1: corner + max 5x5 tap shift never leaves the image's valid lanes.
assert (IMG_H - 5) * IMG_W + (IMG_W - 5) + 4 * IMG_W + 4 < NVALID_PER_B
# deconv2: +y overflow lands inside this image's zero padding.
assert NVALID_PER_B + 4 * IMG_W + 4 <= PB
# deconv2: -y underflow lands inside the previous image's zero padding.
assert 4 * IMG_W + 4 <= PB - NVALID_PER_B


# ----------------------- trace-time constant tables --------------------------
def _build_constants():
    q = np.arange(PPIX)
    b = q // PB
    r = q % PB
    valid = r < NVALID_PER_B
    y = np.where(valid, r // IMG_W, 0)
    x = np.where(valid, r % IMG_W, 0)

    # sel[b*16 + i*MAP_H + j, p] = 1 iff p is the top-left corner of 5x5 block
    # (i, j) of image b (block-diagonal 0/1 scatter matrix, 128 KB).
    sel = np.zeros((BATCH * OUTPUT_DIM, PPIX), np.float32)
    for p in np.nonzero(valid & (y % 5 == 0) & (x % 5 == 0))[0]:
        sel[b[p] * OUTPUT_DIM + (y[p] // 5) * MAP_H + (x[p] // 5), p] = 1.0

    # x-boundary validity for the 9 horizontal deconv2 offsets (36 KB).
    # Row dx=4 (sx=0) is the plain valid-pixel mask; the y-boundary handling
    # comes for free from the zeroed padding lanes.
    xmask = np.zeros((9, PPIX), np.float32)
    for dx in range(9):
        sx = dx - 4
        xmask[dx] = (valid & (x + sx >= 0) & (x + sx < IMG_W)).astype(np.float32)
    return jnp.asarray(sel), jnp.asarray(xmask)


_SEL_CONST, _XMASK_CONST = _build_constants()


# ------------------------------- Pallas kernel -------------------------------
def _roll_lanes(v, shift):
    """Cyclic roll along the lane (last) axis: out[:, p] = v[:, p - shift]."""
    shift = shift % v.shape[-1]
    if shift == 0:
        return v
    return pltpu.roll(v, shift, axis=1)


def _decoder_kernel(x_ref, fc1w_ref, fc1b_ref, fc2w_ref, fc2b_ref, lng_ref,
                    lnb_ref, fc3w_ref, fc3b_ref, sel_ref, w1s_ref, bng_ref,
                    bnb_ref, w2b_ref, xmask_ref, dc2b_ref, out_ref,
                    hcs_ref, hbs_ref, y_ref):
    f32 = jnp.float32

    # ---------------- MLP head: fc1 -> relu -> fc2 -> LN -> relu -> fc3 ------
    x = x_ref[...]                                                   # (B*K, D)
    h = jnp.dot(x, fc1w_ref[...], preferred_element_type=f32) + fc1b_ref[...]
    h = jnp.maximum(h, 0.0)
    h2 = jnp.dot(h, fc2w_ref[...], preferred_element_type=f32) + fc2b_ref[...]
    mu = jnp.mean(h2, axis=-1, keepdims=True)
    var = jnp.mean((h2 - mu) ** 2, axis=-1, keepdims=True)
    hn = (h2 - mu) * jax.lax.rsqrt(var + EPS) * lng_ref[...] + lnb_ref[...]
    hn = jnp.maximum(hn, 0.0)
    h3 = jnp.dot(hn, fc3w_ref[...], preferred_element_type=f32) + fc3b_ref[...]
    # h3: (B*K, 16); rows ordered (batch, object), cols m = 4*i + j.

    # ------ scatter onto 5x5 block corners: ONE (K, B*16)@(B*16, PPIX) dot ---
    h3_r = jnp.concatenate(
        [h3[bb * NUM_OBJECTS:(bb + 1) * NUM_OBJECTS, :] for bb in range(BATCH)],
        axis=1)                                                      # (K, B*16)
    hc = jnp.dot(h3_r, sel_ref[...], preferred_element_type=f32)     # (K, PPIX)
    hc8 = jnp.concatenate(
        [hc, jnp.zeros((8 - NUM_OBJECTS, PPIX), f32)], axis=0)       # (8, PPIX)

    # ------ deconv1 (stride == kernel): 25 XLU rolls + ONE MXU matmul --------
    for ki in range(5):
        for kj in range(5):
            t = ki * 5 + kj
            hcs_ref[t * 8:(t + 1) * 8, :] = _roll_lanes(hc8, ki * IMG_W + kj)
    acc1 = jnp.dot(w1s_ref[...], hcs_ref[...],
                   preferred_element_type=f32)                       # (32, PPIX)
    # (deconv1's per-channel bias cancels exactly under training-mode BN.)

    # ------ BatchNorm2d (training-mode stats over the 800 valid pixels) ------
    # Padding lanes of acc1 are exactly zero, so plain lane sums == valid sums.
    inv_n = 1.0 / float(NVALID)
    m1 = jnp.sum(acc1, axis=-1, keepdims=True) * inv_n
    m2 = jnp.sum(acc1 * acc1, axis=-1, keepdims=True) * inv_n
    var1 = m2 - m1 * m1
    hb = (acc1 - m1) * jax.lax.rsqrt(var1 + EPS) * bng_ref[...] + bnb_ref[...]
    hb = jnp.maximum(hb, 0.0)                                        # (32, PPIX)
    # Zero the padding lanes: they double as the y-direction zero halo of the
    # 9x9 "same" convolution (xmask row 4 == plain valid-pixel mask).
    hbm = hb * xmask_ref[4:5, :]

    # ------ deconv2 (9x9, pad 4): 9 row rolls, ONE matmul, 9 col rolls -------
    for dy in range(9):
        hbs_ref[dy * HIDDEN_DIM:(dy + 1) * HIDDEN_DIM, :] = \
            _roll_lanes(hbm, -(dy - 4) * IMG_W)
    y_ref[...] = jnp.dot(w2b_ref[...], hbs_ref[...],
                         preferred_element_type=f32)                 # (72, PPIX)

    acc2 = jnp.zeros((8, PPIX), f32)
    for dx in range(9):
        sx = dx - 4
        z = _roll_lanes(y_ref[dx * 8:(dx + 1) * 8, :], -sx)          # (8, PPIX)
        acc2 = acc2 + z * xmask_ref[dx:dx + 1, :]
    out = acc2[0:C_OUT, :] + dc2b_ref[...]                           # (3, PPIX)

    # ------ store lane-aligned (B, C_out, 512); wrapper crops to H*W ---------
    for bb in range(BATCH):
        out_ref[bb] = out[:, bb * PB:(bb + 1) * PB]


# ------------------------------ Pallas wrapper --------------------------------
def _full_spec(a):
    nd = a.ndim
    return pl.BlockSpec(a.shape, lambda: (0,) * nd)


def decoder_forward(p, ins):
    B, K, D = ins.shape
    x = ins.reshape(B * K, D)

    # deconv1 weights -> (32, 200): column t*8+k holds dc1_w[k, :, ki, kj].
    w1 = p["dc1_w"].transpose(2, 3, 0, 1).reshape(25, NUM_OBJECTS, HIDDEN_DIM)
    w1 = jnp.pad(w1, ((0, 0), (0, 8 - NUM_OBJECTS), (0, 0)))
    w1s = w1.reshape(25 * 8, HIDDEN_DIM).T                           # (32, 200)

    # deconv2 weights -> (72, 288): row dx*8+co, col dy*32+ci = Wflip[ci,co,dy,dx].
    w2f = jnp.flip(p["dc2_w"], axis=(2, 3))                          # (ci, co, dy, dx)
    w2b = jnp.pad(w2f.transpose(3, 1, 2, 0),
                  ((0, 0), (0, 8 - C_OUT), (0, 0), (0, 0)))          # (dx, 8, dy, ci)
    w2b = w2b.reshape(9 * 8, 9 * HIDDEN_DIM)                         # (72, 288)

    args = (
        x,
        p["fc1_w"], p["fc1_b"][None, :],
        p["fc2_w"], p["fc2_b"][None, :],
        p["ln_g"][None, :], p["ln_b"][None, :],
        p["fc3_w"], p["fc3_b"][None, :],
        _SEL_CONST, w1s,
        p["bn_g"][:, None], p["bn_b"][:, None],
        w2b, _XMASK_CONST, p["dc2_b"][:, None],
    )
    out_flat = pl.pallas_call(
        _decoder_kernel,
        in_specs=[_full_spec(a) for a in args],
        out_specs=pl.BlockSpec((BATCH, C_OUT, PB), lambda: (0, 0, 0)),
        out_shape=jax.ShapeDtypeStruct((BATCH, C_OUT, PB), jnp.float32),
        scratch_shapes=[
            pltpu.VMEM((25 * 8, PPIX), jnp.float32),          # rolled corner stack
            pltpu.VMEM((9 * HIDDEN_DIM, PPIX), jnp.float32),  # row-shifted act stack
            pltpu.VMEM((9 * 8, PPIX), jnp.float32),           # per-dx matmul result
        ],
    )(*args)
    # Crop the 512-lane padded rows back to the 400 valid pixels -> NCHW.
    return out_flat[:, :, :NVALID_PER_B].reshape(B, C_OUT, IMG_H, IMG_W)


# --------------------------- pure-JAX reference -------------------------------
def reference_forward(p, ins):
    B, K, D = ins.shape
    x = ins.reshape(B * K, D)
    h = jnp.maximum(x @ p["fc1_w"] + p["fc1_b"], 0.0)
    h2 = h @ p["fc2_w"] + p["fc2_b"]
    mu = h2.mean(-1, keepdims=True)
    var = ((h2 - mu) ** 2).mean(-1, keepdims=True)
    h2 = jnp.maximum((h2 - mu) / jnp.sqrt(var + EPS) * p["ln_g"] + p["ln_b"], 0.0)
    h3 = h2 @ p["fc3_w"] + p["fc3_b"]
    h_conv = h3.reshape(B, K, MAP_W, MAP_H)
    d1 = jnp.einsum("bcij,cokl->boikjl", h_conv, p["dc1_w"]).reshape(
        B, HIDDEN_DIM, MAP_W * 5, MAP_H * 5) + p["dc1_b"][None, :, None, None]
    mu = d1.mean(axis=(0, 2, 3), keepdims=True)
    var = ((d1 - mu) ** 2).mean(axis=(0, 2, 3), keepdims=True)
    hb = jnp.maximum((d1 - mu) / jnp.sqrt(var + EPS)
                     * p["bn_g"][None, :, None, None]
                     + p["bn_b"][None, :, None, None], 0.0)
    Wf = jnp.flip(p["dc2_w"], axis=(2, 3)).transpose(1, 0, 2, 3)   # OIHW
    out = jax.lax.conv_general_dilated(
        hb, Wf, window_strides=(1, 1), padding=((4, 4), (4, 4)),
        dimension_numbers=("NCHW", "OIHW", "NCHW"))
    return out + p["dc2_b"][None, :, None, None]


# ----------------------------------- main -------------------------------------
def make_params(key):
    ks = jax.random.split(key, 12)
    n = lambda k, s, sc=0.1: sc * jax.random.normal(k, s, dtype=jnp.float32)
    return {
        "fc1_w": n(ks[0], (INPUT_DIM, HIDDEN_DIM)),
        "fc1_b": n(ks[1], (HIDDEN_DIM,)),
        "fc2_w": n(ks[2], (HIDDEN_DIM, HIDDEN_DIM)),
        "fc2_b": n(ks[3], (HIDDEN_DIM,)),
        "ln_g": 1.0 + n(ks[4], (HIDDEN_DIM,)),
        "ln_b": n(ks[5], (HIDDEN_DIM,)),
        "fc3_w": n(ks[6], (HIDDEN_DIM, OUTPUT_DIM)),
        "fc3_b": n(ks[7], (OUTPUT_DIM,)),
        "dc1_w": n(ks[8], (NUM_OBJECTS, HIDDEN_DIM, 5, 5)),
        "dc1_b": n(ks[9], (HIDDEN_DIM,)),
        "bn_g": 1.0 + n(ks[10], (HIDDEN_DIM,)),
        "bn_b": n(ks[11], (HIDDEN_DIM,)),
        "dc2_w": n(jax.random.fold_in(key, 100),
                   (HIDDEN_DIM, OUTPUT_SIZE[0], 9, 9)),
        "dc2_b": n(jax.random.fold_in(key, 101), (OUTPUT_SIZE[0],)),
    }


if __name__ == "__main__":
    key = jax.random.PRNGKey(0)
    params = make_params(key)
    ins = jax.random.normal(jax.random.fold_in(key, 999),
                            (BATCH, NUM_OBJECTS, INPUT_DIM), dtype=jnp.float32)

    out = jax.jit(decoder_forward)(params, ins)
    out = jax.block_until_ready(out)
    assert out.shape == (BATCH, OUTPUT_SIZE[0], OUTPUT_SIZE[1], OUTPUT_SIZE[2]), out.shape
    assert bool(jnp.all(jnp.isfinite(out)))

    ref = jax.jit(reference_forward)(params, ins)
    ref = jax.block_until_ready(ref)
    assert bool(jnp.allclose(out, ref, atol=1e-4, rtol=1e-4)), \
        float(jnp.max(jnp.abs(out - ref)))

    print("KERNEL_OK")
</pallas_src>

<mosaic_0001>
module attributes {stable_mosaic.version = 11 : i64} {
  func.func @_decoder_kernel(%arg0: memref<8x8xf32, #tpu.memory_space<vmem>>, %arg1: memref<8x32xf32, #tpu.memory_space<vmem>>, %arg2: memref<1x32xf32, #tpu.memory_space<vmem>>, %arg3: memref<32x32xf32, #tpu.memory_space<vmem>>, %arg4: memref<1x32xf32, #tpu.memory_space<vmem>>, %arg5: memref<1x32xf32, #tpu.memory_space<vmem>>, %arg6: memref<1x32xf32, #tpu.memory_space<vmem>>, %arg7: memref<32x16xf32, #tpu.memory_space<vmem>>, %arg8: memref<1x16xf32, #tpu.memory_space<vmem>>, %arg9: memref<32x1024xf32, #tpu.memory_space<vmem>>, %arg10: memref<32x200xf32, #tpu.memory_space<vmem>>, %arg11: memref<32x1xf32, #tpu.memory_space<vmem>>, %arg12: memref<32x1xf32, #tpu.memory_space<vmem>>, %arg13: memref<72x288xf32, #tpu.memory_space<vmem>>, %arg14: memref<9x1024xf32, #tpu.memory_space<vmem>>, %arg15: memref<3x1xf32, #tpu.memory_space<vmem>>, %arg16: memref<2x3x512xf32, #tpu.memory_space<vmem>>, %arg17: memref<200x1024xf32, #tpu.memory_space<vmem>>, %arg18: memref<288x1024xf32, #tpu.memory_space<vmem>>, %arg19: memref<72x1024xf32, #tpu.memory_space<vmem>>) attributes {dimension_semantics = [], scalar_prefetch = 0 : i64, scratch_operands = 3 : i64, tpu.core_type = #tpu.core_type<tc>} {
    %c0 = arith.constant 0 : index
    %c0_0 = arith.constant 0 : index
    %0 = vector.load %arg0[%c0, %c0_0] : memref<8x8xf32, #tpu.memory_space<vmem>>, vector<8x8xf32>
    %c0_1 = arith.constant 0 : index
    %c0_2 = arith.constant 0 : index
    %1 = vector.load %arg1[%c0_1, %c0_2] : memref<8x32xf32, #tpu.memory_space<vmem>>, vector<8x32xf32>
    %cst = arith.constant dense<0.000000e+00> : vector<8x32xf32>
    %2 = tpu.matmul %0, %1, %cst {dimension_numbers = #tpu.dot_dimension_numbers<[1], [0], [0], [1], [0, 0, 1, 1], [], []>} : vector<8x8xf32>, vector<8x32xf32>, vector<8x32xf32> -> vector<8x32xf32>
    %c0_3 = arith.constant 0 : index
    %c0_4 = arith.constant 0 : index
    %3 = vector.load %arg2[%c0_3, %c0_4] : memref<1x32xf32, #tpu.memory_space<vmem>>, vector<1x32xf32>
    %4 = vector.broadcast %3 : vector<1x32xf32> to vector<8x32xf32>
    %5 = arith.addf %2, %4 : vector<8x32xf32>
    %cst_5 = arith.constant 0.000000e+00 : f32
    %6 = vector.broadcast %cst_5 : f32 to vector<8x32xf32>
    %7 = arith.maximumf %5, %6 : vector<8x32xf32>
    %c0_6 = arith.constant 0 : index
    %c0_7 = arith.constant 0 : index
    %8 = vector.load %arg3[%c0_6, %c0_7] : memref<32x32xf32, #tpu.memory_space<vmem>>, vector<32x32xf32>
    %cst_8 = arith.constant dense<0.000000e+00> : vector<8x32xf32>
    %9 = tpu.matmul %7, %8, %cst_8 {dimension_numbers = #tpu.dot_dimension_numbers<[1], [0], [0], [1], [0, 0, 1, 1], [], []>} : vector<8x32xf32>, vector<32x32xf32>, vector<8x32xf32> -> vector<8x32xf32>
    %c0_9 = arith.constant 0 : index
    %c0_10 = arith.constant 0 : index
    %10 = vector.load %arg4[%c0_9, %c0_10] : memref<1x32xf32, #tpu.memory_space<vmem>>, vector<1x32xf32>
    %11 = vector.broadcast %10 : vector<1x32xf32> to vector<8x32xf32>
    %12 = arith.addf %9, %11 : vector<8x32xf32>
    %cst_11 = arith.constant dense<0.000000e+00> : vector<8xf32>
    %13 = vector.multi_reduction <add>, %12, %cst_11 [1] : vector<8x32xf32> to vector<8xf32>
    %14 = vector.shape_cast %13 : vector<8xf32> to vector<8x1xf32>
    %cst_12 = arith.constant 3.200000e+01 : f32
    %15 = vector.broadcast %cst_12 : f32 to vector<8x1xf32>
    %16 = arith.divf %14, %15 : vector<8x1xf32>
    %17 = vector.broadcast %16 : vector<8x1xf32> to vector<8x32xf32>
    %18 = arith.subf %12, %17 : vector<8x32xf32>
    %19 = arith.mulf %18, %18 : vector<8x32xf32>
    %cst_13 = arith.constant dense<0.000000e+00> : vector<8xf32>
    %20 = vector.multi_reduction <add>, %19, %cst_13 [1] : vector<8x32xf32> to vector<8xf32>
    %21 = vector.shape_cast %20 : vector<8xf32> to vector<8x1xf32>
    %cst_14 = arith.constant 3.200000e+01 : f32
    %22 = vector.broadcast %cst_14 : f32 to vector<8x1xf32>
    %23 = arith.divf %21, %22 : vector<8x1xf32>
    %24 = vector.broadcast %16 : vector<8x1xf32> to vector<8x32xf32>
    %25 = arith.subf %12, %24 : vector<8x32xf32>
    %cst_15 = arith.constant 9.99999974E-6 : f32
    %26 = vector.broadcast %cst_15 : f32 to vector<8x1xf32>
    %27 = arith.addf %23, %26 : vector<8x1xf32>
    %28 = math.rsqrt %27 : vector<8x1xf32>
    %29 = vector.broadcast %28 : vector<8x1xf32> to vector<8x32xf32>
    %30 = arith.mulf %25, %29 : vector<8x32xf32>
    %c0_16 = arith.constant 0 : index
    %c0_17 = arith.constant 0 : index
    %31 = vector.load %arg5[%c0_16, %c0_17] : memref<1x32xf32, #tpu.memory_space<vmem>>, vector<1x32xf32>
    %32 = vector.broadcast %31 : vector<1x32xf32> to vector<8x32xf32>
    %33 = arith.mulf %30, %32 : vector<8x32xf32>
    %c0_18 = arith.constant 0 : index
    %c0_19 = arith.constant 0 : index
    %34 = vector.load %arg6[%c0_18, %c0_19] : memref<1x32xf32, #tpu.memory_space<vmem>>, vector<1x32xf32>
    %35 = vector.broadcast %34 : vector<1x32xf32> to vector<8x32xf32>
    %36 = arith.addf %33, %35 : vector<8x32xf32>
    %cst_20 = arith.constant 0.000000e+00 : f32
    %37 = vector.broadcast %cst_20 : f32 to vector<8x32xf32>
    %38 = arith.maximumf %36, %37 : vector<8x32xf32>
    %c0_21 = arith.constant 0 : index
    %c0_22 = arith.constant 0 : index
    %39 = vector.load %arg7[%c0_21, %c0_22] : memref<32x16xf32, #tpu.memory_space<vmem>>, vector<32x16xf32>
    %cst_23 = arith.constant dense<0.000000e+00> : vector<8x16xf32>
    %40 = tpu.matmul %38, %39, %cst_23 {dimension_numbers = #tpu.dot_dimension_numbers<[1], [0], [0], [1], [0, 0, 1, 1], [], []>} : vector<8x32xf32>, vector<32x16xf32>, vector<8x16xf32> -> vector<8x16xf32>
    %c0_24 = arith.constant 0 : index
    %c0_25 = arith.constant 0 : index
    %41 = vector.load %arg8[%c0_24, %c0_25] : memref<1x16xf32, #tpu.memory_space<vmem>>, vector<1x16xf32>
    %42 = vector.broadcast %41 : vector<1x16xf32> to vector<8x16xf32>
    %43 = arith.addf %40, %42 : vector<8x16xf32>
    %44 = vector.extract_strided_slice %43 {offsets = [0, 0], sizes = [4, 16], strides = [1, 1]} : vector<8x16xf32> to vector<4x16xf32>
    %45 = vector.extract_strided_slice %43 {offsets = [4, 0], sizes = [4, 16], strides = [1, 1]} : vector<8x16xf32> to vector<4x16xf32>
    %46 = tpu.concatenate %44, %45 in 1 : vector<4x16xf32>, vector<4x16xf32> -> vector<4x32xf32>
    %c0_26 = arith.constant 0 : index
    %c0_27 = arith.constant 0 : index
    %47 = vector.load %arg9[%c0_26, %c0_27] : memref<32x1024xf32, #tpu.memory_space<vmem>>, vector<32x1024xf32>
    %cst_28 = arith.constant dense<0.000000e+00> : vector<4x1024xf32>
    %48 = tpu.matmul %46, %47, %cst_28 {dimension_numbers = #tpu.dot_dimension_numbers<[1], [0], [0], [1], [0, 0, 1, 1], [], []>} : vector<4x32xf32>, vector<32x1024xf32>, vector<4x1024xf32> -> vector<4x1024xf32>
    %cst_29 = arith.constant 0.000000e+00 : f32
    %49 = vector.broadcast %cst_29 : f32 to vector<4x1024xf32>
    %50 = tpu.concatenate %48, %49 in 0 : vector<4x1024xf32>, vector<4x1024xf32> -> vector<8x1024xf32>
    %c0_30 = arith.constant 0 : index
    %c0_31 = arith.constant 0 : index
    %51 = vector.load %arg17[%c0_30, %c0_31] : memref<200x1024xf32, #tpu.memory_space<vmem>>, vector<8x1024xf32>
    tpu.vector_store %arg17[%c0_30, %c0_31], %50 {strides = array<i32>} : memref<200x1024xf32, #tpu.memory_space<vmem>>, vector<8x1024xf32>,
    %c1_i32 = arith.constant 1 : i32
    %52 = tpu.dynamic_rotate %50 by %c1_i32 dim 1 : vector<8x1024xf32>, i32 -> vector<8x1024xf32>
    %c8 = arith.constant 8 : index
    %c0_32 = arith.constant 0 : index
    %53 = vector.load %arg17[%c8, %c0_32] : memref<200x1024xf32, #tpu.memory_space<vmem>>, vector<8x1024xf32>
    tpu.vector_store %arg17[%c8, %c0_32], %52 {strides = array<i32>} : memref<200x1024xf32, #tpu.memory_space<vmem>>, vector<8x1024xf32>,
    %c2_i32 = arith.constant 2 : i32
    %54 = tpu.dynamic_rotate %50 by %c2_i32 dim 1 : vector<8x1024xf32>, i32 -> vector<8x1024xf32>
    %c16 = arith.constant 16 : index
    %c0_33 = arith.constant 0 : index
    %55 = vector.load %arg17[%c16, %c0_33] : memref<200x1024xf32, #tpu.memory_space<vmem>>, vector<8x1024xf32>
    tpu.vector_store %arg17[%c16, %c0_33], %54 {strides = array<i32>} : memref<200x1024xf32, #tpu.memory_space<vmem>>, vector<8x1024xf32>,
    %c3_i32 = arith.constant 3 : i32
    %56 = tpu.dynamic_rotate %50 by %c3_i32 dim 1 : vector<8x1024xf32>, i32 -> vector<8x1024xf32>
    %c24 = arith.constant 24 : index
    %c0_34 = arith.constant 0 : index
    %57 = vector.load %arg17[%c24, %c0_34] : memref<200x1024xf32, #tpu.memory_space<vmem>>, vector<8x1024xf32>
    tpu.vector_store %arg17[%c24, %c0_34], %56 {strides = array<i32>} : memref<200x1024xf32, #tpu.memory_space<vmem>>, vector<8x1024xf32>,
    %c4_i32 = arith.constant 4 : i32
    %58 = tpu.dynamic_rotate %50 by %c4_i32 dim 1 : vector<8x1024xf32>, i32 -> vector<8x1024xf32>
    %c32 = arith.constant 32 : index
    %c0_35 = arith.constant 0 : index
    %59 = vector.load %arg17[%c32, %c0_35] : memref<200x1024xf32, #tpu.memory_space<vmem>>, vector<8x1024xf32>
    tpu.vector_store %arg17[%c32, %c0_35], %58 {strides = array<i32>} : memref<200x1024xf32, #tpu.memory_space<vmem>>, vector<8x1024xf32>,
    %c20_i32 = arith.constant 20 : i32
    %60 = tpu.dynamic_rotate %50 by %c20_i32 dim 1 : vector<8x1024xf32>, i32 -> vector<8x1024xf32>
    %c40 = arith.constant 40 : index
    %c0_36 = arith.constant 0 : index
    %61 = vector.load %arg17[%c40, %c0_36] : memref<200x1024xf32, #tpu.memory_space<vmem>>, vector<8x1024xf32>
    tpu.vector_store %arg17[%c40, %c0_36], %60 {strides = array<i32>} : memref<200x1024xf32, #tpu.memory_space<vmem>>, vector<8x1024xf32>,
    %c21_i32 = arith.constant 21 : i32
    %62 = tpu.dynamic_rotate %50 by %c21_i32 dim 1 : vector<8x1024xf32>, i32 -> vector<8x1024xf32>
    %c48 = arith.constant 48 : index
    %c0_37 = arith.constant 0 : index
    %63 = vector.load %arg17[%c48, %c0_37] : memref<200x1024xf32, #tpu.memory_space<vmem>>, vector<8x1024xf32>
    tpu.vector_store %arg17[%c48, %c0_37], %62 {strides = array<i32>} : memref<200x1024xf32, #tpu.memory_space<vmem>>, vector<8x1024xf32>,
    %c22_i32 = arith.constant 22 : i32
    %64 = tpu.dynamic_rotate %50 by %c22_i32 dim 1 : vector<8x1024xf32>, i32 -> vector<8x1024xf32>
    %c56 = arith.constant 56 : index
    %c0_38 = arith.constant 0 : index
    %65 = vector.load %arg17[%c56, %c0_38] : memref<200x1024xf32, #tpu.memory_space<vmem>>, vector<8x1024xf32>
    tpu.vector_store %arg17[%c56, %c0_38], %64 {strides = array<i32>} : memref<200x1024xf32, #tpu.memory_space<vmem>>, vector<8x1024xf32>,
    %c23_i32 = arith.constant 23 : i32
    %66 = tpu.dynamic_rotate %50 by %c23_i32 dim 1 : vector<8x1024xf32>, i32 -> vector<8x1024xf32>
    %c64 = arith.constant 64 : index
    %c0_39 = arith.constant 0 : index
    %67 = vector.load %arg17[%c64, %c0_39] : memref<200x1024xf32, #tpu.memory_space<vmem>>, vector<8x1024xf32>
    tpu.vector_store %arg17[%c64, %c0_39], %66 {strides = array<i32>} : memref<200x1024xf32, #tpu.memory_space<vmem>>, vector<8x1024xf32>,
    %c24_i32 = arith.constant 24 : i32
    %68 = tpu.dynamic_rotate %50 by %c24_i32 dim 1 : vector<8x1024xf32>, i32 -> vector<8x1024xf32>
    %c72 = arith.constant 72 : index
    %c0_40 = arith.constant 0 : index
    %69 = vector.load %arg17[%c72, %c0_40] : memref<200x1024xf32, #tpu.memory_space<vmem>>, vector<8x1024xf32>
    tpu.vector_store %arg17[%c72, %c0_40], %68 {strides = array<i32>} : memref<200x1024xf32, #tpu.memory_space<vmem>>, vector<8x1024xf32>,
    %c40_i32 = arith.constant 40 : i32
    %70 = tpu.dynamic_rotate %50 by %c40_i32 dim 1 : vector<8x1024xf32>, i32 -> vector<8x1024xf32>
    %c80 = arith.constant 80 : index
    %c0_41 = arith.constant 0 : index
    %71 = vector.load %arg17[%c80, %c0_41] : memref<200x1024xf32, #tpu.memory_space<vmem>>, vector<8x1024xf32>
    tpu.vector_store %arg17[%c80, %c0_41], %70 {strides = array<i32>} : memref<200x1024xf32, #tpu.memory_space<vmem>>, vector<8x1024xf32>,
    %c41_i32 = arith.constant 41 : i32
    %72 = tpu.dynamic_rotate %50 by %c41_i32 dim 1 : vector<8x1024xf32>, i32 -> vector<8x1024xf32>
    %c88 = arith.constant 88 : index
    %c0_42 = arith.constant 0 : index
    %73 = vector.load %arg17[%c88, %c0_42] : memref<200x1024xf32, #tpu.memory_space<vmem>>, vector<8x1024xf32>
    tpu.vector_store %arg17[%c88, %c0_42], %72 {strides = array<i32>} : memref<200x1024xf32, #tpu.memory_space<vmem>>, vector<8x1024xf32>,
    %c42_i32 = arith.constant 42 : i32
    %74 = tpu.dynamic_rotate %50 by %c42_i32 dim 1 : vector<8x1024xf32>, i32 -> vector<8x1024xf32>
    %c96 = arith.constant 96 : index
    %c0_43 = arith.constant 0 : index
    %75 = vector.load %arg17[%c96, %c0_43] : memref<200x1024xf32, #tpu.memory_space<vmem>>, vector<8x1024xf32>
    tpu.vector_store %arg17[%c96, %c0_43], %74 {strides = array<i32>} : memref<200x1024xf32, #tpu.memory_space<vmem>>, vector<8x1024xf32>,
    %c43_i32 = arith.constant 43 : i32
    %76 = tpu.dynamic_rotate %50 by %c43_i32 dim 1 : vector<8x1024xf32>, i32 -> vector<8x1024xf32>
    %c104 = arith.constant 104 : index
    %c0_44 = arith.constant 0 : index
    %77 = vector.load %arg17[%c104, %c0_44] : memref<200x1024xf32, #tpu.memory_space<vmem>>, vector<8x1024xf32>
    tpu.vector_store %arg17[%c104, %c0_44], %76 {strides = array<i32>} : memref<200x1024xf32, #tpu.memory_space<vmem>>, vector<8x1024xf32>,
    %c44_i32 = arith.constant 44 : i32
    %78 = tpu.dynamic_rotate %50 by %c44_i32 dim 1 : vector<8x1024xf32>, i32 -> vector<8x1024xf32>
    %c112 = arith.constant 112 : index
    %c0_45 = arith.constant 0 : index
    %79 = vector.load %arg17[%c112, %c0_45] : memref<200x1024xf32, #tpu.memory_space<vmem>>, vector<8x1024xf32>
    tpu.vector_store %arg17[%c112, %c0_45], %78 {strides = array<i32>} : memref<200x1024xf32, #tpu.memory_space<vmem>>, vector<8x1024xf32>,
    %c60_i32 = arith.constant 60 : i32
    %80 = tpu.dynamic_rotate %50 by %c60_i32 dim 1 : vector<8x1024xf32>, i32 -> vector<8x1024xf32>
    %c120 = arith.constant 120 : index
    %c0_46 = arith.constant 0 : index
    %81 = vector.load %arg17[%c120, %c0_46] : memref<200x1024xf32, #tpu.memory_space<vmem>>, vector<8x1024xf32>
    tpu.vector_store %arg17[%c120, %c0_46], %80 {strides = array<i32>} : memref<200x1024xf32, #tpu.memory_space<vmem>>, vector<8x1024xf32>,
    %c61_i32 = arith.constant 61 : i32
    %82 = tpu.dynamic_rotate %50 by %c61_i32 dim 1 : vector<8x1024xf32>, i32 -> vector<8x1024xf32>
    %c128 = arith.constant 128 : index
    %c0_47 = arith.constant 0 : index
    %83 = vector.load %arg17[%c128, %c0_47] : memref<200x1024xf32, #tpu.memory_space<vmem>>, vector<8x1024xf32>
    tpu.vector_store %arg17[%c128, %c0_47], %82 {strides = array<i32>} : memref<200x1024xf32, #tpu.memory_space<vmem>>, vector<8x1024xf32>,
    %c62_i32 = arith.constant 62 : i32
    %84 = tpu.dynamic_rotate %50 by %c62_i32 dim 1 : vector<8x1024xf32>, i32 -> vector<8x1024xf32>
    %c136 = arith.constant 136 : index
    %c0_48 = arith.constant 0 : index
    %85 = vector.load %arg17[%c136, %c0_48] : memref<200x1024xf32, #tpu.memory_space<vmem>>, vector<8x1024xf32>
    tpu.vector_store %arg17[%c136, %c0_48], %84 {strides = array<i32>} : memref<200x1024xf32, #tpu.memory_space<vmem>>, vector<8x1024xf32>,
    %c63_i32 = arith.constant 63 : i32
    %86 = tpu.dynamic_rotate %50 by %c63_i32 dim 1 : vector<8x1024xf32>, i32 -> vector<8x1024xf32>
    %c144 = arith.constant 144 : index
    %c0_49 = arith.constant 0 : index
    %87 = vector.load %arg17[%c144, %c0_49] : memref<200x1024xf32, #tpu.memory_space<vmem>>, vector<8x1024xf32>
    tpu.vector_store %arg17[%c144, %c0_49], %86 {strides = array<i32>} : memref<200x1024xf32, #tpu.memory_space<vmem>>, vector<8x1024xf32>,
    %c64_i32 = arith.constant 64 : i32
    %88 = tpu.dynamic_rotate %50 by %c64_i32 dim 1 : vector<8x1024xf32>, i32 -> vector<8x1024xf32>
    %c152 = arith.constant 152 : index
    %c0_50 = arith.constant 0 : index
    %89 = vector.load %arg17[%c152, %c0_50] : memref<200x1024xf32, #tpu.memory_space<vmem>>, vector<8x1024xf32>
    tpu.vector_store %arg17[%c152, %c0_50], %88 {strides = array<i32>} : memref<200x1024xf32, #tpu.memory_space<vmem>>, vector<8x1024xf32>,
    %c80_i32 = arith.constant 80 : i32
    %90 = tpu.dynamic_rotate %50 by %c80_i32 dim 1 : vector<8x1024xf32>, i32 -> vector<8x1024xf32>
    %c160 = arith.constant 160 : index
    %c0_51 = arith.constant 0 : index
    %91 = vector.load %arg17[%c160, %c0_51] : memref<200x1024xf32, #tpu.memory_space<vmem>>, vector<8x1024xf32>
    tpu.vector_store %arg17[%c160, %c0_51], %90 {strides = array<i32>} : memref<200x1024xf32, #tpu.memory_space<vmem>>, vector<8x1024xf32>,
    %c81_i32 = arith.constant 81 : i32
    %92 = tpu.dynamic_rotate %50 by %c81_i32 dim 1 : vector<8x1024xf32>, i32 -> vector<8x1024xf32>
    %c168 = arith.constant 168 : index
    %c0_52 = arith.constant 0 : index
    %93 = vector.load %arg17[%c168, %c0_52] : memref<200x1024xf32, #tpu.memory_space<vmem>>, vector<8x1024xf32>
    tpu.vector_store %arg17[%c168, %c0_52], %92 {strides = array<i32>} : memref<200x1024xf32, #tpu.memory_space<vmem>>, vector<8x1024xf32>,
    %c82_i32 = arith.constant 82 : i32
    %94 = tpu.dynamic_rotate %50 by %c82_i32 dim 1 : vector<8x1024xf32>, i32 -> vector<8x1024xf32>
    %c176 = arith.constant 176 : index
    %c0_53 = arith.constant 0 : index
    %95 = vector.load %arg17[%c176, %c0_53] : memref<200x1024xf32, #tpu.memory_space<vmem>>, vector<8x1024xf32>
    tpu.vector_store %arg17[%c176, %c0_53], %94 {strides = array<i32>} : memref<200x1024xf32, #tpu.memory_space<vmem>>, vector<8x1024xf32>,
    %c83_i32 = arith.constant 83 : i32
    %96 = tpu.dynamic_rotate %50 by %c83_i32 dim 1 : vector<8x1024xf32>, i32 -> vector<8x1024xf32>
    %c184 = arith.constant 184 : index
    %c0_54 = arith.constant 0 : index
    %97 = vector.load %arg17[%c184, %c0_54] : memref<200x1024xf32, #tpu.memory_space<vmem>>, vector<8x1024xf32>
    tpu.vector_store %arg17[%c184, %c0_54], %96 {strides = array<i32>} : memref<200x1024xf32, #tpu.memory_space<vmem>>, vector<8x1024xf32>,
    %c84_i32 = arith.constant 84 : i32
    %98 = tpu.dynamic_rotate %50 by %c84_i32 dim 1 : vector<8x1024xf32>, i32 -> vector<8x1024xf32>
    %c192 = arith.constant 192 : index
    %c0_55 = arith.constant 0 : index
    %99 = vector.load %arg17[%c192, %c0_55] : memref<200x1024xf32, #tpu.memory_space<vmem>>, vector<8x1024xf32>
    tpu.vector_store %arg17[%c192, %c0_55], %98 {strides = array<i32>} : memref<200x1024xf32, #tpu.memory_space<vmem>>, vector<8x1024xf32>,
    %c0_56 = arith.constant 0 : index
    %c0_57 = arith.constant 0 : index
    %100 = vector.load %arg10[%c0_56, %c0_57] : memref<32x200xf32, #tpu.memory_space<vmem>>, vector<32x200xf32>
    %c0_58 = arith.constant 0 : index
    %c0_59 = arith.constant 0 : index
    %101 = vector.load %arg17[%c0_58, %c0_59] : memref<200x1024xf32, #tpu.memory_space<vmem>>, vector<200x1024xf32>
    %cst_60 = arith.constant dense<0.000000e+00> : vector<32x1024xf32>
    %102 = tpu.matmul %100, %101, %cst_60 {dimension_numbers = #tpu.dot_dimension_numbers<[1], [0], [0], [1], [0, 0, 1, 1], [], []>} : vector<32x200xf32>, vector<200x1024xf32>, vector<32x1024xf32> -> vector<32x1024xf32>
    %cst_61 = arith.constant dense<0.000000e+00> : vector<32xf32>
    %103 = vector.multi_reduction <add>, %102, %cst_61 [1] : vector<32x1024xf32> to vector<32xf32>
    %104 = vector.shape_cast %103 : vector<32xf32> to vector<32x1xf32>
    %cst_62 = arith.constant 1.250000e-03 : f32
    %105 = vector.broadcast %cst_62 : f32 to vector<32x1xf32>
    %106 = arith.mulf %104, %105 : vector<32x1xf32>
    %107 = arith.mulf %102, %102 : vector<32x1024xf32>
    %cst_63 = arith.constant dense<0.000000e+00> : vector<32xf32>
    %108 = vector.multi_reduction <add>, %107, %cst_63 [1] : vector<32x1024xf32> to vector<32xf32>
    %109 = vector.shape_cast %108 : vector<32xf32> to vector<32x1xf32>
    %cst_64 = arith.constant 1.250000e-03 : f32
    %110 = vector.broadcast %cst_64 : f32 to vector<32x1xf32>
    %111 = arith.mulf %109, %110 : vector<32x1xf32>
    %112 = arith.mulf %106, %106 : vector<32x1xf32>
    %113 = arith.subf %111, %112 : vector<32x1xf32>
    %114 = vector.broadcast %106 : vector<32x1xf32> to vector<32x1024xf32>
    %115 = arith.subf %102, %114 : vector<32x1024xf32>
    %cst_65 = arith.constant 9.99999974E-6 : f32
    %116 = vector.broadcast %cst_65 : f32 to vector<32x1xf32>
    %117 = arith.addf %113, %116 : vector<32x1xf32>
    %118 = math.rsqrt %117 : vector<32x1xf32>
    %119 = vector.broadcast %118 : vector<32x1xf32> to vector<32x1024xf32>
    %120 = arith.mulf %115, %119 : vector<32x1024xf32>
    %c0_66 = arith.constant 0 : index
    %c0_67 = arith.constant 0 : index
    %121 = vector.load %arg11[%c0_66, %c0_67] : memref<32x1xf32, #tpu.memory_space<vmem>>, vector<32x1xf32>
    %122 = vector.broadcast %121 : vector<32x1xf32> to vector<32x1024xf32>
    %123 = arith.mulf %120, %122 : vector<32x1024xf32>
    %c0_68 = arith.constant 0 : index
    %c0_69 = arith.constant 0 : index
    %124 = vector.load %arg12[%c0_68, %c0_69] : memref<32x1xf32, #tpu.memory_space<vmem>>, vector<32x1xf32>
    %125 = vector.broadcast %124 : vector<32x1xf32> to vector<32x1024xf32>
    %126 = arith.addf %123, %125 : vector<32x1024xf32>
    %cst_70 = arith.constant 0.000000e+00 : f32
    %127 = vector.broadcast %cst_70 : f32 to vector<32x1024xf32>
    %128 = arith.maximumf %126, %127 : vector<32x1024xf32>
    %c4 = arith.constant 4 : index
    %c0_71 = arith.constant 0 : index
    %129 = vector.load %arg14[%c4, %c0_71] : memref<9x1024xf32, #tpu.memory_space<vmem>>, vector<1x1024xf32>
    %130 = vector.broadcast %129 : vector<1x1024xf32> to vector<32x1024xf32>
    %131 = arith.mulf %128, %130 : vector<32x1024xf32>
    %c80_i32_72 = arith.constant 80 : i32
    %132 = tpu.dynamic_rotate %131 by %c80_i32_72 dim 1 : vector<32x1024xf32>, i32 -> vector<32x1024xf32>
    %c0_73 = arith.constant 0 : index
    %c0_74 = arith.constant 0 : index
    %133 = vector.load %arg18[%c0_73, %c0_74] : memref<288x1024xf32, #tpu.memory_space<vmem>>, vector<32x1024xf32>
    tpu.vector_store %arg18[%c0_73, %c0_74], %132 {strides = array<i32>} : memref<288x1024xf32, #tpu.memory_space<vmem>>, vector<32x1024xf32>,
    %c60_i32_75 = arith.constant 60 : i32
    %134 = tpu.dynamic_rotate %131 by %c60_i32_75 dim 1 : vector<32x1024xf32>, i32 -> vector<32x1024xf32>
    %c32_76 = arith.constant 32 : index
    %c0_77 = arith.constant 0 : index
    %135 = vector.load %arg18[%c32_76, %c0_77] : memref<288x1024xf32, #tpu.memory_space<vmem>>, vector<32x1024xf32>
    tpu.vector_store %arg18[%c32_76, %c0_77], %134 {strides = array<i32>} : memref<288x1024xf32, #tpu.memory_space<vmem>>, vector<32x1024xf32>,
    %c40_i32_78 = arith.constant 40 : i32
    %136 = tpu.dynamic_rotate %131 by %c40_i32_78 dim 1 : vector<32x1024xf32>, i32 -> vector<32x1024xf32>
    %c64_79 = arith.constant 64 : index
    %c0_80 = arith.constant 0 : index
    %137 = vector.load %arg18[%c64_79, %c0_80] : memref<288x1024xf32, #tpu.memory_space<vmem>>, vector<32x1024xf32>
    tpu.vector_store %arg18[%c64_79, %c0_80], %136 {strides = array<i32>} : memref<288x1024xf32, #tpu.memory_space<vmem>>, vector<32x1024xf32>,
    %c20_i32_81 = arith.constant 20 : i32
    %138 = tpu.dynamic_rotate %131 by %c20_i32_81 dim 1 : vector<32x1024xf32>, i32 -> vector<32x1024xf32>
    %c96_82 = arith.constant 96 : index
    %c0_83 = arith.constant 0 : index
    %139 = vector.load %arg18[%c96_82, %c0_83] : memref<288x1024xf32, #tpu.memory_space<vmem>>, vector<32x1024xf32>
    tpu.vector_store %arg18[%c96_82, %c0_83], %138 {strides = array<i32>} : memref<288x1024xf32, #tpu.memory_space<vmem>>, vector<32x1024xf32>,
    %c128_84 = arith.constant 128 : index
    %c0_85 = arith.constant 0 : index
    %140 = vector.load %arg18[%c128_84, %c0_85] : memref<288x1024xf32, #tpu.memory_space<vmem>>, vector<32x1024xf32>
    tpu.vector_store %arg18[%c128_84, %c0_85], %131 {strides = array<i32>} : memref<288x1024xf32, #tpu.memory_space<vmem>>, vector<32x1024xf32>,
    %c1004_i32 = arith.constant 1004 : i32
    %141 = tpu.dynamic_rotate %131 by %c1004_i32 dim 1 : vector<32x1024xf32>, i32 -> vector<32x1024xf32>
    %c160_86 = arith.constant 160 : index
    %c0_87 = arith.constant 0 : index
    %142 = vector.load %arg18[%c160_86, %c0_87] : memref<288x1024xf32, #tpu.memory_space<vmem>>, vector<32x1024xf32>
    tpu.vector_store %arg18[%c160_86, %c0_87], %141 {strides = array<i32>} : memref<288x1024xf32, #tpu.memory_space<vmem>>, vector<32x1024xf32>,
    %c984_i32 = arith.constant 984 : i32
    %143 = tpu.dynamic_rotate %131 by %c984_i32 dim 1 : vector<32x1024xf32>, i32 -> vector<32x1024xf32>
    %c192_88 = arith.constant 192 : index
    %c0_89 = arith.constant 0 : index
    %144 = vector.load %arg18[%c192_88, %c0_89] : memref<288x1024xf32, #tpu.memory_space<vmem>>, vector<32x1024xf32>
    tpu.vector_store %arg18[%c192_88, %c0_89], %143 {strides = array<i32>} : memref<288x1024xf32, #tpu.memory_space<vmem>>, vector<32x1024xf32>,
    %c964_i32 = arith.constant 964 : i32
    %145 = tpu.dynamic_rotate %131 by %c964_i32 dim 1 : vector<32x1024xf32>, i32 -> vector<32x1024xf32>
    %c224 = arith.constant 224 : index
    %c0_90 = arith.constant 0 : index
    %146 = vector.load %arg18[%c224, %c0_90] : memref<288x1024xf32, #tpu.memory_space<vmem>>, vector<32x1024xf32>
    tpu.vector_store %arg18[%c224, %c0_90], %145 {strides = array<i32>} : memref<288x1024xf32, #tpu.memory_space<vmem>>, vector<32x1024xf32>,
    %c944_i32 = arith.constant 944 : i32
    %147 = tpu.dynamic_rotate %131 by %c944_i32 dim 1 : vector<32x1024xf32>, i32 -> vector<32x1024xf32>
    %c256 = arith.constant 256 : index
    %c0_91 = arith.constant 0 : index
    %148 = vector.load %arg18[%c256, %c0_91] : memref<288x1024xf32, #tpu.memory_space<vmem>>, vector<32x1024xf32>
    tpu.vector_store %arg18[%c256, %c0_91], %147 {strides = array<i32>} : memref<288x1024xf32, #tpu.memory_space<vmem>>, vector<32x1024xf32>,
    %c0_92 = arith.constant 0 : index
    %c0_93 = arith.constant 0 : index
    %149 = vector.load %arg13[%c0_92, %c0_93] : memref<72x288xf32, #tpu.memory_space<vmem>>, vector<72x288xf32>
    %c0_94 = arith.constant 0 : index
    %c0_95 = arith.constant 0 : index
    %150 = vector.load %arg18[%c0_94, %c0_95] : memref<288x1024xf32, #tpu.memory_space<vmem>>, vector<288x1024xf32>
    %cst_96 = arith.constant dense<0.000000e+00> : vector<72x1024xf32>
    %151 = tpu.matmul %149, %150, %cst_96 {dimension_numbers = #tpu.dot_dimension_numbers<[1], [0], [0], [1], [0, 0, 1, 1], [], []>} : vector<72x288xf32>, vector<288x1024xf32>, vector<72x1024xf32> -> vector<72x1024xf32>
    %c0_97 = arith.constant 0 : index
    %c0_98 = arith.constant 0 : index
    %152 = vector.load %arg19[%c0_97, %c0_98] : memref<72x1024xf32, #tpu.memory_space<vmem>>, vector<72x1024xf32>
    tpu.vector_store %arg19[%c0_97, %c0_98], %151 {strides = array<i32>} : memref<72x1024xf32, #tpu.memory_space<vmem>>, vector<72x1024xf32>,
    %cst_99 = arith.constant 0.000000e+00 : f32
    %153 = vector.broadcast %cst_99 : f32 to vector<8x1024xf32>
    %c0_100 = arith.constant 0 : index
    %c0_101 = arith.constant 0 : index
    %154 = vector.load %arg19[%c0_100, %c0_101] : memref<72x1024xf32, #tpu.memory_space<vmem>>, vector<8x1024xf32>
    %c4_i32_102 = arith.constant 4 : i32
    %155 = tpu.dynamic_rotate %154 by %c4_i32_102 dim 1 : vector<8x1024xf32>, i32 -> vector<8x1024xf32>
    %c0_103 = arith.constant 0 : index
    %c0_104 = arith.constant 0 : index
    %156 = vector.load %arg14[%c0_103, %c0_104] : memref<9x1024xf32, #tpu.memory_space<vmem>>, vector<1x1024xf32>
    %157 = vector.broadcast %156 : vector<1x1024xf32> to vector<8x1024xf32>
    %158 = arith.mulf %155, %157 : vector<8x1024xf32>
    %159 = arith.addf %153, %158 : vector<8x1024xf32>
    %c8_105 = arith.constant 8 : index
    %c0_106 = arith.constant 0 : index
    %160 = vector.load %arg19[%c8_105, %c0_106] : memref<72x1024xf32, #tpu.memory_space<vmem>>, vector<8x1024xf32>
    %c3_i32_107 = arith.constant 3 : i32
    %161 = tpu.dynamic_rotate %160 by %c3_i32_107 dim 1 : vector<8x1024xf32>, i32 -> vector<8x1024xf32>
    %c1 = arith.constant 1 : index
    %c0_108 = arith.constant 0 : index
    %162 = vector.load %arg14[%c1, %c0_108] : memref<9x1024xf32, #tpu.memory_space<vmem>>, vector<1x1024xf32>
    %163 = vector.broadcast %162 : vector<1x1024xf32> to vector<8x1024xf32>
    %164 = arith.mulf %161, %163 : vector<8x1024xf32>
    %165 = arith.addf %159, %164 : vector<8x1024xf32>
    %c16_109 = arith.constant 16 : index
    %c0_110 = arith.constant 0 : index
    %166 = vector.load %arg19[%c16_109, %c0_110] : memref<72x1024xf32, #tpu.memory_space<vmem>>, vector<8x1024xf32>
    %c2_i32_111 = arith.constant 2 : i32
    %167 = tpu.dynamic_rotate %166 by %c2_i32_111 dim 1 : vector<8x1024xf32>, i32 -> vector<8x1024xf32>
    %c2 = arith.constant 2 : index
    %c0_112 = arith.constant 0 : index
    %168 = vector.load %arg14[%c2, %c0_112] : memref<9x1024xf32, #tpu.memory_space<vmem>>, vector<1x1024xf32>
    %169 = vector.broadcast %168 : vector<1x1024xf32> to vector<8x1024xf32>
    %170 = arith.mulf %167, %169 : vector<8x1024xf32>
    %171 = arith.addf %165, %170 : vector<8x1024xf32>
    %c24_113 = arith.constant 24 : index
    %c0_114 = arith.constant 0 : index
    %172 = vector.load %arg19[%c24_113, %c0_114] : memref<72x1024xf32, #tpu.memory_space<vmem>>, vector<8x1024xf32>
    %c1_i32_115 = arith.constant 1 : i32
    %173 = tpu.dynamic_rotate %172 by %c1_i32_115 dim 1 : vector<8x1024xf32>, i32 -> vector<8x1024xf32>
    %c3 = arith.constant 3 : index
    %c0_116 = arith.constant 0 : index
    %174 = vector.load %arg14[%c3, %c0_116] : memref<9x1024xf32, #tpu.memory_space<vmem>>, vector<1x1024xf32>
    %175 = vector.broadcast %174 : vector<1x1024xf32> to vector<8x1024xf32>
    %176 = arith.mulf %173, %175 : vector<8x1024xf32>
    %177 = arith.addf %171, %176 : vector<8x1024xf32>
    %c32_117 = arith.constant 32 : index
    %c0_118 = arith.constant 0 : index
    %178 = vector.load %arg19[%c32_117, %c0_118] : memref<72x1024xf32, #tpu.memory_space<vmem>>, vector<8x1024xf32>
    %c4_119 = arith.constant 4 : index
    %c0_120 = arith.constant 0 : index
    %179 = vector.load %arg14[%c4_119, %c0_120] : memref<9x1024xf32, #tpu.memory_space<vmem>>, vector<1x1024xf32>
    %180 = vector.broadcast %179 : vector<1x1024xf32> to vector<8x1024xf32>
    %181 = arith.mulf %178, %180 : vector<8x1024xf32>
    %182 = arith.addf %177, %181 : vector<8x1024xf32>
    %c40_121 = arith.constant 40 : index
    %c0_122 = arith.constant 0 : index
    %183 = vector.load %arg19[%c40_121, %c0_122] : memref<72x1024xf32, #tpu.memory_space<vmem>>, vector<8x1024xf32>
    %c1023_i32 = arith.constant 1023 : i32
    %184 = tpu.dynamic_rotate %183 by %c1023_i32 dim 1 : vector<8x1024xf32>, i32 -> vector<8x1024xf32>
    %c5 = arith.constant 5 : index
    %c0_123 = arith.constant 0 : index
    %185 = vector.load %arg14[%c5, %c0_123] : memref<9x1024xf32, #tpu.memory_space<vmem>>, vector<1x1024xf32>
    %186 = vector.broadcast %185 : vector<1x1024xf32> to vector<8x1024xf32>
    %187 = arith.mulf %184, %186 : vector<8x1024xf32>
    %188 = arith.addf %182, %187 : vector<8x1024xf32>
    %c48_124 = arith.constant 48 : index
    %c0_125 = arith.constant 0 : index
    %189 = vector.load %arg19[%c48_124, %c0_125] : memref<72x1024xf32, #tpu.memory_space<vmem>>, vector<8x1024xf32>
    %c1022_i32 = arith.constant 1022 : i32
    %190 = tpu.dynamic_rotate %189 by %c1022_i32 dim 1 : vector<8x1024xf32>, i32 -> vector<8x1024xf32>
    %c6 = arith.constant 6 : index
    %c0_126 = arith.constant 0 : index
    %191 = vector.load %arg14[%c6, %c0_126] : memref<9x1024xf32, #tpu.memory_space<vmem>>, vector<1x1024xf32>
    %192 = vector.broadcast %191 : vector<1x1024xf32> to vector<8x1024xf32>
    %193 = arith.mulf %190, %192 : vector<8x1024xf32>
    %194 = arith.addf %188, %193 : vector<8x1024xf32>
    %c56_127 = arith.constant 56 : index
    %c0_128 = arith.constant 0 : index
    %195 = vector.load %arg19[%c56_127, %c0_128] : memref<72x1024xf32, #tpu.memory_space<vmem>>, vector<8x1024xf32>
    %c1021_i32 = arith.constant 1021 : i32
    %196 = tpu.dynamic_rotate %195 by %c1021_i32 dim 1 : vector<8x1024xf32>, i32 -> vector<8x1024xf32>
    %c7 = arith.constant 7 : index
    %c0_129 = arith.constant 0 : index
    %197 = vector.load %arg14[%c7, %c0_129] : memref<9x1024xf32, #tpu.memory_space<vmem>>, vector<1x1024xf32>
    %198 = vector.broadcast %197 : vector<1x1024xf32> to vector<8x1024xf32>
    %199 = arith.mulf %196, %198 : vector<8x1024xf32>
    %200 = arith.addf %194, %199 : vector<8x1024xf32>
    %c64_130 = arith.constant 64 : index
    %c0_131 = arith.constant 0 : index
    %201 = vector.load %arg19[%c64_130, %c0_131] : memref<72x1024xf32, #tpu.memory_space<vmem>>, vector<8x1024xf32>
    %c1020_i32 = arith.constant 1020 : i32
    %202 = tpu.dynamic_rotate %201 by %c1020_i32 dim 1 : vector<8x1024xf32>, i32 -> vector<8x1024xf32>
    %c8_132 = arith.constant 8 : index
    %c0_133 = arith.constant 0 : index
    %203 = vector.load %arg14[%c8_132, %c0_133] : memref<9x1024xf32, #tpu.memory_space<vmem>>, vector<1x1024xf32>
    %204 = vector.broadcast %203 : vector<1x1024xf32> to vector<8x1024xf32>
    %205 = arith.mulf %202, %204 : vector<8x1024xf32>
    %206 = arith.addf %200, %205 : vector<8x1024xf32>
    %207 = vector.extract_strided_slice %206 {offsets = [0, 0], sizes = [3, 1024], strides = [1, 1]} : vector<8x1024xf32> to vector<3x1024xf32>
    %c0_134 = arith.constant 0 : index
    %c0_135 = arith.constant 0 : index
    %208 = vector.load %arg15[%c0_134, %c0_135] : memref<3x1xf32, #tpu.memory_space<vmem>>, vector<3x1xf32>
    %209 = vector.broadcast %208 : vector<3x1xf32> to vector<3x1024xf32>
    %210 = arith.addf %207, %209 : vector<3x1024xf32>
    %211 = vector.extract_strided_slice %210 {offsets = [0, 0], sizes = [3, 512], strides = [1, 1]} : vector<3x1024xf32> to vector<3x512xf32>
    %c0_136 = arith.constant 0 : index
    %c0_137 = arith.constant 0 : index
    %c0_138 = arith.constant 0 : index
    %212 = vector.load %arg16[%c0_136, %c0_137, %c0_138] : memref<2x3x512xf32, #tpu.memory_space<vmem>>, vector<1x3x512xf32>
    %213 = vector.shape_cast %212 : vector<1x3x512xf32> to vector<3x512xf32>
    %214 = vector.shape_cast %211 : vector<3x512xf32> to vector<1x3x512xf32>
    tpu.vector_store %arg16[%c0_136, %c0_137, %c0_138], %214 {strides = array<i32>} : memref<2x3x512xf32, #tpu.memory_space<vmem>>, vector<1x3x512xf32>,
    %215 = vector.extract_strided_slice %210 {offsets = [0, 512], sizes = [3, 512], strides = [1, 1]} : vector<3x1024xf32> to vector<3x512xf32>
    %c1_139 = arith.constant 1 : index
    %c0_140 = arith.constant 0 : index
    %c0_141 = arith.constant 0 : index
    %216 = vector.load %arg16[%c1_139, %c0_140, %c0_141] : memref<2x3x512xf32, #tpu.memory_space<vmem>>, vector<1x3x512xf32>
    %217 = vector.shape_cast %216 : vector<1x3x512xf32> to vector<3x512xf32>
    %218 = vector.shape_cast %215 : vector<3x512xf32> to vector<1x3x512xf32>
    tpu.vector_store %arg16[%c1_139, %c0_140, %c0_141], %218 {strides = array<i32>} : memref<2x3x512xf32, #tpu.memory_space<vmem>>, vector<1x3x512xf32>,
    return
  }
}

</mosaic_0001>

<bundles_post_ra>
// kernel: decoder_forward.1
= control target key start
LH: loop header
LB: loop body
LE: loop exit
PB: predicated region body
PF: predicated region fallthrough
CT: control target
= control target key end

     0   :  { %vm59_vm0 = vcmask 64512   ;;  %vm13076_vm1 = vcmask 261120   ;;  %v6837_v14 = vmov 32.0   ;;  %vm192_vm6 = vcmask 130048   ;;  %s6840_s29 = smov 4   ;;  %s6841_s30 = smov 2   ;;  %s13038_s1 = inlined_call_operand.vmem [shape: f32[8,32], index: 1, kind: input, shape index: {}]   ;;  %s13039_s0 = inlined_call_operand.vmem [shape: f32[8,8], index: 0, kind: input, shape index: {}]   ;;  %s13040_s3 = inlined_call_operand.vmem [shape: f32[32,32], index: 3, kind: input, shape index: {}]   ;;  %s13041_s2 = inlined_call_operand.vmem [shape: f32[1,32], index: 2, kind: input, shape index: {}]   ;;  %s13042_s4 = inlined_call_operand.vmem [shape: f32[1,32], index: 4, kind: input, shape index: {}]   ;;  %s13043_s5 = inlined_call_operand.vmem [shape: f32[1,32], index: 5, kind: input, shape index: {}]   ;;  %s13044_s6 = inlined_call_operand.vmem [shape: f32[1,32], index: 6, kind: input, shape index: {}]   ;;  %s13045_s8 = inlined_call_operand.vmem [shape: f32[1,16], index: 8, kind: input, shape index: {}]   ;;  %s13046_s7 = inlined_call_operand.vmem [shape: f32[32,16], index: 7, kind: input, shape index: {}]   ;;  %s13047_s9 = inlined_call_operand.vmem [shape: f32[32,1024], index: 9, kind: input, shape index: {}]   ;;  %s13048_s10 = inlined_call_operand.vmem [shape: f32[32,200], index: 10, kind: input, shape index: {}]   ;;  %s13049_s11 = inlined_call_operand.vmem [shape: f32[32,1], index: 11, kind: input, shape index: {}]   ;;  %s13050_s12 = inlined_call_operand.vmem [shape: f32[32,1], index: 12, kind: input, shape index: {}]   ;;  %s13051_s14 = inlined_call_operand.vmem [shape: f32[9,1024], index: 14, kind: input, shape index: {}]   ;;  %s13052_s13 = inlined_call_operand.vmem [shape: f32[72,288], index: 13, kind: input, shape index: {}]   ;;  %s13053_s15 = inlined_call_operand.vmem [shape: f32[3,1], index: 15, kind: input, shape index: {}]   ;;  %s13054_s16 = inlined_call_operand.vmem [shape: f32[2,3,512], index: 16, kind: output, shape index: {}]  }
   0x1   :  { %13436 = sst [smem:[#allocation95_spill]] %s13038_s1  ;;  %v53_v1 = vld [vmem:[%s13039_s0] sm:$0xff]  ;;  %v87_v2 = vld [vmem:[%s13040_s3 + $0x18] sm:$0xff]  ;;  %v86_v3 = vld [vmem:[%s13040_s3 + $0x10] sm:$0xff]  ;;  %6788 = vrcp.f32 %v6837_v14  ;;  %vm13077_vm7 = vcmask 1043456   ;;  %s6842_s1 = smov 20  }
   0x2   :  { %s13437_s23 = sld [smem:[#allocation95_spill]]  ;;  %v85_v4 = vld [vmem:[%s13040_s3 + $0x8] sm:$0xff]  ;;  %v84_v5 = vld [vmem:[%s13040_s3] sm:$0xff]  ;;  %v159_v26 = vld [vmem:[%s13046_s7 + $0x18] sm:$0xff]  ;;  %s6843_s17 = smov 3  }
   0x3   :  { %v6783_v6 = vld [vmem:[%s13041_s2] ss:$0 sm:$0xff]  ;;  %v158_v27 = vld [vmem:[%s13046_s7 + $0x10] sm:$0xff]  ;;  %179 = vmatpush.msra.mxu2 %v159_v26  ;;  %v157_v28 = vld [vmem:[%s13046_s7 + $0x8] sm:$0xff]  ;;  %s6844_s18 = smov 22   ;;  %s6846_s0 = smov 21  }
   0x4   :  { %v6784_v10 = vld [vmem:[%s13042_s4] ss:$0 sm:$0xff]  ;;  %v219_v47 = vld [vmem:[%s13047_s9 + $0xc8] sm:$0xff]  ;;  %v220_v48 = vld [vmem:[%s13047_s9 + $0xd0] sm:$0xff]  ;;  %s6848_s19 = smov 41   ;;  %s6849_s20 = smov 24  }
   0x5   :  { %180 = vmatpush.msra.mxu2 %v158_v27  ;;  %v156_v29 = vld [vmem:[%s13046_s7] sm:$0xff]  ;;  %v221_v49 = vld [vmem:[%s13047_s9 + $0xd8] sm:$0xff]  ;;  %v211_v51 = vld [vmem:[%s13047_s9 + $0x88] sm:$0xff]  ;;  %281 = vmatpush.msra.mxu1 %v220_v48  ;;  %s6850_s21 = smov 43   ;;  %s6851_s2 = smov 44  }
   0x6   :  { %v6785_v39 = vld [vmem:[%s13043_s5] ss:$0 sm:$0xff]  ;;  %v212_v52 = vld [vmem:[%s13047_s9 + $0x90] sm:$0xff]  ;;  %v213_v53 = vld [vmem:[%s13047_s9 + $0x98] sm:$0xff]  ;;  %s6838_s5 = smov 16   ;;  %s6853_s3 = smov 61  }
   0x7   :  { %v6789_v15 = vpop.eup %6788  ;;  %181 = vmatpush.msra.mxu2 %v157_v28  ;;  %v6786_v42 = vld [vmem:[%s13044_s6] ss:$0 sm:$0xff]  ;;  %v203_v55 = vld [vmem:[%s13047_s9 + $0x48] sm:$0xff]  ;;  %v204_v56 = vld [vmem:[%s13047_s9 + $0x50] sm:$0xff]  ;;  %282 = vmatpush.msra.mxu1 %v212_v52  ;;  %s6847_s6 = smov 40   ;;  %s6854_s4 = smov 62  }
   0x8   :  { %v54_v0 = vld [vmem:[%s13437_s23] sm:$0xff]  ;;  %v120_v16 = vmul.f32 32.0, %v6789_v15  ;;  %vm124_vm2 = vweird.f32 %v6789_v15  ;;  %v205_v57 = vld [vmem:[%s13047_s9 + $0x58] sm:$0xff]  ;;  %v195_v63 = vld [vmem:[%s13047_s9 + $0x8] sm:$0xff]  ;;  %s6855_s22 = smov 60   ;;  %s6856_s23 = smov 64  }
   0x9   :  { %78 = vmatpush.msra.mxu0 %v54_v0  ;;  %182 = vmatpush.msra.mxu2 %v156_v29  ;;  %v218_v46 = vld [vmem:[%s13047_s9 + $0xc0] sm:$0xff]  ;;  %v196_v0 = vld [vmem:[%s13047_s9 + $0x10] sm:$0xff]  ;;  %s6857_s24 = smov 80   ;;  %s6858_s25 = smov 63  }
   0xa   :  { %5482 = vmatmul.msk.f32.vlgmr.msra.gmra.mxu0 %vm59_vm0, %v53_v1  ;;  %v121_v17 = vsub.f32 1.0, %v120_v16  ;;  %241 = vmatpush.msra.mxu3 %v218_v46  ;;  %v210_v50 = vld [vmem:[%s13047_s9 + $0x80] sm:$0xff]  ;;  %v197_v1 = vld [vmem:[%s13047_s9 + $0x18] sm:$0xff]  ;;  %v200_v16 = vld [vmem:[%s13047_s9 + $0x30] sm:$0xff]  ;;  %s6859_s26 = smov 82   ;;  %s6860_s27 = smov 83  }
   0xb   :  { %108 = vmatpush.msrb.mxu0 %v87_v2  ;;  %301 = vmatpush.msrb.mxu2 %v221_v49  ;;  %v202_v54 = vld [vmem:[%s13047_s9 + $0x40] sm:$0xff]  ;;  %s6861_s28 = smov 81   ;;  %s6862_s7 = smov 84  }
   0xc   :  { %v122_v18 = vmul.f32 %v6789_v15, %v121_v17  ;;  %242 = vmatpush.msra.mxu3 %v210_v50  ;;  %283 = vmatpush.msra.mxu1 %v204_v56  ;;  %v6787_v58 = vld [vmem:[%s13045_s8] ss:$0 sm:$0xff]  ;;  %v201_v17 = vld [vmem:[%s13047_s9 + $0x38] sm:$0xff]  ;;  %s6852_s8 = smov 42  }
   0xd   :  { %109 = vmatpush.msrb.mxu0 %v86_v3  ;;  %302 = vmatpush.msrb.mxu2 %v213_v53  ;;  %v194_v62 = vld [vmem:[%s13047_s9] sm:$0xff]  ;;  %v223_v3 = vld [vmem:[%s13047_s9 + $0xe8] sm:$0xff] }
   0xe   :  { %v123_v19 = vadd.f32 %v6789_v15, %v122_v18  ;;  %243 = vmatpush.msra.mxu3 %v202_v54  ;;  %284 = vmatpush.msra.mxu1 %v196_v0  ;;  %v222_v2 = vld [vmem:[%s13047_s9 + $0xe0] sm:$0xff] }
   0xf   :  { %110 = vmatpush.msrb.mxu0 %v85_v4  ;;  %303 = vmatpush.msrb.mxu2 %v205_v57  ;;  %v224_v4 = vld [vmem:[%s13047_s9 + $0xf0] sm:$0xff]  ;;  %v198_v14 = vld [vmem:[%s13047_s9 + $0x20] sm:$0xff] }
  0x10   :  { %v125_v20 = vsel %vm124_vm2, %v6789_v15, %v123_v19  ;;  %244 = vmatpush.msra.mxu3 %v194_v62  ;;  %361 = vmatpush.msrb.mxu1 %v224_v4  ;;  %v199_v15 = vld [vmem:[%s13047_s9 + $0x28] sm:$0xff] }
  0x11   :  { %111 = vmatpush.msrb.mxu0 %v84_v5  ;;  %304 = vmatpush.msrb.mxu2 %v197_v1  ;;  %v225_v5 = vld [vmem:[%s13047_s9 + $0xf8] sm:$0xff] }
  0x12   :  { %321 = vmatpush.msrb.mxu3 %v222_v2 }
  0x13   :  { %261 = vmatpush.msra.mxu0 %v219_v47 }
  0x15   :  { %262 = vmatpush.msra.mxu0 %v211_v51 }
  0x17   :  { %263 = vmatpush.msra.mxu0 %v203_v55 }
  0x19   :  { %264 = vmatpush.msra.mxu0 %v195_v63 }
  0x87   :  { %v80_v7 = vpop.f32.mrf.mxu0 }
  0x88   :  { %v81_v8 = vadd.f32 %v6783_v6, %v80_v7  ;;  %v214_v6 = vld [vmem:[%s13047_s9 + $0xa0] sm:$0xff]  ;;  %v215_v7 = vld [vmem:[%s13047_s9 + $0xa8] sm:$0xff] }
  0x89   :  { %322 = vmatpush.msrb.mxu3 %v214_v6 }
  0x8a   :  { %v83_v9 = vmax.f32 %v81_v8, 0.0  ;;  %v216_v8 = vld [vmem:[%s13047_s9 + $0xb0] sm:$0xff] }
  0x8b   :  { %362 = vmatpush.msrb.mxu1 %v216_v8 }
  0x8c   :  { %5483 = vmatmul.msk.f32.vlgmr.msrb.gmra.mxu0 %vm13076_vm1, %v83_v9  ;;  %v217_v9 = vld [vmem:[%s13047_s9 + $0xb8] sm:$0xff] }
  0x8d   :  { %341 = vmatpush.msrb.mxu0 %v223_v3 }
  0x8f   :  { %342 = vmatpush.msrb.mxu0 %v215_v7 }
 0x109   :  { %v113_v11 = vpop.f32.mrf.mxu0 }
 0x10a   :  { %v114_v12 = vadd.f32 %v6784_v10, %v113_v11  ;;  %v206_v10 = vld [vmem:[%s13047_s9 + $0x60] sm:$0xff]  ;;  %v207_v11 = vld [vmem:[%s13047_s9 + $0x68] sm:$0xff] }
 0x10b   :  { %323 = vmatpush.msrb.mxu3 %v206_v10  ;;  %343 = vmatpush.msrb.mxu0 %v207_v11  ;;  %v422_v10 = vlaneseq }
 0x10c   :  { %v116_v13 = vsel %vm13076_vm1, %v114_v12, 0.0 }
 0x10d   :  { %117 = vadd.xlane.f32.xlu0 %v116_v13  ;;  %v209_v13 = vld [vmem:[%s13047_s9 + $0x78] sm:$0xff]  ;;  %324 = vmatpush.msrb.mxu3 %v198_v14 }
 0x10e   :  { %344 = vmatpush.msrb.mxu0 %v199_v15 }
 0x180   :  { %v118_v21 = vpop.xlane.xlu0 %117 }
 0x181   :  { %v126_v22 = vmul.f32 %v125_v20, %v118_v21 }
 0x183   :  { %v127_v23 = vsub.f32 %v114_v12, %v126_v22  ;;  %v208_v12 = vld [vmem:[%s13047_s9 + $0x70] sm:$0xff]  ;;  %s6839_s9 = smov 1  }
 0x184   :  { %363 = vmatpush.msrb.mxu1 %v208_v12  ;;  %v7376_v12 = vand.u32 127, %v422_v10 }
 0x185   :  { %v128_v24 = vmul.f32 %v127_v23, %v127_v23 }
 0x186   :  { %364 = vmatpush.msrb.mxu1 %v200_v16  ;;  %vm886_vm8 = vcmp.lt.s32.totalorder %v7376_v12, 60  ;;  %vm853_vm9 = vcmp.lt.s32.totalorder %v7376_v12, 44  ;;  %vm820_vm10 = vcmp.lt.s32.totalorder %v7376_v12, 43  ;;  %vm787_vm11 = vcmp.lt.s32.totalorder %v7376_v12, 42 }
 0x187   :  { %v129_v25 = vsel %vm13076_vm1, %v128_v24, 0.0  ;;  %vm754_vm12 = vcmp.lt.s32.totalorder %v7376_v12, 41  ;;  %vm721_vm13 = vcmp.lt.s32.totalorder %v7376_v12, 40  ;;  %vm688_vm14 = vcmp.lt.s32.totalorder %v7376_v12, 24 }
 0x188   :  { %130 = vadd.xlane.f32.xlu0 %v129_v25  ;;  %vm655_vm15 = vcmp.lt.s32.totalorder %v7376_v12, 23  ;;  %vm622_vm0 = vcmp.lt.s32.totalorder %v7376_v12, 22  ;;  %vm13197_vm2 = vcmp.lt.s32.totalorder %v7376_v12, 21 }
 0x1fb   :  { %v131_v30 = vpop.xlane.xlu0 %130 }
 0x1fc   :  { %v132_v31 = vmul.f32 %v131_v30, %v125_v20 }
 0x1fe   :  { %v133_v32 = vadd.f32 1e-05, %v132_v31 }
 0x200   :  { %6790 = vrsqrt.f32 %v133_v32  ;;  %vm140_vm4 = vweird.f32 %v133_v32 }
 0x206   :  { %v6791_v33 = vpop.eup %6790 }
 0x207   :  { %v135_v34 = vmul.f32 %v6791_v33, %v133_v32  ;;  %vm141_vm3 = vweird.f32 %v6791_v33 }
 0x208   :  { %vm142_vm5 = vmor %vm140_vm4, %vm141_vm3  ;;  %vm13170_vm3 = vcmp.lt.s32.totalorder %v7376_v12, 20  ;;  %vm13169_vm4 = vcmp.lt.s32.totalorder %v7376_v12, 4 }
 0x209   :  { %v136_v35 = vmul.f32 %v6791_v33, %v135_v34 }
 0x20b   :  { %v137_v36 = vmul.f32 0.5, %v136_v35 }
 0x20d   :  { %v138_v37 = vsub.f32 1.5, %v137_v36 }
 0x20f   :  { %v139_v38 = vmul.f32 %v6791_v33, %v138_v37 }
 0x211   :  { %v143_v40 = vsel %vm142_vm5, %v6791_v33, %v139_v38  ;;  %vm13173_vm5 = vcmp.lt.s32.totalorder %v7376_v12, 3 }
 0x212   :  { %v144_v41 = vmul.f32 %v143_v40, %v127_v23 }
 0x214   :  { %v149_v43 = vmul.f32 %v6785_v39, %v144_v41 }
 0x216   :  { %v154_v44 = vadd.f32 %v6786_v42, %v149_v43 }
 0x218   :  { %v155_v45 = vmax.f32 %v154_v44, 0.0 }
 0x21a   :  { %5484 = vmatmul.msk.f32.vlgmr.msra.gmra.mxu2 %vm13076_vm1, %v155_v45 }
 0x21b   :  { %381 = vmatpush.msra.mxu2 %v225_v5 }
 0x21d   :  { %382 = vmatpush.msra.mxu2 %v217_v9 }
 0x21f   :  { %383 = vmatpush.msra.mxu2 %v209_v13 }
 0x221   :  { %384 = vmatpush.msra.mxu2 %v201_v17 }
 0x29d   :  { %v184_v59 = vpop.f32.mrf.mxu2 }
 0x29e   :  { %v185_v60 = vadd.f32 %v6787_v58, %v184_v59 }
 0x2a0   :  { %v188_v61 = vrot.slane %v185_v60, 4 }
 0x2a2   :  { %189 = vrot.lane.b32.xlu1 %v188_v61, %s6838_s5  ;;  %s6845_s5 = smov 23  }
 0x314   :  { %v190_v18 = vpop.permute.xlu1 %189 }
 0x315   :  { %v193_v19 = vsel %vm192_vm6, %v185_v60, %v190_v18  ;;  %vm13086_vm6 = vcmp.lt.s32.totalorder %v7376_v12, 2 }
 0x316   :  { %5485 = vmatmul.msk.f32.vlgmr.msra.gmra.mxu3 %vm13076_vm1, %v193_v19  ;;  %5486 = vmatmul.msk.f32.vlgmr.msra.gmra.mxu0 %vm13076_vm1, %v193_v19 }
 0x317   :  { %5487 = vmatmul.msk.f32.vlgmr.msra.gmra.mxu1 %vm13076_vm1, %v193_v19  ;;  %5488 = vmatmul.msk.f32.vlgmr.msrb.gmra.mxu2 %vm13076_vm1, %v193_v19 }
 0x31e   :  { %5489 = vmatmul.msk.f32.vlgmr.msrb.gmra.mxu3 %vm13076_vm1, %v193_v19  ;;  %5490 = vmatmul.msk.f32.vlgmr.msrb.gmra.mxu0 %vm13076_vm1, %v193_v19 }
 0x31f   :  { %5491 = vmatmul.msk.f32.vlgmr.msrb.gmra.mxu1 %vm13076_vm1, %v193_v19  ;;  %5492 = vmatmul.msk.f32.vlgmr.msra.gmra.mxu2 %vm13076_vm1, %v193_v19  ;;  %vm13084_vm1 = vcmp.lt.s32.totalorder %v7376_v12, 1 }
 0x393   :  { %v7110_v20 = vpop.f32.mrf.mxu0 }
 0x394   :  { %v7112_v21 = vpop.f32.mrf.mxu1  ;;  %v391_v23 = vsel %vm13077_vm7, %v7110_v20, 0.0 }
 0x395   :  { %13438 = vst [vmem:[#allocation5_spill] sm:$0xff] %v7112_v21  ;;  %v392_v26 = vsel %vm13077_vm7, %v7112_v21, 0.0 }
 0x399   :  { %v7114_v22 = vpop.f32.mrf.mxu3 }
 0x39a   :  { %v390_v24 = vsel %vm13077_vm7, %v7114_v22, 0.0  ;;  %v7120_v25 = vpop.f32.mrf.mxu2 }
 0x39b   :  { %13439 = vst [vmem:[#allocation6_spill] sm:$0xff] %v7120_v25  ;;  %v393_v27 = vsel %vm13077_vm7, %v7120_v25, 0.0  ;;  %v7126_v28 = vpack.i.bf16 %v391_v23, %v390_v24  ;;  %v7146_v32 = vpop.f32.mrf.mxu0 }
 0x39c   :  { %v7128_v29 = vpack.i.bf16 %v393_v27, %v392_v26  ;;  %13442 = vst [vmem:[#allocation9_spill] sm:$0xff] %v7146_v32  ;;  %v7148_v33 = vpop.f32.mrf.mxu1  ;;  %v395_v36 = vsel %vm13077_vm7, %v7146_v32, 0.0 }
 0x39d   :  { %5661 = vrot.lane.b32.xlu1 %v7126_v28, %s6839_s9  ;;  %13443 = vst [vmem:[#allocation10_spill] sm:$0xff] %v7148_v33  ;;  %v7160_v37 = vsel %vm13077_vm7, %v7148_v33, 0.0 }
 0x39e   :  { %5696 = vrot.lane.b32.xlu0 %v7128_v29, %s6840_s29  ;;  %5666 = vrot.lane.b32.xlu2 %v7128_v29, %s6839_s9 }
 0x3a1   :  { %v7144_v31 = vpop.f32.mrf.mxu3 }
 0x3a2   :  { %v7142_v30 = vpop.f32.mrf.mxu2  ;;  %13441 = vst [vmem:[#allocation8_spill] sm:$0xff] %v7144_v31  ;;  %v394_v35 = vsel %vm13077_vm7, %v7144_v31, 0.0 }
 0x3a3   :  { %13440 = vst [vmem:[#allocation7_spill] sm:$0xff] %v7142_v30  ;;  %v7152_v34 = vsel %vm13077_vm7, %v7142_v30, 0.0  ;;  %v7172_v39 = vpack.i.bf16 %v395_v36, %v394_v35 }
 0x3a4   :  { %v7166_v38 = vpack.i.bf16 %v7152_v34, %v7160_v37 }
 0x3a5   :  { %5671 = vrot.lane.b32.xlu1 %v7126_v28, %s6841_s30 }
 0x3a6   :  { %5676 = vrot.lane.b32.xlu2 %v7128_v29, %s6841_s30  ;;  %5701 = vrot.lane.b32.xlu0 %v7126_v28, %s6842_s1 }
 0x3ad   :  { %5681 = vrot.lane.b32.xlu1 %v7126_v28, %s6843_s17 }
 0x3ae   :  { %5686 = vrot.lane.b32.xlu2 %v7128_v29, %s6843_s17  ;;  %5726 = vrot.lane.b32.xlu0 %v7128_v29, %s6844_s18 }
 0x3b5   :  { %5706 = vrot.lane.b32.xlu1 %v7128_v29, %s6842_s1 }
 0x3b6   :  { %5731 = vrot.lane.b32.xlu0 %v7126_v28, %s6845_s5  ;;  %5691 = vrot.lane.b32.xlu2 %v7126_v28, %s6840_s29 }
 0x3bd   :  { %5711 = vrot.lane.b32.xlu1 %v7126_v28, %s6846_s0 }
 0x3be   :  { %5756 = vrot.lane.b32.xlu0 %v7128_v29, %s6847_s6  ;;  %5716 = vrot.lane.b32.xlu2 %v7128_v29, %s6846_s0 }
 0x3c5   :  { %5736 = vrot.lane.b32.xlu1 %v7128_v29, %s6845_s5 }
 0x3c6   :  { %5761 = vrot.lane.b32.xlu0 %v7126_v28, %s6848_s19  ;;  %5721 = vrot.lane.b32.xlu2 %v7126_v28, %s6844_s18 }
 0x3cd   :  { %5741 = vrot.lane.b32.xlu1 %v7126_v28, %s6849_s20 }
 0x3ce   :  { %5786 = vrot.lane.b32.xlu0 %v7128_v29, %s6850_s21  ;;  %5746 = vrot.lane.b32.xlu2 %v7128_v29, %s6849_s20 }
 0x3d5   :  { %5766 = vrot.lane.b32.xlu1 %v7128_v29, %s6848_s19 }
 0x3d6   :  { %5791 = vrot.lane.b32.xlu0 %v7126_v28, %s6851_s2  ;;  %5751 = vrot.lane.b32.xlu2 %v7126_v28, %s6847_s6 }
 0x3dd   :  { %5771 = vrot.lane.b32.xlu1 %v7126_v28, %s6852_s8 }
 0x3de   :  { %5816 = vrot.lane.b32.xlu0 %v7128_v29, %s6853_s3  ;;  %5776 = vrot.lane.b32.xlu2 %v7128_v29, %s6852_s8 }
 0x3e5   :  { %5796 = vrot.lane.b32.xlu1 %v7128_v29, %s6851_s2 }
 0x3e6   :  { %5821 = vrot.lane.b32.xlu0 %v7126_v28, %s6854_s4  ;;  %5781 = vrot.lane.b32.xlu2 %v7126_v28, %s6850_s21 }
 0x3ed   :  { %5801 = vrot.lane.b32.xlu1 %v7126_v28, %s6855_s22 }
 0x3ee   :  { %5846 = vrot.lane.b32.xlu0 %v7128_v29, %s6856_s23  ;;  %5806 = vrot.lane.b32.xlu2 %v7128_v29, %s6855_s22 }
 0x3f5   :  { %5826 = vrot.lane.b32.xlu1 %v7128_v29, %s6854_s4 }
 0x3f6   :  { %5851 = vrot.lane.b32.xlu0 %v7126_v28, %s6857_s24  ;;  %5811 = vrot.lane.b32.xlu2 %v7126_v28, %s6853_s3 }
 0x3f8   :  { %v7230_v41 = vpop.permute.xlu2 %5666 }
 0x3f9   :  { %13444 = vst [vmem:[#allocation11_spill] sm:$0xff] %v7230_v41 }
 0x3fd   :  { %5831 = vrot.lane.b32.xlu1 %v7126_v28, %s6858_s25 }
 0x3fe   :  { %5876 = vrot.lane.b32.xlu0 %v7128_v29, %s6859_s26  ;;  %5836 = vrot.lane.b32.xlu2 %v7128_v29, %s6858_s25 }
 0x400   :  { %v7238_v42 = vpop.permute.xlu2 %5676 }
 0x401   :  { %13445 = vst [vmem:[#allocation12_spill] sm:$0xff] %v7238_v42 }
 0x405   :  { %5856 = vrot.lane.b32.xlu1 %v7128_v29, %s6857_s24 }
 0x406   :  { %5881 = vrot.lane.b32.xlu0 %v7126_v28, %s6860_s27  ;;  %5841 = vrot.lane.b32.xlu2 %v7126_v28, %s6856_s23 }
 0x408   :  { %v7246_v43 = vpop.permute.xlu2 %5686 }
 0x409   :  { %13446 = vst [vmem:[#allocation13_spill] sm:$0xff] %v7246_v43 }
 0x40d   :  { %5861 = vrot.lane.b32.xlu1 %v7126_v28, %s6861_s28 }
 0x40e   :  { %5901 = vrot.lane.b32.xlu0 %v7166_v38, %s6839_s9  ;;  %5866 = vrot.lane.b32.xlu2 %v7128_v29, %s6861_s28 }
 0x40f   :  { %v7254_v44 = vpop.permute.xlu1 %5661 }
 0x410   :  { %13447 = vst [vmem:[#allocation14_spill] sm:$0xff] %v7254_v44  ;;  %v7256_v45 = vpop.permute.xlu0 %5696  ;;  %v7258_v46 = vpop.permute.xlu2 %5691 }
 0x411   :  { %13448 = vst [vmem:[#allocation15_spill] sm:$0xff] %v7256_v45  ;;  %v13079_v33 = vunpack.i.h.bf16 %v7258_v46  ;;  %v13470_v31 = vunpack.i.l.bf16 %v7258_v46 }
 0x412   :  { %13449 = vst [vmem:[#allocation16_spill] sm:$0xff] %v7258_v46 }
 0x413   :  { %v530_v30 = vsel %vm13169_vm4, %v13470_v31, %v13079_v33 }
 0x415   :  { %5886 = vrot.lane.b32.xlu1 %v7128_v29, %s6860_s27 }
 0x416   :  { %5871 = vrot.lane.b32.xlu2 %v7126_v28, %s6859_s26  ;;  %5916 = vrot.lane.b32.xlu0 %v7172_v39, %s6843_s17 }
 0x417   :  { %v7266_v47 = vpop.permute.xlu1 %5671 }
 0x418   :  { %13450 = vst [vmem:[#allocation17_spill] sm:$0xff] %v7266_v47  ;;  %v7268_v48 = vpop.permute.xlu0 %5701  ;;  %v7270_v49 = vpop.permute.xlu2 %5716  ;;  %v13473_v21 = vunpack.i.h.bf16 %v7266_v47 }
 0x419   :  { %13451 = vst [vmem:[#allocation18_spill] sm:$0xff] %v7268_v48 }
 0x41a   :  { %13452 = vst [vmem:[#allocation19_spill] sm:$0xff] %v7270_v49 }
 0x41d   :  { %5891 = vrot.lane.b32.xlu1 %v7126_v28, %s6862_s7 }
 0x41e   :  { %5941 = vrot.lane.b32.xlu0 %v7166_v38, %s6842_s1  ;;  %5896 = vrot.lane.b32.xlu2 %v7172_v39, %s6839_s9 }
 0x41f   :  { %v7278_v50 = vpop.permute.xlu1 %5681 }
 0x420   :  { %13453 = vst [vmem:[#allocation20_spill] sm:$0xff] %v7278_v50  ;;  %v7280_v51 = vpop.permute.xlu0 %5726  ;;  %v7282_v52 = vpop.permute.xlu2 %5721 }
 0x421   :  { %13454 = vst [vmem:[#allocation21_spill] sm:$0xff] %v7280_v51 }
 0x422   :  { %13455 = vst [vmem:[#allocation22_spill] sm:$0xff] %v7282_v52 }
 0x425   :  { %5906 = vrot.lane.b32.xlu1 %v7172_v39, %s6841_s30 }
 0x426   :  { %5946 = vrot.lane.b32.xlu0 %v7172_v39, %s6846_s0  ;;  %5911 = vrot.lane.b32.xlu2 %v7166_v38, %s6841_s30 }
 0x427   :  { %v7290_v53 = vpop.permute.xlu1 %5706 }
 0x428   :  { %13456 = vst [vmem:[#allocation23_spill] sm:$0xff] %v7290_v53  ;;  %v7292_v54 = vpop.permute.xlu0 %5731  ;;  %v7294_v55 = vpop.permute.xlu2 %5746 }
 0x429   :  { %13457 = vst [vmem:[#allocation24_spill] sm:$0xff] %v7292_v54  ;;  %v13069_v40 = vunpack.i.h.bf16 %v7292_v54 }
 0x42a   :  { %13458 = vst [vmem:[#allocation25_spill] sm:$0xff] %v7294_v55 }
 0x42d   :  { %5921 = vrot.lane.b32.xlu1 %v7166_v38, %s6843_s17 }
 0x42e   :  { %5971 = vrot.lane.b32.xlu0 %v7166_v38, %s6845_s5  ;;  %5931 = vrot.lane.b32.xlu2 %v7166_v38, %s6840_s29 }
 0x42f   :  { %v7302_v56 = vpop.permute.xlu1 %5711 }
 0x430   :  { %13459 = vst [vmem:[#allocation26_spill] sm:$0xff] %v7302_v56  ;;  %v7304_v57 = vpop.permute.xlu0 %5756  ;;  %v7306_v58 = vpop.permute.xlu2 %5751 }
 0x435   :  { %5926 = vrot.lane.b32.xlu1 %v7172_v39, %s6840_s29 }
 0x436   :  { %5976 = vrot.lane.b32.xlu0 %v7172_v39, %s6849_s20  ;;  %5936 = vrot.lane.b32.xlu2 %v7172_v39, %s6842_s1 }
 0x437   :  { %v7314_v59 = vpop.permute.xlu1 %5736 }
 0x438   :  { %13460 = vst [vmem:[#allocation27_spill] sm:$0xff] %v7314_v59  ;;  %v7316_v60 = vpop.permute.xlu0 %5761  ;;  %v7318_v61 = vpop.permute.xlu2 %5776 }
 0x439   :  { %v13062_v35 = vunpack.i.h.bf16 %v7316_v60  ;;  %v13064_v36 = vunpack.i.l.bf16 %v7316_v60 }
 0x43d   :  { %5951 = vrot.lane.b32.xlu1 %v7166_v38, %s6846_s0 }
 0x43e   :  { %6001 = vrot.lane.b32.xlu0 %v7166_v38, %s6848_s19  ;;  %5961 = vrot.lane.b32.xlu2 %v7166_v38, %s6844_s18 }
 0x43f   :  { %v7326_v62 = vpop.permute.xlu1 %5741 }
 0x440   :  { %v7328_v63 = vpop.permute.xlu0 %5786  ;;  %v7330_v0 = vpop.permute.xlu2 %5781 }
 0x441   :  { %13461 = vst [vmem:[#allocation28_spill] sm:$0xff] %v7330_v0  ;;  %v13058_v19 = vunpack.i.h.bf16 %v7330_v0  ;;  %v13059_v23 = vunpack.i.l.bf16 %v7330_v0 }
 0x443   :  { %v827_v10 = vsel %vm820_vm10, %v13059_v23, %v13058_v19  ;;  %v13067_v23 = vunpack.i.l.bf16 %v7326_v62 }
 0x445   :  { %5956 = vrot.lane.b32.xlu1 %v7172_v39, %s6844_s18  ;;  %s6865_s18 = smov 88  }
 0x446   :  { %6006 = vrot.lane.b32.xlu0 %v7172_v39, %s6852_s8  ;;  %5966 = vrot.lane.b32.xlu2 %v7172_v39, %s6845_s5 }
 0x447   :  { %v7338_v1 = vpop.permute.xlu1 %5766 }
 0x448   :  { %v7340_v2 = vpop.permute.xlu0 %5791  ;;  %v7342_v3 = vpop.permute.xlu2 %5806 }
 0x449   :  { %v13055_v13 = vunpack.i.h.bf16 %v7340_v2  ;;  %v13057_v14 = vunpack.i.l.bf16 %v7340_v2 }
 0x44b   :  { %v860_v28 = vsel %vm853_vm9, %v13057_v14, %v13055_v13  ;;  %v13070_v13 = vunpack.i.l.bf16 %v7292_v54 }
 0x44d   :  { %5981 = vrot.lane.b32.xlu1 %v7166_v38, %s6849_s20 }
 0x44e   :  { %6031 = vrot.lane.b32.xlu0 %v7166_v38, %s6851_s2  ;;  %5991 = vrot.lane.b32.xlu2 %v7166_v38, %s6847_s6 }
 0x44f   :  { %v7350_v4 = vpop.permute.xlu1 %5771 }
 0x450   :  { %13462 = vst [vmem:[#allocation29_spill] sm:$0xff] %v7350_v4  ;;  %v7352_v5 = vpop.permute.xlu0 %5816  ;;  %v7354_v6 = vpop.permute.xlu2 %5811  ;;  %v13061_v26 = vunpack.i.h.bf16 %v7350_v4  ;;  %v13065_v27 = vunpack.i.l.bf16 %v7350_v4 }
 0x451   :  { %13463 = vst [vmem:[#allocation30_spill] sm:$0xff] %v7354_v6 }
 0x452   :  { %v794_v19 = vsel %vm787_vm11, %v13065_v27, %v13061_v26 }
 0x455   :  { %5986 = vrot.lane.b32.xlu1 %v7172_v39, %s6847_s6 }
 0x456   :  { %6036 = vrot.lane.b32.xlu0 %v7172_v39, %s6855_s22  ;;  %5996 = vrot.lane.b32.xlu2 %v7172_v39, %s6848_s19  ;;  %s6870_s19 = smov 125  }
 0x457   :  { %v7362_v7 = vpop.permute.xlu1 %5796 }
 0x458   :  { %v7364_v8 = vpop.permute.xlu0 %5821  ;;  %v7366_v9 = vpop.permute.xlu2 %5836 }
 0x459   :  { %v13103_v53 = vunpack.i.l.bf16 %v7364_v8 }
 0x45d   :  { %6011 = vrot.lane.b32.xlu1 %v7166_v38, %s6852_s8 }
 0x45e   :  { %6061 = vrot.lane.b32.xlu0 %v7166_v38, %s6854_s4  ;;  %6021 = vrot.lane.b32.xlu2 %v7166_v38, %s6850_s21 }
 0x45f   :  { %v7374_v11 = vpop.permute.xlu1 %5801 }
 0x460   :  { %v7380_v15 = vpop.permute.xlu0 %5846  ;;  %v7382_v16 = vpop.permute.xlu2 %5841  ;;  %v13056_v17 = vunpack.i.h.bf16 %v7374_v11  ;;  %v13060_v18 = vunpack.i.l.bf16 %v7374_v11 }
 0x462   :  { %v893_v24 = vsel %vm886_vm8, %v13060_v18, %v13056_v17  ;;  %v761_v18 = vsel %vm754_vm12, %v13064_v36, %v13062_v35  ;;  %v13465_v36 = vunpack.i.l.bf16 %v7282_v52 }
 0x463   :  { %1479 = vmatpush.msra.mxu1 %v893_v24 }
 0x465   :  { %1480 = vmatpush.msra.mxu1 %v860_v28  ;;  %6016 = vrot.lane.b32.xlu1 %v7172_v39, %s6850_s21  ;;  %v13063_v28 = vunpack.i.h.bf16 %v7306_v58 }
 0x466   :  { %6066 = vrot.lane.b32.xlu0 %v7172_v39, %s6858_s25  ;;  %6026 = vrot.lane.b32.xlu2 %v7172_v39, %s6851_s2 }
 0x467   :  { %v7419_v24 = vpop.permute.xlu1 %5826  ;;  %1481 = vmatpush.msra.mxu1 %v827_v10  ;;  %v13066_v10 = vunpack.i.h.bf16 %v7326_v62 }
 0x468   :  { %v7425_v17 = vpop.permute.xlu0 %5851  ;;  %v7427_v14 = vpop.permute.xlu2 %5866 }
 0x469   :  { %1482 = vmatpush.msra.mxu1 %v794_v19  ;;  %v13464_v19 = vunpack.i.l.bf16 %v7306_v58 }
 0x46b   :  { %1483 = vmatpush.msra.mxu1 %v761_v18  ;;  %v728_v26 = vsel %vm721_vm13, %v13464_v19, %v13063_v28  ;;  %v13071_v18 = vunpack.i.h.bf16 %v7282_v52 }
 0x46d   :  { %1484 = vmatpush.msra.mxu1 %v728_v26  ;;  %6041 = vrot.lane.b32.xlu1 %v7166_v38, %s6855_s22  ;;  %v695_v26 = vsel %vm688_vm14, %v13067_v23, %v13066_v10  ;;  %v662_v10 = vsel %vm655_vm15, %v13070_v13, %v13069_v40  ;;  %v629_v28 = vsel %vm622_vm0, %v13465_v36, %v13071_v18  ;;  %v13466_v40 = vunpack.i.h.bf16 %v7302_v56 }
 0x46e   :  { %6091 = vrot.lane.b32.xlu0 %v7166_v38, %s6857_s24  ;;  %6051 = vrot.lane.b32.xlu2 %v7166_v38, %s6853_s3  ;;  %v13467_v13 = vunpack.i.l.bf16 %v7302_v56 }
 0x46f   :  { %v7468_v19 = vpop.permute.xlu1 %5831  ;;  %1485 = vmatpush.msra.mxu1 %v695_v26  ;;  %v13074_v26 = vunpack.i.h.bf16 %v7268_v48 }
 0x470   :  { %v7473_v27 = vpop.permute.xlu0 %5876  ;;  %v7475_v35 = vpop.permute.xlu2 %5871  ;;  %v596_v23 = vsel %vm13197_vm2, %v13467_v13, %v13466_v40  ;;  %v13468_v40 = vunpack.i.l.bf16 %v7268_v48 }
 0x471   :  { %1486 = vmatpush.msra.mxu1 %v662_v10 }
 0x472   :  { %v563_v13 = vsel %vm13170_vm3, %v13468_v40, %v13074_v26  ;;  %v13078_v40 = vunpack.i.h.bf16 %v7254_v44  ;;  %v13471_v26 = vunpack.i.h.bf16 %v7278_v50 }
 0x473   :  { %1487 = vmatpush.msra.mxu1 %v629_v28  ;;  %v13472_v28 = vunpack.i.l.bf16 %v7278_v50 }
 0x475   :  { %1488 = vmatpush.msra.mxu1 %v596_v23  ;;  %6046 = vrot.lane.b32.xlu1 %v7172_v39, %s6853_s3  ;;  %v497_v18 = vsel %vm13173_vm5, %v13472_v28, %v13471_v26 }
 0x476   :  { %6096 = vrot.lane.b32.xlu0 %v7172_v39, %s6861_s28  ;;  %6056 = vrot.lane.b32.xlu2 %v7172_v39, %s6854_s4  ;;  %s6868_s4 = smov 127  }
 0x477   :  { %v7516_v23 = vpop.permute.xlu1 %5856  ;;  %1489 = vmatpush.msra.mxu1 %v563_v13  ;;  %v13080_v13 = vunpack.i.l.bf16 %v7254_v44 }
 0x478   :  { %v7520_v36 = vpop.permute.xlu0 %5881  ;;  %v7522_v10 = vpop.permute.xlu2 %5896 }
 0x479   :  { %13469 = vst [vmem:[#allocation31_spill] sm:$0xff] %v7522_v10  ;;  %1490 = vmatpush.msra.mxu1 %v530_v30  ;;  %v13474_v30 = vunpack.i.l.bf16 %v7266_v47  ;;  %v13481_v41 = vunpack.i.h.bf16 %v7520_v36 }
 0x47b   :  { %1491 = vmatpush.msra.mxu1 %v497_v18  ;;  %v464_v31 = vsel %vm13086_vm6, %v13474_v30, %v13473_v21  ;;  %v431_v18 = vsel %vm13084_vm1, %v13080_v13, %v13078_v40  ;;  %vm13091_vm1 = vcmp.lt.s32.totalorder %v7376_v12, 83  ;;  %vm13094_vm6 = vcmp.lt.s32.totalorder %v7376_v12, 82 }
 0x47d   :  { %1492 = vmatpush.msra.mxu1 %v464_v31  ;;  %6071 = vrot.lane.b32.xlu1 %v7166_v38, %s6858_s25 }
 0x47e   :  { %6126 = vrot.lane.b32.xlu0 %v7166_v38, %s6860_s27  ;;  %6081 = vrot.lane.b32.xlu2 %v7166_v38, %s6856_s23 }
 0x47f   :  { %v7559_v21 = vpop.permute.xlu1 %5861  ;;  %1493 = vmatpush.msra.mxu1 %v431_v18 }
 0x480   :  { %v7561_v26 = vpop.permute.xlu0 %5901  ;;  %v7563_v28 = vpop.permute.xlu2 %5911  ;;  %v13489_v45 = vunpack.i.l.bf16 %v7559_v21 }
 0x481   :  { %13475 = vst [vmem:[#allocation32_spill] sm:$0xff] %v7561_v26  ;;  %5618 = vmatpush.msk.msra.mxu1 %vm13077_vm7, %v7110_v20  ;;  %vm13092_vm7 = vcmp.lt.s32.totalorder %v7376_v12, 84 }
 0x482   :  { %13476 = vst [vmem:[#allocation33_spill] sm:$0xff] %v7563_v28 }
 0x485   :  { %6076 = vrot.lane.b32.xlu1 %v7172_v39, %s6856_s23 }
 0x486   :  { %6131 = vrot.lane.b32.xlu0 %v7172_v39, %s6862_s7  ;;  %6086 = vrot.lane.b32.xlu2 %v7172_v39, %s6857_s24 }
 0x487   :  { %v7573_v30 = vpop.permute.xlu1 %5886 }
 0x488   :  { %v7575_v31 = vpop.permute.xlu0 %5916  ;;  %v7577_v18 = vpop.permute.xlu2 %5931 }
 0x489   :  { %13477 = vst [vmem:[#allocation34_spill] sm:$0xff] %v7575_v31 }
 0x48a   :  { %13478 = vst [vmem:[#allocation35_spill] sm:$0xff] %v7577_v18 }
 0x48d   :  { %6101 = vrot.lane.b32.xlu1 %v7166_v38, %s6861_s28 }
 0x48e   :  { %6111 = vrot.lane.b32.xlu2 %v7166_v38, %s6859_s26  ;;  %v13482_v38 = vunpack.i.l.bf16 %v7520_v36 }
 0x48f   :  { %v7583_v20 = vpop.permute.xlu1 %5891 }
 0x490   :  { %v13090_v13 = vunpack.i.h.bf16 %v7583_v20  ;;  %v13089_v32 = vunpack.i.l.bf16 %v7583_v20  ;;  %v7590_v10 = vpop.permute.xlu0 %5941  ;;  %v7592_v31 = vpop.permute.xlu2 %5936  ;;  %v1157_v25 = vsel %vm13091_vm1, %v13482_v38, %v13481_v41  ;;  %vm13099_vm1 = vcmp.lt.s32.totalorder %v7376_v12, 81 }
 0x491   :  { %13479 = vst [vmem:[#allocation36_spill] sm:$0xff] %v7590_v10  ;;  %v13490_v38 = vunpack.i.h.bf16 %v7425_v17 }
 0x492   :  { %13480 = vst [vmem:[#allocation37_spill] sm:$0xff] %v7592_v31  ;;  %v1190_v33 = vsel %vm13092_vm7, %v13089_v32, %v13090_v13  ;;  %v13483_v13 = vunpack.i.h.bf16 %v7475_v35  ;;  %v13484_v31 = vunpack.i.l.bf16 %v7475_v35  ;;  %vm13098_vm7 = vcmp.lt.s32.totalorder %v7376_v12, 80 }
 0x493   :  { %1515 = vmatpush.msrb.mxu2 %v1190_v33  ;;  %v13488_v32 = vunpack.i.h.bf16 %v7559_v21 }
 0x494   :  { %v1124_v40 = vsel %vm13094_vm6, %v13484_v31, %v13483_v13  ;;  %vm13100_vm6 = vcmp.lt.s32.totalorder %v7376_v12, 64  ;;  %v13101_v13 = vunpack.i.h.bf16 %v7468_v19  ;;  %v13494_v31 = vpack.i.bf16 %v7160_v37, %v7152_v34 }
 0x495   :  { %1516 = vmatpush.msrb.mxu2 %v1157_v25  ;;  %6106 = vrot.lane.b32.xlu1 %v7172_v39, %s6859_s26  ;;  %v13491_v25 = vunpack.i.l.bf16 %v7425_v17 }
 0x496   :  { %6116 = vrot.lane.b32.xlu2 %v7172_v39, %s6860_s27 }
 0x497   :  { %1517 = vmatpush.msrb.mxu2 %v1124_v40  ;;  %v7624_v41 = vpop.permute.xlu1 %5906  ;;  %v1091_v40 = vsel %vm13099_vm1, %v13489_v45, %v13488_v32  ;;  %v13492_v32 = vunpack.i.h.bf16 %v7382_v16  ;;  %v13493_v45 = vunpack.i.l.bf16 %v7382_v16  ;;  %vm952_vm1 = vcmp.lt.s32.totalorder %v7376_v12, 62 }
 0x498   :  { %13485 = vst [vmem:[#allocation38_spill] sm:$0xff] %v7624_v41  ;;  %v7630_v33 = vpop.permute.xlu0 %5946  ;;  %v7632_v39 = vpop.permute.xlu2 %5961  ;;  %v1058_v41 = vsel %vm13098_vm7, %v13491_v25, %v13490_v38  ;;  %vm985_vm7 = vcmp.lt.s32.totalorder %v7376_v12, 63  ;;  %v13106_v25 = vunpack.i.l.bf16 %v7354_v6  ;;  %v13495_v38 = vunpack.i.l.bf16 %v7468_v19 }
 0x499   :  { %13486 = vst [vmem:[#allocation39_spill] sm:$0xff] %v7630_v33  ;;  %1518 = vmatpush.msrb.mxu2 %v1091_v40  ;;  %v13104_v33 = vunpack.i.h.bf16 %v7364_v8  ;;  %v1025_v40 = vsel %vm13100_vm6, %v13493_v45, %v13492_v32  ;;  %vm13120_vm6 = vcmp.lt.s32.totalorder %v7376_v12, 61 }
 0x49a   :  { %13487 = vst [vmem:[#allocation40_spill] sm:$0xff] %v7632_v39  ;;  %v992_v32 = vsel %vm985_vm7, %v13495_v38, %v13101_v13 }
 0x49b   :  { %1519 = vmatpush.msrb.mxu2 %v1058_v41  ;;  %v13107_v41 = vunpack.i.h.bf16 %v7354_v6 }
 0x49d   :  { %1520 = vmatpush.msrb.mxu2 %v1025_v40  ;;  %6136 = vrot.lane.b32.xlu1 %v13494_v31, %s6862_s7  ;;  %v926_v45 = vsel %vm13120_vm6, %v13106_v25, %v13107_v41  ;;  %vm1408_vm6 = vcmask 588800  }
 0x49e   :  { %6121 = vrot.lane.b32.xlu2 %v7128_v29, %s6862_s7  ;;  %v959_v29 = vsel %vm952_vm1, %v13103_v53, %v13104_v33  ;;  %s6864_s7 = smov 68  }
 0x49f   :  { %1521 = vmatpush.msrb.mxu2 %v992_v32  ;;  %v7673_v34 = vpop.permute.xlu1 %5921 }
 0x4a0   :  { %13496 = vst [vmem:[#allocation41_spill] sm:$0xff] %v7673_v34  ;;  %v7676_v37 = vpop.permute.xlu0 %5971  ;;  %v7678_v31 = vpop.permute.xlu2 %5966 }
 0x4a1   :  { %13497 = vst [vmem:[#allocation42_spill] sm:$0xff] %v7676_v37  ;;  %1522 = vmatpush.msrb.mxu2 %v959_v29 }
 0x4a2   :  { %13498 = vst [vmem:[#allocation43_spill] sm:$0xff] %v7678_v31 }
 0x4a3   :  { %1523 = vmatpush.msrb.mxu2 %v926_v45 }
 0x4a7   :  { %v7692_v40 = vpop.permute.xlu1 %5926 }
 0x4a8   :  { %13499 = vst [vmem:[#allocation44_spill] sm:$0xff] %v7692_v40  ;;  %v7694_v38 = vpop.permute.xlu0 %5976  ;;  %v7696_v32 = vpop.permute.xlu2 %5991 }
 0x4a9   :  { %13500 = vst [vmem:[#allocation45_spill] sm:$0xff] %v7694_v38 }
 0x4aa   :  { %13501 = vst [vmem:[#allocation46_spill] sm:$0xff] %v7696_v32 }
 0x4af   :  { %v7698_v13 = vpop.permute.xlu1 %5951 }
 0x4b0   :  { %13502 = vst [vmem:[#allocation47_spill] sm:$0xff] %v7698_v13  ;;  %v7700_v31 = vpop.permute.xlu0 %6001  ;;  %v7702_v53 = vpop.permute.xlu2 %5996 }
 0x4b1   :  { %13503 = vst [vmem:[#allocation48_spill] sm:$0xff] %v7700_v31 }
 0x4b2   :  { %13504 = vst [vmem:[#allocation49_spill] sm:$0xff] %v7702_v53 }
 0x4b7   :  { %v7704_v29 = vpop.permute.xlu1 %5956 }
 0x4b8   :  { %13505 = vst [vmem:[#allocation50_spill] sm:$0xff] %v7704_v29  ;;  %v7706_v33 = vpop.permute.xlu0 %6006  ;;  %v7708_v49 = vpop.permute.xlu2 %6021 }
 0x4b9   :  { %13506 = vst [vmem:[#allocation51_spill] sm:$0xff] %v7706_v33 }
 0x4ba   :  { %13507 = vst [vmem:[#allocation52_spill] sm:$0xff] %v7708_v49 }
 0x4bf   :  { %v7710_v25 = vpop.permute.xlu1 %5981 }
 0x4c0   :  { %13508 = vst [vmem:[#allocation53_spill] sm:$0xff] %v7710_v25  ;;  %v7712_v45 = vpop.permute.xlu0 %6031  ;;  %v7714_v41 = vpop.permute.xlu2 %6026 }
 0x4c1   :  { %13509 = vst [vmem:[#allocation54_spill] sm:$0xff] %v7712_v45 }
 0x4c2   :  { %13510 = vst [vmem:[#allocation55_spill] sm:$0xff] %v7714_v41  ;;  %v13134_v41 = vunpack.i.h.bf16 %v7712_v45  ;;  %v13154_v45 = vunpack.i.h.bf16 %v7676_v37  ;;  %v13166_v37 = vunpack.i.h.bf16 %v7577_v18  ;;  %v13547_v18 = vunpack.i.h.bf16 %v7673_v34 }
 0x4c7   :  { %v7716_v40 = vpop.permute.xlu1 %5986 }
 0x4c8   :  { %13511 = vst [vmem:[#allocation56_spill] sm:$0xff] %v7716_v40  ;;  %v7718_v38 = vpop.permute.xlu2 %6051  ;;  %v7720_v43 = vpop.permute.xlu0 %6036  ;;  %v7737_v40 = vld [vmem:[%s13048_s10] sm:$0xff] }
 0x4c9   :  { %13512 = vst [vmem:[#allocation57_spill] sm:$0xff] %v7718_v38  ;;  %v7742_v38 = vld [vmem:[%s13048_s10 + $0x8] sm:$0xff]  ;;  %1495 = vmatmul.f32.vlgmr.msra.gmra.mxu1 %v7737_v40 }
 0x4ca   :  { %13513 = vst [vmem:[#allocation58_spill] sm:$0xff] %v7720_v43  ;;  %5497 = vmatmul.msk.f32.vlgmr.msrb.gmra.mxu2 %vm1408_vm6, %v7742_v38 }
 0x4cb   :  { %13520 = vst [vmem:[#allocation65_spill] sm:$0xff] %v7737_v40  ;;  %v13527_v40 = vunpack.i.h.bf16 %v7708_v49 }
 0x4cc   :  { %13521 = vst [vmem:[#allocation66_spill] sm:$0xff] %v7742_v38  ;;  %v13524_v38 = vunpack.i.l.bf16 %v7340_v2 }
 0x4ce   :  { %v861_v55 = vsel %vm853_vm9, %v13134_v41, %v13524_v38 }
 0x4cf   :  { %v7722_v42 = vpop.permute.xlu1 %6011 }
 0x4d0   :  { %13514 = vst [vmem:[#allocation59_spill] sm:$0xff] %v7722_v42  ;;  %v7724_v53 = vpop.permute.xlu2 %6056  ;;  %v7726_v29 = vpop.permute.xlu0 %6061  ;;  %v13529_v49 = vunpack.i.h.bf16 %v7722_v42  ;;  %v13533_v42 = vunpack.i.h.bf16 %v7696_v32 }
 0x4d1   :  { %13515 = vst [vmem:[#allocation60_spill] sm:$0xff] %v7724_v53  ;;  %v13523_v53 = vunpack.i.l.bf16 %v7374_v11 }
 0x4d2   :  { %13516 = vst [vmem:[#allocation61_spill] sm:$0xff] %v7726_v29 }
 0x4d7   :  { %v7728_v33 = vpop.permute.xlu1 %6016 }
 0x4d8   :  { %13517 = vst [vmem:[#allocation62_spill] sm:$0xff] %v7728_v33  ;;  %v7730_v59 = vpop.permute.xlu2 %6081  ;;  %v7732_v6 = vpop.permute.xlu0 %6066 }
 0x4d9   :  { %13518 = vst [vmem:[#allocation63_spill] sm:$0xff] %v7730_v59  ;;  %v7770_v59 = vld [vmem:[%s13048_s10 + $0x10] sm:$0xff] }
 0x4da   :  { %13519 = vst [vmem:[#allocation64_spill] sm:$0xff] %v7732_v6  ;;  %1498 = vmatmul.f32.gmra.mxu1 %v7770_v59 }
 0x4df   :  { %v7747_v33 = vpop.permute.xlu1 %6041 }
 0x4e0   :  { %13522 = vst [vmem:[#allocation67_spill] sm:$0xff] %v7747_v33  ;;  %v13133_v29 = vunpack.i.h.bf16 %v7747_v33  ;;  %v7751_v43 = vpop.permute.xlu2 %6086  ;;  %v13528_v33 = vunpack.i.l.bf16 %v7350_v4  ;;  %v13532_v4 = vunpack.i.l.bf16 %v7306_v58 }
 0x4e2   :  { %v894_v6 = vsel %vm886_vm8, %v13133_v29, %v13523_v53  ;;  %v7775_v53 = vld [vmem:[%s13048_s10 + $0x18] sm:$0xff]  ;;  %v13526_v29 = vunpack.i.l.bf16 %v7330_v0  ;;  %v13531_v0 = vunpack.i.h.bf16 %v7700_v31 }
 0x4e3   :  { %1421 = vmatpush.msra.mxu3 %v894_v6  ;;  %13525 = vst [vmem:[#allocation68_spill] sm:$0xff] %v7775_v53  ;;  %5498 = vmatmul.msk.f32.gmra.mxu2 %vm1408_vm6, %v7775_v53  ;;  %v13530_v53 = vunpack.i.l.bf16 %v7316_v60 }
 0x4e4   :  { %v828_v38 = vsel %vm820_vm10, %v13527_v40, %v13526_v29  ;;  %v795_v40 = vsel %vm787_vm11, %v13529_v49, %v13528_v33  ;;  %v13147_v29 = vunpack.i.h.bf16 %v7710_v25  ;;  %v729_v49 = vsel %vm721_vm13, %v13533_v42, %v13532_v4 }
 0x4e5   :  { %1422 = vmatpush.msra.mxu3 %v861_v55  ;;  %v7787_v55 = vpop.permute.xlu0 %6091  ;;  %v13537_v25 = vunpack.i.l.bf16 %v7282_v52  ;;  %v13538_v4 = vunpack.i.h.bf16 %v7632_v39  ;;  %v13542_v39 = vunpack.i.h.bf16 %v7590_v10  ;;  %v13548_v10 = vunpack.i.h.bf16 %v7583_v20  ;;  %v13603_v52 = vld [vmem:[#allocation13_spill] sm:$0xff] }
 0x4e7   :  { %v7789_v41 = vpop.permute.xlu1 %6046  ;;  %1423 = vmatpush.msra.mxu3 %v828_v38  ;;  %v762_v38 = vsel %vm754_vm12, %v13531_v0, %v13530_v53  ;;  %v7824_v53 = vld [vmem:[%s13048_s10 + $0x20] sm:$0xff]  ;;  %v630_v32 = vsel %vm622_vm0, %v13538_v4, %v13537_v25  ;;  %v7876_v4 = vld [vmem:[%s13048_s10 + $0x38] sm:$0xff] }
 0x4e8   :  { %v7792_v6 = vpop.permute.xlu2 %6111  ;;  %1501 = vmatmul.f32.gmra.mxu1 %v7824_v53  ;;  %13544 = vst [vmem:[#allocation71_spill] sm:$0xff] %v7876_v4 }
 0x4e9   :  { %1424 = vmatpush.msra.mxu3 %v795_v40  ;;  %v13534_v40 = vunpack.i.l.bf16 %v7326_v62 }
 0x4eb   :  { %1425 = vmatpush.msra.mxu3 %v762_v38  ;;  %v696_v0 = vsel %vm688_vm14, %v13147_v29, %v13534_v40  ;;  %v7829_v38 = vld [vmem:[%s13048_s10 + $0x28] sm:$0xff]  ;;  %v13536_v40 = vunpack.i.l.bf16 %v7292_v54 }
 0x4ec   :  { %13535 = vst [vmem:[#allocation69_spill] sm:$0xff] %v7829_v38  ;;  %5499 = vmatmul.msk.f32.gmra.mxu2 %vm1408_vm6, %v7829_v38  ;;  %v13611_v54 = vld [vmem:[#allocation66_spill] sm:$0xff] }
 0x4ed   :  { %1426 = vmatpush.msra.mxu3 %v729_v49  ;;  %v663_v29 = vsel %vm655_vm15, %v13154_v45, %v13536_v40  ;;  %v7845_v33 = vpop.permute.xlu0 %6096  ;;  %v13539_v40 = vunpack.i.l.bf16 %v7302_v56  ;;  %v13540_v45 = vunpack.i.h.bf16 %v7698_v13 }
 0x4ef   :  { %v7831_v42 = vpop.permute.xlu1 %6071  ;;  %1427 = vmatpush.msra.mxu3 %v696_v0  ;;  %v597_v31 = vsel %vm13197_vm2, %v13540_v45, %v13539_v40  ;;  %v13541_v0 = vunpack.i.l.bf16 %v7268_v48 }
 0x4f0   :  { %v7835_v49 = vpop.permute.xlu2 %6116 }
 0x4f1   :  { %1428 = vmatpush.msra.mxu3 %v663_v29  ;;  %v564_v25 = vsel %vm13170_vm3, %v13542_v39, %v13541_v0  ;;  %v13545_v39 = vunpack.i.l.bf16 %v7258_v46  ;;  %v13546_v46 = vunpack.i.l.bf16 %v7278_v50  ;;  %v5878_v29 = vunpack.i.l.bf16 %v7473_v27 }
 0x4f2   :  { %v5868_v50 = vunpack.i.l.bf16 %v7427_v14 }
 0x4f3   :  { %1429 = vmatpush.msra.mxu3 %v630_v32  ;;  %v7871_v32 = vld [vmem:[%s13048_s10 + $0x30] sm:$0xff]  ;;  %v531_v0 = vsel %vm13169_vm4, %v13166_v37, %v13545_v39  ;;  %v498_v39 = vsel %vm13173_vm5, %v13547_v18, %v13546_v46  ;;  %vm13549_vm4 = vcmp.lt.s32.totalorder %v7376_v12, 84  ;;  %v13552_v46 = vunpack.i.l.bf16 %v7266_v47 }
 0x4f4   :  { %13543 = vst [vmem:[#allocation70_spill] sm:$0xff] %v7871_v32  ;;  %1504 = vmatmul.f32.gmra.mxu1 %v7871_v32  ;;  %5500 = vmatmul.msk.f32.gmra.mxu2 %vm1408_vm6, %v7876_v4  ;;  %vm13551_vm3 = vmmov %vm13549_vm4  ;;  %v13553_v18 = vunpack.i.h.bf16 %v7563_v28  ;;  %vm13554_vm5 = vcmp.lt.s32.totalorder %v7376_v12, 2  ;;  %v13595_v47 = vunpack.i.h.bf16 %v7352_v5 }
 0x4f5   :  { %1430 = vmatpush.msra.mxu3 %v597_v31  ;;  %v7905_v4 = vpop.permute.xlu0 %6126 }
 0x4f6   :  { %v465_v37 = vsel %vm13554_vm5, %v13553_v18, %v13552_v46  ;;  %v13559_v46 = vunpack.i.l.bf16 %v7254_v44  ;;  %vm13561_vm5 = vcmp.lt.s32.totalorder %v7376_v12, 1  ;;  %v13598_v44 = vunpack.i.l.bf16 %v7304_v57 }
 0x4f7   :  { %v7878_v31 = vpop.permute.xlu1 %6076  ;;  %1431 = vmatpush.msra.mxu3 %v564_v25  ;;  %v5888_v25 = vunpack.i.l.bf16 %v7573_v30 }
 0x4f8   :  { %v7882_v40 = vpop.permute.xlu2 %6121 }
 0x4f9   :  { %v6123_v45 = vunpack.i.l.bf16 %v7882_v40  ;;  %1432 = vmatpush.msra.mxu3 %v531_v0  ;;  %v13550_v13 = vunpack.i.h.bf16 %v7882_v40 }
 0x4fb   :  { %1433 = vmatpush.msra.mxu3 %v498_v39  ;;  %v1189_v0 = vsel %vm13549_vm4, %v13548_v10, %v6123_v45  ;;  %v1188_v34 = vsel %vm13551_vm3, %v6123_v45, %v13550_v13  ;;  %v13555_v10 = vunpack.i.h.bf16 %v7520_v36  ;;  %vm13556_vm4 = vcmp.lt.s32.totalorder %v7376_v12, 83 }
 0x4fc   :  { %1573 = vmatpush.msra.mxu2 %v1189_v0  ;;  %1631 = vmatpush.msrb.mxu1 %v1188_v34  ;;  %v13557_v13 = vunpack.i.h.bf16 %v7573_v30  ;;  %vm13558_vm3 = vmmov %vm13556_vm4  ;;  %v13178_v45 = vunpack.i.h.bf16 %v7342_v3  ;;  %v5858_v39 = vunpack.i.l.bf16 %v7516_v23  ;;  %v13179_v0 = vunpack.i.h.bf16 %v7362_v7 }
 0x4fd   :  { %1434 = vmatpush.msra.mxu3 %v465_v37  ;;  %v1156_v48 = vsel %vm13556_vm4, %v13555_v10, %v5888_v25  ;;  %v13560_v37 = vunpack.i.h.bf16 %v7561_v26  ;;  %vm13563_vm4 = vcmp.lt.s32.totalorder %v7376_v12, 82  ;;  %v5818_v26 = vunpack.i.l.bf16 %v7352_v5 }
 0x4fe   :  { %v1155_v34 = vsel %vm13558_vm3, %v5888_v25, %v13557_v13  ;;  %1574 = vmatpush.msra.mxu2 %v1156_v48  ;;  %v13562_v25 = vunpack.i.h.bf16 %v7475_v35  ;;  %v13564_v13 = vunpack.i.h.bf16 %v7473_v27  ;;  %vm13565_vm3 = vmmov %vm13563_vm4 }
 0x4ff   :  { %1632 = vmatpush.msrb.mxu1 %v1155_v34  ;;  %v432_v18 = vsel %vm13561_vm5, %v13560_v37, %v13559_v46  ;;  %v7941_v28 = vpop.permute.xlu1 %6101  ;;  %vm13566_vm5 = vcmask 1043456   ;;  %v5838_v46 = vunpack.i.l.bf16 %v7366_v9 }
 0x500   :  { %1435 = vmatpush.msra.mxu3 %v432_v18  ;;  %v1123_v48 = vsel %vm13563_vm4, %v13562_v25, %v5878_v29  ;;  %v1122_v34 = vsel %vm13565_vm3, %v5878_v29, %v13564_v13  ;;  %v5848_v18 = vunpack.i.l.bf16 %v7380_v15  ;;  %v13567_v25 = vunpack.i.h.bf16 %v7559_v21 }
 0x501   :  { %1575 = vmatpush.msra.mxu2 %v1123_v48  ;;  %1633 = vmatpush.msrb.mxu1 %v1122_v34  ;;  %vm13568_vm4 = vcmp.lt.s32.totalorder %v7376_v12, 81  ;;  %v13569_v29 = vunpack.i.h.bf16 %v7427_v14 }
 0x502   :  { %5617 = vmatpush.msk.msra.mxu3 %vm13566_vm5, %v7114_v22  ;;  %v1090_v10 = vsel %vm13568_vm4, %v13567_v25, %v5868_v50  ;;  %vm13570_vm3 = vmmov %vm13568_vm4  ;;  %v13571_v22 = vunpack.i.l.bf16 %v7342_v3  ;;  %vm13573_vm5 = vcmp.lt.s32.totalorder %v7376_v12, 80  ;;  %v5828_v25 = vunpack.i.l.bf16 %v7419_v24 }
 0x503   :  { %v1089_v13 = vsel %vm13570_vm3, %v5868_v50, %v13569_v29  ;;  %1576 = vmatpush.msra.mxu2 %v1090_v10  ;;  %v13572_v50 = vunpack.i.h.bf16 %v7425_v17  ;;  %v13574_v10 = vunpack.i.h.bf16 %v7516_v23  ;;  %vm13575_vm4 = vmmov %vm13573_vm5  ;;  %vm13578_vm3 = vcmp.lt.s32.totalorder %v7376_v12, 64 }
 0x504   :  { %1634 = vmatpush.msrb.mxu1 %v1089_v13  ;;  %v891_v37 = vsel %vm886_vm8, %v13571_v22, %v13178_v45  ;;  %v13582_v45 = vunpack.i.l.bf16 %v7328_v63 }
 0x505   :  { %1595 = vmatpush.msrb.mxu3 %v891_v37  ;;  %v1057_v29 = vsel %vm13573_vm5, %v13572_v50, %v5858_v39  ;;  %v1056_v13 = vsel %vm13575_vm4, %v5858_v39, %v13574_v10  ;;  %v13576_v37 = vunpack.i.l.bf16 %v7362_v7  ;;  %v7994_v39 = vpop.permute.xlu0 %6131  ;;  %v13577_v10 = vunpack.i.h.bf16 %v7382_v16  ;;  %vm13580_vm5 = vmmov %vm13578_vm3 }
 0x506   :  { %1577 = vmatpush.msra.mxu2 %v1057_v29  ;;  %1635 = vmatpush.msrb.mxu1 %v1056_v13  ;;  %v13579_v13 = vunpack.i.h.bf16 %v7380_v15  ;;  %vm13594_vm4 = vcmp.lt.s32.totalorder %v7376_v12, 61 }
 0x507   :  { %v858_v50 = vsel %vm853_vm9, %v13576_v37, %v13179_v0  ;;  %v1024_v29 = vsel %vm13578_vm3, %v13577_v10, %v5848_v18  ;;  %v13589_v0 = vld [vmem:[#allocation25_spill] sm:$0xff]  ;;  %v13592_v37 = vld [vmem:[#allocation30_spill] sm:$0xff]  ;;  %vm13596_vm3 = vmmov %vm13594_vm4 }
 0x508   :  { %1596 = vmatpush.msrb.mxu3 %v858_v50  ;;  %v1023_v34 = vsel %vm13580_vm5, %v5848_v18, %v13579_v13  ;;  %1578 = vmatpush.msra.mxu2 %v1024_v29  ;;  %v13581_v50 = vunpack.i.h.bf16 %v7328_v63  ;;  %v8015_v18 = vpop.permute.xlu1 %6106  ;;  %v13583_v13 = vunpack.i.h.bf16 %v7468_v19  ;;  %vm13601_vm5 = vcmp.lt.s32.totalorder %v7376_v12, 84 }
 0x509   :  { %1636 = vmatpush.msrb.mxu1 %v1023_v34  ;;  %v13584_v34 = vunpack.i.h.bf16 %v7366_v9  ;;  %v6108_v56 = vunpack.i.l.bf16 %v8015_v18  ;;  %v13608_v32 = vunpack.i.l.bf16 %v13589_v0 }
 0x50a   :  { %v825_v10 = vsel %vm820_vm10, %v13582_v45, %v13581_v50  ;;  %v991_v29 = vsel %vm985_vm7, %v13583_v13, %v5838_v46  ;;  %v6133_v45 = vunpack.i.l.bf16 %v7994_v39  ;;  %v13585_v50 = vunpack.i.h.bf16 %v7318_v61 }
 0x50b   :  { %1597 = vmatpush.msrb.mxu3 %v825_v10  ;;  %v990_v22 = vsel %vm985_vm7, %v5838_v46, %v13584_v34  ;;  %1579 = vmatpush.msra.mxu2 %v991_v29  ;;  %v13586_v10 = vunpack.i.l.bf16 %v7318_v61  ;;  %v13587_v46 = vunpack.i.h.bf16 %v7364_v8  ;;  %v13588_v29 = vunpack.i.h.bf16 %v7419_v24 }
 0x50c   :  { %1637 = vmatpush.msrb.mxu1 %v990_v22 }
 0x50d   :  { %v792_v48 = vsel %vm787_vm11, %v13586_v10, %v13585_v50  ;;  %v958_v34 = vsel %vm952_vm1, %v13587_v46, %v5828_v25  ;;  %v957_v22 = vsel %vm952_vm1, %v5828_v25, %v13588_v29  ;;  %v6118_v50 = vunpack.i.l.bf16 %v7835_v49 }
 0x50e   :  { %1598 = vmatpush.msrb.mxu3 %v792_v48  ;;  %1580 = vmatpush.msra.mxu2 %v958_v34  ;;  %v13590_v48 = vunpack.i.h.bf16 %v7338_v1  ;;  %v13591_v10 = vunpack.i.l.bf16 %v7338_v1  ;;  %v13593_v25 = vunpack.i.h.bf16 %v13592_v37  ;;  %v924_v34 = vsel %vm13596_vm3, %v5818_v26, %v13595_v47 }
 0x50f   :  { %1638 = vmatpush.msrb.mxu1 %v957_v22  ;;  %v13597_v22 = vunpack.i.h.bf16 %v7304_v57  ;;  %vm13610_vm3 = vcmp.lt.s32.totalorder %v7376_v12, 83 }
 0x510   :  { %v759_v46 = vsel %vm754_vm12, %v13591_v10, %v13590_v48  ;;  %v925_v29 = vsel %vm13594_vm4, %v13593_v25, %v5818_v26  ;;  %v13599_v10 = vld [vmem:[#allocation27_spill] sm:$0xff]  ;;  %v13600_v25 = vunpack.i.h.bf16 %v7882_v40  ;;  %v13602_v26 = vld [vmem:[#allocation12_spill] sm:$0xff]  ;;  %vm13605_vm4 = vmmov %vm13601_vm5  ;;  %v6098_v40 = vunpack.i.l.bf16 %v7845_v33 }
 0x511   :  { %1599 = vmatpush.msrb.mxu3 %v759_v46  ;;  %v726_v48 = vsel %vm721_vm13, %v13598_v44, %v13597_v22  ;;  %v13193_v13 = vunpack.i.h.bf16 %v13599_v10  ;;  %v13194_v46 = vunpack.i.l.bf16 %v13599_v10  ;;  %1581 = vmatpush.msra.mxu2 %v925_v29  ;;  %v13604_v44 = vunpack.i.h.bf16 %v7994_v39  ;;  %v13606_v29 = vld [vmem:[#allocation19_spill] sm:$0xff] }
 0x512   :  { %1639 = vmatpush.msrb.mxu1 %v924_v34  ;;  %v1187_v47 = vsel %vm13601_vm5, %v13600_v25, %v6133_v45  ;;  %v13607_v25 = vunpack.i.h.bf16 %v13589_v0  ;;  %5501 = vmatmul.msk.f32.vlgmr.msra.gmra.mxu2 %vm1408_vm6, %v13611_v54  ;;  %vm13613_vm5 = vmmov %vm13610_vm3 }
 0x513   :  { %1600 = vmatpush.msrb.mxu3 %v726_v48  ;;  %1689 = vmatpush.msrb.mxu2 %v1187_v47  ;;  %v1186_v22 = vsel %vm13605_vm4, %v6133_v45, %v13604_v44  ;;  %v13609_v48 = vunpack.i.h.bf16 %v7573_v30  ;;  %v13614_v30 = vunpack.i.h.bf16 %v7280_v51  ;;  %v6088_v45 = vunpack.i.l.bf16 %v7751_v43  ;;  %v13618_v44 = vld [vmem:[#allocation65_spill] sm:$0xff] }
 0x514   :  { %1747 = vmatpush.msra.mxu1 %v1186_v22  ;;  %v693_v38 = vsel %vm688_vm14, %v13608_v32, %v13607_v25  ;;  %v13612_v22 = vunpack.i.h.bf16 %v7835_v49  ;;  %v8101_v32 = vpop.permute.xlu1 %6136  ;;  %v13615_v25 = vunpack.i.l.bf16 %v7280_v51  ;;  %vm13617_vm4 = vcmp.lt.s32.totalorder %v7376_v12, 82  ;;  %1437 = vmatmul.f32.vlgmr.msra.gmra.mxu3 %v13618_v44 }
 0x515   :  { %v1154_v47 = vsel %vm13610_vm3, %v13609_v48, %v6118_v50  ;;  %1601 = vmatpush.msrb.mxu3 %v693_v38  ;;  %v13620_v51 = vunpack.i.h.bf16 %v8015_v18  ;;  %vm13621_vm3 = vmmov %vm13617_vm4  ;;  %v13627_v38 = vld [vmem:[#allocation15_spill] sm:$0xff]  ;;  %5505 = vmatmul.msk.f32.vlgmr.msrb.gmra.mxu1 %vm1408_vm6, %v13611_v54 }
 0x516   :  { %1690 = vmatpush.msrb.mxu2 %v1154_v47  ;;  %v1153_v34 = vsel %vm13613_vm5, %v6118_v50, %v13612_v22  ;;  %v627_v48 = vsel %vm622_vm0, %v13615_v25, %v13614_v30  ;;  %v660_v50 = vsel %vm655_vm15, %v13194_v46, %v13193_v13  ;;  %v13616_v47 = vunpack.i.h.bf16 %v7473_v27  ;;  %v13619_v30 = vld [vmem:[#allocation23_spill] sm:$0xff] }
 0x517   :  { %1748 = vmatpush.msra.mxu1 %v1153_v34  ;;  %1602 = vmatpush.msrb.mxu3 %v660_v50  ;;  %v1120_v13 = vsel %vm13621_vm3, %v6108_v56, %v13620_v51  ;;  %v6078_v46 = vunpack.i.l.bf16 %v7878_v31  ;;  %vm13623_vm5 = vcmp.lt.s32.totalorder %v7376_v12, 81  ;;  %v13624_v34 = vunpack.i.l.bf16 %v7583_v20 }
 0x518   :  { %v1121_v22 = vsel %vm13617_vm4, %v13616_v47, %v6108_v56  ;;  %v13622_v47 = vunpack.i.h.bf16 %v7427_v14  ;;  %v13625_v50 = vunpack.i.l.bf16 %v8101_v32  ;;  %vm13626_vm4 = vcmp.lt.s32.totalorder %v7376_v12, 84  ;;  %vm13629_vm3 = vmmov %vm13623_vm5 }
 0x519   :  { %1691 = vmatpush.msrb.mxu2 %v1121_v22  ;;  %1749 = vmatpush.msra.mxu1 %v1120_v13  ;;  %v13196_v51 = vunpack.i.h.bf16 %v7792_v6  ;;  %v13195_v56 = vunpack.i.h.bf16 %v7878_v31  ;;  %v13628_v14 = vunpack.i.h.bf16 %v7845_v33  ;;  %v13637_v20 = vunpack.i.l.bf16 %v7520_v36 }
 0x51a   :  { %v1088_v25 = vsel %vm13623_vm5, %v13622_v47, %v6098_v40  ;;  %v1191_v22 = vsel %vm13626_vm4, %v13625_v50, %v13624_v34  ;;  %1603 = vmatpush.msrb.mxu3 %v627_v48  ;;  %v13630_v47 = vld [vmem:[#allocation64_spill] sm:$0xff]  ;;  %v13631_v34 = vunpack.i.h.bf16 %v13606_v29  ;;  %v13632_v50 = vunpack.i.l.bf16 %v13606_v29 }
 0x51b   :  { %1692 = vmatpush.msrb.mxu2 %v1088_v25  ;;  %v1087_v13 = vsel %vm13629_vm3, %v6098_v40, %v13628_v14  ;;  %v6068_v27 = vunpack.i.l.bf16 %v13630_v47  ;;  %1457 = vmatpush.msra.mxu0 %v1191_v22  ;;  %v13633_v48 = vunpack.i.h.bf16 %v7516_v23  ;;  %vm13634_vm5 = vcmp.lt.s32.totalorder %v7376_v12, 80 }
 0x51c   :  { %1750 = vmatpush.msra.mxu1 %v1087_v13  ;;  %v594_v44 = vsel %vm13197_vm2, %v13632_v50, %v13631_v34  ;;  %v6104_v14 = vunpack.i.h.bf16 %v7941_v28  ;;  %v13635_v22 = vunpack.i.h.bf16 %v7751_v43  ;;  %vm13636_vm4 = vmmov %vm13634_vm5  ;;  %v13638_v34 = vunpack.i.h.bf16 %v7905_v4  ;;  %1440 = vmatmul.f32.gmra.mxu3 %v7770_v59 }
 0x51d   :  { %v1055_v25 = vsel %vm13634_vm5, %v13633_v48, %v6088_v45  ;;  %1604 = vmatpush.msrb.mxu3 %v594_v44  ;;  %vm13639_vm3 = vcmp.lt.s32.totalorder %v7376_v12, 83  ;;  %v13198_v50 = vunpack.i.l.bf16 %v13603_v52  ;;  %v13640_v48 = vld [vmem:[#allocation60_spill] sm:$0xff]  ;;  %v13641_v44 = vunpack.i.h.bf16 %v13619_v30 }
 0x51e   :  { %1693 = vmatpush.msrb.mxu2 %v1055_v25  ;;  %v1054_v13 = vsel %vm13636_vm4, %v6088_v45, %v13635_v22  ;;  %v1158_v23 = vsel %vm13639_vm3, %v13638_v34, %v13637_v20  ;;  %v6058_v40 = vunpack.i.l.bf16 %v13640_v48  ;;  %v13642_v25 = vunpack.i.l.bf16 %v13619_v30 }
 0x51f   :  { %1751 = vmatpush.msra.mxu1 %v1054_v13  ;;  %1458 = vmatpush.msra.mxu0 %v1158_v23  ;;  %vm13643_vm5 = vcmp.lt.s32.totalorder %v7376_v12, 20  ;;  %v13644_v36 = vunpack.i.h.bf16 %v7380_v15  ;;  %vm13645_vm4 = vcmp.lt.s32.totalorder %v7376_v12, 64  ;;  %v13200_v20 = vunpack.i.h.bf16 %v13640_v48 }
 0x520   :  { %v561_v45 = vsel %vm13643_vm5, %v13642_v25, %v13641_v44  ;;  %v6094_v34 = vunpack.i.h.bf16 %v7787_v55  ;;  %vm13646_vm3 = vmmov %vm13645_vm4  ;;  %v13647_v23 = vunpack.i.l.bf16 %v7475_v35  ;;  %vm13648_vm5 = vcmp.lt.s32.totalorder %v7376_v12, 82 }
 0x521   :  { %v1022_v22 = vsel %vm13645_vm4, %v13644_v36, %v6078_v46  ;;  %1605 = vmatpush.msrb.mxu3 %v561_v45  ;;  %v1021_v13 = vsel %vm13646_vm3, %v6078_v46, %v13195_v56  ;;  %v6048_v25 = vunpack.i.l.bf16 %v7789_v41  ;;  %v13649_v45 = vunpack.i.h.bf16 %v13627_v38  ;;  %v13653_v56 = vld [vmem:[#allocation63_spill] sm:$0xff] }
 0x522   :  { %1694 = vmatpush.msrb.mxu2 %v1022_v22  ;;  %v1125_v15 = vsel %vm13648_vm5, %v13196_v51, %v13647_v23  ;;  %1752 = vmatpush.msra.mxu1 %v1021_v13  ;;  %v13650_v36 = vunpack.i.l.bf16 %v13627_v38  ;;  %vm13651_vm4 = vcmp.lt.s32.totalorder %v7376_v12, 4  ;;  %v13652_v35 = vunpack.i.h.bf16 %v7366_v9 }
 0x523   :  { %1459 = vmatpush.msra.mxu0 %v1125_v15  ;;  %v13203_v23 = vunpack.i.h.bf16 %v13653_v56  ;;  %v13199_v51 = vunpack.i.h.bf16 %v7789_v41  ;;  %v13654_v13 = vunpack.i.h.bf16 %v13630_v47  ;;  %v13655_v44 = vunpack.i.l.bf16 %v7559_v21 }
 0x524   :  { %v528_v46 = vsel %vm13651_vm4, %v13650_v36, %v13649_v45  ;;  %v989_v22 = vsel %vm985_vm7, %v13652_v35, %v6068_v27  ;;  %vm13656_vm3 = vcmp.lt.s32.totalorder %v7376_v12, 81  ;;  %v6139_v45 = vunpack.i.h.bf16 %v8101_v32  ;;  %v13660_v35 = vld [vmem:[#allocation11_spill] sm:$0xff]  ;;  %1443 = vmatmul.f32.gmra.mxu3 %v7824_v53 }
 0x525   :  { %1606 = vmatpush.msrb.mxu3 %v528_v46  ;;  %1695 = vmatpush.msrb.mxu2 %v989_v22  ;;  %v988_v15 = vsel %vm985_vm7, %v6068_v27, %v13654_v13  ;;  %v1092_v9 = vsel %vm13656_vm3, %v6104_v14, %v13655_v44  ;;  %v13657_v36 = vunpack.i.h.bf16 %v13603_v52  ;;  %vm13658_vm5 = vcmp.lt.s32.totalorder %v7376_v12, 3 }
 0x526   :  { %1753 = vmatpush.msra.mxu1 %v988_v15  ;;  %1460 = vmatpush.msra.mxu0 %v1092_v9  ;;  %v13659_v27 = vunpack.i.h.bf16 %v7419_v24  ;;  %v13201_v22 = vunpack.i.h.bf16 %v13660_v35  ;;  %v13202_v44 = vunpack.i.l.bf16 %v13660_v35  ;;  %v955_v13 = vsel %vm952_vm1, %v6058_v40, %v13200_v20 }
 0x527   :  { %v495_v46 = vsel %vm13658_vm5, %v13198_v50, %v13657_v36  ;;  %v13661_v15 = vunpack.i.l.bf16 %v7425_v17  ;;  %vm13662_vm4 = vcmp.lt.s32.totalorder %v7376_v12, 80  ;;  %v6128_v9 = vunpack.i.l.bf16 %v7905_v4  ;;  %v13672_v50 = vld [vmem:[#allocation61_spill] sm:$0xff] }
 0x528   :  { %v956_v21 = vsel %vm952_vm1, %v13659_v27, %v6058_v40  ;;  %1607 = vmatpush.msrb.mxu3 %v495_v46  ;;  %v6074_v36 = vunpack.i.h.bf16 %v7831_v42  ;;  %1754 = vmatpush.msra.mxu1 %v955_v13  ;;  %v13663_v46 = vunpack.i.h.bf16 %v13602_v26  ;;  %v13664_v27 = vunpack.i.l.bf16 %v13602_v26 }
 0x529   :  { %1696 = vmatpush.msrb.mxu2 %v956_v21  ;;  %v1059_v24 = vsel %vm13662_vm4, %v6094_v34, %v13661_v15  ;;  %vm13665_vm3 = vcmp.lt.s32.totalorder %v7376_v12, 2  ;;  %v13666_v17 = vunpack.i.h.bf16 %v7352_v5  ;;  %vm13667_vm5 = vcmp.lt.s32.totalorder %v7376_v12, 61 }
 0x52a   :  { %1461 = vmatpush.msra.mxu0 %v1059_v24  ;;  %v462_v40 = vsel %vm13665_vm3, %v13664_v27, %v13663_v46  ;;  %vm13668_vm4 = vmmov %vm13667_vm5  ;;  %v13669_v15 = vunpack.i.l.bf16 %v7382_v16  ;;  %vm13670_vm2 = vcmp.lt.s32.totalorder %v7376_v12, 64  ;;  %v13671_v46 = vld [vmem:[#allocation58_spill] sm:$0xff]  ;;  %vm13674_vm3 = vcmp.lt.s32.totalorder %v7376_v12, 84 }
 0x52b   :  { %v923_v21 = vsel %vm13667_vm5, %v13666_v17, %v6048_v25  ;;  %1608 = vmatpush.msrb.mxu3 %v462_v40  ;;  %v922_v13 = vsel %vm13668_vm4, %v6048_v25, %v13199_v51  ;;  %v13216_v27 = vunpack.i.h.bf16 %v13671_v46  ;;  %v6038_v5 = vunpack.i.l.bf16 %v13671_v46 }
 0x52c   :  { %1697 = vmatpush.msrb.mxu2 %v923_v21  ;;  %v1026_v24 = vsel %vm13670_vm2, %v13203_v23, %v13669_v15  ;;  %v6064_v17 = vunpack.i.h.bf16 %v13672_v50  ;;  %1755 = vmatpush.msra.mxu1 %v922_v13  ;;  %v13673_v40 = vunpack.i.h.bf16 %v7994_v39  ;;  %v13675_v21 = vld [vmem:[#allocation55_spill] sm:$0xff]  ;;  %v6113_v51 = vunpack.i.l.bf16 %v7792_v6  ;;  %vm13677_vm2 = vmmov %vm13674_vm3 }
 0x52d   :  { %1462 = vmatpush.msra.mxu0 %v1026_v24  ;;  %v13213_v16 = vunpack.i.h.bf16 %v13675_v21  ;;  %v13676_v15 = vunpack.i.l.bf16 %v8101_v32  ;;  %vm13678_vm5 = vcmp.lt.s32.totalorder %v7376_v12, 1  ;;  %v6028_v13 = vunpack.i.l.bf16 %v13675_v21  ;;  %v13679_v24 = vld [vmem:[#allocation57_spill] sm:$0xff] }
 0x52e   :  { %v1185_v25 = vsel %vm13674_vm3, %v13673_v40, %v6139_v45  ;;  %v429_v39 = vsel %vm13678_vm5, %v13202_v44, %v13201_v22  ;;  %v6054_v40 = vunpack.i.h.bf16 %v13679_v24  ;;  %vm13682_vm4 = vcmp.lt.s32.totalorder %v7376_v12, 83 }
 0x52f   :  { %1805 = vmatpush.msra.mxu2 %v1185_v25  ;;  %v1184_v20 = vsel %vm13677_vm2, %v6139_v45, %v13676_v15  ;;  %1609 = vmatpush.msrb.mxu3 %v429_v39  ;;  %v13680_v25 = vunpack.i.l.bf16 %v7468_v19  ;;  %v13681_v45 = vunpack.i.h.bf16 %v7835_v49  ;;  %v6103_v22 = vunpack.i.l.bf16 %v7941_v28  ;;  %vm13684_vm3 = vmmov %vm13682_vm4  ;;  %v13685_v19 = vld [vmem:[#allocation62_spill] sm:$0xff] }
 0x530   :  { %1863 = vmatpush.msrb.mxu1 %v1184_v20  ;;  %v13683_v44 = vunpack.i.h.bf16 %v7905_v4  ;;  %v13212_v39 = vunpack.i.h.bf16 %v13685_v19  ;;  %v6018_v23 = vunpack.i.l.bf16 %v13685_v19  ;;  %vm13687_vm2 = vcmask 1043456  }
 0x531   :  { %v993_v32 = vsel %vm985_vm7, %v6074_v36, %v13680_v25  ;;  %v1152_v15 = vsel %vm13682_vm4, %v13681_v45, %v6128_v9  ;;  %v13686_v25 = vld [vmem:[#allocation6_spill] sm:$0xff]  ;;  %v13688_v49 = vunpack.i.l.bf16 %v7364_v8  ;;  %v889_v4 = vsel %vm886_vm8, %v6038_v5, %v13216_v27 }
 0x532   :  { %1463 = vmatpush.msra.mxu0 %v993_v32  ;;  %1806 = vmatpush.msra.mxu2 %v1152_v15  ;;  %v1151_v20 = vsel %vm13684_vm3, %v6128_v9, %v13683_v44  ;;  %v6093_v44 = vunpack.i.l.bf16 %v7787_v55  ;;  %v13689_v9 = vunpack.i.h.bf16 %v8015_v18  ;;  %vm13690_vm5 = vcmp.lt.s32.totalorder %v7376_v12, 82 }
 0x533   :  { %1864 = vmatpush.msrb.mxu1 %v1151_v20  ;;  %5620 = vmatpush.msk.msrb.mxu3 %vm13687_vm2, %v13686_v25  ;;  %v960_v32 = vsel %vm952_vm1, %v6064_v17, %v13688_v49  ;;  %v13691_v45 = vunpack.i.h.bf16 %v7792_v6  ;;  %vm13692_vm4 = vmmov %vm13690_vm5  ;;  %v13693_v20 = vunpack.i.l.bf16 %v13592_v37  ;;  %vm13694_vm3 = vcmp.lt.s32.totalorder %v7376_v12, 61  ;;  %v13695_v6 = vld [vmem:[#allocation51_spill] sm:$0xff] }
 0x534   :  { %1464 = vmatpush.msra.mxu0 %v960_v32  ;;  %v1119_v8 = vsel %vm13690_vm5, %v13689_v9, %v6113_v51  ;;  %v856_v18 = vsel %vm853_vm9, %v6028_v13, %v13213_v16  ;;  %v13210_v49 = vunpack.i.h.bf16 %v13695_v6  ;;  %v13696_v37 = vunpack.i.h.bf16 %v7845_v33  ;;  %v13699_v33 = vld [vmem:[#allocation49_spill] sm:$0xff]  ;;  %v13756_v16 = vld [vmem:[#allocation18_spill] sm:$0xff] }
 0x535   :  { %1711 = vmatpush.msra.mxu3 %v889_v4  ;;  %v1118_v15 = vsel %vm13692_vm4, %v6113_v51, %v13691_v45  ;;  %1807 = vmatpush.msra.mxu2 %v1119_v8  ;;  %v927_v25 = vsel %vm13694_vm3, %v6054_v40, %v13693_v20  ;;  %v6008_v51 = vunpack.i.l.bf16 %v13695_v6  ;;  %vm13697_vm2 = vcmp.lt.s32.totalorder %v7376_v12, 81 }
 0x536   :  { %1865 = vmatpush.msrb.mxu1 %v1118_v15  ;;  %1465 = vmatpush.msra.mxu0 %v927_v25  ;;  %v1086_v32 = vsel %vm13697_vm2, %v13696_v37, %v6103_v22  ;;  %vm13698_vm5 = vmmov %vm13697_vm2  ;;  %v6083_v9 = vunpack.i.l.bf16 %v13653_v56  ;;  %v823_v8 = vsel %vm820_vm10, %v6018_v23, %v13212_v39  ;;  %v13209_v45 = vunpack.i.h.bf16 %v13699_v33 }
 0x537   :  { %1712 = vmatpush.msra.mxu3 %v856_v18  ;;  %v1085_v4 = vsel %vm13698_vm5, %v6103_v22, %v6104_v14  ;;  %1808 = vmatpush.msra.mxu2 %v1086_v32  ;;  %v5998_v15 = vunpack.i.l.bf16 %v13699_v33  ;;  %v13700_v28 = vunpack.i.l.bf16 %v7342_v3  ;;  %v13701_v14 = vunpack.i.h.bf16 %v7374_v11  ;;  %v13705_v32 = vld [vmem:[#allocation56_spill] sm:$0xff] }
 0x538   :  { %1866 = vmatpush.msrb.mxu1 %v1085_v4  ;;  %5493 = vmatmul.msk.f32.vlgmr.msra.gmra.mxu0 %vm1408_vm6, %v13611_v54  ;;  %v13702_v20 = vunpack.i.h.bf16 %v7751_v43  ;;  %vm13703_vm4 = vcmp.lt.s32.totalorder %v7376_v12, 80  ;;  %v6073_v18 = vunpack.i.l.bf16 %v7831_v42  ;;  %v13208_v11 = vunpack.i.h.bf16 %v13705_v32 }
 0x539   :  { %v892_v22 = vsel %vm886_vm8, %v13701_v14, %v13700_v28  ;;  %1713 = vmatpush.msra.mxu3 %v823_v8  ;;  %vm13704_vm3 = vmmov %vm13703_vm4  ;;  %v5988_v4 = vunpack.i.l.bf16 %v13705_v32  ;;  %v13706_v43 = vunpack.i.l.bf16 %v7362_v7  ;;  %v13707_v8 = vunpack.i.h.bf16 %v7340_v2 }
 0x53a   :  { %v1053_v25 = vsel %vm13703_vm4, %v13702_v20, %v6093_v44  ;;  %1537 = vmatpush.msrb.mxu0 %v892_v22  ;;  %v1052_v37 = vsel %vm13704_vm3, %v6093_v44, %v6094_v34  ;;  %v790_v55 = vsel %vm787_vm11, %v6008_v51, %v13210_v49  ;;  %v6063_v34 = vunpack.i.l.bf16 %v13672_v50  ;;  %v13712_v20 = vld [vmem:[#allocation45_spill] sm:$0xff] }
 0x53b   :  { %1809 = vmatpush.msra.mxu2 %v1053_v25  ;;  %1867 = vmatpush.msrb.mxu1 %v1052_v37  ;;  %v859_v28 = vsel %vm853_vm9, %v13707_v8, %v13706_v43  ;;  %v13708_v44 = vunpack.i.h.bf16 %v7878_v31  ;;  %vm13709_vm2 = vcmp.lt.s32.totalorder %v7376_v12, 64  ;;  %v13710_v2 = vunpack.i.h.bf16 %v13653_v56  ;;  %v13714_v8 = vld [vmem:[#allocation28_spill] sm:$0xff] }
 0x53c   :  { %1538 = vmatpush.msrb.mxu0 %v859_v28  ;;  %1714 = vmatpush.msra.mxu3 %v790_v55  ;;  %vm13711_vm5 = vmmov %vm13709_vm2  ;;  %v13207_v25 = vunpack.i.h.bf16 %v13712_v20  ;;  %v5978_v37 = vunpack.i.l.bf16 %v13712_v20  ;;  %v13713_v43 = vunpack.i.l.bf16 %v7328_v63  ;;  %v13715_v28 = vunpack.i.h.bf16 %v13714_v8 }
 0x53d   :  { %v1020_v14 = vsel %vm13709_vm2, %v13708_v44, %v6083_v9  ;;  %v1019_v22 = vsel %vm13711_vm5, %v6083_v9, %v13710_v2  ;;  %v757_v56 = vsel %vm754_vm12, %v5998_v15, %v13209_v45  ;;  %v13716_v9 = vunpack.i.h.bf16 %v13630_v47  ;;  %v13720_v47 = vld [vmem:[#allocation43_spill] sm:$0xff]  ;;  %v13750_v45 = vld [vmem:[#allocation26_spill] sm:$0xff] }
 0x53e   :  { %1810 = vmatpush.msra.mxu2 %v1020_v14  ;;  %1868 = vmatpush.msrb.mxu1 %v1019_v22  ;;  %v826_v31 = vsel %vm820_vm10, %v13715_v28, %v13713_v43  ;;  %v986_v44 = vsel %vm985_vm7, %v6073_v18, %v6074_v36  ;;  %v6053_v14 = vunpack.i.l.bf16 %v13679_v24  ;;  %v13717_v2 = vunpack.i.l.bf16 %v7318_v61  ;;  %v13718_v22 = vld [vmem:[#allocation29_spill] sm:$0xff] }
 0x53f   :  { %1539 = vmatpush.msrb.mxu0 %v826_v31  ;;  %1715 = vmatpush.msra.mxu3 %v757_v56  ;;  %v987_v55 = vsel %vm985_vm7, %v13716_v9, %v6073_v18  ;;  %v13719_v43 = vunpack.i.h.bf16 %v13718_v22  ;;  %v724_v42 = vsel %vm721_vm13, %v5988_v4, %v13208_v11  ;;  %v13205_v36 = vunpack.i.h.bf16 %v13720_v47  ;;  %v13748_v11 = vld [vmem:[#allocation70_spill] sm:$0xff] }
 0x540   :  { %1811 = vmatpush.msra.mxu2 %v987_v55  ;;  %1869 = vmatpush.msrb.mxu1 %v986_v44  ;;  %v5968_v18 = vunpack.i.l.bf16 %v13720_v47  ;;  %v13721_v28 = vunpack.i.h.bf16 %v13640_v48  ;;  %v953_v56 = vsel %vm952_vm1, %v6063_v34, %v6064_v17  ;;  %v691_v9 = vsel %vm688_vm14, %v5978_v37, %v13207_v25  ;;  %v13722_v55 = vld [vmem:[#allocation50_spill] sm:$0xff] }
 0x541   :  { %v793_v8 = vsel %vm787_vm11, %v13719_v43, %v13717_v2  ;;  %1716 = vmatpush.msra.mxu3 %v724_v42  ;;  %v13204_v44 = vunpack.i.h.bf16 %v13722_v55  ;;  %v5958_v48 = vunpack.i.l.bf16 %v13722_v55  ;;  %v13723_v2 = vld [vmem:[#allocation68_spill] sm:$0xff]  ;;  %v13724_v50 = vunpack.i.l.bf16 %v7338_v1  ;;  %v13729_v42 = vld [vmem:[#allocation39_spill] sm:$0xff] }
 0x542   :  { %1540 = vmatpush.msrb.mxu0 %v793_v8  ;;  %v954_v31 = vsel %vm952_vm1, %v13721_v28, %v6063_v34  ;;  %1870 = vmatpush.msrb.mxu1 %v953_v56  ;;  %v13725_v17 = vunpack.i.h.bf16 %v7316_v60  ;;  %v13726_v22 = vunpack.i.h.bf16 %v7789_v41  ;;  %vm13727_vm1 = vcmp.lt.s32.totalorder %v7376_v12, 61 }
 0x543   :  { %1812 = vmatpush.msra.mxu2 %v954_v31  ;;  %5494 = vmatmul.msk.f32.gmra.mxu0 %vm1408_vm6, %v13723_v2  ;;  %vm13728_vm7 = vmmov %vm13727_vm1  ;;  %v13206_v28 = vunpack.i.h.bf16 %v13729_v42  ;;  %v5948_v60 = vunpack.i.l.bf16 %v13729_v42  ;;  %v13730_v31 = vunpack.i.l.bf16 %v7304_v57  ;;  %v13731_v41 = vunpack.i.h.bf16 %v7306_v58 }
 0x544   :  { %v760_v34 = vsel %vm754_vm12, %v13725_v17, %v13724_v50  ;;  %1717 = vmatpush.msra.mxu3 %v691_v9  ;;  %v921_v43 = vsel %vm13727_vm1, %v13726_v22, %v6053_v14  ;;  %v920_v8 = vsel %vm13728_vm7, %v6053_v14, %v6054_v40  ;;  %v658_v24 = vsel %vm655_vm15, %v5968_v18, %v13205_v36  ;;  %v13732_v40 = vld [vmem:[#allocation37_spill] sm:$0xff]  ;;  %v13735_v22 = vld [vmem:[#allocation44_spill] sm:$0xff]  ;;  %v13744_v36 = vld [vmem:[#allocation22_spill] sm:$0xff] }
 0x545   :  { %1541 = vmatpush.msrb.mxu0 %v760_v34  ;;  %1813 = vmatpush.msra.mxu2 %v921_v43  ;;  %v727_v56 = vsel %vm721_vm13, %v13731_v41, %v13730_v31  ;;  %v13211_v14 = vunpack.i.h.bf16 %v13732_v40  ;;  %v13221_v9 = vunpack.i.l.bf16 %v13732_v40  ;;  %v13733_v50 = vunpack.i.l.bf16 %v13589_v0  ;;  %v13737_v31 = vld [vmem:[#allocation24_spill] sm:$0xff] }
 0x546   :  { %1871 = vmatpush.msrb.mxu1 %v920_v8  ;;  %1718 = vmatpush.msra.mxu3 %v658_v24  ;;  %v13734_v58 = vunpack.i.h.bf16 %v7326_v62  ;;  %v625_v34 = vsel %vm622_vm0, %v5958_v48, %v13204_v44  ;;  %v13215_v62 = vunpack.i.h.bf16 %v13735_v22  ;;  %v13220_v43 = vunpack.i.l.bf16 %v13735_v22 }
 0x547   :  { %1542 = vmatpush.msrb.mxu0 %v727_v56  ;;  %5502 = vmatmul.msk.f32.gmra.mxu2 %vm1408_vm6, %v13723_v2  ;;  %v13736_v8 = vunpack.i.l.bf16 %v13599_v10  ;;  %v13738_v41 = vunpack.i.h.bf16 %v13737_v31  ;;  %vm13739_vm4 = vcmp.lt.s32.totalorder %v7376_v12, 21  ;;  %v13742_v31 = vld [vmem:[#allocation21_spill] sm:$0xff]  ;;  %vm13746_vm3 = vcmp.lt.s32.totalorder %v7376_v12, 20 }
 0x548   :  { %v694_v17 = vsel %vm688_vm14, %v13734_v58, %v13733_v50  ;;  %5506 = vmatmul.msk.f32.gmra.mxu1 %vm1408_vm6, %v13723_v2  ;;  %1719 = vmatpush.msra.mxu3 %v625_v34  ;;  %v592_v24 = vsel %vm13739_vm4, %v5948_v60, %v13206_v28  ;;  %v13740_v50 = vld [vmem:[#allocation34_spill] sm:$0xff]  ;;  %v13741_v34 = vld [vmem:[#allocation69_spill] sm:$0xff]  ;;  %v13743_v44 = vunpack.i.l.bf16 %v13742_v31  ;;  %v13751_v49 = vunpack.i.h.bf16 %v13750_v45  ;;  %vm13752_vm2 = vmmov %vm13739_vm4 }
 0x549   :  { %1543 = vmatpush.msrb.mxu0 %v694_v17  ;;  %v661_v56 = vsel %vm655_vm15, %v13738_v41, %v13736_v8  ;;  %v13214_v58 = vunpack.i.h.bf16 %v13740_v50  ;;  %v13219_v17 = vunpack.i.l.bf16 %v13740_v50  ;;  %v13745_v8 = vunpack.i.h.bf16 %v13744_v36  ;;  %1446 = vmatmul.f32.gmra.mxu3 %v13748_v11  ;;  %vm13758_vm1 = vmmov %vm13746_vm3 }
 0x54a   :  { %1720 = vmatpush.msra.mxu3 %v592_v24  ;;  %v13747_v24 = vld [vmem:[#allocation38_spill] sm:$0xff]  ;;  %v13749_v36 = vunpack.i.l.bf16 %v13606_v29  ;;  %vm13753_vm5 = vcmp.lt.s32.totalorder %v7376_v12, 4  ;;  %v13755_v39 = vunpack.i.l.bf16 %v13619_v30  ;;  %v13757_v45 = vunpack.i.h.bf16 %v13756_v16 }
 0x54b   :  { %1544 = vmatpush.msrb.mxu0 %v661_v56  ;;  %v628_v41 = vsel %vm622_vm0, %v13745_v8, %v13743_v44  ;;  %v559_v56 = vsel %vm13746_vm3, %v13221_v9, %v13211_v14  ;;  %v13217_v28 = vunpack.i.h.bf16 %v13747_v24  ;;  %v13218_v25 = vunpack.i.l.bf16 %v13747_v24  ;;  %vm13763_vm4 = vmmov %vm13753_vm5  ;;  %v13779_v9 = vld [vmem:[#allocation9_spill] sm:$0xff] }
 0x54c   :  { %5495 = vmatmul.msk.f32.gmra.mxu0 %vm1408_vm6, %v13741_v34  ;;  %1721 = vmatpush.msra.mxu3 %v559_v56  ;;  %v595_v44 = vsel %vm13752_vm2, %v13751_v49, %v13749_v36  ;;  %v526_v8 = vsel %vm13753_vm5, %v13220_v43, %v13215_v62  ;;  %v562_v49 = vsel %vm13758_vm1, %v13757_v45, %v13755_v39  ;;  %vm13759_vm7 = vcmp.lt.s32.totalorder %v7376_v12, 3  ;;  %v13777_v43 = vld [vmem:[#allocation65_spill] sm:$0xff] }
 0x54d   :  { %1545 = vmatpush.msrb.mxu0 %v628_v41  ;;  %v13754_v41 = vld [vmem:[#allocation31_spill] sm:$0xff]  ;;  %v493_v36 = vsel %vm13759_vm7, %v13219_v17, %v13214_v58  ;;  %v13760_v16 = vunpack.i.l.bf16 %v13627_v38  ;;  %vm13764_vm3 = vcmp.lt.s32.totalorder %v7376_v12, 2  ;;  %vm13770_vm2 = vmmov %vm13759_vm7  ;;  %vm13771_vm5 = vcmp.lt.s32.totalorder %v7376_v12, 1 }
 0x54e   :  { %1722 = vmatpush.msra.mxu3 %v526_v8  ;;  %v13222_v56 = vunpack.i.h.bf16 %v13754_v41  ;;  %v13223_v14 = vunpack.i.l.bf16 %v13754_v41  ;;  %v460_v45 = vsel %vm13764_vm3, %v13218_v25, %v13217_v28  ;;  %v13765_v58 = vld [vmem:[#allocation67_spill] sm:$0xff]  ;;  %v13772_v28 = vld [vmem:[#allocation54_spill] sm:$0xff]  ;;  %v13774_v25 = vld [vmem:[#allocation17_spill] sm:$0xff]  ;;  %vm13780_vm7 = vcmask 1043456  }
 0x54f   :  { %1546 = vmatpush.msrb.mxu0 %v595_v44  ;;  %5503 = vmatmul.msk.f32.gmra.mxu2 %vm1408_vm6, %v13741_v34  ;;  %v13761_v44 = vld [vmem:[#allocation16_spill] sm:$0xff]  ;;  %v13224_v62 = vunpack.i.l.bf16 %v13765_v58  ;;  %v13775_v17 = vunpack.i.h.bf16 %v13774_v25  ;;  %vm13776_vm1 = vmmov %vm13764_vm3  ;;  %v13782_v25 = vunpack.i.l.bf16 %v13660_v35 }
 0x550   :  { %5507 = vmatmul.msk.f32.gmra.mxu1 %vm1408_vm6, %v13741_v34  ;;  %1723 = vmatpush.msra.mxu3 %v493_v36  ;;  %v13762_v8 = vunpack.i.h.bf16 %v13761_v44  ;;  %v13767_v36 = vunpack.i.l.bf16 %v13603_v52  ;;  %v13768_v44 = vld [vmem:[#allocation20_spill] sm:$0xff]  ;;  %vm13790_vm3 = vmmov %vm13780_vm7 }
 0x551   :  { %1547 = vmatpush.msrb.mxu0 %v562_v49  ;;  %v13766_v49 = vld [vmem:[#allocation71_spill] sm:$0xff]  ;;  %v13769_v27 = vunpack.i.h.bf16 %v13768_v44  ;;  %1611 = vmatmul.f32.vlgmr.msrb.gmra.mxu3 %v13777_v43 }
 0x552   :  { %v529_v39 = vsel %vm13763_vm4, %v13762_v8, %v13760_v16  ;;  %1724 = vmatpush.msra.mxu3 %v460_v45  ;;  %v427_v8 = vsel %vm13771_vm5, %v13223_v14, %v13222_v56  ;;  %v13773_v45 = vunpack.i.l.bf16 %v13602_v26  ;;  %v13781_v56 = vunpack.i.h.bf16 %v13765_v58  ;;  %vm13785_vm4 = vmmov %vm13771_vm5 }
 0x553   :  { %1548 = vmatpush.msrb.mxu0 %v529_v39  ;;  %v496_v16 = vsel %vm13770_vm2, %v13769_v27, %v13767_v36  ;;  %v13225_v39 = vunpack.i.l.bf16 %v13772_v28  ;;  %v13778_v27 = vld [vmem:[#allocation52_spill] sm:$0xff]  ;;  %vm13814_vm2 = vcmp.lt.s32.totalorder %v7376_v12, 21  ;;  %vm13818_vm5 = vcmp.lt.s32.totalorder %v7376_v12, 20 }
 0x554   :  { %5496 = vmatmul.msk.f32.gmra.mxu0 %vm1408_vm6, %v13766_v49  ;;  %1725 = vmatpush.msra.mxu3 %v427_v8  ;;  %v463_v44 = vsel %vm13776_vm1, %v13775_v17, %v13773_v45  ;;  %v6023_v36 = vunpack.i.l.bf16 %v13778_v27  ;;  %v13783_v8 = vld [vmem:[#allocation14_spill] sm:$0xff]  ;;  %v13786_v45 = vld [vmem:[#allocation59_spill] sm:$0xff]  ;;  %vm13821_vm1 = vmmov %vm13814_vm2 }
 0x555   :  { %1549 = vmatpush.msrb.mxu0 %v496_v16  ;;  %v887_v16 = vsel %vm886_vm8, %v13224_v62, %v13781_v56  ;;  %v13784_v14 = vunpack.i.h.bf16 %v13783_v8  ;;  %v13788_v8 = vld [vmem:[#allocation48_spill] sm:$0xff]  ;;  %v13792_v62 = vunpack.i.h.bf16 %v13778_v27  ;;  %v13856_v27 = vunpack.i.h.bf16 %v13699_v33 }
 0x556   :  { %5622 = vmatpush.msk.msra.mxu3 %vm13780_vm7, %v13779_v9  ;;  %v6013_v9 = vunpack.i.l.bf16 %v13786_v45  ;;  %vm13823_vm7 = vcmp.lt.s32.totalorder %v7376_v12, 4 }
 0x557   :  { %1550 = vmatpush.msrb.mxu0 %v463_v44  ;;  %v430_v17 = vsel %vm13785_vm4, %v13784_v14, %v13782_v25  ;;  %5504 = vmatmul.msk.f32.gmra.mxu2 %vm1408_vm6, %v13766_v49  ;;  %v13787_v44 = vunpack.i.h.bf16 %v13772_v28  ;;  %v6003_v14 = vunpack.i.l.bf16 %v13788_v8  ;;  %v13791_v25 = vunpack.i.h.bf16 %v7342_v3  ;;  %vm13827_vm4 = vmmov %vm13818_vm5 }
 0x558   :  { %1827 = vmatpush.msrb.mxu3 %v887_v16  ;;  %5508 = vmatmul.msk.f32.gmra.mxu1 %vm1408_vm6, %v13766_v49  ;;  %v13789_v16 = vld [vmem:[#allocation5_spill] sm:$0xff]  ;;  %v13794_v3 = vunpack.i.h.bf16 %v7362_v7 }
 0x559   :  { %1551 = vmatpush.msrb.mxu0 %v430_v17  ;;  %v854_v56 = vsel %vm853_vm9, %v13225_v39, %v13787_v44  ;;  %v890_v17 = vsel %vm886_vm8, %v13791_v25, %v6038_v5  ;;  %v821_v44 = vsel %vm820_vm10, %v6023_v36, %v13792_v62  ;;  %v13796_v25 = vld [vmem:[#allocation53_spill] sm:$0xff]  ;;  %1614 = vmatmul.f32.gmra.mxu3 %v7770_v59 }
 0x55a   :  { %1828 = vmatpush.msrb.mxu3 %v854_v56  ;;  %v13793_v56 = vld [vmem:[#allocation46_spill] sm:$0xff]  ;;  %v857_v5 = vsel %vm853_vm9, %v13794_v3, %v6028_v13  ;;  %v13798_v13 = vunpack.i.h.bf16 %v13788_v8  ;;  %v13859_v8 = vunpack.i.h.bf16 %v13720_v47  ;;  %v13861_v47 = vunpack.i.h.bf16 %v13729_v42 }
 0x55b   :  { %5619 = vmatpush.msk.msrb.mxu0 %vm13790_vm3, %v13789_v16  ;;  %v5993_v39 = vunpack.i.l.bf16 %v13793_v56  ;;  %v13795_v16 = vunpack.i.h.bf16 %v13786_v45  ;;  %v13799_v3 = vld [vmem:[#allocation42_spill] sm:$0xff]  ;;  %vm13829_vm3 = vcmp.lt.s32.totalorder %v7376_v12, 3 }
 0x55c   :  { %1829 = vmatpush.msrb.mxu3 %v821_v44  ;;  %1553 = vmatmul.f32.vlgmr.msrb.gmra.mxu0 %v13777_v43  ;;  %v13797_v43 = vunpack.i.h.bf16 %v7328_v63  ;;  %v755_v44 = vsel %vm754_vm12, %v6003_v14, %v13798_v13  ;;  %v13800_v63 = vunpack.i.h.bf16 %v7318_v61  ;;  %v13804_v13 = vunpack.i.h.bf16 %v13796_v25 }
 0x55d   :  { %1653 = vmatpush.msra.mxu0 %v890_v17  ;;  %v788_v62 = vsel %vm787_vm11, %v6013_v9, %v13795_v16  ;;  %v5983_v17 = vunpack.i.l.bf16 %v13796_v25  ;;  %v13801_v16 = vunpack.i.h.bf16 %v13793_v56  ;;  %v13863_v25 = vunpack.i.h.bf16 %v13732_v40 }
 0x55e   :  { %1830 = vmatpush.msrb.mxu3 %v788_v62  ;;  %v824_v7 = vsel %vm820_vm10, %v13797_v43, %v6018_v23  ;;  %v791_v23 = vsel %vm787_vm11, %v13800_v63, %v6008_v51  ;;  %v13802_v43 = vld [vmem:[#allocation40_spill] sm:$0xff]  ;;  %v13803_v51 = vunpack.i.h.bf16 %v7338_v1  ;;  %v13806_v1 = vunpack.i.h.bf16 %v7304_v57 }
 0x55f   :  { %1654 = vmatpush.msra.mxu0 %v857_v5  ;;  %v5973_v5 = vunpack.i.l.bf16 %v13799_v3  ;;  %v722_v62 = vsel %vm721_vm13, %v5993_v39, %v13801_v16  ;;  %5509 = vmatmul.msk.f32.vlgmr.msrb.gmra.mxu2 %vm1408_vm6, %v13611_v54  ;;  %v5963_v61 = vunpack.i.l.bf16 %v13802_v43 }
 0x560   :  { %1831 = vmatpush.msrb.mxu3 %v755_v44  ;;  %5513 = vmatmul.msk.f32.vlgmr.msra.gmra.mxu1 %vm1408_vm6, %v13611_v54  ;;  %v689_v44 = vsel %vm688_vm14, %v5983_v17, %v13804_v13  ;;  %v13805_v54 = vld [vmem:[#allocation47_spill] sm:$0xff] }
 0x561   :  { %1655 = vmatpush.msra.mxu0 %v824_v7  ;;  %v758_v7 = vsel %vm754_vm12, %v13803_v51, %v5998_v15  ;;  %v5953_v63 = vunpack.i.l.bf16 %v13805_v54  ;;  %v725_v15 = vsel %vm721_vm13, %v13806_v1, %v5988_v4  ;;  %1617 = vmatmul.f32.gmra.mxu3 %v7824_v53  ;;  %v13810_v4 = vunpack.i.h.bf16 %v13802_v43  ;;  %v13811_v13 = vld [vmem:[#allocation35_spill] sm:$0xff] }
 0x562   :  { %1832 = vmatpush.msrb.mxu3 %v722_v62  ;;  %v13808_v62 = vld [vmem:[#allocation36_spill] sm:$0xff]  ;;  %v13813_v1 = vunpack.i.h.bf16 %v13805_v54  ;;  %v13871_v43 = vunpack.i.h.bf16 %v13754_v41 }
 0x563   :  { %1656 = vmatpush.msra.mxu0 %v791_v23  ;;  %v13807_v23 = vunpack.i.h.bf16 %v13799_v3  ;;  %v5943_v51 = vunpack.i.l.bf16 %v13808_v62 }
 0x564   :  { %1833 = vmatpush.msrb.mxu3 %v689_v44  ;;  %1556 = vmatmul.f32.gmra.mxu0 %v7770_v59  ;;  %v13809_v59 = vunpack.i.h.bf16 %v13589_v0  ;;  %v5933_v44 = vunpack.i.l.bf16 %v13811_v13  ;;  %v13812_v0 = vunpack.i.h.bf16 %v13599_v10 }
 0x565   :  { %1657 = vmatpush.msra.mxu0 %v758_v7  ;;  %v656_v16 = vsel %vm655_vm15, %v5973_v5, %v13807_v23  ;;  %v623_v7 = vsel %vm622_vm0, %v5963_v61, %v13810_v4  ;;  %v13815_v23 = vld [vmem:[#allocation41_spill] sm:$0xff] }
 0x566   :  { %1834 = vmatpush.msrb.mxu3 %v656_v16  ;;  %v692_v57 = vsel %vm688_vm14, %v13809_v59, %v5978_v37  ;;  %v659_v37 = vsel %vm655_vm15, %v13812_v0, %v5968_v18  ;;  %v5923_v10 = vunpack.i.l.bf16 %v13815_v23  ;;  %v13816_v18 = vunpack.i.h.bf16 %v13742_v31 }
 0x567   :  { %1658 = vmatpush.msra.mxu0 %v725_v15  ;;  %v590_v15 = vsel %vm13814_vm2, %v5953_v63, %v13813_v1  ;;  %5510 = vmatmul.msk.f32.gmra.mxu2 %vm1408_vm6, %v13723_v2  ;;  %v13817_v59 = vunpack.i.h.bf16 %v13808_v62  ;;  %v13820_v31 = vunpack.i.h.bf16 %v13606_v29  ;;  %vm13832_vm2 = vmmov %vm13823_vm7  ;;  %v6863_v62 = vmov 0  }
 0x568   :  { %1835 = vmatpush.msrb.mxu3 %v623_v7  ;;  %5514 = vmatmul.msk.f32.gmra.mxu1 %vm1408_vm6, %v13723_v2  ;;  %v626_v16 = vsel %vm622_vm0, %v13816_v18, %v5958_v48  ;;  %v13819_v2 = vld [vmem:[#allocation33_spill] sm:$0xff]  ;;  %v13822_v7 = vunpack.i.h.bf16 %v13811_v13  ;;  %v13826_v18 = vunpack.i.h.bf16 %v13619_v30  ;;  %v2116_v13 = vld [vmem:[%s13049_s11 + $0x18] sm:$0xff] }
 0x569   :  { %1659 = vmatpush.msra.mxu0 %v692_v57  ;;  %v557_v57 = vsel %vm13818_vm5, %v5943_v51, %v13817_v59  ;;  %v5913_v4 = vunpack.i.l.bf16 %v13819_v2  ;;  %v593_v48 = vsel %vm13821_vm1, %v13820_v31, %v5948_v60  ;;  %1620 = vmatmul.f32.gmra.mxu3 %v13748_v11  ;;  %v13828_v60 = vunpack.i.h.bf16 %v13815_v23  ;;  %vm13837_vm1 = vmmov %vm13829_vm3 }
 0x56a   :  { %1836 = vmatpush.msrb.mxu3 %v590_v15  ;;  %v524_v0 = vsel %vm13823_vm7, %v5933_v44, %v13822_v7  ;;  %v13825_v15 = vunpack.i.l.bf16 %v13732_v40  ;;  %v13830_v59 = vunpack.i.l.bf16 %v13735_v22  ;;  %v13833_v31 = vunpack.i.h.bf16 %v13819_v2  ;;  %6140 = vset.pattern.permute.xlu2 %v6863_v62 }
 0x56b   :  { %1660 = vmatpush.msra.mxu0 %v659_v37  ;;  %v13824_v37 = vld [vmem:[#allocation32_spill] sm:$0xff]  ;;  %vm13834_vm5 = vcmp.lt.s32.totalorder %v7376_v12, 2  ;;  %v13836_v7 = vunpack.i.h.bf16 %v13603_v52  ;;  %vm13839_vm7 = vcmp.lt.s32.totalorder %v7376_v12, 1  ;;  %v13867_v40 = vunpack.i.h.bf16 %v13740_v50  ;;  %6141 = vset.pattern.permute.xlu1 %v6863_v62 }
 0x56c   :  { %1837 = vmatpush.msrb.mxu3 %v557_v57  ;;  %1559 = vmatmul.f32.gmra.mxu0 %v7824_v53  ;;  %v5903_v1 = vunpack.i.l.bf16 %v13824_v37  ;;  %v560_v29 = vsel %vm13827_vm4, %v13826_v18, %v13825_v15  ;;  %v13831_v57 = vunpack.i.h.bf16 %v13627_v38  ;;  %v13835_v38 = vunpack.i.l.bf16 %v13740_v50  ;;  %vm13842_vm4 = vmmov %vm13834_vm5 }
 0x56d   :  { %1661 = vmatpush.msra.mxu0 %v626_v16  ;;  %v491_v16 = vsel %vm13829_vm3, %v5923_v10, %v13828_v60  ;;  %v13838_v15 = vunpack.i.h.bf16 %v13824_v37  ;;  %v13843_v60 = vld [vmem:[#allocation7_spill] sm:$0xff]  ;;  %vm13844_vm3 = vcmask 1043456   ;;  %6142 = vset.pattern.permute.xlu0 %v6863_v62 }
 0x56e   :  { %1838 = vmatpush.msrb.mxu3 %v524_v0  ;;  %v527_v30 = vsel %vm13832_vm2, %v13831_v57, %v13830_v59  ;;  %v494_v0 = vsel %vm13837_vm1, %v13836_v7, %v13835_v38  ;;  %v13846_v59 = vunpack.i.h.bf16 %v13660_v35  ;;  %vm13847_vm2 = vmmov %vm13839_vm7  ;;  %v13850_v35 = vunpack.i.l.bf16 %v13765_v58  ;;  %v6801_v58 = vld [vmem:[%s13048_s10 + $0x10] sm:$0xff] }
 0x56f   :  { %1662 = vmatpush.msra.mxu0 %v593_v48  ;;  %v458_v48 = vsel %vm13834_vm5, %v5913_v4, %v13833_v31  ;;  %5511 = vmatmul.msk.f32.gmra.mxu2 %vm1408_vm6, %v13741_v34  ;;  %v425_v18 = vsel %vm13839_vm7, %v5903_v1, %v13838_v15  ;;  %vm13849_vm5 = vmmov %vm13844_vm3  ;;  %v13851_v31 = vunpack.i.h.bf16 %v13671_v46  ;;  %v13852_v38 = vunpack.i.l.bf16 %v13772_v28 }
 0x570   :  { %1839 = vmatpush.msrb.mxu3 %v491_v16  ;;  %5515 = vmatmul.msk.f32.gmra.mxu1 %vm1408_vm6, %v13741_v34  ;;  %v13840_v34 = vunpack.i.l.bf16 %v13747_v24  ;;  %v13845_v16 = vunpack.i.l.bf16 %v13754_v41  ;;  %v13853_v7 = vunpack.i.h.bf16 %v13675_v21  ;;  %v13854_v15 = vunpack.i.h.bf16 %v13685_v19  ;;  %v6802_v19 = vld [vmem:[%s13048_s10 + $0x8] sm:$0xff] }
 0x571   :  { %1663 = vmatpush.msra.mxu0 %v560_v29  ;;  %v13841_v29 = vunpack.i.h.bf16 %v13602_v26  ;;  %v13848_v26 = vld [vmem:[#allocation8_spill] sm:$0xff]  ;;  %v13855_v21 = vunpack.i.h.bf16 %v13695_v6  ;;  %v13857_v6 = vunpack.i.h.bf16 %v13705_v32  ;;  %v657_v32 = vsel %vm655_vm15, %v13859_v8, %v5973_v5  ;;  %vm13872_vm15 = vmmov %vm13847_vm2 }
 0x572   :  { %1840 = vmatpush.msrb.mxu3 %v458_v48  ;;  %v428_v57 = vsel %vm13847_vm2, %v13846_v59, %v13845_v16  ;;  %v888_v48 = vsel %vm886_vm8, %v13851_v31, %v13850_v35  ;;  %v822_v46 = vsel %vm820_vm10, %v13854_v15, %v6023_v36  ;;  %v756_v36 = vsel %vm754_vm12, %v13856_v27, %v6003_v14  ;;  %vm13868_vm12 = vmmov %vm13837_vm1  ;;  %v2171_v27 = vld [vmem:[%s13050_s12 + $0x10] sm:$0xff] }
 0x573   :  { %1664 = vmatpush.msra.mxu0 %v527_v30  ;;  %v461_v52 = vsel %vm13842_vm4, %v13841_v29, %v13840_v34  ;;  %v6800_v30 = vld [vmem:[%s13048_s10] sm:$0xff]  ;;  %v789_v28 = vsel %vm787_vm11, %v13855_v21, %v6013_v9  ;;  %v723_v45 = vsel %vm721_vm13, %v13857_v6, %v5993_v39  ;;  %v13858_v9 = vunpack.i.h.bf16 %v13712_v20  ;;  %v6803_v39 = vld [vmem:[%s13048_s10 + $0x18] sm:$0xff] }
 0x574   :  { %1841 = vmatpush.msrb.mxu3 %v425_v18  ;;  %1562 = vmatmul.f32.gmra.mxu0 %v13748_v11  ;;  %v13860_v20 = vunpack.i.h.bf16 %v13722_v55  ;;  %vm13864_vm10 = vcmp.lt.s32.totalorder %v7376_v12, 20  ;;  %vm13866_vm11 = vcmp.lt.s32.totalorder %v7376_v12, 4  ;;  %v492_v3 = vsel %vm13868_vm12, %v13867_v40, %v5923_v10  ;;  %v2169_v21 = vld [vmem:[%s13050_s12] sm:$0xff] }
 0x575   :  { %1665 = vmatpush.msra.mxu0 %v494_v0  ;;  %1727 = vmatmul.f32.vlgmr.msra.gmra.mxu3 %v6800_v30  ;;  %v855_v0 = vsel %vm853_vm9, %v13853_v7, %v13852_v38  ;;  %v690_v33 = vsel %vm688_vm14, %v13858_v9, %v5983_v17  ;;  %vm13862_vm9 = vcmp.lt.s32.totalorder %v7376_v12, 21  ;;  %v558_v55 = vsel %vm13864_vm10, %v13863_v25, %v5943_v51  ;;  %v6804_v17 = vld [vmem:[%s13048_s10 + $0x28] sm:$0xff]  ;;  %vm13870_vm14 = vmmov %vm13842_vm4 }
 0x576   :  { %5624 = vmatpush.msk.msrb.mxu3 %vm13844_vm3, %v13843_v60  ;;  %v624_v14 = vsel %vm622_vm0, %v13860_v20, %v5963_v61  ;;  %v591_v56 = vsel %vm13862_vm9, %v13861_v47, %v5953_v63  ;;  %v426_v50 = vsel %vm13872_vm15, %v13871_v43, %v5903_v1  ;;  %vm13874_vm0 = vmmov %vm13844_vm3  ;;  %v8957_v61 = vpop.f32.mrf.mxu2  ;;  %v2113_v63 = vld [vmem:[%s13049_s11] sm:$0xff]  ;;  %v2172_v60 = vld [vmem:[%s13050_s12 + $0x18] sm:$0xff]  ;;  %vm13920_vm15 = vcmp.lt.s32.totalorder %v7376_v12, 80 }
 0x577   :  { %1666 = vmatpush.msra.mxu0 %v461_v52  ;;  %5512 = vmatmul.msk.f32.gmra.mxu2 %vm1408_vm6, %v13766_v49  ;;  %v2114_v7 = vld [vmem:[%s13049_s11 + $0x8] sm:$0xff] }
 0x578   :  { %5516 = vmatmul.msk.f32.gmra.mxu1 %vm1408_vm6, %v13766_v49  ;;  %2119 = vperm.xlu2 %6140, %v2113_v63  }
 0x579   :  { %1667 = vmatpush.msra.mxu0 %v428_v57  ;;  %2124 = vperm.xlu1 %6141, %v2114_v7  }
 0x57b   :  { %5621 = vmatpush.msk.msra.mxu0 %vm13849_vm5, %v13848_v26 }
 0x57c   :  { %1669 = vmatmul.f32.vlgmr.msra.gmra.mxu0 %v6800_v30 }
 0x57d   :  { %1769 = vmatpush.msrb.mxu0 %v888_v48  ;;  %1730 = vmatmul.f32.gmra.mxu3 %v6801_v58 }
 0x57e   :  { %v8959_v41 = vpop.f32.mrf.mxu2 }
 0x57f   :  { %1770 = vmatpush.msrb.mxu0 %v855_v0  ;;  %5517 = vmatmul.msk.f32.vlgmr.msra.gmra.mxu2 %vm1408_vm6, %v6802_v19  ;;  %v2115_v0 = vld [vmem:[%s13049_s11 + $0x10] sm:$0xff] }
 0x580   :  { %5521 = vmatmul.msk.f32.vlgmr.msrb.gmra.mxu1 %vm1408_vm6, %v6802_v19  ;;  %2134 = vperm.xlu2 %6140, %v2116_v13  }
 0x581   :  { %1771 = vmatpush.msrb.mxu0 %v822_v46  ;;  %2129 = vperm.xlu0 %6142, %v2115_v0  }
 0x582   :  { %2175 = vperm.xlu1 %6141, %v2169_v21  }
 0x583   :  { %1772 = vmatpush.msrb.mxu0 %v789_v28 }
 0x584   :  { %1672 = vmatmul.f32.gmra.mxu0 %v6801_v58 }
 0x585   :  { %1773 = vmatpush.msrb.mxu0 %v756_v36  ;;  %1733 = vmatmul.f32.gmra.mxu3 %v7824_v53 }
 0x586   :  { %v8969_v51 = vpop.f32.mrf.mxu2 }
 0x587   :  { %1774 = vmatpush.msrb.mxu0 %v723_v45  ;;  %5518 = vmatmul.msk.f32.gmra.mxu2 %vm1408_vm6, %v6803_v39 }
 0x588   :  { %5522 = vmatmul.msk.f32.gmra.mxu1 %vm1408_vm6, %v6803_v39 }
 0x589   :  { %1775 = vmatpush.msrb.mxu0 %v690_v33 }
 0x58a   :  { %2185 = vperm.xlu1 %6141, %v2171_v27  }
 0x58b   :  { %1776 = vmatpush.msrb.mxu0 %v657_v32 }
 0x58c   :  { %1675 = vmatmul.f32.gmra.mxu0 %v7824_v53  ;;  %v13865_v53 = vunpack.i.h.bf16 %v13735_v22  ;;  %v13869_v22 = vunpack.i.h.bf16 %v13747_v24  ;;  %v8955_v24 = vpop.f32.mrf.mxu1 }
 0x58d   :  { %1777 = vmatpush.msrb.mxu0 %v624_v14  ;;  %1736 = vmatmul.f32.gmra.mxu3 %v13748_v11  ;;  %v9037_v40 = vadd.f32 %v8957_v61, %v8955_v24 }
 0x58e   :  { %v525_v42 = vsel %vm13866_vm11, %v13865_v53, %v5933_v44  ;;  %v459_v5 = vsel %vm13870_vm14, %v13869_v22, %v5913_v4  ;;  %v6806_v44 = vld [vmem:[%s13048_s10 + $0x30] sm:$0xff]  ;;  %v8979_v2 = vpop.f32.mrf.mxu2  ;;  %v2170_v4 = vld [vmem:[%s13050_s12 + $0x8] sm:$0xff]  ;;  %s6869_s12 = smov 126  }
 0x58f   :  { %1778 = vmatpush.msrb.mxu0 %v591_v56  ;;  %5519 = vmatmul.msk.f32.gmra.mxu2 %vm1408_vm6, %v6804_v17 }
 0x590   :  { %5523 = vmatmul.msk.f32.gmra.mxu1 %vm1408_vm6, %v6804_v17  ;;  %2180 = vperm.xlu2 %6140, %v2170_v4  }
 0x591   :  { %1779 = vmatpush.msrb.mxu0 %v558_v55 }
 0x593   :  { %1780 = vmatpush.msrb.mxu0 %v525_v42 }
 0x594   :  { %1678 = vmatmul.f32.gmra.mxu0 %v13748_v11  ;;  %v13873_v11 = vld [vmem:[#allocation10_spill] sm:$0xff]  ;;  %v8961_v54 = vpop.f32.mrf.mxu1 }
 0x595   :  { %1781 = vmatpush.msrb.mxu0 %v492_v3  ;;  %1843 = vmatmul.f32.vlgmr.msrb.gmra.mxu3 %v6800_v30  ;;  %v9061_v13 = vadd.f32 %v8959_v41, %v8961_v54 }
 0x596   :  { %v1583_v34 = vpop.f32.mrf.mxu2 }
 0x597   :  { %1782 = vmatpush.msrb.mxu0 %v459_v5  ;;  %5520 = vmatmul.msk.f32.gmra.mxu2 %vm1408_vm6, %v13766_v49  ;;  %v1438_v10 = vpop.f32.mrf.mxu3  ;;  %v1934_v54 = vmul.f32 %v9061_v13, %v9061_v13 }
 0x598   :  { %5524 = vmatmul.msk.f32.gmra.mxu1 %vm1408_vm6, %v13766_v49  ;;  %v6805_v49 = vld [vmem:[%s13048_s10 + $0x20] sm:$0xff]  ;;  %2190 = vperm.xlu2 %6140, %v2172_v60  }
 0x599   :  { %1783 = vmatpush.msrb.mxu0 %v426_v50  ;;  %v1926_v50 = vmul.f32 %v9037_v40, %v9037_v40 }
 0x59b   :  { %5623 = vmatpush.msk.msrb.mxu0 %vm13874_vm0, %v13873_v11  ;;  %vm13922_vm0 = vmmov %vm13920_vm15 }
 0x59c   :  { %1785 = vmatmul.f32.vlgmr.msrb.gmra.mxu0 %v6800_v30  ;;  %v8977_v23 = vpop.f32.mrf.mxu1 }
 0x59d   :  { %1846 = vmatmul.f32.gmra.mxu3 %v6801_v58 }
 0x59f   :  { %v1441_v18 = vpop.f32.mrf.mxu3 }
 0x5a4   :  { %1788 = vmatmul.f32.gmra.mxu0 %v6801_v58  ;;  %v8984_v1 = vpop.f32.mrf.mxu1 }
 0x5a5   :  { %1849 = vmatmul.f32.gmra.mxu3 %v6805_v49 }
 0x5a7   :  { %v8989_v16 = vpop.f32.mrf.mxu3 }
 0x5ac   :  { %1791 = vmatmul.f32.gmra.mxu0 %v6805_v49  ;;  %v1641_v52 = vpop.f32.mrf.mxu1 }
 0x5ad   :  { %1852 = vmatmul.f32.gmra.mxu3 %v6806_v44 }
 0x5b4   :  { %1794 = vmatmul.f32.gmra.mxu0 %v6806_v44 }
 0x5b5   :  { %v1467_v37 = vpop.f32.mrf.mxu0 }
 0x5b6   :  { %v9033_v17 = vadd.f32 %v1467_v37, %v1438_v10 }
 0x5b8   :  { %v1925_v43 = vmul.f32 %v9033_v17, %v9033_v17  ;;  %v1885_v24 = vadd.f32 %v9037_v40, %v9033_v17 }
 0x5ba   :  { %v1957_v61 = vadd.f32 %v1926_v50, %v1925_v43 }
 0x5c0   :  { %v1470_v29 = vpop.f32.mrf.mxu0 }
 0x5c1   :  { %v9057_v62 = vadd.f32 %v1470_v29, %v1441_v18 }
 0x5c3   :  { %v1933_v41 = vmul.f32 %v9057_v62, %v9057_v62  ;;  %v1894_v0 = vadd.f32 %v9061_v13, %v9057_v62 }
 0x5c5   :  { %v8993_v30 = vpop.f32.mrf.mxu1 }
 0x5c9   :  { %v8991_v59 = vpop.f32.mrf.mxu0 }
 0x5ca   :  { %v1586_v57 = vpop.f32.mrf.mxu2  ;;  %v9096_v43 = vadd.f32 %v8991_v59, %v8989_v16 }
 0x5cc   :  { %v8995_v26 = vpop.f32.mrf.mxu3 }
 0x5cd   :  { %v9001_v48 = vpop.f32.mrf.mxu1 }
 0x5d1   :  { %v8997_v35 = vpop.f32.mrf.mxu0 }
 0x5d2   :  { %v8999_v31 = vpop.f32.mrf.mxu2 }
 0x5d4   :  { %v1612_v38 = vpop.f32.mrf.mxu3 }
 0x5d5   :  { %v9011_v58 = vpop.f32.mrf.mxu1  ;;  %v9051_v63 = vadd.f32 %v1641_v52, %v1612_v38 }
 0x5d9   :  { %v1554_v15 = vpop.f32.mrf.mxu0 }
 0x5da   :  { %v9009_v46 = vpop.f32.mrf.mxu2  ;;  %v9039_v3 = vadd.f32 %v1583_v34, %v1554_v15  ;;  %v1928_v34 = vmul.f32 %v9051_v63, %v9051_v63 }
 0x5dc   :  { %v1615_v19 = vpop.f32.mrf.mxu3  ;;  %v1927_v11 = vmul.f32 %v9039_v3, %v9039_v3  ;;  %v1886_v44 = vadd.f32 %v1885_v24, %v9039_v3 }
 0x5dd   :  { %v1757_v6 = vpop.f32.mrf.mxu1 }
 0x5de   :  { %v1958_v37 = vadd.f32 %v1957_v61, %v1927_v11  ;;  %v1887_v7 = vadd.f32 %v1886_v44, %v9051_v63 }
 0x5e0   :  { %v1959_v15 = vadd.f32 %v1958_v37, %v1928_v34 }
 0x5e1   :  { %v1557_v28 = vpop.f32.mrf.mxu0 }
 0x5e2   :  { %v1699_v36 = vpop.f32.mrf.mxu2  ;;  %v9070_v38 = vadd.f32 %v1586_v57, %v1557_v28  ;;  %v9084_v57 = vadd.f32 %v8993_v30, %v1615_v19  ;;  %v9100_v30 = vadd.f32 %v8969_v51, %v8977_v23 }
 0x5e4   :  { %v9019_v9 = vpop.f32.mrf.mxu3  ;;  %v1935_v21 = vmul.f32 %v9070_v38, %v9070_v38  ;;  %v1895_v27 = vadd.f32 %v1894_v0, %v9070_v38  ;;  %v1936_v19 = vmul.f32 %v9084_v57, %v9084_v57  ;;  %v1941_v0 = vmul.f32 %v9096_v43, %v9096_v43 }
 0x5e5   :  { %v1760_v39 = vpop.f32.mrf.mxu1 }
 0x5e9   :  { %v1560_v45 = vpop.f32.mrf.mxu0 }
 0x5ea   :  { %v1702_v32 = vpop.f32.mrf.mxu2  ;;  %v9111_v16 = vadd.f32 %v8999_v31, %v1560_v45  ;;  %v1903_v31 = vadd.f32 %v9100_v30, %v9096_v43  ;;  %v1942_v45 = vmul.f32 %v9100_v30, %v9100_v30 }
 0x5ec   :  { %v9023_v8 = vpop.f32.mrf.mxu3 }
 0x5ed   :  { %v9027_v56 = vpop.f32.mrf.mxu1 }
 0x5f1   :  { %v9021_v33 = vpop.f32.mrf.mxu0 }
 0x5f2   :  { %v9025_v47 = vpop.f32.mrf.mxu2 }
 0x5f5   :  { %v9031_v42 = vpop.f32.mrf.mxu1 }
 0x5f8   :  { %v1728_v14 = vpop.f32.mrf.mxu3 }
 0x5f9   :  { %v1670_v20 = vpop.f32.mrf.mxu0  ;;  %v9074_v29 = vadd.f32 %v1757_v6, %v1728_v14 }
 0x5fa   :  { %v9029_v53 = vpop.f32.mrf.mxu2  ;;  %v9055_v49 = vadd.f32 %v1699_v36, %v1670_v20  ;;  %v1966_v20 = vadd.f32 %v1934_v54, %v1933_v41 }
 0x5fb   :  { %v1930_v36 = vmul.f32 %v9074_v29, %v9074_v29 }
 0x5fc   :  { %v1929_v18 = vmul.f32 %v9055_v49, %v9055_v49  ;;  %v1888_v28 = vadd.f32 %v1887_v7, %v9055_v49  ;;  %v1967_v24 = vadd.f32 %v1966_v20, %v1935_v21  ;;  %v1904_v21 = vadd.f32 %v1903_v31, %v9111_v16 }
 0x5fd   :  { %v1873_v4 = vpop.f32.mrf.mxu1 }
 0x5fe   :  { %v1960_v6 = vadd.f32 %v1959_v15, %v1929_v18  ;;  %v9136_v15 = vadd.f32 %v8997_v35, %v8995_v26  ;;  %v9151_v26 = vadd.f32 %v9009_v46, %v9021_v33 }
 0x600   :  { %v1731_v55 = vpop.f32.mrf.mxu3  ;;  %v1961_v23 = vadd.f32 %v1960_v6, %v1930_v36  ;;  %v1943_v6 = vmul.f32 %v9111_v16, %v9111_v16 }
 0x601   :  { %v1673_v25 = vpop.f32.mrf.mxu0  ;;  %v9113_v59 = vadd.f32 %v1760_v39, %v1731_v55  ;;  %v9128_v39 = vadd.f32 %v8979_v2, %v8984_v1  ;;  %v1968_v55 = vadd.f32 %v1967_v24, %v1936_v19  ;;  %v1949_v24 = vmul.f32 %v9136_v15, %v9136_v15 }
 0x602   :  { %v1815_v10 = vpop.f32.mrf.mxu2  ;;  %v9092_v14 = vadd.f32 %v1702_v32, %v1673_v25  ;;  %v1889_v32 = vadd.f32 %v1888_v28, %v9074_v29  ;;  %v1896_v25 = vadd.f32 %v1895_v27, %v9084_v57  ;;  %v9141_v28 = vadd.f32 %v9001_v48, %v9019_v9 }
 0x603   :  { %v1938_v2 = vmul.f32 %v9113_v59, %v9113_v59  ;;  %v1950_v36 = vmul.f32 %v9128_v39, %v9128_v39  ;;  %v1912_v46 = vadd.f32 %v9128_v39, %v9136_v15 }
 0x604   :  { %v1937_v34 = vmul.f32 %v9092_v14, %v9092_v14  ;;  %v1897_v41 = vadd.f32 %v1896_v25, %v9092_v14  ;;  %v1905_v33 = vadd.f32 %v1904_v21, %v9141_v28 }
 0x605   :  { %v1876_v37 = vpop.f32.mrf.mxu1 }
 0x606   :  { %v1969_v27 = vadd.f32 %v1968_v55, %v1937_v34  ;;  %v9178_v34 = vadd.f32 %v9011_v58, %v9023_v8  ;;  %v1984_v55 = vadd.f32 %v1950_v36, %v1949_v24 }
 0x608   :  { %v9043_v5 = vpop.f32.mrf.mxu3 }
 0x609   :  { %v9041_v22 = vpop.f32.mrf.mxu0  ;;  %v9183_v31 = vadd.f32 %v9027_v56, %v9043_v5  ;;  %v1952_v56 = vmul.f32 %v9178_v34, %v9178_v34 }
 0x60a   :  { %v1818_v51 = vpop.f32.mrf.mxu2  ;;  %v9155_v48 = vadd.f32 %v9025_v47, %v9041_v22 }
 0x610   :  { %v9068_v60 = vpop.f32.mrf.mxu3 }
 0x611   :  { %v9066_v52 = vpop.f32.mrf.mxu0 }
 0x618   :  { %v1844_v11 = vpop.f32.mrf.mxu3 }
 0x619   :  { %v1786_v50 = vpop.f32.mrf.mxu0  ;;  %v9106_v44 = vadd.f32 %v1873_v4, %v1844_v11  ;;  %v1975_v11 = vadd.f32 %v1942_v45, %v1941_v0 }
 0x61a   :  { %v9104_v61 = vadd.f32 %v1815_v10, %v1786_v50  ;;  %v1898_v50 = vadd.f32 %v1897_v41, %v9113_v59  ;;  %v1913_v41 = vadd.f32 %v1912_v46, %v9151_v26 }
 0x61b   :  { %v1932_v18 = vmul.f32 %v9106_v44, %v9106_v44 }
 0x61c   :  { %v1890_v10 = vadd.f32 %v1889_v32, %v9104_v61  ;;  %v1931_v4 = vmul.f32 %v9104_v61, %v9104_v61  ;;  %v1970_v32 = vadd.f32 %v1969_v27, %v1938_v2 }
 0x61e   :  { %v1891_v54 = vadd.f32 %v1890_v10, %v9106_v44  ;;  %v1962_v7 = vadd.f32 %v1961_v23, %v1931_v4  ;;  %v1944_v23 = vmul.f32 %v9141_v28, %v9141_v28  ;;  %v1821_v10 = vpop.f32.mrf.mxu2  ;;  %v1879_v4 = vpop.f32.mrf.mxu1 }
 0x620   :  { %1892 = vadd.xlane.f32.xlu2 %v1891_v54  ;;  %v1963_v1 = vadd.f32 %v1962_v7, %v1932_v18  ;;  %v1847_v20 = vpop.f32.mrf.mxu3  ;;  %v1906_v18 = vadd.f32 %v1905_v33, %v9155_v48  ;;  %v1945_v54 = vmul.f32 %v9155_v48, %v9155_v48  ;;  %v9190_v7 = vadd.f32 %v9029_v53, %v9066_v52 }
 0x621   :  { %v1789_v35 = vpop.f32.mrf.mxu0  ;;  %v9159_v19 = vadd.f32 %v1876_v37, %v1847_v20  ;;  %v1951_v37 = vmul.f32 %v9151_v26, %v9151_v26  ;;  %v1914_v53 = vadd.f32 %v1913_v41, %v9178_v34  ;;  %v1946_v52 = vmul.f32 %v9183_v31, %v9183_v31 }
 0x622   :  { %v9157_v9 = vadd.f32 %v1818_v51, %v1789_v35  ;;  %1964 = vadd.xlane.f32.xlu0 %v1963_v1  ;;  %v1976_v51 = vadd.f32 %v1975_v11, %v1943_v6  ;;  %v1907_v36 = vadd.f32 %v1906_v18, %v9183_v31  ;;  %v1953_v6 = vmul.f32 %v9190_v7, %v9190_v7 }
 0x623   :  { %v1940_v22 = vmul.f32 %v9159_v19, %v9159_v19  ;;  %v1985_v21 = vadd.f32 %v1984_v55, %v1951_v37  ;;  %v9207_v35 = vadd.f32 %v9031_v42, %v9068_v60  ;;  %v1915_v11 = vadd.f32 %v1914_v53, %v9190_v7  ;;  %v9237_v53 = vpop.permute.xlu0 %2129 }
 0x624   :  { %v1939_v47 = vmul.f32 %v9157_v9, %v9157_v9  ;;  %v1899_v25 = vadd.f32 %v1898_v50, %v9157_v9  ;;  %v1977_v0 = vadd.f32 %v1976_v51, %v1944_v23 }
 0x625   :  { %v1986_v24 = vadd.f32 %v1985_v21, %v1952_v56  ;;  %v1916_v23 = vadd.f32 %v1915_v11, %v9207_v35  ;;  %v9229_v56 = vpop.permute.xlu2 %2119 }
 0x626   :  { %v1971_v45 = vadd.f32 %v1970_v32, %v1939_v47  ;;  %v1900_v8 = vadd.f32 %v1899_v25, %v9159_v19  ;;  %v1978_v50 = vadd.f32 %v1977_v0, %v1945_v54  ;;  %v1824_v47 = vpop.f32.mrf.mxu2  ;;  %v1954_v32 = vmul.f32 %v9207_v35, %v9207_v35 }
 0x627   :  { %v1987_v42 = vadd.f32 %v1986_v24, %v1953_v6 }
 0x628   :  { %v1972_v58 = vadd.f32 %v1971_v45, %v1940_v22  ;;  %v1850_v2 = vpop.f32.mrf.mxu3  ;;  %v1882_v22 = vpop.f32.mrf.mxu1  ;;  %v1979_v25 = vadd.f32 %v1978_v50, %v1946_v52 }
 0x629   :  { %v1792_v5 = vpop.f32.mrf.mxu0  ;;  %v9197_v27 = vadd.f32 %v1879_v4, %v1850_v2  ;;  %v1988_v54 = vadd.f32 %v1987_v42, %v1954_v32 }
 0x62a   :  { %v9195_v1 = vadd.f32 %v1821_v10, %v1792_v5  ;;  %1973 = vadd.xlane.f32.xlu2 %v1972_v58  ;;  %1901 = vadd.xlane.f32.xlu0 %v1900_v8 }
 0x62b   :  { %v1948_v4 = vmul.f32 %v9197_v27, %v9197_v27 }
 0x62c   :  { %v1908_v20 = vadd.f32 %v1907_v36, %v9195_v1  ;;  %v1947_v33 = vmul.f32 %v9195_v1, %v9195_v1 }
 0x62d   :  { %v9231_v5 = vpop.permute.xlu2 %2134 }
 0x62e   :  { %v1909_v46 = vadd.f32 %v1908_v20, %v9197_v27  ;;  %v1980_v18 = vadd.f32 %v1979_v25, %v1947_v33 }
 0x630   :  { %1910 = vadd.xlane.f32.xlu1 %v1909_v46  ;;  %v1853_v51 = vpop.f32.mrf.mxu3  ;;  %v1981_v58 = vadd.f32 %v1980_v18, %v1948_v4  ;;  %v9247_v4 = vpop.permute.xlu1 %2124 }
 0x631   :  { %v1795_v60 = vpop.f32.mrf.mxu0  ;;  %v9219_v10 = vadd.f32 %v1882_v22, %v1853_v51 }
 0x632   :  { %v9217_v37 = vadd.f32 %v1824_v47, %v1795_v60 }
 0x633   :  { %v1956_v41 = vmul.f32 %v9219_v10, %v9219_v10 }
 0x634   :  { %v1917_v45 = vadd.f32 %v1916_v23, %v9217_v37  ;;  %v1955_v55 = vmul.f32 %v9217_v37, %v9217_v37 }
 0x635   :  { %v9233_v2 = vpop.permute.xlu2 %2180 }
 0x636   :  { %v1918_v8 = vadd.f32 %v1917_v45, %v9219_v10  ;;  %v1989_v0 = vadd.f32 %v1988_v54, %v1955_v55  ;;  %v5525_v54 = vld [vmem:[%s13051_s14 + $0x4] ss:$8 sm:$0xf] }
 0x638   :  { %1982 = vadd.xlane.f32.xlu1 %v1981_v58  ;;  %1919 = vadd.xlane.f32.xlu2 %v1918_v8  ;;  %v1990_v21 = vadd.f32 %v1989_v0, %v1956_v41  ;;  %v5526_v58 = vld [vmem:[%s13051_s14 + $0x4] ss:$8 sm:$0xf0] }
 0x63a   :  { %1991 = vadd.xlane.f32.xlu0 %v1990_v21 }
 0x63d   :  { %v9235_v36 = vpop.permute.xlu2 %2190 }
 0x693   :  { %v1893_v52 = vpop.xlane.xlu2 %1892 }
 0x694   :  { %v9239_v6 = vmul.f32 0.00125, %v1893_v52 }
 0x695   :  { %v1965_v20 = vpop.xlane.xlu0 %1964 }
 0x696   :  { %v1993_v50 = vmul.f32 0.00125, %v1965_v20  ;;  %v1997_v11 = vmul.f32 %v9239_v6, %v9239_v6  ;;  %v2005_v8 = vsub.f32 %v9033_v17, %v9239_v6  ;;  %v2006_v0 = vsub.f32 %v9037_v40, %v9239_v6  ;;  %v9270_v40 = vpop.permute.xlu1 %2175 }
 0x697   :  { %v2012_v21 = vsub.f32 %v9106_v44, %v9239_v6 }
 0x698   :  { %v2001_v24 = vsub.f32 %v1993_v50, %v1997_v11  ;;  %v9265_v11 = vor.u32 %v5526_v58, %v5525_v54  ;;  %v2007_v54 = vsub.f32 %v9039_v3, %v9239_v6  ;;  %v2009_v3 = vsub.f32 %v9055_v49, %v9239_v6 }
 0x69a   :  { %v2037_v46 = vadd.f32 1e-05, %v2001_v24 }
 0x69c   :  { %6792 = vrsqrt.f32 %v2037_v46  ;;  %vm2047_vm1 = vweird.f32 %v2037_v46 }
 0x69d   :  { %v1902_v33 = vpop.xlane.xlu0 %1901  ;;  %v1974_v47 = vpop.xlane.xlu2 %1973 }
 0x69e   :  { %v9243_v22 = vmul.f32 0.00125, %v1902_v33  ;;  %v1994_v25 = vmul.f32 0.00125, %v1974_v47 }
 0x6a0   :  { %v1998_v32 = vmul.f32 %v9243_v22, %v9243_v22  ;;  %v2015_v49 = vsub.f32 %v9070_v38, %v9243_v22 }
 0x6a2   :  { %v6793_v42 = vpop.eup %6792  ;;  %v2002_v51 = vsub.f32 %v1994_v25, %v1998_v32  ;;  %v9275_v32 = vperm.slane %v9265_v11, 0  ;;  %v9278_v25 = vperm.slane %v9265_v11, 1 }
 0x6a3   :  { %v2042_v60 = vmul.f32 %v6793_v42, %v2037_v46  ;;  %vm2048_vm6 = vweird.f32 %v6793_v42 }
 0x6a4   :  { %v2038_v45 = vadd.f32 1e-05, %v2002_v51  ;;  %vm2049_vm7 = vmor %vm2047_vm1, %vm2048_vm6 }
 0x6a5   :  { %v2043_v23 = vmul.f32 %v6793_v42, %v2042_v60  ;;  %vm13952_vm6 = vmmov %vm13922_vm0 }
 0x6a6   :  { %6794 = vrsqrt.f32 %v2038_v45  ;;  %vm2057_vm3 = vweird.f32 %v2038_v45  ;;  %vm13954_vm1 = vmmov %vm13922_vm0 }
 0x6a7   :  { %v2044_v18 = vmul.f32 0.5, %v2043_v23 }
 0x6a9   :  { %v2045_v55 = vsub.f32 1.5, %v2044_v18 }
 0x6ab   :  { %v2046_v41 = vmul.f32 %v6793_v42, %v2045_v55 }
 0x6ac   :  { %v6795_v33 = vpop.eup %6794 }
 0x6ad   :  { %v9261_v52 = vsel %vm2049_vm7, %v6793_v42, %v2046_v41  ;;  %v2052_v23 = vmul.f32 %v6795_v33, %v2038_v45  ;;  %vm2058_vm4 = vweird.f32 %v6795_v33  ;;  %v2018_v45 = vsub.f32 %v9113_v59, %v9243_v22 }
 0x6ae   :  { %v2081_v20 = vmul.f32 %v9261_v52, %v2005_v8  ;;  %v2082_v50 = vmul.f32 %v9261_v52, %v2006_v0  ;;  %v2088_v24 = vmul.f32 %v9261_v52, %v2012_v21  ;;  %v2083_v8 = vmul.f32 %v9261_v52, %v2007_v54  ;;  %vm2059_vm2 = vmor %vm2057_vm3, %vm2058_vm4 }
 0x6af   :  { %v2053_v58 = vmul.f32 %v6795_v33, %v2052_v23  ;;  %v9292_v21 = vperm.slane %v9265_v11, 7  ;;  %v2085_v23 = vmul.f32 %v9261_v52, %v2009_v3  ;;  %vm3176_vm7 = vcmp.lt.s32.totalorder %v7376_v12, 68 }
 0x6b0   :  { %v2137_v46 = vmul.f32 %v9229_v56, %v2081_v20  ;;  %v2138_v17 = vmul.f32 %v9229_v56, %v2082_v50  ;;  %v2144_v42 = vmul.f32 %v9229_v56, %v2088_v24  ;;  %v9298_v24 = vpop.permute.xlu1 %2185  ;;  %vm3047_vm4 = vcmp.lt.s32.totalorder %v7376_v12, 88 }
 0x6b1   :  { %v2054_v0 = vmul.f32 0.5, %v2053_v58  ;;  %vm13968_vm3 = vcmp.lt.s32.totalorder %v7376_v12, 20 }
 0x6b2   :  { %v2193_v47 = vadd.f32 %v9270_v40, %v2137_v46  ;;  %v2194_v44 = vadd.f32 %v9270_v40, %v2138_v17  ;;  %v2200_v18 = vadd.f32 %v9270_v40, %v2144_v42  ;;  %v2008_v17 = vsub.f32 %v9051_v63, %v9239_v6 }
 0x6b3   :  { %v2055_v46 = vsub.f32 1.5, %v2054_v0  ;;  %v2139_v42 = vmul.f32 %v9229_v56, %v2083_v8 }
 0x6b4   :  { %v2225_v60 = vmax.f32 %v2193_v47, 0.0  ;;  %v2226_v51 = vmax.f32 %v2194_v44, 0.0  ;;  %v2232_v20 = vmax.f32 %v2200_v18, 0.0  ;;  %v2010_v47 = vsub.f32 %v9074_v29, %v9239_v6 }
 0x6b5   :  { %v2013_v44 = vsub.f32 %v9057_v62, %v9243_v22  ;;  %v2016_v62 = vsub.f32 %v9084_v57, %v9243_v22  ;;  %v2017_v29 = vsub.f32 %v9092_v14, %v9243_v22  ;;  %v2084_v14 = vmul.f32 %v9261_v52, %v2008_v17 }
 0x6b6   :  { %v9283_v55 = vmul.f32 %v9275_v32, %v2225_v60  ;;  %v9286_v41 = vmul.f32 %v9278_v25, %v2226_v51  ;;  %v2014_v60 = vsub.f32 %v9061_v13, %v9243_v22  ;;  %v2056_v51 = vmul.f32 %v6795_v33, %v2055_v46 }
 0x6b7   :  { %v9314_v63 = vmul.f32 %v9292_v21, %v2232_v20  ;;  %v2086_v13 = vmul.f32 %v9261_v52, %v2010_v47  ;;  %v2195_v8 = vadd.f32 %v9270_v40, %v2139_v42  ;;  %v9345_v17 = vperm.slane %v9265_v11, 2 }
 0x6b8   :  { %13875 = vst [vmem:[#allocation25_spill] sm:$0xff] %v9286_v41  ;;  %v9296_v50 = vpack.i.bf16 %v9286_v41, %v9283_v55  ;;  %v9327_v18 = vsel %vm2059_vm2, %v6795_v33, %v2056_v51  ;;  %v2141_v42 = vmul.f32 %v9229_v56, %v2085_v23  ;;  %vm13970_vm2 = vmmov %vm13968_vm3 }
 0x6b9   :  { %13876 = vst [vmem:[#allocation30_spill] sm:$0xff] %v9314_v63  ;;  %v2089_v54 = vmul.f32 %v9327_v18, %v2013_v44  ;;  %v2090_v38 = vmul.f32 %v9327_v18, %v2014_v60  ;;  %v2091_v57 = vmul.f32 %v9327_v18, %v2015_v49  ;;  %v2092_v58 = vmul.f32 %v9327_v18, %v2016_v62  ;;  %v1911_v62 = vpop.xlane.xlu1 %1910 }
 0x6ba   :  { %6144 = vrot.lane.b32.xlu1 %v9296_v50, %s6864_s7  ;;  %v2093_v0 = vmul.f32 %v9327_v18, %v2017_v29  ;;  %v2094_v20 = vmul.f32 %v9327_v18, %v2018_v45  ;;  %v6148_v3 = vpack.i.bf16 %v9314_v63, %v9286_v41  ;;  %v2142_v60 = vmul.f32 %v9229_v56, %v2086_v13 }
 0x6bb   :  { %v2145_v59 = vmul.f32 %v9247_v4, %v2089_v54  ;;  %v2146_v33 = vmul.f32 %v9247_v4, %v2090_v38  ;;  %v2147_v46 = vmul.f32 %v9247_v4, %v2091_v57  ;;  %v2148_v51 = vmul.f32 %v9247_v4, %v2092_v58 }
 0x6bc   :  { %v2149_v47 = vmul.f32 %v9247_v4, %v2093_v0  ;;  %v2150_v44 = vmul.f32 %v9247_v4, %v2094_v20  ;;  %v2227_v49 = vmax.f32 %v2195_v8, 0.0  ;;  %v2140_v38 = vmul.f32 %v9229_v56, %v2084_v14 }
 0x6bd   :  { %v2203_v29 = vadd.f32 %v9233_v2, %v2147_v46  ;;  %v2202_v45 = vadd.f32 %v9233_v2, %v2146_v33  ;;  %v2201_v54 = vadd.f32 %v9233_v2, %v2145_v59  ;;  %v2197_v58 = vadd.f32 %v9270_v40, %v2141_v42 }
 0x6be   :  { %v2206_v57 = vadd.f32 %v9233_v2, %v2150_v44  ;;  %v2205_v13 = vadd.f32 %v9233_v2, %v2149_v47  ;;  %v2198_v8 = vadd.f32 %v9270_v40, %v2142_v60  ;;  %v9361_v46 = vmul.f32 %v9345_v17, %v2227_v49 }
 0x6bf   :  { %v2235_v0 = vmax.f32 %v2203_v29, 0.0  ;;  %v2234_v23 = vmax.f32 %v2202_v45, 0.0  ;;  %v2233_v20 = vmax.f32 %v2201_v54, 0.0  ;;  %v2196_v47 = vadd.f32 %v9270_v40, %v2140_v38 }
 0x6c0   :  { %13877 = vst [vmem:[#allocation27_spill] sm:$0xff] %v9361_v46  ;;  %v2238_v60 = vmax.f32 %v2206_v57, 0.0  ;;  %v9386_v45 = vperm.slane %v9265_v11, 4  ;;  %v9389_v54 = vperm.slane %v9265_v11, 5  ;;  %v2229_v38 = vmax.f32 %v2197_v58, 0.0 }
 0x6c1   :  { %v9364_v59 = vmul.f32 %v9345_v17, %v2235_v0  ;;  %v9367_v14 = vmul.f32 %v9278_v25, %v2234_v23  ;;  %v9370_v33 = vmul.f32 %v9275_v32, %v2233_v20  ;;  %v2230_v0 = vmax.f32 %v2198_v8, 0.0  ;;  %v1983_v20 = vpop.xlane.xlu1 %1982 }
 0x6c2   :  { %6149 = vrot.lane.b32.xlu1 %v6148_v3, %s6842_s1  ;;  %v2204_v3 = vadd.f32 %v9233_v2, %v2148_v51  ;;  %v2237_v51 = vmax.f32 %v2205_v13, 0.0  ;;  %v9396_v57 = vperm.slane %v9265_v11, 3  ;;  %v2228_v23 = vmax.f32 %v2196_v47, 0.0 }
 0x6c3   :  { %13878 = vst [vmem:[#allocation12_spill] sm:$0xff] %v9364_v59  ;;  %v9375_v44 = vpack.i.bf16 %v9364_v59, %v9361_v46  ;;  %v9379_v42 = vpack.i.bf16 %v9367_v14, %v9286_v41  ;;  %v9383_v49 = vpack.i.bf16 %v9370_v33, %v9283_v55  ;;  %v9401_v13 = vmul.f32 %v9389_v54, %v2238_v60 }
 0x6c4   :  { %13879 = vst [vmem:[#allocation13_spill] sm:$0xff] %v9367_v14  ;;  %v2236_v29 = vmax.f32 %v2204_v3, 0.0  ;;  %v9404_v58 = vmul.f32 %v9386_v45, %v2237_v51  ;;  %v9406_v8 = vmul.f32 0.00125, %v1911_v62  ;;  %v9412_v41 = vmul.f32 %v9386_v45, %v2229_v38 }
 0x6c5   :  { %6164 = vrot.lane.b32.xlu0 %v9375_v44, %s6857_s24  ;;  %6159 = vrot.lane.b32.xlu2 %v9379_v42, %s6857_s24  ;;  %13880 = vst [vmem:[#allocation19_spill] sm:$0xff] %v9401_v13  ;;  %v9415_v47 = vmul.f32 %v9389_v54, %v2230_v0  ;;  %v9418_v59 = vmul.f32 %v9396_v57, %v2228_v23  ;;  %v1995_v46 = vmul.f32 0.00125, %v1983_v20 }
 0x6c6   :  { %13881 = vst [vmem:[#allocation66_spill] sm:$0xff] %v9404_v58  ;;  %v9409_v3 = vmul.f32 %v9396_v57, %v2236_v29  ;;  %v2011_v60 = vsub.f32 %v9104_v61, %v9239_v6  ;;  %v6173_v51 = vpack.i.bf16 %v9404_v58, %v9412_v41  ;;  %v1999_v29 = vmul.f32 %v9406_v8, %v9406_v8 }
 0x6c7   :  { %13883 = vst [vmem:[#allocation15_spill] sm:$0xff] %v9412_v41  ;;  %v9424_v62 = vpack.i.bf16 %v9401_v13, %v9415_v47  ;;  %v2019_v23 = vsub.f32 %v9157_v9, %v9243_v22  ;;  %v2020_v61 = vsub.f32 %v9159_v19, %v9243_v22  ;;  %v1992_v41 = vpop.xlane.xlu0 %1991 }
 0x6c8   :  { %13882 = vst [vmem:[#allocation23_spill] sm:$0xff] %v9409_v3  ;;  %v9432_v38 = vpack.i.bf16 %v9409_v3, %v9418_v59  ;;  %v2087_v0 = vmul.f32 %v9261_v52, %v2011_v60  ;;  %v2003_v6 = vsub.f32 %v1995_v46, %v1999_v29  ;;  %v1920_v52 = vpop.xlane.xlu2 %1919  ;;  %v1996_v29 = vmul.f32 0.00125, %v1992_v41 }
 0x6c9   :  { %13884 = vst [vmem:[#allocation64_spill] sm:$0xff] %v9415_v47  ;;  %v2095_v20 = vmul.f32 %v9327_v18, %v2019_v23  ;;  %v2096_v47 = vmul.f32 %v9327_v18, %v2020_v61  ;;  %v9449_v22 = vmul.f32 0.00125, %v1920_v52  ;;  %v9459_v23 = vperm.slane %v9265_v11, 6 }
 0x6ca   :  { %6154 = vrot.lane.b32.xlu1 %v9383_v49, %s6857_s24  ;;  %13885 = vst [vmem:[#allocation60_spill] sm:$0xff] %v9418_v59  ;;  %v2143_v60 = vmul.f32 %v9229_v56, %v2087_v0  ;;  %v2039_v9 = vadd.f32 1e-05, %v2003_v6 }
 0x6cb   :  { %v2151_v13 = vmul.f32 %v9247_v4, %v2095_v20  ;;  %v2152_v19 = vmul.f32 %v9247_v4, %v2096_v47  ;;  %v2000_v18 = vmul.f32 %v9449_v22, %v9449_v22 }
 0x6cc   :  { %v2199_v46 = vadd.f32 %v9270_v40, %v2143_v60  ;;  %6796 = vrsqrt.f32 %v2039_v9  ;;  %vm2067_vm9 = vweird.f32 %v2039_v9 }
 0x6cd   :  { %6179 = vrot.lane.b32.xlu0 %v9424_v62, %s6857_s24  ;;  %6174 = vrot.lane.b32.xlu2 %v6173_v51, %s6857_s24  ;;  %v2208_v56 = vadd.f32 %v9233_v2, %v2152_v19  ;;  %v2207_v0 = vadd.f32 %v9233_v2, %v2151_v13  ;;  %v2004_v47 = vsub.f32 %v1996_v29, %v2000_v18 }
 0x6ce   :  { %v2231_v4 = vmax.f32 %v2199_v46, 0.0 }
 0x6cf   :  { %v2240_v61 = vmax.f32 %v2208_v56, 0.0  ;;  %v2239_v6 = vmax.f32 %v2207_v0, 0.0  ;;  %v2040_v11 = vadd.f32 1e-05, %v2004_v47 }
 0x6d0   :  { %v9462_v20 = vmul.f32 %v9459_v23, %v2231_v4 }
 0x6d1   :  { %v9465_v41 = vmul.f32 %v9292_v21, %v2240_v61  ;;  %v9468_v52 = vmul.f32 %v9459_v23, %v2239_v6  ;;  %6798 = vrsqrt.f32 %v2040_v11  ;;  %v2021_v61 = vsub.f32 %v9096_v43, %v9406_v8 }
 0x6d2   :  { %6169 = vrot.lane.b32.xlu1 %v9432_v38, %s6857_s24  ;;  %v6797_v40 = vpop.eup %6796  ;;  %13886 = vst [vmem:[#allocation63_spill] sm:$0xff] %v9462_v20  ;;  %v2022_v6 = vsub.f32 %v9100_v30, %v9406_v8  ;;  %v2028_v30 = vsub.f32 %v9197_v27, %v9406_v8  ;;  %vm2077_vm12 = vweird.f32 %v2040_v11 }
 0x6d3   :  { %13887 = vst [vmem:[#allocation11_spill] sm:$0xff] %v9465_v41  ;;  %v2062_v2 = vmul.f32 %v6797_v40, %v2039_v9  ;;  %v6188_v13 = vpack.i.bf16 %v9465_v41, %v9314_v63  ;;  %v6183_v60 = vpack.i.bf16 %v9468_v52, %v9462_v20  ;;  %vm2068_vm5 = vweird.f32 %v6797_v40 }
 0x6d4   :  { %13888 = vst [vmem:[#allocation58_spill] sm:$0xff] %v9468_v52  ;;  %vm2069_vm10 = vmor %vm2067_vm9, %vm2068_vm5 }
 0x6d5   :  { %6194 = vrot.lane.b32.xlu0 %v9383_v49, %s6855_s22  ;;  %6189 = vrot.lane.b32.xlu2 %v6188_v13, %s6857_s24  ;;  %v2063_v19 = vmul.f32 %v6797_v40, %v2062_v2  ;;  %vm13978_vm5 = vmmov %vm13970_vm2 }
 0x6d6   :  { %vm13980_vm9 = vmmov %vm13970_vm2 }
 0x6d7   :  { %v2064_v46 = vmul.f32 0.5, %v2063_v19  ;;  %v6799_v29 = vpop.eup %6798 }
 0x6d8   :  { %v2072_v56 = vmul.f32 %v6799_v29, %v2040_v11  ;;  %vm2078_vm11 = vweird.f32 %v6799_v29  ;;  %v6283_v11 = vpack.i.bf16 %v9283_v55, %v9465_v41 }
 0x6d9   :  { %v2065_v18 = vsub.f32 1.5, %v2064_v46  ;;  %vm2079_vm14 = vmor %vm2077_vm12, %vm2078_vm11 }
 0x6da   :  { %6184 = vrot.lane.b32.xlu1 %v6183_v60, %s6857_s24  ;;  %v2073_v4 = vmul.f32 %v6799_v29, %v2072_v56  ;;  %vm13984_vm11 = vmmov %vm13970_vm2 }
 0x6db   :  { %v2066_v0 = vmul.f32 %v6797_v40, %v2065_v18  ;;  %vm13991_vm12 = vmmov %vm13970_vm2 }
 0x6dc   :  { %v2074_v2 = vmul.f32 0.5, %v2073_v4 }
 0x6dd   :  { %6209 = vrot.lane.b32.xlu0 %v9432_v38, %s6855_s22  ;;  %6204 = vrot.lane.b32.xlu2 %v9375_v44, %s6855_s22  ;;  %v9488_v47 = vsel %vm2069_vm10, %v6797_v40, %v2066_v0  ;;  %v2030_v0 = vsub.f32 %v9128_v39, %v9449_v22  ;;  %vm13982_vm10 = vmmov %vm13970_vm2 }
 0x6de   :  { %v2098_v9 = vmul.f32 %v9488_v47, %v2022_v6  ;;  %v2075_v19 = vsub.f32 1.5, %v2074_v2 }
 0x6e0   :  { %v2154_v43 = vmul.f32 %v9237_v53, %v2098_v9  ;;  %v2076_v46 = vmul.f32 %v6799_v29, %v2075_v19  ;;  %v2025_v19 = vsub.f32 %v9155_v48, %v9406_v8 }
 0x6e2   :  { %6199 = vrot.lane.b32.xlu1 %v9379_v42, %s6855_s22  ;;  %v2210_v56 = vadd.f32 %v9298_v24, %v2154_v43 }
 0x6e4   :  { %v2242_v4 = vmax.f32 %v2210_v56, 0.0 }
 0x6e5   :  { %6224 = vrot.lane.b32.xlu0 %v6183_v60, %s6855_s22  ;;  %6219 = vrot.lane.b32.xlu2 %v9424_v62, %s6855_s22 }
 0x6ea   :  { %6214 = vrot.lane.b32.xlu1 %v6173_v51, %s6855_s22 }
 0x6ed   :  { %6239 = vrot.lane.b32.xlu0 %v9379_v42, %s6847_s6  ;;  %v2097_v42 = vmul.f32 %v9488_v47, %v2021_v61  ;;  %6234 = vrot.lane.b32.xlu2 %v9383_v49, %s6847_s6  ;;  %v9508_v49 = vsel %vm2079_vm14, %v6799_v29, %v2076_v46  ;;  %v2029_v29 = vsub.f32 %v9136_v15, %v9449_v22  ;;  %vm13995_vm14 = vmmov %vm13970_vm2 }
 0x6ee   :  { %v2106_v61 = vmul.f32 %v9508_v49, %v2030_v0  ;;  %v2031_v0 = vsub.f32 %v9151_v26, %v9449_v22 }
 0x6ef   :  { %v2153_v40 = vmul.f32 %v9237_v53, %v2097_v42  ;;  %v2105_v6 = vmul.f32 %v9508_v49, %v2029_v29  ;;  %v2033_v42 = vsub.f32 %v9190_v7, %v9449_v22  ;;  %v2032_v7 = vsub.f32 %v9178_v34, %v9449_v22 }
 0x6f0   :  { %v2162_v2 = vmul.f32 %v9231_v5, %v2106_v61  ;;  %v9561_v34 = vpack.i.bf16 %v9367_v14, %v9370_v33  ;;  %v2107_v61 = vmul.f32 %v9508_v49, %v2031_v0 }
 0x6f1   :  { %v2209_v18 = vadd.f32 %v9298_v24, %v2153_v40  ;;  %v2109_v9 = vmul.f32 %v9508_v49, %v2033_v42  ;;  %v2161_v40 = vmul.f32 %v9231_v5, %v2105_v6  ;;  %v2108_v46 = vmul.f32 %v9508_v49, %v2032_v7 }
 0x6f2   :  { %6229 = vrot.lane.b32.xlu1 %v6188_v13, %s6855_s22  ;;  %v2218_v43 = vadd.f32 %v9235_v36, %v2162_v2  ;;  %v2035_v2 = vsub.f32 %v9217_v37, %v9449_v22 }
 0x6f4   :  { %v2250_v56 = vmax.f32 %v2218_v43, 0.0 }
 0x6f5   :  { %6254 = vrot.lane.b32.xlu0 %v6173_v51, %s6847_s6  ;;  %v2104_v51 = vmul.f32 %v9488_v47, %v2028_v30  ;;  %6249 = vrot.lane.b32.xlu2 %v9432_v38, %s6847_s6 }
 0x6f7   :  { %v2160_v27 = vmul.f32 %v9237_v53, %v2104_v51  ;;  %v2165_v51 = vmul.f32 %v9231_v5, %v2109_v9 }
 0x6f9   :  { %v2216_v39 = vadd.f32 %v9298_v24, %v2160_v27 }
 0x6fa   :  { %6244 = vrot.lane.b32.xlu1 %v9375_v44, %s6847_s6  ;;  %v9528_v44 = vmul.f32 %v9278_v25, %v2242_v4  ;;  %v2023_v4 = vsub.f32 %v9111_v16, %v9406_v8  ;;  %v2027_v16 = vsub.f32 %v9195_v1, %v9406_v8 }
 0x6fb   :  { %v2248_v15 = vmax.f32 %v2216_v39, 0.0  ;;  %v9580_v39 = vmul.f32 %v9278_v25, %v2250_v56  ;;  %v2111_v25 = vmul.f32 %v9508_v49, %v2035_v2 }
 0x6fc   :  { %13889 = vst [vmem:[#allocation61_spill] sm:$0xff] %v9528_v44  ;;  %v2099_v42 = vmul.f32 %v9488_v47, %v2023_v4 }
 0x6fd   :  { %6269 = vrot.lane.b32.xlu0 %v6188_v13, %s6847_s6  ;;  %v2241_v13 = vmax.f32 %v2209_v18, 0.0  ;;  %6264 = vrot.lane.b32.xlu2 %v6183_v60, %s6847_s6  ;;  %v2101_v60 = vmul.f32 %v9488_v47, %v2025_v19  ;;  %v9554_v48 = vmul.f32 %v9292_v21, %v2248_v15  ;;  %v2217_v18 = vadd.f32 %v9235_v36, %v2161_v40 }
 0x6fe   :  { %13891 = vst [vmem:[#allocation57_spill] sm:$0xff] %v9580_v39  ;;  %v2163_v19 = vmul.f32 %v9231_v5, %v2107_v61  ;;  %v9601_v1 = vpack.i.bf16 %v9580_v39, %v9528_v44 }
 0x6ff   :  { %v9525_v38 = vmul.f32 %v9275_v32, %v2241_v13  ;;  %13890 = vst [vmem:[#allocation55_spill] sm:$0xff] %v9554_v48  ;;  %v2157_v13 = vmul.f32 %v9237_v53, %v2101_v60  ;;  %v2249_v29 = vmax.f32 %v2217_v18, 0.0  ;;  %v6298_v6 = vpack.i.bf16 %v9554_v48, %v9528_v44 }
 0x700   :  { %v2034_v60 = vsub.f32 %v9207_v35, %v9449_v22  ;;  %v2167_v35 = vmul.f32 %v9231_v5, %v2111_v25 }
 0x701   :  { %v9544_v30 = vpack.i.bf16 %v9528_v44, %v9525_v38  ;;  %v2213_v9 = vadd.f32 %v9298_v24, %v2157_v13  ;;  %v9597_v7 = vmul.f32 %v9275_v32, %v2249_v29  ;;  %v2026_v32 = vsub.f32 %v9183_v31, %v9406_v8 }
 0x702   :  { %6259 = vrot.lane.b32.xlu1 %v9424_v62, %s6847_s6  ;;  %v2024_v62 = vsub.f32 %v9141_v28, %v9406_v8  ;;  %v2036_v28 = vsub.f32 %v9219_v10, %v9449_v22  ;;  %v2221_v10 = vadd.f32 %v9235_v36, %v2165_v51  ;;  %v2110_v56 = vmul.f32 %v9508_v49, %v2034_v60 }
 0x703   :  { %v2245_v18 = vmax.f32 %v2213_v9, 0.0  ;;  %v2219_v22 = vadd.f32 %v9235_v36, %v2163_v19  ;;  %v6308_v13 = vpack.i.bf16 %v9597_v7, %v9525_v38  ;;  %v2102_v4 = vmul.f32 %v9488_v47, %v2026_v32 }
 0x704   :  { %v2100_v27 = vmul.f32 %v9488_v47, %v2024_v62  ;;  %v2112_v26 = vmul.f32 %v9508_v49, %v2036_v28  ;;  %v2253_v37 = vmax.f32 %v2221_v10, 0.0  ;;  %v2103_v62 = vmul.f32 %v9488_v47, %v2027_v16 }
 0x705   :  { %6284 = vrot.lane.b32.xlu0 %v6283_v11, %s6842_s1  ;;  %6274 = vrot.lane.b32.xlu2 %v9561_v34, %s6864_s7  ;;  %v2164_v11 = vmul.f32 %v9231_v5, %v2108_v46  ;;  %v2155_v46 = vmul.f32 %v9237_v53, %v2099_v42  ;;  %v9627_v49 = vmul.f32 %v9386_v45, %v2245_v18  ;;  %v2251_v10 = vmax.f32 %v2219_v22, 0.0 }
 0x706   :  { %v2156_v15 = vmul.f32 %v9237_v53, %v2100_v27  ;;  %v2168_v40 = vmul.f32 %v9231_v5, %v2112_v26  ;;  %v9619_v27 = vmul.f32 %v9386_v45, %v2253_v37  ;;  %v2159_v61 = vmul.f32 %v9237_v53, %v2103_v62 }
 0x707   :  { %v2220_v43 = vadd.f32 %v9235_v36, %v2164_v11  ;;  %v2211_v31 = vadd.f32 %v9298_v24, %v2155_v46  ;;  %13893 = vst [vmem:[#allocation6_spill] sm:$0xff] %v9627_v49  ;;  %v2166_v26 = vmul.f32 %v9231_v5, %v2110_v56  ;;  %v2223_v11 = vadd.f32 %v9235_v36, %v2167_v35 }
 0x708   :  { %v2212_v51 = vadd.f32 %v9298_v24, %v2156_v15  ;;  %v2224_v0 = vadd.f32 %v9235_v36, %v2168_v40  ;;  %13892 = vst [vmem:[#allocation62_spill] sm:$0xff] %v9619_v27  ;;  %v6328_v47 = vpack.i.bf16 %v9619_v27, %v9627_v49  ;;  %v2158_v2 = vmul.f32 %v9237_v53, %v2102_v4 }
 0x709   :  { %v2252_v28 = vmax.f32 %v2220_v43, 0.0  ;;  %v2215_v16 = vadd.f32 %v9298_v24, %v2159_v61  ;;  %v2243_v45 = vmax.f32 %v2211_v31, 0.0  ;;  %v2222_v5 = vadd.f32 %v9235_v36, %v2166_v26 }
 0x70a   :  { %6279 = vrot.lane.b32.xlu1 %v9561_v34, %s6842_s1  ;;  %v2244_v8 = vmax.f32 %v2212_v51, 0.0  ;;  %v2256_v29 = vmax.f32 %v2224_v0, 0.0  ;;  %v2255_v15 = vmax.f32 %v2223_v11, 0.0  ;;  %v9647_v9 = vmul.f32 %v9345_v17, %v2251_v10 }
 0x70b   :  { %v2247_v19 = vmax.f32 %v2215_v16, 0.0  ;;  %v9656_v40 = vmul.f32 %v9345_v17, %v2243_v45  ;;  %v2254_v43 = vmax.f32 %v2222_v5, 0.0  ;;  %v6428_v11 = vpack.i.bf16 %v9580_v39, %v9597_v7 }
 0x70c   :  { %v9640_v42 = vmul.f32 %v9396_v57, %v2244_v8  ;;  %13896 = vst [vmem:[#allocation56_spill] sm:$0xff] %v9647_v9  ;;  %v9650_v25 = vmul.f32 %v9292_v21, %v2256_v29  ;;  %v9660_v36 = vmul.f32 %v9459_v23, %v2255_v15 }
 0x70d   :  { %6294 = vrot.lane.b32.xlu0 %v9544_v30, %s6864_s7  ;;  %6289 = vrot.lane.b32.xlu2 %v9561_v34, %s6865_s18  ;;  %13898 = vst [vmem:[#allocation28_spill] sm:$0xff] %v9656_v40  ;;  %v6318_v37 = vpack.i.bf16 %v9647_v9, %v9656_v40  ;;  %v9674_v17 = vmul.f32 %v9389_v54, %v2254_v43 }
 0x70e   :  { %13895 = vst [vmem:[#allocation49_spill] sm:$0xff] %v9640_v42  ;;  %v6343_v60 = vpack.i.bf16 %v9650_v25, %v9554_v48 }
 0x70f   :  { %13897 = vst [vmem:[#allocation45_spill] sm:$0xff] %v9650_v25 }
 0x710   :  { %13899 = vst [vmem:[#allocation29_spill] sm:$0xff] %v9660_v36 }
 0x711   :  { %13901 = vst [vmem:[#allocation50_spill] sm:$0xff] %v9674_v17 }
 0x712   :  { %6314 = vrot.lane.b32.xlu1 %v9601_v1, %s6857_s24 }
 0x715   :  { %6299 = vrot.lane.b32.xlu0 %v6298_v6, %s6842_s1  ;;  %v9633_v6 = vmul.f32 %v9396_v57, %v2252_v28  ;;  %6304 = vrot.lane.b32.xlu2 %v9544_v30, %s6865_s18  ;;  %v2214_v57 = vadd.f32 %v9298_v24, %v2158_v2  ;;  %v9669_v24 = vmul.f32 %v9459_v23, %v2247_v19 }
 0x717   :  { %13894 = vst [vmem:[#allocation51_spill] sm:$0xff] %v9633_v6  ;;  %v6323_v53 = vpack.i.bf16 %v9633_v6, %v9640_v42  ;;  %v2246_v62 = vmax.f32 %v2214_v57, 0.0  ;;  %v6338_v51 = vpack.i.bf16 %v9660_v36, %v9669_v24 }
 0x718   :  { %13900 = vst [vmem:[#allocation43_spill] sm:$0xff] %v9669_v24 }
 0x719   :  { %v9681_v18 = vmul.f32 %v9389_v54, %v2246_v62 }
 0x71a   :  { %6329 = vrot.lane.b32.xlu1 %v6328_v47, %s6857_s24 }
 0x71b   :  { %13903 = vst [vmem:[#allocation39_spill] sm:$0xff] %v9681_v18  ;;  %v6333_v23 = vpack.i.bf16 %v9674_v17, %v9681_v18 }
 0x71d   :  { %6309 = vrot.lane.b32.xlu0 %v6308_v13, %s6857_s24  ;;  %6319 = vrot.lane.b32.xlu2 %v6318_v37, %s6857_s24 }
 0x71f   :  { %v9664_v21 = vpop.permute.xlu2 %6159 }
 0x722   :  { %6344 = vrot.lane.b32.xlu1 %v6343_v60, %s6857_s24 }
 0x725   :  { %6324 = vrot.lane.b32.xlu0 %v6323_v53, %s6857_s24  ;;  %6334 = vrot.lane.b32.xlu2 %v6333_v23, %s6857_s24 }
 0x727   :  { %v9687_v32 = vpop.permute.xlu2 %6174 }
 0x728   :  { %13904 = vst [vmem:[#allocation37_spill] sm:$0xff] %v9687_v32 }
 0x72a   :  { %6359 = vrot.lane.b32.xlu1 %v6318_v37, %s6855_s22 }
 0x72c   :  { %v9676_v46 = vpop.permute.xlu1 %6144 }
 0x72d   :  { %13902 = vst [vmem:[#allocation68_spill] sm:$0xff] %v9676_v46  ;;  %6339 = vrot.lane.b32.xlu0 %v6338_v51, %s6857_s24  ;;  %6349 = vrot.lane.b32.xlu2 %v6308_v13, %s6855_s22 }
 0x72f   :  { %v9698_v54 = vpop.permute.xlu2 %6189 }
 0x730   :  { %13907 = vst [vmem:[#allocation34_spill] sm:$0xff] %v9698_v54  ;;  %v13240_v43 = vunpack.i.h.bf16 %v9698_v54 }
 0x732   :  { %6374 = vrot.lane.b32.xlu1 %v6333_v23, %s6855_s22 }
 0x734   :  { %v9690_v56 = vpop.permute.xlu1 %6149 }
 0x735   :  { %13905 = vst [vmem:[#allocation44_spill] sm:$0xff] %v9690_v56  ;;  %6354 = vrot.lane.b32.xlu0 %v9601_v1, %s6855_s22  ;;  %6364 = vrot.lane.b32.xlu2 %v6323_v53, %s6855_s22 }
 0x737   :  { %v9694_v35 = vpop.permute.xlu0 %6164  ;;  %v9707_v28 = vpop.permute.xlu2 %6204 }
 0x738   :  { %13906 = vst [vmem:[#allocation24_spill] sm:$0xff] %v9694_v35 }
 0x739   :  { %13909 = vst [vmem:[#allocation21_spill] sm:$0xff] %v9707_v28 }
 0x73a   :  { %6389 = vrot.lane.b32.xlu1 %v6308_v13, %s6847_s6 }
 0x73c   :  { %v9701_v22 = vpop.permute.xlu1 %6154 }
 0x73d   :  { %6369 = vrot.lane.b32.xlu0 %v6328_v47, %s6855_s22  ;;  %6379 = vrot.lane.b32.xlu2 %v6338_v51, %s6855_s22 }
 0x73f   :  { %v9703_v0 = vpop.permute.xlu0 %6179  ;;  %v9716_v31 = vpop.permute.xlu2 %6219 }
 0x740   :  { %13908 = vst [vmem:[#allocation69_spill] sm:$0xff] %v9703_v0  ;;  %v6518_v0 = vpack.i.bf16 %v9656_v40, %v9647_v9 }
 0x741   :  { %13911 = vst [vmem:[#allocation38_spill] sm:$0xff] %v9716_v31 }
 0x742   :  { %6404 = vrot.lane.b32.xlu1 %v6323_v53, %s6847_s6 }
 0x744   :  { %v9714_v61 = vpop.permute.xlu1 %6169 }
 0x745   :  { %6384 = vrot.lane.b32.xlu0 %v6343_v60, %s6855_s22  ;;  %13910 = vst [vmem:[#allocation22_spill] sm:$0xff] %v9714_v61  ;;  %6394 = vrot.lane.b32.xlu2 %v9601_v1, %s6847_s6  ;;  %s6866_s22 = smov 108  }
 0x747   :  { %v9710_v4 = vpop.permute.xlu0 %6194  ;;  %v9724_v13 = vpop.permute.xlu2 %6234 }
 0x74a   :  { %6419 = vrot.lane.b32.xlu1 %v6338_v51, %s6847_s6 }
 0x74c   :  { %v9726_v26 = vpop.permute.xlu1 %6184 }
 0x74d   :  { %6399 = vrot.lane.b32.xlu0 %v6318_v37, %s6847_s6  ;;  %13913 = vst [vmem:[#allocation26_spill] sm:$0xff] %v9726_v26  ;;  %6409 = vrot.lane.b32.xlu2 %v6328_v47, %s6847_s6  ;;  %v6443_v47 = vpack.i.bf16 %v9525_v38, %v9650_v25  ;;  %v13237_v15 = vunpack.i.h.bf16 %v9726_v26  ;;  %v13238_v53 = vunpack.i.l.bf16 %v9726_v26  ;;  %v13239_v37 = vunpack.i.l.bf16 %v9698_v54 }
 0x74f   :  { %v9719_v8 = vpop.permute.xlu0 %6209  ;;  %v9735_v29 = vpop.permute.xlu2 %6249  ;;  %v9775_v62 = vsel %vm13920_vm15, %v13237_v15, %v13240_v43  ;;  %v9783_v51 = vsel %vm13922_vm0, %v13238_v53, %v13239_v37  ;;  %v13929_v43 = vld [vmem:[#allocation27_spill] sm:$0xff]  ;;  %vm2918_vm15 = vcmp.lt.s32.totalorder %v7376_v12, 108  ;;  %vm3305_vm0 = vcmp.lt.s32.totalorder %v7376_v12, 48 }
 0x750   :  { %13912 = vst [vmem:[#allocation70_spill] sm:$0xff] %v9719_v8 }
 0x751   :  { %13915 = vst [vmem:[#allocation18_spill] sm:$0xff] %v9735_v29 }
 0x752   :  { %6429 = vrot.lane.b32.xlu1 %v6428_v11, %s6864_s7  ;;  %13921 = vst [vmem:[#allocation54_spill] sm:$0xff] %v9775_v62 }
 0x753   :  { %13923 = vst [vmem:[#allocation17_spill] sm:$0xff] %v9783_v51 }
 0x754   :  { %v9737_v1 = vpop.permute.xlu1 %6199 }
 0x755   :  { %6414 = vrot.lane.b32.xlu0 %v6333_v23, %s6847_s6  ;;  %6424 = vrot.lane.b32.xlu2 %v6343_v60, %s6847_s6  ;;  %s6867_s6 = smov 48  }
 0x757   :  { %v9731_v10 = vpop.permute.xlu0 %6224  ;;  %v9744_v16 = vpop.permute.xlu2 %6264 }
 0x758   :  { %13914 = vst [vmem:[#allocation31_spill] sm:$0xff] %v9731_v10  ;;  %v13255_v31 = vunpack.i.h.bf16 %v9731_v10  ;;  %v13937_v8 = vunpack.i.l.bf16 %v9731_v10 }
 0x759   :  { %13916 = vst [vmem:[#allocation16_spill] sm:$0xff] %v9744_v16 }
 0x75a   :  { %6449 = vrot.lane.b32.xlu1 %v6428_v11, %s6865_s18 }
 0x75c   :  { %v9746_v45 = vpop.permute.xlu1 %6214 }
 0x75d   :  { %6434 = vrot.lane.b32.xlu0 %v6428_v11, %s6842_s1  ;;  %13917 = vst [vmem:[#allocation67_spill] sm:$0xff] %v9746_v45  ;;  %6444 = vrot.lane.b32.xlu2 %v6443_v47, %s6842_s1 }
 0x75f   :  { %v9740_v2 = vpop.permute.xlu0 %6239  ;;  %v9759_v57 = vpop.permute.xlu2 %6274 }
 0x760   :  { %13919 = vst [vmem:[#allocation20_spill] sm:$0xff] %v9759_v57 }
 0x762   :  { %6454 = vrot.lane.b32.xlu1 %v9544_v30, %s6866_s22 }
 0x764   :  { %v9761_v19 = vpop.permute.xlu1 %6229 }
 0x765   :  { %6439 = vrot.lane.b32.xlu0 %v9296_v50, %s6865_s18  ;;  %6464 = vrot.lane.b32.xlu2 %v6428_v11, %s6866_s22  ;;  %v13936_v45 = vunpack.i.l.bf16 %v9761_v19 }
 0x767   :  { %v9752_v5 = vpop.permute.xlu0 %6254  ;;  %v9787_v23 = vpop.permute.xlu2 %6289  ;;  %v9844_v29 = vsel %vm886_vm8, %v13937_v8, %v13936_v45 }
 0x768   :  { %13918 = vst [vmem:[#allocation71_spill] sm:$0xff] %v9752_v5  ;;  %v13934_v5 = vunpack.i.h.bf16 %v9761_v19 }
 0x769   :  { %13924 = vst [vmem:[#allocation65_spill] sm:$0xff] %v9787_v23 }
 0x76a   :  { %6484 = vrot.lane.b32.xlu1 %v6428_v11, %s6867_s6  ;;  %v6498_v11 = vpack.i.bf16 %v9640_v42, %v9656_v40  ;;  %v9836_v61 = vsel %vm886_vm8, %v13255_v31, %v13934_v5  ;;  %13938 = vst [vmem:[#allocation42_spill] sm:$0xff] %v9844_v29  ;;  %v13261_v31 = vunpack.i.h.bf16 %v9744_v16 }
 0x76b   :  { %13935 = vst [vmem:[#allocation53_spill] sm:$0xff] %v9836_v61  ;;  %v13263_v61 = vunpack.i.l.bf16 %v9744_v16 }
 0x76c   :  { %v9789_v47 = vpop.permute.xlu1 %6244 }
 0x76d   :  { %6459 = vrot.lane.b32.xlu0 %v9561_v34, %s6866_s22  ;;  %13925 = vst [vmem:[#allocation52_spill] sm:$0xff] %v9789_v47  ;;  %6469 = vrot.lane.b32.xlu2 %v9296_v50, %s6866_s22 }
 0x76f   :  { %v9767_v60 = vpop.permute.xlu0 %6269  ;;  %v9799_v53 = vpop.permute.xlu2 %6304 }
 0x770   :  { %13927 = vst [vmem:[#allocation14_spill] sm:$0xff] %v9799_v53  ;;  %v13262_v40 = vunpack.i.h.bf16 %v9767_v60  ;;  %v13941_v29 = vunpack.i.l.bf16 %v9767_v60 }
 0x772   :  { %6489 = vrot.lane.b32.xlu1 %v9296_v50, %s6867_s6  ;;  %v6523_v50 = vpack.i.bf16 %v9633_v6, %v9647_v9  ;;  %v9869_v5 = vsel %vm721_vm13, %v13261_v31, %v13262_v40  ;;  %v9877_v10 = vsel %vm721_vm13, %v13263_v61, %v13941_v29 }
 0x773   :  { %13940 = vst [vmem:[#allocation47_spill] sm:$0xff] %v9869_v5 }
 0x774   :  { %v9801_v37 = vpop.permute.xlu1 %6259  ;;  %13942 = vst [vmem:[#allocation36_spill] sm:$0xff] %v9877_v10 }
 0x775   :  { %6474 = vrot.lane.b32.xlu0 %v9544_v30, %s6867_s6  ;;  %13928 = vst [vmem:[#allocation59_spill] sm:$0xff] %v9801_v37  ;;  %v6508_v30 = vpack.i.bf16 %v9418_v59, %v13929_v43  ;;  %6479 = vrot.lane.b32.xlu2 %v9561_v34, %s6867_s6  ;;  %v13932_v34 = vld [vmem:[#allocation12_spill] sm:$0xff] }
 0x776   :  { %v6493_v37 = vpack.i.bf16 %v13929_v43, %v13932_v34  ;;  %v6503_v8 = vpack.i.bf16 %v9409_v3, %v13932_v34 }
 0x777   :  { %v9793_v15 = vpop.permute.xlu0 %6284  ;;  %v9815_v26 = vpop.permute.xlu2 %6319 }
 0x778   :  { %13926 = vst [vmem:[#allocation9_spill] sm:$0xff] %v9793_v15 }
 0x779   :  { %13931 = vst [vmem:[#allocation5_spill] sm:$0xff] %v9815_v26  ;;  %v6618_v26 = vpack.i.bf16 %v9404_v58, %v9409_v3 }
 0x77a   :  { %6509 = vrot.lane.b32.xlu1 %v6508_v30, %s6864_s7 }
 0x77c   :  { %v9817_v32 = vpop.permute.xlu1 %6279 }
 0x77d   :  { %6499 = vrot.lane.b32.xlu0 %v6498_v11, %s6864_s7  ;;  %6494 = vrot.lane.b32.xlu2 %v6493_v37, %s6842_s1 }
 0x77f   :  { %v9808_v51 = vpop.permute.xlu0 %6294  ;;  %v9848_v43 = vpop.permute.xlu2 %6334 }
 0x780   :  { %13930 = vst [vmem:[#allocation48_spill] sm:$0xff] %v9808_v51  ;;  %v13964_v54 = vunpack.i.l.bf16 %v9808_v51 }
 0x781   :  { %13939 = vst [vmem:[#allocation40_spill] sm:$0xff] %v9848_v43 }
 0x782   :  { %6524 = vrot.lane.b32.xlu1 %v6523_v50, %s6864_s7 }
 0x784   :  { %v9850_v14 = vpop.permute.xlu1 %6314 }
 0x785   :  { %6519 = vrot.lane.b32.xlu0 %v6518_v0, %s6842_s1  ;;  %6504 = vrot.lane.b32.xlu2 %v6503_v8, %s6864_s7 }
 0x787   :  { %v9828_v62 = vpop.permute.xlu0 %6299  ;;  %v9879_v43 = vpop.permute.xlu2 %6349 }
 0x788   :  { %13933 = vst [vmem:[#allocation46_spill] sm:$0xff] %v9828_v62 }
 0x78a   :  { %6529 = vrot.lane.b32.xlu1 %v6503_v8, %s6865_s18 }
 0x78c   :  { %v9881_v34 = vpop.permute.xlu1 %6329 }
 0x78d   :  { %6534 = vrot.lane.b32.xlu0 %v6508_v30, %s6865_s18  ;;  %13943 = vst [vmem:[#allocation35_spill] sm:$0xff] %v9881_v34  ;;  %6514 = vrot.lane.b32.xlu2 %v6498_v11, %s6865_s18 }
 0x78f   :  { %v9859_v45 = vpop.permute.xlu0 %6309  ;;  %v9888_v31 = vpop.permute.xlu2 %6364 }
 0x790   :  { %13945 = vst [vmem:[#allocation33_spill] sm:$0xff] %v9888_v31 }
 0x792   :  { %6559 = vrot.lane.b32.xlu1 %v6518_v0, %s6867_s6  ;;  %v6588_v0 = vpack.i.bf16 %v9627_v49, %v9619_v27 }
 0x794   :  { %v9890_v40 = vpop.permute.xlu1 %6344 }
 0x795   :  { %6539 = vrot.lane.b32.xlu0 %v6523_v50, %s6865_s18  ;;  %6549 = vrot.lane.b32.xlu2 %v6523_v50, %s6866_s22  ;;  %v13279_v35 = vunpack.i.h.bf16 %v9890_v40 }
 0x797   :  { %v9884_v44 = vpop.permute.xlu0 %6324  ;;  %v9897_v61 = vpop.permute.xlu2 %6379 }
 0x798   :  { %13944 = vst [vmem:[#allocation41_spill] sm:$0xff] %v9884_v44 }
 0x799   :  { %13947 = vst [vmem:[#allocation7_spill] sm:$0xff] %v9897_v61 }
 0x79a   :  { %6564 = vrot.lane.b32.xlu1 %v6493_v37, %s6867_s6  ;;  %v6573_v37 = vpack.i.bf16 %v9418_v59, %v9409_v3 }
 0x79c   :  { %v9899_v10 = vpop.permute.xlu1 %6359 }
 0x79d   :  { %6544 = vrot.lane.b32.xlu0 %v6498_v11, %s6866_s22  ;;  %13948 = vst [vmem:[#allocation8_spill] sm:$0xff] %v9899_v10  ;;  %6554 = vrot.lane.b32.xlu2 %v6503_v8, %s6866_s22  ;;  %v13958_v10 = vld [vmem:[#allocation64_spill] sm:$0xff] }
 0x79f   :  { %v9893_v29 = vpop.permute.xlu0 %6339  ;;  %v9908_v11 = vpop.permute.xlu2 %6394 }
 0x7a0   :  { %13946 = vst [vmem:[#allocation32_spill] sm:$0xff] %v9893_v29  ;;  %v13278_v9 = vunpack.i.h.bf16 %v9893_v29  ;;  %v13283_v39 = vunpack.i.l.bf16 %v9893_v29  ;;  %v13957_v29 = vld [vmem:[#allocation19_spill] sm:$0xff] }
 0x7a2   :  { %6589 = vrot.lane.b32.xlu1 %v6588_v0, %s6864_s7 }
 0x7a4   :  { %v9910_v50 = vpop.permute.xlu1 %6374 }
 0x7a5   :  { %6569 = vrot.lane.b32.xlu0 %v6508_v30, %s6866_s22  ;;  %13949 = vst [vmem:[#allocation10_spill] sm:$0xff] %v9910_v50  ;;  %v6578_v30 = vpack.i.bf16 %v9640_v42, %v9633_v6  ;;  %v13951_v50 = vld [vmem:[#allocation15_spill] sm:$0xff] }
 0x7a6   :  { %v6598_v44 = vpack.i.bf16 %v13951_v50, %v9404_v58 }
 0x7a7   :  { %v9904_v5 = vpop.permute.xlu0 %6354  ;;  %6579 = vrot.lane.b32.xlu2 %v6578_v30, %s6842_s1  ;;  %v9921_v8 = vpop.permute.xlu2 %6409 }
 0x7aa   :  { %6594 = vrot.lane.b32.xlu1 %v6588_v0, %s6865_s18 }
 0x7ac   :  { %v9923_v34 = vpop.permute.xlu1 %6389 }
 0x7ad   :  { %6574 = vrot.lane.b32.xlu0 %v6573_v37, %s6842_s1 }
 0x7af   :  { %v9917_v16 = vpop.permute.xlu0 %6369  ;;  %6584 = vrot.lane.b32.xlu2 %v6598_v44, %s6864_s7  ;;  %v9932_v37 = vpop.permute.xlu2 %6424 }
 0x7b0   :  { %13950 = vst [vmem:[#allocation72_spill] sm:$0xff] %v9917_v16  ;;  %v6623_v16 = vpack.i.bf16 %v9619_v27, %v9633_v6 }
 0x7b2   :  { %6609 = vrot.lane.b32.xlu1 %v6598_v44, %s6866_s22 }
 0x7b4   :  { %v9934_v30 = vpop.permute.xlu1 %6404 }
 0x7b5   :  { %6599 = vrot.lane.b32.xlu0 %v6598_v44, %s6865_s18  ;;  %v13284_v44 = vunpack.i.l.bf16 %v9890_v40 }
 0x7b7   :  { %v9928_v31 = vpop.permute.xlu0 %6384  ;;  %6604 = vrot.lane.b32.xlu2 %v6588_v0, %s6866_s22  ;;  %v9963_v3 = vsel %vm13954_vm1, %v13283_v39, %v13284_v44  ;;  %v9965_v6 = vpop.permute.xlu2 %6444  ;;  %v9978_v39 = vpack.i.bf16 %v13958_v10, %v13957_v29 }
 0x7b8   :  { %13955 = vst [vmem:[#allocation74_spill] sm:$0xff] %v9963_v3  ;;  %v9984_v3 = vpack.i.bf16 %v9681_v18, %v9674_v17 }
 0x7b9   :  { %13956 = vst [vmem:[#allocation75_spill] sm:$0xff] %v9965_v6 }
 0x7ba   :  { %6619 = vrot.lane.b32.xlu1 %v6618_v26, %s6867_s6  ;;  %v6628_v26 = vpack.i.bf16 %v13951_v50, %v9418_v59  ;;  %v6653_v59 = vpack.i.bf16 %v9674_v17, %v9619_v27  ;;  %v13965_v27 = vunpack.i.h.bf16 %v9759_v57 }
 0x7bc   :  { %v9967_v0 = vpop.permute.xlu1 %6419 }
 0x7bd   :  { %6624 = vrot.lane.b32.xlu0 %v6623_v16, %s6867_s6  ;;  %v9955_v16 = vsel %vm13952_vm6, %v13278_v9, %v13279_v35  ;;  %v6643_v35 = vpack.i.bf16 %v13957_v29, %v9404_v58  ;;  %v6447_v9 = vunpack.i.h.bf16 %v9965_v6  ;;  %vm14042_vm6 = vmmov %vm13954_vm1 }
 0x7be   :  { %13953 = vst [vmem:[#allocation73_spill] sm:$0xff] %v9955_v16  ;;  %v6613_v16 = vpack.i.bf16 %v9627_v49, %v9640_v42 }
 0x7bf   :  { %v9944_v28 = vpop.permute.xlu0 %6399  ;;  %v10000_v25 = vpop.permute.xlu2 %6464 }
 0x7c0   :  { %6614 = vrot.lane.b32.xlu2 %v6613_v16, %s6867_s6  ;;  %13959 = vst [vmem:[#allocation76_spill] sm:$0xff] %v10000_v25  ;;  %v13961_v16 = vunpack.i.h.bf16 %v9676_v46 }
 0x7c2   :  { %6634 = vrot.lane.b32.xlu1 %v9978_v39, %s6864_s7 }
 0x7c5   :  { %6629 = vrot.lane.b32.xlu0 %v6628_v26, %s6867_s6  ;;  %v6638_v26 = vpack.i.bf16 %v9681_v18, %v9627_v49  ;;  %v10002_v18 = vpop.permute.xlu1 %6429  ;;  %v13962_v49 = vunpack.i.l.bf16 %v9676_v46  ;;  %v13967_v46 = vunpack.i.l.bf16 %v9965_v6 }
 0x7c6   :  { %13960 = vst [vmem:[#allocation77_spill] sm:$0xff] %v10002_v18  ;;  %v13301_v17 = vunpack.i.h.bf16 %v10002_v18  ;;  %v13300_v42 = vunpack.i.l.bf16 %v10002_v18 }
 0x7c7   :  { %v9980_v44 = vpop.permute.xlu0 %6414  ;;  %v3201_v29 = vsel %vm3176_vm7, %v13962_v49, %v13961_v16  ;;  %v13966_v49 = vunpack.i.l.bf16 %v9759_v57  ;;  %v13972_v57 = vunpack.i.l.bf16 %v9787_v23  ;;  %v10073_v6 = vpop.permute.xlu2 %6469  ;;  %v13977_v16 = vunpack.i.h.bf16 %v9828_v62 }
 0x7c8   :  { %v3204_v58 = vsel %vm3176_vm7, %v13300_v42, %v13301_v17  ;;  %v6281_v17 = vunpack.i.l.bf16 %v9817_v32  ;;  %6649 = vrot.lane.b32.xlu2 %v9984_v3, %s6864_s7  ;;  %13973 = vst [vmem:[#allocation78_spill] sm:$0xff] %v10073_v6 }
 0x7c9   :  { %3756 = vmatpush.msrb.mxu2 %v3204_v58  ;;  %v13963_v58 = vunpack.i.h.bf16 %v9808_v51  ;;  %v3202_v42 = vsel %vm3176_vm7, %v13966_v49, %v13965_v27  ;;  %v13318_v49 = vunpack.i.l.bf16 %v9921_v8 }
 0x7ca   :  { %6639 = vrot.lane.b32.xlu1 %v6638_v26, %s6842_s1 }
 0x7cb   :  { %v3203_v47 = vsel %vm3176_vm7, %v13964_v54, %v13963_v58  ;;  %v13971_v58 = vunpack.i.h.bf16 %v9787_v23 }
 0x7cc   :  { %3757 = vmatpush.msrb.mxu2 %v3203_v47 }
 0x7cd   :  { %6644 = vrot.lane.b32.xlu0 %v6643_v35, %s6842_s1  ;;  %v3073_v27 = vsel %vm3047_vm4, %v13972_v57, %v13971_v58  ;;  %v13317_v57 = vunpack.i.h.bf16 %v9921_v8 }
 0x7ce   :  { %3758 = vmatpush.msrb.mxu2 %v3202_v42  ;;  %v6426_v42 = vunpack.i.l.bf16 %v9932_v37 }
 0x7cf   :  { %v10031_v35 = vpop.permute.xlu0 %6434 }
 0x7d0   :  { %v6436_v36 = vunpack.i.l.bf16 %v10031_v35  ;;  %v13969_v51 = vunpack.i.h.bf16 %v10031_v35  ;;  %3759 = vmatpush.msrb.mxu2 %v3201_v29  ;;  %v13989_v29 = vunpack.i.h.bf16 %v9793_v15  ;;  %6659 = vrot.lane.b32.xlu2 %v9984_v3, %s6865_s18 }
 0x7d2   :  { %v2789_v26 = vsel %vm13968_vm3, %v13967_v46, %v6436_v36  ;;  %v2785_v54 = vsel %vm13970_vm2, %v6436_v36, %v13969_v51  ;;  %v10075_v46 = vpop.permute.xlu1 %6449  ;;  %v13975_v36 = vunpack.i.h.bf16 %v9799_v53  ;;  %v13976_v51 = vunpack.i.l.bf16 %v9799_v53  ;;  %vm14046_vm3 = vmmov %vm13954_vm1 }
 0x7d3   :  { %13974 = vst [vmem:[#allocation79_spill] sm:$0xff] %v10075_v46  ;;  %3712 = vmatpush.msra.mxu0 %v2789_v26  ;;  %3844 = vmatpush.msra.mxu1 %v2785_v54  ;;  %v13316_v58 = vunpack.i.h.bf16 %v10075_v46  ;;  %v13315_v47 = vunpack.i.l.bf16 %v10075_v46  ;;  %v2788_v26 = vsel %vm13978_vm5, %v13977_v16, %v6447_v9  ;;  %v13320_v53 = vunpack.i.h.bf16 %v9928_v31  ;;  %vm14047_vm2 = vmmov %vm13954_vm1 }
 0x7d4   :  { %v3074_v23 = vsel %vm3047_vm4, %v13976_v51, %v13975_v36  ;;  %v13979_v54 = vunpack.i.l.bf16 %v9828_v62  ;;  %v13981_v51 = vunpack.i.l.bf16 %v9793_v15  ;;  %v14008_v15 = vunpack.i.l.bf16 %v10000_v25  ;;  %vm14050_vm5 = vmmov %vm13954_vm1 }
 0x7d5   :  { %6654 = vrot.lane.b32.xlu0 %v6653_v59, %s6842_s1  ;;  %3713 = vmatpush.msra.mxu0 %v2788_v26  ;;  %v3075_v16 = vsel %vm3047_vm4, %v13315_v47, %v13316_v58  ;;  %v13983_v26 = vunpack.i.h.bf16 %v9817_v32  ;;  %v13999_v58 = vunpack.i.l.bf16 %v9897_v61 }
 0x7d6   :  { %v2784_v36 = vsel %vm13980_vm9, %v6447_v9, %v13979_v54  ;;  %v2787_v59 = vsel %vm13982_vm10, %v13981_v51, %v6281_v17  ;;  %v6427_v54 = vunpack.i.h.bf16 %v9932_v37  ;;  %v13987_v51 = vunpack.i.l.bf16 %v9934_v30  ;;  %3760 = vmatpush.msrb.mxu2 %v3075_v16  ;;  %vm14051_vm9 = vmmov %vm13954_vm1 }
 0x7d7   :  { %3845 = vmatpush.msra.mxu1 %v2784_v36  ;;  %v2783_v9 = vsel %vm13984_vm11, %v6281_v17, %v13983_v26  ;;  %v10115_v18 = vpop.permute.xlu0 %6439  ;;  %3714 = vmatpush.msra.mxu0 %v2787_v59  ;;  %v13986_v36 = vunpack.i.h.bf16 %v9934_v30  ;;  %v6392_v26 = vunpack.i.h.bf16 %v9923_v34  ;;  %v13992_v16 = vpack.i.bf16 %v13958_v10, %v13951_v50  ;;  %vm14053_vm10 = vmmov %vm13954_vm1 }
 0x7d8   :  { %13985 = vst [vmem:[#allocation80_spill] sm:$0xff] %v10115_v18  ;;  %v10131_v17 = vsel %vm721_vm13, %v13987_v51, %v13318_v49  ;;  %v13993_v51 = vunpack.i.l.bf16 %v9690_v56  ;;  %v13322_v59 = vunpack.i.h.bf16 %v9908_v11  ;;  %3761 = vmatpush.msrb.mxu2 %v3074_v23  ;;  %6664 = vrot.lane.b32.xlu2 %v9978_v39, %s6865_s18  ;;  %vm14054_vm11 = vcmask 261120  }
 0x7d9   :  { %v10123_v47 = vsel %vm721_vm13, %v13986_v36, %v13317_v57  ;;  %13988 = vst [vmem:[#allocation81_spill] sm:$0xff] %v10131_v17  ;;  %3846 = vmatpush.msra.mxu1 %v2783_v9  ;;  %v13990_v36 = vunpack.i.h.bf16 %v9690_v56  ;;  %6669 = vrot.lane.b32.xlu1 %v13992_v16, %s6842_s1  ;;  %v13994_v9 = vmov %v13989_v29 }
 0x7da   :  { %v2782_v49 = vsel %vm13995_vm14, %v13994_v9, %v13993_v51  ;;  %v6391_v51 = vunpack.i.l.bf16 %v9923_v34  ;;  %v10179_v10 = vpop.permute.xlu1 %6454  ;;  %v14003_v34 = vunpack.i.h.bf16 %v10115_v18  ;;  %3762 = vmatpush.msrb.mxu2 %v3073_v27  ;;  %v14007_v9 = vunpack.i.h.bf16 %v10000_v25 }
 0x7db   :  { %v2786_v57 = vsel %vm13991_vm12, %v13990_v36, %v13989_v29  ;;  %v13996_v29 = vunpack.i.h.bf16 %v9897_v61  ;;  %v13998_v36 = vunpack.i.l.bf16 %v9928_v31  ;;  %14002 = vst [vmem:[#allocation85_spill] sm:$0xff] %v10179_v10  ;;  %3847 = vmatpush.msra.mxu1 %v2782_v49  ;;  %v2657_v49 = vsel %vm721_vm13, %v6392_v26, %v13322_v59  ;;  %vm14055_vm12 = vmmov %vm13954_vm1 }
 0x7dc   :  { %3715 = vmatpush.msra.mxu0 %v2786_v57  ;;  %v13323_v57 = vunpack.i.l.bf16 %v9908_v11  ;;  %v2660_v27 = vsel %vm721_vm13, %v6426_v42, %v6391_v51 }
 0x7dd   :  { %v10161_v37 = vsel %vm886_vm8, %v13996_v29, %v13320_v53  ;;  %v10169_v16 = vsel %vm886_vm8, %v13999_v58, %v13998_v36  ;;  %v2661_v58 = vsel %vm721_vm13, %v6427_v54, %v6392_v26  ;;  %v14004_v36 = vunpack.i.l.bf16 %v10115_v18  ;;  %3848 = vmatpush.msra.mxu1 %v2657_v49  ;;  %6674 = vrot.lane.b32.xlu0 %v9984_v3, %s6866_s22 }
 0x7de   :  { %13997 = vst [vmem:[#allocation82_spill] sm:$0xff] %v10161_v37  ;;  %v10177_v37 = vpop.permute.xlu2 %6479  ;;  %3716 = vmatpush.msra.mxu0 %v2661_v58  ;;  %v13324_v53 = vunpack.i.h.bf16 %v10179_v10  ;;  %v6236_v58 = vunpack.i.l.bf16 %v9724_v13  ;;  %v2656_v26 = vsel %vm721_vm13, %v6391_v51, %v13323_v57  ;;  %v14006_v49 = vunpack.i.h.bf16 %v9724_v13 }
 0x7df   :  { %14000 = vst [vmem:[#allocation83_spill] sm:$0xff] %v10169_v16  ;;  %v3072_v23 = vsel %vm3047_vm4, %v14004_v36, %v14003_v34  ;;  %v14005_v36 = vunpack.i.h.bf16 %v9740_v2  ;;  %3849 = vmatpush.msra.mxu1 %v2656_v26  ;;  %v14011_v51 = vunpack.i.h.bf16 %v9767_v60  ;;  %v14012_v29 = vunpack.i.h.bf16 %v9967_v0 }
 0x7e0   :  { %14001 = vst [vmem:[#allocation84_spill] sm:$0xff] %v10177_v37  ;;  %3763 = vmatpush.msrb.mxu2 %v3072_v23  ;;  %3717 = vmatpush.msra.mxu0 %v2660_v27  ;;  %v2946_v23 = vsel %vm2918_vm15, %v14008_v15, %v14007_v9  ;;  %v10221_v27 = vpop.permute.xlu0 %6459  ;;  %v14010_v34 = vmov %v14006_v49  ;;  %v13327_v9 = vunpack.i.h.bf16 %v9904_v5  ;;  %v6352_v13 = vunpack.i.h.bf16 %v9879_v43 }
 0x7e1   :  { %v2655_v59 = vsel %vm721_vm13, %v14006_v49, %v14005_v36  ;;  %14009 = vst [vmem:[#allocation86_spill] sm:$0xff] %v10221_v27  ;;  %v2659_v57 = vsel %vm721_vm13, %v14011_v51, %v14010_v34  ;;  %v10233_v36 = vsel %vm721_vm13, %v14012_v29, %v6427_v54  ;;  %v14014_v49 = vunpack.i.l.bf16 %v9967_v0  ;;  %6684 = vrot.lane.b32.xlu1 %v9984_v3, %s6867_s6 }
 0x7e2   :  { %14013 = vst [vmem:[#allocation87_spill] sm:$0xff] %v10233_v36  ;;  %3764 = vmatpush.msrb.mxu2 %v2946_v23  ;;  %v13326_v26 = vunpack.i.h.bf16 %v10221_v27  ;;  %v13325_v34 = vunpack.i.l.bf16 %v10221_v27  ;;  %3718 = vmatpush.msra.mxu0 %v2659_v57  ;;  %v14017_v29 = vunpack.i.h.bf16 %v9934_v30  ;;  %v14018_v23 = vunpack.i.h.bf16 %v9944_v28 }
 0x7e3   :  { %v10239_v15 = vsel %vm721_vm13, %v14014_v49, %v6426_v42  ;;  %v14016_v42 = vunpack.i.l.bf16 %v10179_v10  ;;  %v14019_v49 = vunpack.i.l.bf16 %v9934_v30  ;;  %v14020_v51 = vunpack.i.l.bf16 %v9944_v28  ;;  %3850 = vmatpush.msra.mxu1 %v2655_v59  ;;  %v10288_v59 = vpop.permute.xlu1 %6484  ;;  %6679 = vrot.lane.b32.xlu2 %v9978_v39, %s6866_s22 }
 0x7e4   :  { %14015 = vst [vmem:[#allocation88_spill] sm:$0xff] %v10239_v15  ;;  %v10262_v57 = vsel %vm721_vm13, %v14018_v23, %v14017_v29  ;;  %v2944_v30 = vsel %vm2918_vm15, %v13325_v34, %v13326_v26  ;;  %v13330_v23 = vunpack.i.l.bf16 %v9904_v5  ;;  %v13328_v34 = vunpack.i.l.bf16 %v10288_v59 }
 0x7e5   :  { %v2945_v54 = vsel %vm2918_vm15, %v14016_v42, %v13324_v53  ;;  %v10270_v3 = vsel %vm721_vm13, %v14020_v51, %v14019_v49  ;;  %v14021_v42 = vunpack.i.l.bf16 %v9767_v60  ;;  %v6351_v51 = vunpack.i.l.bf16 %v9879_v43  ;;  %14022 = vst [vmem:[#allocation89_spill] sm:$0xff] %v10288_v59  ;;  %6689 = vrot.lane.b32.xlu0 %v9978_v39, %s6867_s6 }
 0x7e6   :  { %3765 = vmatpush.msrb.mxu2 %v2945_v54  ;;  %v10286_v54 = vpop.permute.xlu2 %6494  ;;  %v14023_v60 = vunpack.i.l.bf16 %v9740_v2  ;;  %v14024_v26 = vunpack.i.h.bf16 %v9928_v31  ;;  %v6417_v29 = vunpack.i.h.bf16 %v9980_v44 }
 0x7e7   :  { %v2658_v53 = vsel %vm721_vm13, %v14021_v42, %v6236_v58  ;;  %v13329_v42 = vunpack.i.h.bf16 %v10288_v59 }
 0x7e8   :  { %3719 = vmatpush.msra.mxu0 %v2658_v53  ;;  %v2654_v49 = vsel %vm721_vm13, %v6236_v58, %v14023_v60  ;;  %v2533_v43 = vsel %vm886_vm8, %v14024_v26, %v6352_v13  ;;  %3766 = vmatpush.msrb.mxu2 %v2944_v30  ;;  %v2529_v53 = vsel %vm886_vm8, %v6352_v13, %v13327_v9  ;;  %v6416_v58 = vunpack.i.l.bf16 %v9980_v44 }
 0x7e9   :  { %3851 = vmatpush.msra.mxu1 %v2654_v49  ;;  %v14025_v60 = vunpack.i.h.bf16 %v10073_v6  ;;  %v14026_v26 = vunpack.i.l.bf16 %v10073_v6  ;;  %v6197_v49 = vunpack.i.h.bf16 %v9710_v4  ;;  %v3333_v44 = vsel %vm3305_vm0, %v13328_v34, %v13329_v42  ;;  %v10336_v42 = vpop.permute.xlu0 %6474 }
 0x7ea   :  { %3720 = vmatpush.msra.mxu0 %v2533_v43  ;;  %v10324_v13 = vpack.i.bf16 %v9462_v20, %v9468_v52  ;;  %v14027_v43 = vunpack.i.l.bf16 %v9928_v31  ;;  %3812 = vmatpush.msra.mxu3 %v3333_v44  ;;  %v2528_v34 = vsel %vm886_vm8, %v6351_v51, %v13330_v23  ;;  %14028 = vst [vmem:[#allocation90_spill] sm:$0xff] %v10336_v42 }
 0x7eb   :  { %v2943_v30 = vsel %vm2918_vm15, %v14026_v26, %v14025_v60  ;;  %3852 = vmatpush.msra.mxu1 %v2529_v53  ;;  %v6196_v60 = vunpack.i.l.bf16 %v9710_v4  ;;  %v10340_v31 = vpack.i.bf16 %v9314_v63, %v9462_v20  ;;  %v13337_v53 = vunpack.i.h.bf16 %v10336_v42  ;;  %v14063_v20 = vld [vmem:[#allocation77_spill] sm:$0xff] }
 0x7ec   :  { %v2532_v9 = vsel %vm886_vm8, %v14027_v43, %v6351_v51  ;;  %3767 = vmatpush.msrb.mxu2 %v2943_v30  ;;  %v13331_v4 = vunpack.i.l.bf16 %v10336_v42  ;;  %v14029_v30 = vunpack.i.h.bf16 %v9761_v19  ;;  %v14030_v51 = vunpack.i.h.bf16 %v9737_v1  ;;  %6694 = vrot.lane.b32.xlu1 %v10324_v13, %s6842_s1 }
 0x7ed   :  { %3721 = vmatpush.msra.mxu0 %v2532_v9  ;;  %3853 = vmatpush.msra.mxu1 %v2528_v34  ;;  %v6312_v43 = vunpack.i.h.bf16 %v9859_v45  ;;  %v14031_v34 = vunpack.i.h.bf16 %v9921_v8 }
 0x7ee   :  { %v2531_v9 = vsel %vm886_vm8, %v14029_v30, %v6197_v49  ;;  %3768 = vmatpush.msrb.mxu2 %v9597_v7  ;;  %v2527_v44 = vsel %vm886_vm8, %v6197_v49, %v14030_v51  ;;  %v14032_v7 = vunpack.i.l.bf16 %v9921_v8  ;;  %v14034_v49 = vunpack.i.h.bf16 %v9967_v0  ;;  %v10392_v26 = vpop.permute.xlu2 %6504  ;;  %6709 = vrot.lane.b32.xlu0 %v10340_v31, %s6864_s7 }
 0x7ef   :  { %v10362_v30 = vsel %vm721_vm13, %v14031_v34, %v6417_v29  ;;  %3722 = vmatpush.msra.mxu0 %v2531_v9  ;;  %3854 = vmatpush.msra.mxu1 %v2527_v44  ;;  %v3332_v8 = vsel %vm3305_vm0, %v13331_v4, %v13337_v53  ;;  %v14036_v34 = vunpack.i.l.bf16 %v9967_v0  ;;  %v10394_v9 = vpop.permute.xlu1 %6489  ;;  %v14039_v44 = vunpack.i.l.bf16 %v9761_v19 }
 0x7f0   :  { %v10368_v23 = vsel %vm721_vm13, %v14032_v7, %v6416_v58  ;;  %v10374_v39 = vsel %vm721_vm13, %v6417_v29, %v14034_v49  ;;  %v13332_v29 = vunpack.i.h.bf16 %v9850_v14  ;;  %v6311_v49 = vunpack.i.l.bf16 %v9859_v45  ;;  %14038 = vst [vmem:[#allocation94_spill] sm:$0xff] %v10394_v9  ;;  %3769 = vmatpush.msrb.mxu2 %v9525_v38  ;;  %3813 = vmatpush.msra.mxu3 %v3332_v8 }
 0x7f1   :  { %14033 = vst [vmem:[#allocation91_spill] sm:$0xff] %v10368_v23  ;;  %v10388_v7 = vsel %vm721_vm13, %v6416_v58, %v14036_v34  ;;  %v2530_v51 = vsel %vm886_vm8, %v14039_v44, %v6196_v60  ;;  %v14040_v0 = vunpack.i.l.bf16 %v9737_v1  ;;  %v6157_v45 = vunpack.i.h.bf16 %v9701_v22 }
 0x7f2   :  { %14035 = vst [vmem:[#allocation92_spill] sm:$0xff] %v10374_v39  ;;  %3723 = vmatpush.msra.mxu0 %v2530_v51  ;;  %v13333_v34 = vunpack.i.l.bf16 %v9850_v14  ;;  %v14041_v4 = vunpack.i.h.bf16 %v9890_v40  ;;  %3770 = vmatpush.msrb.mxu2 %v9370_v33  ;;  %v2401_v38 = vsel %vm13954_vm1, %v6312_v43, %v13332_v29  ;;  %v13334_v51 = vunpack.i.l.bf16 %v10394_v9  ;;  %vm14062_vm1 = vmmov %vm13995_vm14 }
 0x7f3   :  { %14037 = vst [vmem:[#allocation93_spill] sm:$0xff] %v10388_v7  ;;  %v2526_v58 = vsel %vm886_vm8, %v6196_v60, %v14040_v0  ;;  %v13336_v60 = vunpack.i.h.bf16 %v10394_v9  ;;  %v10422_v8 = vpack.i.bf16 %v9554_v48, %v9669_v24  ;;  %v14043_v33 = vunpack.i.h.bf16 %v10177_v37 }
 0x7f4   :  { %3855 = vmatpush.msra.mxu1 %v2526_v58  ;;  %v2405_v19 = vsel %vm14042_vm6, %v14041_v4, %v6312_v43  ;;  %v14044_v4 = vunpack.i.l.bf16 %v10177_v37  ;;  %v6156_v44 = vunpack.i.l.bf16 %v9701_v22  ;;  %v10433_v0 = vpack.i.bf16 %v9465_v41, %v9468_v52  ;;  %3771 = vmatpush.msrb.mxu2 %v9283_v55  ;;  %v10447_v22 = vld [vmem:[%s13052_s13 + $0x8] sm:$0xff]  ;;  %vm14059_vm6 = vmmov %vm14054_vm11 }
 0x7f5   :  { %3724 = vmatpush.msra.mxu0 %v2405_v19  ;;  %v14045_v58 = vunpack.i.l.bf16 %v9890_v40  ;;  %v2400_v19 = vsel %vm14047_vm2, %v6311_v49, %v13333_v34  ;;  %v13335_v40 = vunpack.i.h.bf16 %v9664_v21  ;;  %6699 = vrot.lane.b32.xlu2 %v10422_v8, %s6864_s7  ;;  %v14048_v55 = vld [vmem:[#allocation34_spill] sm:$0xff]  ;;  %vm14073_vm2 = vmmov %vm14062_vm1  ;;  %v14076_v50 = vunpack.i.h.bf16 %v10392_v26 }
 0x7f6   :  { %3856 = vmatpush.msra.mxu1 %v2401_v38  ;;  %v3331_v43 = vsel %vm3305_vm0, %v14044_v4, %v14043_v33  ;;  %v10449_v38 = vpop.permute.xlu0 %6499  ;;  %6704 = vrot.lane.b32.xlu1 %v10433_v0, %s6864_s7  ;;  %v14049_v33 = vunpack.i.h.bf16 %v14048_v55  ;;  %v10463_v4 = vld [vmem:[%s13052_s13 + $0x10] sm:$0xff]  ;;  %v14052_v34 = vunpack.i.l.bf16 %v14048_v55 }
 0x7f7   :  { %v2404_v29 = vsel %vm14046_vm3, %v14045_v58, %v6311_v49  ;;  %3814 = vmatpush.msra.mxu3 %v3331_v43  ;;  %v13338_v43 = vunpack.i.l.bf16 %v9664_v21  ;;  %3772 = vmatmul.f32.vlgmr.msrb.gmra.mxu2 %v10447_v22  ;;  %v2399_v58 = vsel %vm14051_vm9, %v6157_v45, %v13335_v40  ;;  %v14056_v40 = vld [vmem:[#allocation29_spill] sm:$0xff]  ;;  %v6501_v16 = vunpack.i.l.bf16 %v10449_v38  ;;  %vm14068_vm3 = vmmov %vm14062_vm1 }
 0x7f8   :  { %3725 = vmatpush.msra.mxu0 %v2404_v29  ;;  %3857 = vmatpush.msra.mxu1 %v2400_v19  ;;  %v2403_v49 = vsel %vm14050_vm5, %v14049_v33, %v6157_v45  ;;  %v3330_v29 = vsel %vm3305_vm0, %v13334_v51, %v13336_v60  ;;  %v10480_v19 = vld [vmem:[%s13052_s13] sm:$0xff]  ;;  %v10482_v33 = vpop.permute.xlu2 %6514  ;;  %v2402_v51 = vsel %vm14053_vm10, %v14052_v34, %v6156_v44  ;;  %vm14080_vm5 = vmmov %vm14059_vm6 }
 0x7f9   :  { %3815 = vmatpush.msra.mxu3 %v3330_v29  ;;  %v2398_v45 = vsel %vm14055_vm12, %v6156_v44, %v13338_v43  ;;  %v14057_v60 = vld [vmem:[#allocation45_spill] sm:$0xff]  ;;  %v10506_v34 = vpack.i.bf16 %v9669_v24, %v14056_v40  ;;  %v14058_v43 = vunpack.i.h.bf16 %v10031_v35  ;;  %v14061_v35 = vunpack.i.l.bf16 %v9828_v62  ;;  %vm14090_vm9 = vmmov %vm14080_vm5 }
 0x7fa   :  { %3726 = vmatpush.msra.mxu0 %v2403_v49  ;;  %v10484_v49 = vpop.permute.xlu1 %6509  ;;  %3858 = vmatpush.msra.mxu1 %v2399_v58  ;;  %v10498_v53 = vpack.i.bf16 %v14057_v60, %v14056_v40  ;;  %v10524_v58 = vld [vmem:[%s13052_s13 + $0x28] sm:$0xff]  ;;  %v14064_v40 = vunpack.i.h.bf16 %v14063_v20  ;;  %v14072_v20 = vunpack.i.l.bf16 %v9690_v56  ;;  %vm14109_vm10 = vmmov %vm14080_vm5 }
 0x7fb   :  { %5527 = vmatmul.msk.f32.vlgmr.msra.gmra.mxu3 %vm14054_vm11, %v10463_v4  ;;  %vm14120_vm11 = vmmov %vm14055_vm12 }
 0x7fc   :  { %3727 = vmatpush.msra.mxu0 %v2402_v51  ;;  %3859 = vmatpush.msra.mxu1 %v2398_v45  ;;  %v10511_v51 = vld [vmem:[%s13052_s13 + $0x20] sm:$0xff]  ;;  %v10530_v45 = vld [vmem:[%s13052_s13 + $0x18] sm:$0xff]  ;;  %vm14125_vm12 = vmmov %vm14062_vm1 }
 0x7fd   :  { %3728 = vmatmul.f32.vlgmr.msra.gmra.mxu0 %v10480_v19  ;;  %3860 = vmatmul.f32.vlgmr.msra.gmra.mxu1 %v10480_v19 }
 0x7fe   :  { %6724 = vrot.lane.b32.xlu0 %v10498_v53, %s6864_s7  ;;  %v10513_v44 = vpop.permute.xlu0 %6519  ;;  %6719 = vrot.lane.b32.xlu2 %v10506_v34, %s6842_s1 }
 0x7ff   :  { %v13342_v29 = vunpack.i.l.bf16 %v10513_v44  ;;  %6714 = vrot.lane.b32.xlu1 %v10422_v8, %s6865_s18  ;;  %3775 = vmatmul.f32.gmra.mxu2 %v10511_v51  ;;  %v14060_v24 = vunpack.i.h.bf16 %v10513_v44 }
 0x800   :  { %v10539_v15 = vpop.permute.xlu2 %6549 }
 0x801   :  { %v2781_v55 = vsel %vm13995_vm14, %v14058_v43, %v13342_v29  ;;  %v2780_v43 = vsel %vm14062_vm1, %v14061_v35, %v14060_v24  ;;  %v13347_v29 = vunpack.i.h.bf16 %v10449_v38  ;;  %v6506_v35 = vunpack.i.l.bf16 %v10392_v26  ;;  %vm14129_vm14 = vmmov %vm14120_vm11 }
 0x802   :  { %v10541_v36 = vpop.permute.xlu1 %6524  ;;  %3976 = vmatpush.msrb.mxu3 %v2781_v55  ;;  %v14067_v55 = vunpack.i.h.bf16 %v9817_v32  ;;  %v14069_v32 = vld [vmem:[#allocation48_spill] sm:$0xff]  ;;  %v14071_v24 = vunpack.i.h.bf16 %v10286_v54 }
 0x803   :  { %v6526_v52 = vunpack.i.l.bf16 %v10541_v36  ;;  %5528 = vmatmul.msk.f32.gmra.mxu3 %vm14059_vm6, %v10524_v58  ;;  %v14065_v7 = vunpack.i.h.bf16 %v10541_v36  ;;  %v3194_v56 = vsel %vm3176_vm7, %v6506_v35, %v14076_v50  ;;  %v14081_v50 = vunpack.i.h.bf16 %v9944_v28  ;;  %vm14133_vm6 = vmmov %vm14062_vm1 }
 0x804   :  { %3977 = vmatpush.msrb.mxu3 %v2780_v43  ;;  %vm14136_vm1 = vmmov %vm14120_vm11 }
 0x805   :  { %3731 = vmatmul.f32.gmra.mxu0 %v10530_v45  ;;  %v3200_v61 = vsel %vm3176_vm7, %v14064_v40, %v6526_v52  ;;  %v3196_v62 = vsel %vm3176_vm7, %v6526_v52, %v14065_v7  ;;  %3863 = vmatmul.f32.gmra.mxu1 %v10530_v45  ;;  %v14066_v40 = vunpack.i.l.bf16 %v10286_v54  ;;  %v10581_v7 = vld [vmem:[%s13052_s13 + $0x38] sm:$0xff] }
 0x806   :  { %6729 = vrot.lane.b32.xlu0 %v10433_v0, %s6865_s18  ;;  %3888 = vmatpush.msrb.mxu0 %v3200_v61  ;;  %v10570_v43 = vpop.permute.xlu0 %6534  ;;  %v6511_v61 = vunpack.i.l.bf16 %v10484_v49 }
 0x807   :  { %4020 = vmatpush.msrb.mxu1 %v3196_v62  ;;  %v2779_v52 = vsel %vm14068_vm3, %v14067_v55, %v14066_v40  ;;  %6734 = vrot.lane.b32.xlu2 %v10340_v31, %s6865_s18  ;;  %v14070_v62 = vunpack.i.h.bf16 %v14069_v32  ;;  %v3195_v40 = vsel %vm3176_vm7, %v6501_v16, %v13347_v29  ;;  %v2778_v32 = vsel %vm14073_vm2, %v14072_v20, %v14071_v24  ;;  %v14077_v20 = vld [vmem:[#allocation68_spill] sm:$0xff]  ;;  %vm14138_vm3 = vmmov %vm14080_vm5 }
 0x808   :  { %3978 = vmatpush.msrb.mxu3 %v2779_v52  ;;  %6749 = vrot.lane.b32.xlu1 %v10498_v53, %s6866_s22  ;;  %v10600_v52 = vld [vmem:[%s13052_s13 + $0x40] sm:$0xff]  ;;  %v14078_v24 = vunpack.i.h.bf16 %v14077_v20  ;;  %vm14141_vm2 = vmmov %vm14136_vm1 }
 0x809   :  { %v3199_v55 = vsel %vm3176_vm7, %v14070_v62, %v6501_v16  ;;  %4021 = vmatpush.msrb.mxu1 %v3195_v40  ;;  %v10611_v62 = vld [vmem:[%s13052_s13 + $0x30] sm:$0xff]  ;;  %v10613_v16 = vpop.permute.xlu2 %6554  ;;  %v14074_v40 = vld [vmem:[#allocation20_spill] sm:$0xff]  ;;  %3778 = vmatmul.f32.gmra.mxu2 %v10581_v7 }
 0x80a   :  { %3889 = vmatpush.msrb.mxu0 %v3199_v55  ;;  %v10615_v55 = vpop.permute.xlu1 %6529  ;;  %v14075_v29 = vunpack.i.h.bf16 %v14074_v40  ;;  %3979 = vmatpush.msrb.mxu3 %v2778_v32  ;;  %v3197_v23 = vsel %vm3176_vm7, %v14078_v24, %v6511_v61  ;;  %v14079_v40 = vunpack.i.h.bf16 %v10484_v49 }
 0x80b   :  { %4022 = vmatpush.msrb.mxu1 %v3194_v56  ;;  %5529 = vmatmul.msk.f32.gmra.mxu3 %vm14080_vm5, %v10600_v52  ;;  %v14082_v56 = vunpack.i.h.bf16 %v9908_v11  ;;  %vm14145_vm5 = vmmov %vm14133_vm6 }
 0x80c   :  { %v3198_v39 = vsel %vm3176_vm7, %v14075_v29, %v6506_v35  ;;  %v3193_v29 = vsel %vm3176_vm7, %v6511_v61, %v14079_v40  ;;  %v14083_v35 = vld [vmem:[#allocation52_spill] sm:$0xff] }
 0x80d   :  { %3890 = vmatpush.msrb.mxu0 %v3198_v39  ;;  %4023 = vmatpush.msrb.mxu1 %v3193_v29  ;;  %v2653_v39 = vsel %vm721_vm13, %v14082_v56, %v14081_v50  ;;  %v13354_v32 = vunpack.i.h.bf16 %v14083_v35  ;;  %v6516_v50 = vunpack.i.l.bf16 %v10482_v33  ;;  %v14086_v56 = vunpack.i.l.bf16 %v9908_v11  ;;  %v10671_v29 = vld [vmem:[%s13052_s13 + $0x58] sm:$0xff] }
 0x80e   :  { %3734 = vmatmul.f32.gmra.mxu0 %v10611_v62  ;;  %3866 = vmatmul.f32.gmra.mxu1 %v10611_v62  ;;  %v10645_v61 = vpop.permute.xlu0 %6539 }
 0x80f   :  { %3891 = vmatpush.msrb.mxu0 %v3197_v23  ;;  %3980 = vmatpush.msrb.mxu3 %v2653_v39  ;;  %v10652_v23 = vld [vmem:[%s13052_s13 + $0x50] sm:$0xff]  ;;  %v13351_v40 = vunpack.i.h.bf16 %v10645_v61  ;;  %v6541_v24 = vunpack.i.l.bf16 %v10645_v61 }
 0x810   :  { %6759 = vrot.lane.b32.xlu0 %v10506_v34, %s6867_s6  ;;  %14084 = vst [vmem:[#allocation34_spill] sm:$0xff] %v10652_v23  ;;  %6739 = vrot.lane.b32.xlu2 %v10498_v53, %s6865_s18  ;;  %v14085_v34 = vunpack.i.l.bf16 %v9944_v28  ;;  %v10676_v53 = vld [vmem:[%s13052_s13 + $0x48] sm:$0xff] }
 0x811   :  { %6754 = vrot.lane.b32.xlu1 %v10433_v0, %s6866_s22  ;;  %v14087_v0 = vunpack.i.h.bf16 %v10075_v46  ;;  %v3067_v11 = vsel %vm3047_vm4, %v6541_v24, %v13351_v40  ;;  %3781 = vmatmul.f32.gmra.mxu2 %v10652_v23  ;;  %v10697_v17 = vpop.permute.xlu2 %6579  ;;  %v14091_v40 = vunpack.i.l.bf16 %v14083_v35  ;;  %v14092_v23 = vunpack.i.l.bf16 %v9740_v2 }
 0x812   :  { %v2652_v39 = vsel %vm721_vm13, %v14086_v56, %v14085_v34  ;;  %v10686_v34 = vpop.permute.xlu1 %6559  ;;  %v14088_v56 = vunpack.i.h.bf16 %v9740_v2  ;;  %4024 = vmatpush.msrb.mxu1 %v3067_v11  ;;  %v6536_v2 = vunpack.i.l.bf16 %v10570_v43 }
 0x813   :  { %3981 = vmatpush.msrb.mxu3 %v2652_v39  ;;  %v3071_v28 = vsel %vm3047_vm4, %v14087_v0, %v6541_v24  ;;  %v13355_v46 = vunpack.i.l.bf16 %v10686_v34  ;;  %v14089_v0 = vld [vmem:[#allocation8_spill] sm:$0xff]  ;;  %v14095_v24 = vunpack.i.h.bf16 %v10288_v59 }
 0x814   :  { %v2651_v39 = vsel %vm721_vm13, %v14088_v56, %v13354_v32  ;;  %3892 = vmatpush.msrb.mxu0 %v3071_v28  ;;  %5530 = vmatmul.msk.f32.gmra.mxu3 %vm14090_vm9, %v10671_v29  ;;  %v2650_v28 = vsel %vm721_vm13, %v14092_v23, %v14091_v40  ;;  %v14093_v56 = vld [vmem:[#allocation14_spill] sm:$0xff]  ;;  %v6531_v23 = vunpack.i.l.bf16 %v10615_v55  ;;  %v6773_v40 = vpack.i.bf16 %v9554_v48, %v14057_v60  ;;  %vm14153_vm9 = vmmov %vm14145_vm5 }
 0x815   :  { %3982 = vmatpush.msrb.mxu3 %v2651_v39  ;;  %v14094_v11 = vunpack.i.h.bf16 %v14093_v56  ;;  %v3329_v20 = vsel %vm3305_vm0, %v14095_v24, %v13355_v46  ;;  %v14097_v32 = vunpack.i.h.bf16 %v9904_v5  ;;  %v6551_v48 = vunpack.i.l.bf16 %v10539_v15 }
 0x816   :  { %3737 = vmatmul.f32.gmra.mxu0 %v10676_v53  ;;  %3944 = vmatpush.msra.mxu2 %v3329_v20  ;;  %v10731_v24 = vpop.permute.xlu0 %6544  ;;  %v10739_v20 = vld [vmem:[%s13052_s13 + $0x68] sm:$0xff] }
 0x817   :  { %v3070_v39 = vsel %vm3047_vm4, %v14094_v11, %v6516_v50  ;;  %3983 = vmatpush.msrb.mxu3 %v2650_v28  ;;  %3869 = vmatmul.f32.gmra.mxu1 %v10676_v53  ;;  %v14096_v11 = vunpack.i.h.bf16 %v14089_v0  ;;  %v14102_v28 = vunpack.i.l.bf16 %v9904_v5 }
 0x818   :  { %3893 = vmatpush.msrb.mxu0 %v3070_v39  ;;  %6764 = vrot.lane.b32.xlu0 %v10324_v13, %s6867_s6  ;;  %v14098_v39 = vld [vmem:[#allocation21_spill] sm:$0xff] }
 0x819   :  { %v2525_v56 = vsel %vm886_vm8, %v14097_v32, %v14096_v11  ;;  %6744 = vrot.lane.b32.xlu2 %v10422_v8, %s6866_s22  ;;  %6774 = vrot.lane.b32.xlu1 %v6773_v40, %s6867_s6  ;;  %v14099_v32 = vunpack.i.h.bf16 %v10686_v34  ;;  %v14101_v11 = vunpack.i.l.bf16 %v14089_v0  ;;  %v14103_v8 = vunpack.i.h.bf16 %v10482_v33 }
 0x81a   :  { %3984 = vmatpush.msrb.mxu3 %v2525_v56  ;;  %v14100_v56 = vunpack.i.h.bf16 %v10336_v42  ;;  %v10769_v5 = vpop.permute.xlu1 %6564  ;;  %3784 = vmatmul.f32.gmra.mxu2 %v10739_v20  ;;  %v10819_v42 = vpop.permute.xlu2 %6584 }
 0x81b   :  { %v2524_v46 = vsel %vm886_vm8, %v14102_v28, %v14101_v11  ;;  %v3066_v40 = vsel %vm3047_vm4, %v6516_v50, %v14103_v8  ;;  %v14104_v28 = vld [vmem:[#allocation65_spill] sm:$0xff]  ;;  %v14106_v11 = vunpack.i.h.bf16 %v14098_v39  ;;  %v14107_v50 = vunpack.i.h.bf16 %v9737_v1 }
 0x81c   :  { %v3328_v13 = vsel %vm3305_vm0, %v14100_v56, %v14099_v32  ;;  %3985 = vmatpush.msrb.mxu3 %v2524_v46  ;;  %v10766_v32 = vld [vmem:[%s13052_s13 + $0x70] sm:$0xff]  ;;  %4025 = vmatpush.msrb.mxu1 %v3066_v40  ;;  %v13360_v56 = vunpack.i.l.bf16 %v10769_v5  ;;  %v14108_v40 = vunpack.i.h.bf16 %v10615_v55 }
 0x81d   :  { %3945 = vmatpush.msra.mxu2 %v3328_v13  ;;  %v14105_v13 = vunpack.i.h.bf16 %v14104_v28  ;;  %v2523_v8 = vsel %vm886_vm8, %v14107_v50, %v14106_v11  ;;  %5531 = vmatmul.msk.f32.gmra.mxu3 %vm14109_vm10, %v10766_v32  ;;  %v14110_v28 = vunpack.i.h.bf16 %v10115_v18  ;;  %v14111_v50 = vunpack.i.l.bf16 %v14098_v39  ;;  %vm14154_vm10 = vmmov %vm14138_vm3 }
 0x81e   :  { %3986 = vmatpush.msrb.mxu3 %v2523_v8  ;;  %v3065_v60 = vsel %vm3047_vm4, %v6531_v23, %v14108_v40  ;;  %v6546_v40 = vunpack.i.l.bf16 %v10731_v24 }
 0x81f   :  { %v3069_v46 = vsel %vm3047_vm4, %v14105_v13, %v6531_v23  ;;  %4026 = vmatpush.msrb.mxu1 %v3065_v60  ;;  %v3068_v11 = vsel %vm3047_vm4, %v14110_v28, %v6536_v2  ;;  %v10804_v23 = vld [vmem:[%s13052_s13 + $0x60] sm:$0xff]  ;;  %v14113_v28 = vunpack.i.h.bf16 %v10177_v37 }
 0x820   :  { %3894 = vmatpush.msrb.mxu0 %v3069_v46  ;;  %v14112_v46 = vunpack.i.l.bf16 %v9737_v1  ;;  %v14115_v13 = vld [vmem:[#allocation5_spill] sm:$0xff]  ;;  %3872 = vmatmul.f32.gmra.mxu1 %v10804_v23 }
 0x821   :  { %v3327_v1 = vsel %vm3305_vm0, %v14113_v28, %v13360_v56  ;;  %v13365_v18 = vunpack.i.h.bf16 %v14115_v13  ;;  %3740 = vmatmul.f32.gmra.mxu0 %v10804_v23  ;;  %v6778_v28 = vpack.i.bf16 %v9314_v63, %v9465_v41  ;;  %6769 = vrot.lane.b32.xlu2 %v10340_v31, %s6866_s22  ;;  %v14118_v56 = vunpack.i.h.bf16 %v10394_v9  ;;  %v14121_v63 = vld [vmem:[#allocation24_spill] sm:$0xff]  ;;  %s6871_s22 = smov 124  }
 0x822   :  { %v2522_v8 = vsel %vm886_vm8, %v14112_v46, %v14111_v50  ;;  %3895 = vmatpush.msrb.mxu0 %v3068_v11  ;;  %v14114_v50 = vunpack.i.h.bf16 %v10570_v43  ;;  %3946 = vmatpush.msra.mxu2 %v3327_v1  ;;  %v10822_v11 = vpop.permute.xlu0 %6569  ;;  %v6556_v1 = vunpack.i.l.bf16 %v10613_v16  ;;  %v14122_v31 = vunpack.i.h.bf16 %v10539_v15 }
 0x823   :  { %3987 = vmatpush.msrb.mxu3 %v2522_v8  ;;  %v14116_v8 = vunpack.i.h.bf16 %v10000_v25  ;;  %v13366_v25 = vunpack.i.h.bf16 %v10697_v17  ;;  %v14128_v41 = vunpack.i.l.bf16 %v9850_v14  ;;  %6779 = vrot.lane.b32.xlu0 %v6778_v28, %s6867_s6  ;;  %v10895_v28 = vld [vmem:[%s13052_s13 + $0x88] sm:$0xff] }
 0x824   :  { %v3064_v46 = vsel %vm3047_vm4, %v6536_v2, %v14114_v50 }
 0x825   :  { %4027 = vmatpush.msrb.mxu1 %v3064_v46  ;;  %v2942_v2 = vsel %vm2918_vm15, %v14116_v8, %v6551_v48  ;;  %v14117_v46 = vunpack.i.h.bf16 %v10769_v5  ;;  %v14119_v8 = vunpack.i.h.bf16 %v9850_v14  ;;  %5532 = vmatmul.msk.f32.gmra.mxu3 %vm14138_vm3, %v10895_v28 }
 0x826   :  { %3896 = vmatpush.msrb.mxu0 %v2942_v2  ;;  %v2938_v2 = vsel %vm2918_vm15, %v6551_v48, %v14122_v31  ;;  %v14127_v31 = vunpack.i.l.bf16 %v14115_v13 }
 0x827   :  { %v3326_v60 = vsel %vm3305_vm0, %v14118_v56, %v14117_v46  ;;  %v2397_v50 = vsel %vm14120_vm11, %v14119_v8, %v13365_v18  ;;  %v14123_v56 = vunpack.i.l.bf16 %v10697_v17  ;;  %v14124_v46 = vunpack.i.l.bf16 %v10513_v44  ;;  %4028 = vmatpush.msrb.mxu1 %v2938_v2  ;;  %vm14164_vm11 = vmmov %vm14138_vm3 }
 0x828   :  { %3947 = vmatpush.msra.mxu2 %v3326_v60  ;;  %3988 = vmatpush.msrb.mxu3 %v2397_v50  ;;  %v13368_v18 = vunpack.i.h.bf16 %v10613_v16  ;;  %v10863_v60 = vpop.permute.xlu1 %6589  ;;  %v14126_v50 = vunpack.i.h.bf16 %v10179_v10  ;;  %v14130_v2 = vunpack.i.h.bf16 %v10731_v24  ;;  %v6571_v8 = vunpack.i.l.bf16 %v10822_v11 }
 0x829   :  { %v2777_v9 = vsel %vm14125_vm12, %v14124_v46, %v14123_v56  ;;  %v2396_v56 = vsel %vm14129_vm14, %v14128_v41, %v14127_v31  ;;  %v10878_v46 = vld [vmem:[%s13052_s13 + $0x80] sm:$0xff]  ;;  %v14131_v41 = vunpack.i.h.bf16 %v10221_v27  ;;  %v13372_v14 = vunpack.i.h.bf16 %v10863_v60  ;;  %vm14183_vm12 = vmmov %vm14138_vm3 }
 0x82a   :  { %4108 = vmatpush.msrb.mxu2 %v2777_v9  ;;  %v2941_v48 = vsel %vm2918_vm15, %v14126_v50, %v6546_v40  ;;  %v13367_v9 = vunpack.i.l.bf16 %v10863_v60  ;;  %v2937_v50 = vsel %vm2918_vm15, %v6546_v40, %v14130_v2  ;;  %3989 = vmatpush.msrb.mxu3 %v2396_v56  ;;  %v14132_v40 = vunpack.i.h.bf16 %v10513_v44  ;;  %vm14193_vm14 = vmmov %vm14136_vm1 }
 0x82b   :  { %3897 = vmatpush.msrb.mxu0 %v2941_v48  ;;  %4029 = vmatpush.msrb.mxu1 %v2937_v50  ;;  %v2940_v31 = vsel %vm2918_vm15, %v14131_v41, %v6556_v1  ;;  %v14134_v56 = vunpack.i.h.bf16 %v14121_v63  ;;  %v14135_v2 = vunpack.i.h.bf16 %v9664_v21  ;;  %v10913_v41 = vld [vmem:[%s13052_s13 + $0x78] sm:$0xff]  ;;  %v2936_v44 = vsel %vm2918_vm15, %v6556_v1, %v13368_v18  ;;  %v10946_v18 = vpop.permute.xlu2 %6604 }
 0x82c   :  { %3787 = vmatmul.f32.gmra.mxu2 %v10878_v46  ;;  %v2776_v48 = vsel %vm14133_vm6, %v14132_v40, %v13366_v25  ;;  %3743 = vmatmul.f32.gmra.mxu0 %v10913_v41  ;;  %vm14195_vm6 = vmmov %vm14138_vm3 }
 0x82d   :  { %3898 = vmatpush.msrb.mxu0 %v2940_v31  ;;  %v2395_v50 = vsel %vm14136_vm1, %v14135_v2, %v14134_v56  ;;  %4109 = vmatpush.msrb.mxu2 %v2776_v48  ;;  %v14137_v31 = vunpack.i.h.bf16 %v10541_v36  ;;  %v10926_v56 = vpop.permute.xlu0 %6574  ;;  %v14139_v48 = vunpack.i.l.bf16 %v14121_v63  ;;  %v14140_v2 = vunpack.i.l.bf16 %v9664_v21  ;;  %vm14200_vm3 = vmmov %vm14136_vm1 }
 0x82e   :  { %3990 = vmatpush.msrb.mxu3 %v2395_v50  ;;  %4030 = vmatpush.msrb.mxu1 %v2936_v44  ;;  %v14142_v50 = vunpack.i.h.bf16 %v10073_v6  ;;  %v13369_v25 = vunpack.i.l.bf16 %v10926_v56  ;;  %v14144_v21 = vunpack.i.l.bf16 %v10286_v54  ;;  %v14167_v6 = vunpack.i.l.bf16 %v14083_v35 }
 0x82f   :  { %v3192_v40 = vsel %vm3176_vm7, %v14137_v31, %v13367_v9  ;;  %v2394_v1 = vsel %vm14141_vm2, %v14140_v2, %v14139_v48  ;;  %v14143_v31 = vunpack.i.h.bf16 %v10822_v11  ;;  %v13371_v9 = vunpack.i.l.bf16 %v10819_v42  ;;  %3875 = vmatmul.f32.gmra.mxu1 %v10913_v41  ;;  %vm14204_vm2 = vmmov %vm14136_vm1 }
 0x830   :  { %v2939_v36 = vsel %vm2918_vm15, %v14142_v50, %v6571_v8  ;;  %3991 = vmatpush.msrb.mxu3 %v2394_v1  ;;  %v2775_v48 = vsel %vm14145_vm5, %v14144_v21, %v13369_v25  ;;  %v10962_v1 = vpop.permute.xlu1 %6594  ;;  %v13370_v50 = vunpack.i.h.bf16 %v10926_v56  ;;  %v14149_v21 = vunpack.i.h.bf16 %v10392_v26  ;;  %v10983_v25 = vld [vmem:[%s13052_s13 + $0xa0] sm:$0xff]  ;;  %vm14207_vm5 = vmmov %vm14195_vm6 }
 0x831   :  { %v2935_v44 = vsel %vm2918_vm15, %v6571_v8, %v14143_v31  ;;  %3899 = vmatpush.msrb.mxu0 %v2939_v36  ;;  %v14146_v8 = vunpack.i.h.bf16 %v10449_v38  ;;  %v13376_v31 = vunpack.i.h.bf16 %v10819_v42  ;;  %v13373_v36 = vunpack.i.l.bf16 %v10962_v1  ;;  %4110 = vmatpush.msrb.mxu2 %v2775_v48  ;;  %v14148_v38 = vld [vmem:[#allocation56_spill] sm:$0xff]  ;;  %v14150_v48 = vld [vmem:[#allocation61_spill] sm:$0xff] }
 0x832   :  { %4152 = vmatpush.msra.mxu3 %v3192_v40  ;;  %4031 = vmatpush.msrb.mxu1 %v2935_v44  ;;  %v10967_v40 = vld [vmem:[%s13052_s13 + $0x98] sm:$0xff]  ;;  %v14147_v44 = vld [vmem:[#allocation57_spill] sm:$0xff]  ;;  %v14152_v26 = vunpack.i.h.bf16 %v10286_v54  ;;  %v14156_v54 = vunpack.i.h.bf16 %v10645_v61  ;;  %v11028_v61 = vld [vmem:[%s13052_s13 + $0xb0] sm:$0xff] }
 0x833   :  { %v3191_v2 = vsel %vm3176_vm7, %v14146_v8, %v13372_v14  ;;  %3900 = vmatpush.msrb.mxu0 %v14147_v44  ;;  %v3190_v8 = vsel %vm3176_vm7, %v14149_v21, %v13371_v9  ;;  %v10991_v44 = vld [vmem:[%s13052_s13 + $0x90] sm:$0xff]  ;;  %5533 = vmatmul.msk.f32.gmra.mxu3 %vm14154_vm10, %v10983_v25  ;;  %v14157_v9 = vld [vmem:[#allocation13_spill] sm:$0xff]  ;;  %v14158_v14 = vld [vmem:[#allocation12_spill] sm:$0xff] }
 0x834   :  { %4153 = vmatpush.msra.mxu3 %v3191_v2  ;;  %4032 = vmatpush.msrb.mxu1 %v14148_v38  ;;  %v14151_v2 = vld [vmem:[#allocation28_spill] sm:$0xff]  ;;  %v2774_v38 = vsel %vm14153_vm9, %v14152_v26, %v13370_v50  ;;  %v3063_v26 = vsel %vm3047_vm4, %v14156_v54, %v13373_v36  ;;  %vm14212_vm10 = vmmov %vm14153_vm9 }
 0x835   :  { %3790 = vmatmul.f32.gmra.mxu2 %v10967_v40  ;;  %3901 = vmatpush.msrb.mxu0 %v14150_v48  ;;  %v10999_v21 = vpop.permute.xlu0 %6599  ;;  %v14155_v48 = vunpack.i.h.bf16 %v10484_v49  ;;  %v11020_v49 = vpop.permute.xlu2 %6614 }
 0x836   :  { %4154 = vmatpush.msra.mxu3 %v3190_v8  ;;  %4033 = vmatpush.msrb.mxu1 %v14151_v2  ;;  %v13374_v8 = vunpack.i.h.bf16 %v10962_v1  ;;  %v13375_v50 = vunpack.i.l.bf16 %v10999_v21  ;;  %v13380_v54 = vunpack.i.h.bf16 %v10999_v21  ;;  %v6616_v27 = vunpack.i.l.bf16 %v11020_v49 }
 0x837   :  { %v3189_v2 = vsel %vm3176_vm7, %v14155_v48, %v13376_v31  ;;  %4111 = vmatpush.msrb.mxu2 %v2774_v38  ;;  %3902 = vmatpush.msrb.mxu0 %v14157_v9  ;;  %v14159_v38 = vld [vmem:[#allocation25_spill] sm:$0xff]  ;;  %v14161_v9 = vunpack.i.h.bf16 %v10482_v33  ;;  %v14163_v33 = vld [vmem:[#allocation18_spill] sm:$0xff] }
 0x838   :  { %4155 = vmatpush.msra.mxu3 %v3189_v2  ;;  %4034 = vmatpush.msrb.mxu1 %v14158_v14  ;;  %v11023_v48 = vpop.permute.xlu1 %6609  ;;  %v14160_v2 = vld [vmem:[#allocation27_spill] sm:$0xff] }
 0x839   :  { %3746 = vmatmul.f32.gmra.mxu0 %v10991_v44  ;;  %3878 = vmatmul.f32.gmra.mxu1 %v10991_v44  ;;  %v3062_v14 = vsel %vm3047_vm4, %v14161_v9, %v13374_v8  ;;  %v13381_v9 = vunpack.i.l.bf16 %v14163_v33 }
 0x83a   :  { %4156 = vmatpush.msra.mxu3 %v3063_v26  ;;  %3903 = vmatpush.msrb.mxu0 %v14159_v38  ;;  %v14162_v26 = vunpack.i.h.bf16 %v10615_v55  ;;  %v11049_v38 = vld [vmem:[%s13052_s13 + $0xb8] sm:$0xff]  ;;  %v11059_v55 = vld [vmem:[%s13052_s13 + $0xa8] sm:$0xff] }
 0x83b   :  { %4035 = vmatpush.msrb.mxu1 %v14160_v2  ;;  %4112 = vmatpush.msrb.mxu2 %v10262_v57  ;;  %v13378_v2 = vunpack.i.h.bf16 %v14163_v33 }
 0x83c   :  { %v3061_v36 = vsel %vm3047_vm4, %v14162_v26, %v13375_v50  ;;  %4157 = vmatpush.msra.mxu3 %v3062_v14  ;;  %v14165_v14 = vunpack.i.h.bf16 %v14083_v35 }
 0x83d   :  { %3793 = vmatmul.f32.gmra.mxu2 %v11028_v61  ;;  %v11061_v57 = vpop.permute.xlu0 %6624  ;;  %5534 = vmatmul.msk.f32.gmra.mxu3 %vm14164_vm11, %v11049_v38  ;;  %v11121_v37 = vpop.permute.xlu2 %6649  ;;  %vm14215_vm11 = vmmov %vm14153_vm9 }
 0x83e   :  { %4113 = vmatpush.msrb.mxu2 %v10270_v3  ;;  %4158 = vmatpush.msra.mxu3 %v3061_v36  ;;  %v2647_v26 = vsel %vm721_vm13, %v14165_v14, %v13378_v2  ;;  %v14166_v3 = vunpack.i.h.bf16 %v10570_v43  ;;  %v13382_v36 = vunpack.i.h.bf16 %v11061_v57  ;;  %v6626_v31 = vunpack.i.l.bf16 %v11061_v57  ;;  %v14168_v2 = vld [vmem:[#allocation33_spill] sm:$0xff] }
 0x83f   :  { %v2646_v14 = vsel %vm721_vm13, %v14167_v6, %v13381_v9  ;;  %v11105_v9 = vld [vmem:[%s13052_s13 + $0xc8] sm:$0xff]  ;;  %v14172_v43 = vunpack.i.h.bf16 %v10539_v15  ;;  %v14173_v8 = vunpack.i.h.bf16 %v14168_v2  ;;  %v14176_v6 = vunpack.i.h.bf16 %v10731_v24 }
 0x840   :  { %v3060_v50 = vsel %vm3047_vm4, %v14166_v3, %v13380_v54  ;;  %4114 = vmatpush.msrb.mxu2 %v2647_v26  ;;  %v14169_v3 = vunpack.i.l.bf16 %v10686_v34  ;;  %v3321_v35 = vsel %vm3305_vm0, %v6626_v31, %v13382_v36  ;;  %v14170_v26 = vld [vmem:[#allocation70_spill] sm:$0xff]  ;;  %v13386_v36 = vunpack.i.l.bf16 %v14168_v2 }
 0x841   :  { %4159 = vmatpush.msra.mxu3 %v3060_v50  ;;  %3749 = vmatmul.f32.gmra.mxu0 %v11059_v55  ;;  %v11100_v50 = vpop.permute.xlu1 %6619 }
 0x842   :  { %v3325_v54 = vsel %vm3305_vm0, %v14169_v3, %v6626_v31  ;;  %3881 = vmatmul.f32.gmra.mxu1 %v11059_v55  ;;  %4115 = vmatpush.msrb.mxu2 %v2646_v14  ;;  %v14171_v3 = vunpack.i.l.bf16 %v10946_v18  ;;  %v14174_v14 = vunpack.i.h.bf16 %v14089_v0  ;;  %v13387_v15 = vunpack.i.h.bf16 %v11100_v50 }
 0x843   :  { %4076 = vmatpush.msra.mxu0 %v3325_v54  ;;  %v6621_v59 = vunpack.i.l.bf16 %v11100_v50  ;;  %4208 = vmatpush.msra.mxu1 %v3321_v35  ;;  %v11152_v35 = vld [vmem:[%s13052_s13 + $0xc0] sm:$0xff]  ;;  %v14185_v54 = vunpack.i.h.bf16 %v10613_v16  ;;  %v14186_v16 = vunpack.i.l.bf16 %v14170_v26 }
 0x844   :  { %v2934_v31 = vsel %vm2918_vm15, %v14172_v43, %v14171_v3  ;;  %v2521_v10 = vsel %vm886_vm8, %v14174_v14, %v14173_v8  ;;  %v11128_v43 = vld [vmem:[%s13052_s13 + $0xd0] sm:$0xff]  ;;  %v14175_v3 = vunpack.i.h.bf16 %v10946_v18  ;;  %v14178_v14 = vunpack.i.h.bf16 %v10686_v34 }
 0x845   :  { %4160 = vmatpush.msra.mxu3 %v2934_v31  ;;  %4116 = vmatpush.msrb.mxu2 %v2521_v10  ;;  %v14177_v10 = vunpack.i.l.bf16 %v14089_v0  ;;  %v14180_v0 = vunpack.i.h.bf16 %v14098_v39  ;;  %v14181_v34 = vunpack.i.h.bf16 %v11020_v49 }
 0x846   :  { %v2933_v8 = vsel %vm2918_vm15, %v14176_v6, %v14175_v3  ;;  %3796 = vmatmul.f32.gmra.mxu2 %v11105_v9  ;;  %v3324_v24 = vsel %vm3305_vm0, %v14178_v14, %v6616_v27  ;;  %v14179_v3 = vunpack.i.h.bf16 %v14170_v26  ;;  %v11164_v14 = vpop.permute.xlu0 %6629  ;;  %5535 = vmatmul.msk.f32.gmra.mxu3 %vm14183_vm12, %v11128_v43  ;;  %v14184_v6 = vunpack.i.l.bf16 %v11023_v48  ;;  %vm14216_vm12 = vmmov %vm14207_vm5 }
 0x847   :  { %v2520_v31 = vsel %vm886_vm8, %v14177_v10, %v13386_v36  ;;  %4161 = vmatpush.msra.mxu3 %v2933_v8  ;;  %4077 = vmatpush.msra.mxu0 %v3324_v24  ;;  %v3320_v10 = vsel %vm3305_vm0, %v6616_v27, %v14181_v34  ;;  %v13388_v24 = vunpack.i.h.bf16 %v11164_v14  ;;  %v3319_v27 = vsel %vm3305_vm0, %v6621_v59, %v13387_v15 }
 0x848   :  { %4117 = vmatpush.msrb.mxu2 %v2520_v31  ;;  %v2519_v8 = vsel %vm886_vm8, %v14180_v0, %v14179_v3  ;;  %v14182_v31 = vld [vmem:[#allocation41_spill] sm:$0xff]  ;;  %v2932_v3 = vsel %vm2918_vm15, %v14185_v54, %v14184_v6  ;;  %4209 = vmatpush.msra.mxu1 %v3320_v10  ;;  %v6631_v0 = vunpack.i.l.bf16 %v11164_v14  ;;  %v14187_v54 = vunpack.i.l.bf16 %v14098_v39 }
 0x849   :  { %v6327_v36 = vunpack.i.h.bf16 %v14182_v31  ;;  %4162 = vmatpush.msra.mxu3 %v2932_v3  ;;  %3752 = vmatmul.f32.gmra.mxu0 %v11152_v35  ;;  %v11194_v10 = vpop.permute.xlu1 %6634  ;;  %v14188_v3 = vunpack.i.h.bf16 %v11023_v48  ;;  %v14189_v15 = vunpack.i.h.bf16 %v10822_v11  ;;  %v14194_v11 = vunpack.i.h.bf16 %v10769_v5 }
 0x84a   :  { %4118 = vmatpush.msrb.mxu2 %v2519_v8  ;;  %v2518_v6 = vsel %vm886_vm8, %v14187_v54, %v14186_v16  ;;  %4210 = vmatpush.msra.mxu1 %v3319_v27  ;;  %v3318_v8 = vsel %vm3305_vm0, %v6631_v0, %v13388_v24  ;;  %v14190_v16 = vunpack.i.l.bf16 %v10769_v5  ;;  %v14191_v54 = vld [vmem:[#allocation22_spill] sm:$0xff]  ;;  %v11227_v5 = vpop.permute.xlu2 %6659 }
 0x84b   :  { %3884 = vmatmul.f32.gmra.mxu1 %v11152_v35  ;;  %v2931_v39 = vsel %vm2918_vm15, %v14189_v15, %v14188_v3  ;;  %v6172_v34 = vunpack.i.h.bf16 %v14191_v54  ;;  %v3322_v15 = vsel %vm3305_vm0, %v14194_v11, %v6631_v0  ;;  %v14197_v3 = vunpack.i.l.bf16 %v14182_v31  ;;  %v14202_v11 = vld [vmem:[#allocation23_spill] sm:$0xff] }
 0x84c   :  { %4119 = vmatpush.msrb.mxu2 %v2518_v6  ;;  %v3323_v27 = vsel %vm3305_vm0, %v14190_v16, %v6621_v59  ;;  %4163 = vmatpush.msra.mxu3 %v2931_v39  ;;  %v14192_v6 = vunpack.i.h.bf16 %v14115_v13  ;;  %v14196_v59 = vld [vmem:[#allocation51_spill] sm:$0xff]  ;;  %v14198_v39 = vunpack.i.l.bf16 %v14115_v13  ;;  %v13391_v0 = vunpack.i.l.bf16 %v11121_v37 }
 0x84d   :  { %4078 = vmatpush.msra.mxu0 %v3323_v27  ;;  %4211 = vmatpush.msra.mxu1 %v3318_v8  ;;  %v6171_v27 = vunpack.i.l.bf16 %v14191_v54  ;;  %v14201_v8 = vld [vmem:[#allocation49_spill] sm:$0xff] }
 0x84e   :  { %v2393_v24 = vsel %vm14193_vm14, %v14192_v6, %v6327_v36  ;;  %5536 = vmatmul.msk.f32.vlgmr.msra.gmra.mxu2 %vm14195_vm6, %v10463_v4  ;;  %4164 = vmatpush.msra.mxu3 %v14196_v59  ;;  %v2392_v16 = vsel %vm14136_vm1, %v14198_v39, %v14197_v3  ;;  %v14199_v4 = vunpack.i.h.bf16 %v14121_v63  ;;  %v13390_v6 = vunpack.i.h.bf16 %v11121_v37  ;;  %vm14218_vm14 = vmmov %vm14153_vm9 }
 0x84f   :  { %4120 = vmatpush.msrb.mxu2 %v2393_v24  ;;  %4079 = vmatpush.msra.mxu0 %v3322_v15  ;;  %v11229_v24 = vpop.permute.xlu0 %6644  ;;  %v13389_v3 = vunpack.i.l.bf16 %v11194_v10  ;;  %v14205_v39 = vunpack.i.l.bf16 %v10863_v60  ;;  %vm14220_vm6 = vmmov %vm14153_vm9 }
 0x850   :  { %3992 = vmatmul.f32.vlgmr.msrb.gmra.mxu3 %v10480_v19  ;;  %v2391_v13 = vsel %vm14200_vm3, %v14199_v4, %v6172_v34  ;;  %v14203_v19 = vunpack.i.l.bf16 %v14121_v63  ;;  %v13392_v4 = vunpack.i.h.bf16 %v11194_v10  ;;  %v14208_v63 = vunpack.i.h.bf16 %v10863_v60  ;;  %vm14222_vm1 = vmmov %vm14220_vm6 }
 0x851   :  { %4121 = vmatpush.msrb.mxu2 %v2392_v16  ;;  %4165 = vmatpush.msra.mxu3 %v14201_v8  ;;  %v11244_v15 = vpop.permute.xlu1 %6639  ;;  %v14206_v16 = vld [vmem:[#allocation60_spill] sm:$0xff]  ;;  %vm14226_vm3 = vmmov %vm14222_vm1 }
 0x852   :  { %3904 = vmatmul.f32.vlgmr.msrb.gmra.mxu0 %v10447_v22  ;;  %v2390_v59 = vsel %vm14204_vm2, %v14203_v19, %v6171_v27  ;;  %v14209_v19 = vunpack.i.l.bf16 %v10819_v42  ;;  %vm14227_vm2 = vmmov %vm14222_vm1 }
 0x853   :  { %4122 = vmatpush.msrb.mxu2 %v2391_v13  ;;  %4036 = vmatmul.f32.vlgmr.msrb.gmra.mxu1 %v10447_v22  ;;  %v3188_v22 = vsel %vm3176_vm7, %v14205_v39, %v13391_v0  ;;  %v3187_v13 = vsel %vm3176_vm7, %v14208_v63, %v13390_v6  ;;  %v13398_v39 = vunpack.i.h.bf16 %v11227_v5  ;;  %v14210_v63 = vunpack.i.h.bf16 %v10819_v42 }
 0x854   :  { %4166 = vmatpush.msra.mxu3 %v14202_v11  ;;  %v6661_v11 = vunpack.i.l.bf16 %v11227_v5  ;;  %v6646_v6 = vunpack.i.l.bf16 %v11229_v24 }
 0x855   :  { %4123 = vmatpush.msrb.mxu2 %v2390_v59 }
 0x856   :  { %4167 = vmatpush.msra.mxu3 %v14206_v16  ;;  %5537 = vmatmul.msk.f32.gmra.mxu2 %vm14207_vm5, %v10524_v58  ;;  %v3186_v58 = vsel %vm3176_vm7, %v14209_v19, %v13389_v3  ;;  %v6641_v16 = vunpack.i.l.bf16 %v11244_v15  ;;  %v14211_v19 = vunpack.i.l.bf16 %v10697_v17 }
 0x857   :  { %4284 = vmatpush.msra.mxu2 %v3188_v22  ;;  %v11269_v8 = vpop.permute.xlu0 %6654  ;;  %v11282_v22 = vpop.permute.xlu2 %6664 }
 0x858   :  { %3995 = vmatmul.f32.gmra.mxu3 %v10530_v45  ;;  %v13393_v59 = vunpack.i.h.bf16 %v11269_v8  ;;  %v6656_v60 = vunpack.i.l.bf16 %v11269_v8  ;;  %v6642_v45 = vunpack.i.h.bf16 %v11244_v15  ;;  %v13396_v42 = vunpack.i.l.bf16 %v11282_v22 }
 0x859   :  { %4285 = vmatpush.msra.mxu2 %v3187_v13  ;;  %v3185_v13 = vsel %vm3176_vm7, %v14210_v63, %v13392_v4  ;;  %v11303_v0 = vpop.permute.xlu1 %6669  ;;  %v6647_v63 = vunpack.i.h.bf16 %v11229_v24 }
 0x85a   :  { %3907 = vmatmul.f32.gmra.mxu0 %v10511_v51  ;;  %v2773_v3 = vsel %vm14153_vm9, %v14211_v19, %v6656_v60  ;;  %v14213_v19 = vunpack.i.l.bf16 %v10962_v1  ;;  %vm14242_vm9 = vmmov %vm14207_vm5 }
 0x85b   :  { %4286 = vmatpush.msra.mxu2 %v3186_v58  ;;  %v2769_v58 = vsel %vm14212_vm10, %v6656_v60, %v13393_v59  ;;  %4039 = vmatmul.f32.gmra.mxu1 %v10511_v51  ;;  %v14214_v60 = vunpack.i.h.bf16 %v10697_v17  ;;  %v14217_v59 = vunpack.i.h.bf16 %v10962_v1  ;;  %v2768_v17 = vsel %vm14218_vm14, %v6641_v16, %v6642_v45  ;;  %vm14254_vm10 = vmmov %vm14207_vm5 }
 0x85c   :  { %v3059_v4 = vsel %vm3047_vm4, %v14213_v19, %v6661_v11  ;;  %4240 = vmatpush.msrb.mxu0 %v2773_v3  ;;  %4372 = vmatpush.msrb.mxu1 %v2769_v58  ;;  %v6672_v3 = vunpack.i.h.bf16 %v11303_v0  ;;  %v14219_v58 = vunpack.i.l.bf16 %v10926_v56 }
 0x85d   :  { %4287 = vmatpush.msra.mxu2 %v3185_v13  ;;  %v2772_v51 = vsel %vm14215_vm11, %v14214_v60, %v6641_v16  ;;  %v13395_v13 = vunpack.i.h.bf16 %v11282_v22  ;;  %v3058_v19 = vsel %vm3047_vm4, %v14217_v59, %v13398_v39  ;;  %v14221_v59 = vunpack.i.l.bf16 %v10999_v21 }
 0x85e   :  { %5538 = vmatmul.msk.f32.gmra.mxu2 %vm14216_vm12, %v10600_v52  ;;  %4241 = vmatpush.msrb.mxu0 %v2772_v51  ;;  %v2771_v1 = vsel %vm14220_vm6, %v14219_v58, %v6646_v6  ;;  %v2767_v51 = vsel %vm14222_vm1, %v6646_v6, %v6647_v63  ;;  %vm14258_vm11 = vcmp.lt.s32.totalorder %v7376_v12, 80 }
 0x85f   :  { %4288 = vmatpush.msra.mxu2 %v3059_v4  ;;  %v6671_v4 = vunpack.i.l.bf16 %v11303_v0  ;;  %4373 = vmatpush.msrb.mxu1 %v2768_v17  ;;  %v11332_v52 = vpop.permute.xlu0 %6674  ;;  %v3057_v16 = vsel %vm3047_vm4, %v14221_v59, %v13396_v42  ;;  %v14224_v17 = vunpack.i.l.bf16 %v10946_v18  ;;  %v14237_v42 = vunpack.i.h.bf16 %v14163_v33  ;;  %vm14260_vm12 = vmmov %vm14258_vm11 }
 0x860   :  { %3998 = vmatmul.f32.gmra.mxu3 %v10611_v62  ;;  %v13394_v60 = vunpack.i.l.bf16 %v11332_v52  ;;  %4242 = vmatpush.msrb.mxu0 %v2771_v1  ;;  %v14223_v62 = vunpack.i.h.bf16 %v10999_v21  ;;  %v14225_v1 = vunpack.i.h.bf16 %v10926_v56  ;;  %v14228_v56 = vld [vmem:[#allocation71_spill] sm:$0xff]  ;;  %vm14263_vm14 = vmmov %vm14258_vm11 }
 0x861   :  { %4289 = vmatpush.msra.mxu2 %v3058_v19  ;;  %4374 = vmatpush.msrb.mxu1 %v2767_v51  ;;  %v11364_v6 = vpop.permute.xlu1 %6684  ;;  %v2766_v59 = vsel %vm14227_vm2, %v6671_v4, %v6672_v3  ;;  %vm14264_vm6 = vmmov %vm14258_vm11 }
 0x862   :  { %3910 = vmatmul.f32.gmra.mxu0 %v10581_v7  ;;  %v3056_v19 = vsel %vm3047_vm4, %v14223_v62, %v13395_v13  ;;  %v2930_v58 = vsel %vm2918_vm15, %v14224_v17, %v13394_v60  ;;  %v2770_v21 = vsel %vm14226_vm3, %v14225_v1, %v6671_v4  ;;  %v6687_v51 = vunpack.i.h.bf16 %v11364_v6  ;;  %v14230_v1 = vld [vmem:[#allocation59_spill] sm:$0xff]  ;;  %vm14265_vm1 = vmmov %vm14264_vm6 }
 0x863   :  { %4290 = vmatpush.msra.mxu2 %v3057_v16  ;;  %4042 = vmatmul.f32.gmra.mxu1 %v10581_v7  ;;  %v11374_v16 = vpop.permute.xlu2 %6679  ;;  %v6686_v62 = vunpack.i.l.bf16 %v11364_v6  ;;  %v13397_v7 = vunpack.i.h.bf16 %v11332_v52  ;;  %v14229_v4 = vunpack.i.h.bf16 %v11061_v57  ;;  %v6262_v60 = vunpack.i.h.bf16 %v14230_v1  ;;  %vm14266_vm3 = vmmov %vm14265_vm1 }
 0x864   :  { %4243 = vmatpush.msrb.mxu0 %v2770_v21  ;;  %4375 = vmatpush.msrb.mxu1 %v2766_v59  ;;  %v13406_v21 = vunpack.i.l.bf16 %v11374_v16  ;;  %v14231_v57 = vunpack.i.h.bf16 %v11020_v49  ;;  %v14232_v59 = vld [vmem:[#allocation81_spill] sm:$0xff]  ;;  %v13403_v13 = vunpack.i.h.bf16 %v11374_v16  ;;  %vm14267_vm2 = vmmov %vm14207_vm5 }
 0x865   :  { %4291 = vmatpush.msra.mxu2 %v3056_v19  ;;  %v6257_v19 = vunpack.i.h.bf16 %v14228_v56  ;;  %v3317_v17 = vsel %vm3305_vm0, %v14229_v4, %v6686_v62  ;;  %v14233_v4 = vunpack.i.h.bf16 %v10946_v18 }
 0x866   :  { %5539 = vmatmul.msk.f32.gmra.mxu2 %vm14207_vm5, %v10671_v29  ;;  %4244 = vmatpush.msrb.mxu0 %v10123_v47  ;;  %v6256_v29 = vunpack.i.l.bf16 %v14228_v56  ;;  %v3316_v47 = vsel %vm3305_vm0, %v14231_v57, %v6687_v51  ;;  %v14235_v57 = vld [vmem:[#allocation34_spill] sm:$0xff]  ;;  %vm14268_vm5 = vmmov %vm14265_vm1 }
 0x867   :  { %4292 = vmatpush.msra.mxu2 %v2930_v58  ;;  %4340 = vmatpush.msrb.mxu3 %v3317_v17  ;;  %v11392_v58 = vpop.permute.xlu0 %6689  ;;  %v14234_v17 = vld [vmem:[#allocation72_spill] sm:$0xff]  ;;  %v2643_v18 = vsel %vm721_vm13, %v14237_v42, %v6257_v19  ;;  %v2639_v42 = vsel %vm721_vm13, %v6257_v19, %v6262_v60 }
 0x868   :  { %4376 = vmatpush.msrb.mxu1 %v10362_v30  ;;  %4001 = vmatmul.f32.gmra.mxu3 %v10676_v53  ;;  %v2929_v30 = vsel %vm2918_vm15, %v14233_v4, %v13397_v7  ;;  %v6691_v56 = vunpack.i.l.bf16 %v11392_v58  ;;  %v13413_v53 = vunpack.i.l.bf16 %v14230_v1  ;;  %v6372_v49 = vunpack.i.h.bf16 %v14234_v17 }
 0x869   :  { %4245 = vmatpush.msrb.mxu0 %v14232_v59  ;;  %4341 = vmatpush.msrb.mxu3 %v3316_v47  ;;  %v14236_v59 = vld [vmem:[#allocation91_spill] sm:$0xff]  ;;  %v14238_v4 = vunpack.i.h.bf16 %v11100_v50  ;;  %v6371_v50 = vunpack.i.l.bf16 %v14234_v17  ;;  %v6692_v39 = vunpack.i.h.bf16 %v11392_v58  ;;  %v14244_v17 = vunpack.i.h.bf16 %v14168_v2 }
 0x86a   :  { %4293 = vmatpush.msra.mxu2 %v2929_v30  ;;  %3913 = vmatmul.f32.gmra.mxu0 %v14235_v57  ;;  %v14239_v30 = vunpack.i.l.bf16 %v11023_v48 }
 0x86b   :  { %4377 = vmatpush.msrb.mxu1 %v14236_v59  ;;  %v3315_v47 = vsel %vm3305_vm0, %v14238_v4, %v6691_v56  ;;  %4246 = vmatpush.msrb.mxu0 %v2643_v18  ;;  %v14240_v4 = vunpack.i.l.bf16 %v14163_v33  ;;  %v14241_v18 = vld [vmem:[#allocation10_spill] sm:$0xff]  ;;  %v14243_v33 = vunpack.i.h.bf16 %v11023_v48  ;;  %v14246_v48 = vunpack.i.l.bf16 %v14168_v2 }
 0x86c   :  { %4045 = vmatmul.f32.gmra.mxu1 %v14235_v57  ;;  %v2928_v59 = vsel %vm2918_vm15, %v14239_v30, %v13406_v21  ;;  %v13409_v7 = vunpack.i.h.bf16 %v14241_v18  ;;  %v2638_v30 = vsel %vm721_vm13, %v6256_v29, %v13413_v53  ;;  %4342 = vmatpush.msrb.mxu3 %v3315_v47  ;;  %v14249_v2 = vld [vmem:[#allocation38_spill] sm:$0xff] }
 0x86d   :  { %4294 = vmatpush.msra.mxu2 %v2928_v59  ;;  %4378 = vmatpush.msrb.mxu1 %v2639_v42  ;;  %v2642_v57 = vsel %vm721_vm13, %v14240_v4, %v6256_v29  ;;  %v2927_v19 = vsel %vm2918_vm15, %v14243_v33, %v13403_v13  ;;  %v2517_v59 = vsel %vm886_vm8, %v14244_v17, %v6372_v49  ;;  %v14245_v42 = vld [vmem:[#allocation67_spill] sm:$0xff]  ;;  %v14248_v33 = vunpack.i.h.bf16 %v11164_v14  ;;  %v14250_v17 = vld [vmem:[#allocation6_spill] sm:$0xff] }
 0x86e   :  { %4247 = vmatpush.msrb.mxu0 %v2642_v57  ;;  %5540 = vmatmul.msk.f32.gmra.mxu2 %vm14242_vm9, %v10766_v32  ;;  %v6217_v4 = vunpack.i.h.bf16 %v14245_v42  ;;  %v2513_v32 = vsel %vm886_vm8, %v6372_v49, %v13409_v7  ;;  %v2516_v47 = vsel %vm886_vm8, %v14246_v48, %v6371_v50  ;;  %v13408_v57 = vunpack.i.l.bf16 %v14241_v18  ;;  %v14252_v48 = vld [vmem:[#allocation35_spill] sm:$0xff]  ;;  %vm14269_vm9 = vmmov %vm14265_vm1 }
 0x86f   :  { %4379 = vmatpush.msrb.mxu1 %v2638_v30  ;;  %4295 = vmatpush.msra.mxu2 %v2927_v19  ;;  %v11464_v29 = vpop.permute.xlu0 %6709  ;;  %v14247_v30 = vld [vmem:[#allocation62_spill] sm:$0xff]  ;;  %v3314_v49 = vsel %vm3305_vm0, %v14248_v33, %v6692_v39  ;;  %v13407_v19 = vunpack.i.h.bf16 %v14249_v2  ;;  %v14251_v14 = vunpack.i.h.bf16 %v14170_v26 }
 0x870   :  { %4248 = vmatpush.msrb.mxu0 %v2517_v59  ;;  %4004 = vmatmul.f32.gmra.mxu3 %v10804_v23  ;;  %v6216_v23 = vunpack.i.l.bf16 %v14245_v42  ;;  %v2512_v59 = vsel %vm886_vm8, %v6371_v50, %v13408_v57  ;;  %v13404_v42 = vunpack.i.l.bf16 %v14249_v2  ;;  %v14255_v50 = vunpack.i.l.bf16 %v14170_v26 }
 0x871   :  { %4380 = vmatpush.msrb.mxu1 %v2513_v32  ;;  %4296 = vmatpush.msra.mxu2 %v14247_v30  ;;  %v2515_v32 = vsel %vm886_vm8, %v14251_v14, %v6217_v4  ;;  %v14253_v30 = vld [vmem:[#allocation66_spill] sm:$0xff]  ;;  %v14257_v14 = vld [vmem:[#allocation15_spill] sm:$0xff]  ;;  %v6711_v15 = vunpack.i.l.bf16 %v11464_v29 }
 0x872   :  { %4249 = vmatpush.msrb.mxu0 %v2516_v47  ;;  %4343 = vmatpush.msrb.mxu3 %v3314_v49  ;;  %v6332_v47 = vunpack.i.h.bf16 %v14252_v48  ;;  %v2514_v33 = vsel %vm886_vm8, %v14255_v50, %v6216_v23  ;;  %v14256_v49 = vld [vmem:[#allocation40_spill] sm:$0xff] }
 0x873   :  { %3916 = vmatmul.f32.gmra.mxu0 %v10739_v20  ;;  %4297 = vmatpush.msra.mxu2 %v14250_v17  ;;  %v13402_v17 = vunpack.i.h.bf16 %v14256_v49 }
 0x874   :  { %4048 = vmatmul.f32.gmra.mxu1 %v10739_v20  ;;  %4250 = vmatpush.msrb.mxu0 %v2515_v32  ;;  %v2511_v20 = vsel %vm886_vm8, %v6217_v4, %v13407_v19  ;;  %v2510_v4 = vsel %vm886_vm8, %v6216_v23, %v13404_v42  ;;  %v14259_v32 = vld [vmem:[#allocation69_spill] sm:$0xff]  ;;  %v11620_v42 = vld [vmem:[%s13052_s13 + $0x8] sm:$0xff] }
 0x875   :  { %4381 = vmatpush.msrb.mxu1 %v2512_v59  ;;  %4298 = vmatpush.msra.mxu2 %v14253_v30  ;;  %v6331_v59 = vunpack.i.l.bf16 %v14252_v48  ;;  %v13400_v48 = vunpack.i.h.bf16 %v14259_v32  ;;  %v13401_v30 = vunpack.i.l.bf16 %v14256_v49  ;;  %v14261_v23 = vld [vmem:[#allocation37_spill] sm:$0xff]  ;;  %14272 = vst [vmem:[#allocation52_spill] sm:$0xff] %v11620_v42 }
 0x876   :  { %5541 = vmatmul.msk.f32.gmra.mxu2 %vm14254_vm10, %v10895_v28  ;;  %4251 = vmatpush.msrb.mxu0 %v2514_v33  ;;  %v2389_v28 = vsel %vm14258_vm11, %v6327_v36, %v6332_v47  ;;  %v6177_v50 = vunpack.i.h.bf16 %v14261_v23  ;;  %v14262_v36 = vunpack.i.l.bf16 %v14182_v31  ;;  %vm14270_vm10 = vmmov %vm14267_vm2 }
 0x877   :  { %4382 = vmatpush.msrb.mxu1 %v2511_v20  ;;  %4299 = vmatpush.msra.mxu2 %v14257_v14  ;;  %v11517_v26 = vpop.permute.xlu0 %6724  ;;  %v11521_v20 = vpop.permute.xlu2 %6699  ;;  %v13399_v14 = vunpack.i.l.bf16 %v14259_v32  ;;  %vm14271_vm11 = vmmov %vm14267_vm2 }
 0x878   :  { %4007 = vmatmul.f32.gmra.mxu3 %v10913_v41  ;;  %4252 = vmatpush.msrb.mxu0 %v2389_v28  ;;  %v2385_v41 = vsel %vm14260_vm12, %v6332_v47, %v13402_v17  ;;  %v2388_v33 = vsel %vm14263_vm14, %v14262_v36, %v6331_v59  ;;  %v2384_v47 = vsel %vm14264_vm6, %v6331_v59, %v13401_v30  ;;  %v13428_v17 = vunpack.i.h.bf16 %v11517_v26  ;;  %vm14275_vm14 = vmmov %vm14267_vm2 }
 0x879   :  { %4383 = vmatpush.msrb.mxu1 %v2510_v4  ;;  %v6176_v4 = vunpack.i.l.bf16 %v14261_v23  ;;  %v2387_v31 = vsel %vm14265_vm1, %v6172_v34, %v6177_v50  ;;  %v6701_v13 = vunpack.i.l.bf16 %v11521_v20  ;;  %vm14274_vm12 = vcmp.lt.s32.totalorder %v7376_v12, 20  ;;  %vm14277_vm6 = vmmov %vm14267_vm2 }
 0x87a   :  { %4253 = vmatpush.msrb.mxu0 %v2388_v33  ;;  %v3773_v23 = vpop.f32.mrf.mxu2  ;;  %v13426_v19 = vunpack.i.h.bf16 %v11521_v20  ;;  %vm14278_vm1 = vmmov %vm14274_vm12 }
 0x87b   :  { %3919 = vmatmul.f32.gmra.mxu0 %v10878_v46  ;;  %4384 = vmatpush.msrb.mxu1 %v2385_v41  ;;  %v2386_v59 = vsel %vm14268_vm5, %v6171_v27, %v6176_v4  ;;  %v2382_v34 = vsel %vm14269_vm9, %v6176_v4, %v13399_v14  ;;  %v11561_v41 = vpop.permute.xlu1 %6694  ;;  %v11567_v27 = vpop.f32.mrf.mxu1  ;;  %vm14285_vm5 = vmmov %vm14277_vm6 }
 0x87c   :  { %4051 = vmatmul.f32.gmra.mxu1 %v10878_v46  ;;  %4254 = vmatpush.msrb.mxu0 %v2387_v31  ;;  %v2383_v46 = vsel %vm14266_vm3, %v6177_v50, %v13400_v48  ;;  %v13427_v57 = vunpack.i.l.bf16 %v11561_v41  ;;  %vm14280_vm3 = vmmov %vm14278_vm1 }
 0x87d   :  { %4385 = vmatpush.msrb.mxu1 %v2384_v47  ;;  %vm14286_vm9 = vmmov %vm14285_vm5 }
 0x87e   :  { %5542 = vmatmul.msk.f32.gmra.mxu2 %vm14267_vm2, %v10983_v25  ;;  %4255 = vmatpush.msrb.mxu0 %v2386_v59  ;;  %v3729_v25 = vpop.f32.mrf.mxu0  ;;  %vm14282_vm2 = vmmov %vm14278_vm1 }
 0x87f   :  { %4386 = vmatpush.msrb.mxu1 %v2383_v46  ;;  %v11559_v28 = vpop.permute.xlu0 %6729  ;;  %v11564_v54 = vpop.permute.xlu2 %6719  ;;  %v3774_v50 = vadd.f32 %v3773_v23, %v3729_v25 }
 0x880   :  { %4010 = vmatmul.f32.gmra.mxu3 %v10991_v44  ;;  %v3817_v44 = vpop.f32.mrf.mxu3  ;;  %v13429_v48 = vunpack.i.h.bf16 %v11564_v54 }
 0x881   :  { %4387 = vmatpush.msrb.mxu1 %v2382_v34  ;;  %v3818_v36 = vadd.f32 %v3817_v44, %v3774_v50  ;;  %v13411_v50 = vunpack.i.l.bf16 %v11564_v54 }
 0x883   :  { %3922 = vmatmul.f32.gmra.mxu0 %v10967_v40  ;;  %4848 = vrot.lane.b32.xlu2 %v3818_v36, %s6840_s29  ;;  %v11576_v4 = vpop.permute.xlu1 %6704 }
 0x884   :  { %4054 = vmatmul.f32.gmra.mxu1 %v10967_v40  ;;  %v11579_v40 = vpop.f32.mrf.mxu1  ;;  %v6706_v7 = vunpack.i.l.bf16 %v11576_v4 }
 0x886   :  { %5543 = vmatmul.msk.f32.gmra.mxu2 %vm14270_vm10, %v11049_v38  ;;  %v3732_v47 = vpop.f32.mrf.mxu0  ;;  %v3776_v38 = vpop.f32.mrf.mxu2  ;;  %vm14303_vm10 = vmmov %vm14285_vm5 }
 0x887   :  { %v11573_v33 = vpop.permute.xlu0 %6759  ;;  %v11581_v31 = vpop.permute.xlu2 %6734  ;;  %v3777_v46 = vadd.f32 %v3776_v38, %v3732_v47  ;;  %v6726_v38 = vunpack.i.l.bf16 %v11517_v26 }
 0x888   :  { %4013 = vmatmul.f32.gmra.mxu3 %v11059_v55  ;;  %v3820_v59 = vpop.f32.mrf.mxu3  ;;  %v13405_v25 = vunpack.i.l.bf16 %v11573_v33  ;;  %v13410_v44 = vunpack.i.h.bf16 %v11573_v33 }
 0x889   :  { %v3821_v34 = vadd.f32 %v3820_v59, %v3777_v46  ;;  %v11602_v46 = vld [vmem:[%s13052_s13] sm:$0xff] }
 0x88a   :  { %v3313_v59 = vsel %vm3305_vm0, %v6686_v62, %v13405_v25  ;;  %v3312_v62 = vsel %vm3305_vm0, %v6687_v51, %v13410_v44  ;;  %v11642_v51 = vld [vmem:[%s13052_s13 + $0x10] sm:$0xff]  ;;  %v3180_v44 = vsel %vm3176_vm7, %v6726_v38, %v13428_v17 }
 0x88b   :  { %3925 = vmatmul.f32.gmra.mxu0 %v11028_v61  ;;  %4916 = vrot.lane.b32.xlu0 %v3821_v34, %s6843_s17  ;;  %v11596_v47 = vpop.permute.xlu1 %6714  ;;  %v12027_v17 = vld [vmem:[%s13052_s13 + $0xb0] sm:$0xff] }
 0x88c   :  { %4057 = vmatmul.f32.gmra.mxu1 %v11028_v61  ;;  %v11594_v36 = vpop.f32.mrf.mxu1 }
 0x88e   :  { %5544 = vmatmul.msk.f32.gmra.mxu2 %vm14271_vm11, %v11128_v43  ;;  %v3735_v23 = vpop.f32.mrf.mxu0  ;;  %v3779_v14 = vpop.f32.mrf.mxu2  ;;  %vm14319_vm11 = vmmov %vm14285_vm5 }
 0x88f   :  { %v11590_v61 = vpop.permute.xlu0 %6764  ;;  %v11613_v30 = vpop.permute.xlu2 %6739 }
 0x890   :  { %4016 = vmatmul.f32.gmra.mxu3 %v11152_v35  ;;  %v13412_v34 = vunpack.i.l.bf16 %v11590_v61  ;;  %v3823_v21 = vpop.f32.mrf.mxu3  ;;  %v13414_v6 = vunpack.i.h.bf16 %v11590_v61 }
 0x892   :  { %v3310_v24 = vsel %vm3305_vm0, %v6692_v39, %v13414_v6  ;;  %v13420_v39 = vunpack.i.h.bf16 %v11613_v30 }
 0x893   :  { %3928 = vmatmul.f32.gmra.mxu0 %v11105_v9 }
 0x894   :  { %4060 = vmatmul.f32.gmra.mxu1 %v11105_v9  ;;  %v11674_v53 = vpop.f32.mrf.mxu1 }
 0x896   :  { %4124 = vmatmul.f32.vlgmr.msrb.gmra.mxu2 %v11602_v46 }
 0x897   :  { %4472 = vmatpush.msrb.mxu2 %v3313_v59  ;;  %v14273_v59 = vunpack.i.h.bf16 %v11269_v8  ;;  %v14276_v8 = vunpack.i.l.bf16 %v11121_v37  ;;  %v11718_v0 = vpop.permute.xlu2 %6744 }
 0x898   :  { %4168 = vmatmul.f32.vlgmr.msra.gmra.mxu3 %v11620_v42 }
 0x899   :  { %v2765_v25 = vsel %vm14274_vm12, %v14273_v59, %v13411_v50  ;;  %4473 = vmatpush.msrb.mxu2 %v3312_v62  ;;  %v3184_v59 = vsel %vm3176_vm7, %v14276_v8, %v6726_v38  ;;  %v13421_v62 = vunpack.i.h.bf16 %v11561_v41  ;;  %v2764_v8 = vsel %vm14278_vm1, %v6642_v45, %v13429_v48  ;;  %v3738_v50 = vpop.f32.mrf.mxu0  ;;  %vm14320_vm12 = vmmov %vm14285_vm5 }
 0x89a   :  { %4504 = vmatpush.msra.mxu3 %v2765_v25  ;;  %v3311_v25 = vsel %vm3305_vm0, %v6691_v56, %v13412_v34  ;;  %v13416_v56 = vunpack.i.h.bf16 %v11576_v4  ;;  %v14279_v34 = vunpack.i.h.bf16 %v11121_v37  ;;  %v2763_v45 = vsel %vm14280_vm3, %v6647_v63, %v13427_v57  ;;  %vm14339_vm3 = vmmov %vm14285_vm5 }
 0x89b   :  { %5545 = vmatmul.msk.f32.vlgmr.msra.gmra.mxu0 %vm14275_vm14, %v11642_v51  ;;  %4474 = vmatpush.msrb.mxu2 %v3311_v25  ;;  %v3179_v37 = vsel %vm3176_vm7, %v6701_v13, %v13426_v19  ;;  %v3780_v38 = vadd.f32 %v3779_v14, %v3735_v23  ;;  %v3782_v25 = vpop.f32.mrf.mxu2  ;;  %v2762_v58 = vsel %vm14282_vm2, %v6672_v3, %v13421_v62  ;;  %v11711_v14 = vld [vmem:[%s13052_s13 + $0x18] sm:$0xff]  ;;  %v6716_v3 = vunpack.i.l.bf16 %v11596_v47  ;;  %vm14340_vm2 = vmmov %vm14339_vm3 }
 0x89c   :  { %5554 = vmatmul.msk.f32.vlgmr.msra.gmra.mxu1 %vm14277_vm6, %v11642_v51  ;;  %4416 = vmatpush.msra.mxu0 %v3184_v59  ;;  %v3183_v59 = vsel %vm3176_vm7, %v14279_v34, %v6701_v13  ;;  %v14281_v34 = vunpack.i.l.bf16 %v11194_v10  ;;  %v6741_v13 = vunpack.i.l.bf16 %v11613_v30  ;;  %v3178_v23 = vsel %vm3176_vm7, %v6706_v7, %v13416_v56  ;;  %v14291_v56 = vld [vmem:[#allocation16_spill] sm:$0xff] }
 0x89d   :  { %4505 = vmatpush.msra.mxu3 %v2764_v8  ;;  %4548 = vmatpush.msra.mxu1 %v3180_v44  ;;  %v13415_v44 = vunpack.i.h.bf16 %v11464_v29  ;;  %v11699_v8 = vpop.permute.xlu1 %6749  ;;  %v11764_v6 = vpop.f32.mrf.mxu1 }
 0x89e   :  { %4417 = vmatpush.msra.mxu0 %v3183_v59  ;;  %v3182_v63 = vsel %vm3176_vm7, %v14281_v34, %v6706_v7  ;;  %4475 = vmatpush.msrb.mxu2 %v3310_v24  ;;  %v3826_v59 = vpop.f32.mrf.mxu3  ;;  %v13419_v7 = vunpack.i.h.bf16 %v11596_v47  ;;  %v3824_v34 = vadd.f32 %v3823_v21, %v3780_v38  ;;  %v3055_v21 = vsel %vm3047_vm4, %v6661_v11, %v6741_v13 }
 0x89f   :  { %4506 = vmatpush.msra.mxu3 %v2763_v45  ;;  %4549 = vmatpush.msra.mxu1 %v3179_v37  ;;  %v11724_v45 = vld [vmem:[%s13052_s13 + $0x20] sm:$0xff]  ;;  %v14283_v37 = vunpack.i.h.bf16 %v11194_v10  ;;  %v11741_v10 = vld [vmem:[%s13052_s13 + $0x28] sm:$0xff]  ;;  %v13417_v38 = vunpack.i.h.bf16 %v11559_v28  ;;  %14290 = vst [vmem:[#allocation21_spill] sm:$0xff] %v11764_v6 }
 0x8a0   :  { %4418 = vmatpush.msra.mxu0 %v3182_v63  ;;  %4127 = vmatmul.f32.gmra.mxu2 %v11711_v14  ;;  %v14284_v63 = vld [vmem:[#allocation92_spill] sm:$0xff]  ;;  %v14358_v6 = vld [vmem:[#allocation77_spill] sm:$0xff] }
 0x8a1   :  { %4507 = vmatpush.msra.mxu3 %v2762_v58  ;;  %4550 = vmatpush.msra.mxu1 %v3178_v23  ;;  %v3181_v24 = vsel %vm3176_vm7, %v14283_v37, %v6711_v15  ;;  %v3177_v58 = vsel %vm3176_vm7, %v6711_v15, %v13415_v44  ;;  %v6731_v23 = vunpack.i.l.bf16 %v11559_v28  ;;  %v3051_v15 = vsel %vm3047_vm4, %v6741_v13, %v13420_v39 }
 0x8a2   :  { %4171 = vmatmul.f32.gmra.mxu3 %v11724_v45  ;;  %4419 = vmatpush.msra.mxu0 %v3181_v24  ;;  %v6736_v37 = vunpack.i.l.bf16 %v11581_v31  ;;  %v14287_v24 = vld [vmem:[#allocation93_spill] sm:$0xff]  ;;  %v3783_v44 = vadd.f32 %v3782_v25, %v3738_v50  ;;  %v14292_v13 = vunpack.i.h.bf16 %v14291_v56 }
 0x8a3   :  { %4508 = vmatpush.msra.mxu3 %v14284_v63  ;;  %4551 = vmatpush.msra.mxu1 %v3177_v58  ;;  %v14288_v63 = vunpack.i.h.bf16 %v11227_v5  ;;  %v11762_v58 = vpop.f32.mrf.mxu0  ;;  %v3050_v5 = vsel %vm3047_vm4, %v6716_v3, %v13419_v7  ;;  %v11782_v25 = vpop.f32.mrf.mxu2 }
 0x8a4   :  { %5546 = vmatmul.msk.f32.gmra.mxu0 %vm14285_vm5, %v11741_v10  ;;  %5555 = vmatmul.msk.f32.gmra.mxu1 %vm14286_vm9, %v11741_v10  ;;  %14289 = vst [vmem:[#allocation8_spill] sm:$0xff] %v11762_v58  ;;  %vm14342_vm9 = vmmov %vm14340_vm2  ;;  %v14356_v58 = vunpack.i.h.bf16 %v11564_v54 }
 0x8a5   :  { %4420 = vmatpush.msra.mxu0 %v3055_v21  ;;  %4509 = vmatpush.msra.mxu3 %v14287_v24  ;;  %v3054_v11 = vsel %vm3047_vm4, %v14288_v63, %v6716_v3  ;;  %v13418_v21 = vunpack.i.h.bf16 %v11581_v31  ;;  %v14293_v24 = vunpack.i.l.bf16 %v11282_v22  ;;  %14294 = vst [vmem:[#allocation5_spill] sm:$0xff] %v11782_v25  ;;  %v6751_v63 = vunpack.i.l.bf16 %v11699_v8 }
 0x8a6   :  { %4552 = vmatpush.msra.mxu1 %v3051_v15  ;;  %v2635_v15 = vsel %vm721_vm13, %v6262_v60, %v14292_v13  ;;  %4985 = vrot.lane.b32.xlu1 %v3824_v34, %s6841_s30  ;;  %v11788_v60 = vld [vmem:[%s13052_s13 + $0x30] sm:$0xff]  ;;  %v14295_v3 = vunpack.i.l.bf16 %v14291_v56  ;;  %v14296_v34 = vunpack.i.l.bf16 %v14230_v1  ;;  %v3049_v13 = vsel %vm3047_vm4, %v6731_v23, %v13417_v38  ;;  %v11808_v1 = vpop.f32.mrf.mxu3  ;;  %v11834_v38 = vld [vmem:[%s13052_s13 + $0x40] sm:$0xff] }
 0x8a7   :  { %4421 = vmatpush.msra.mxu0 %v3054_v11  ;;  %4510 = vmatpush.msra.mxu3 %v2635_v15  ;;  %v3053_v50 = vsel %vm3047_vm4, %v14293_v24, %v6731_v23  ;;  %v13425_v15 = vunpack.i.h.bf16 %v11699_v8  ;;  %v14297_v24 = vunpack.i.h.bf16 %v11282_v22  ;;  %14298 = vst [vmem:[#allocation24_spill] sm:$0xff] %v11808_v1  ;;  %v11814_v23 = vld [vmem:[%s13052_s13 + $0x38] sm:$0xff]  ;;  %v14301_v22 = vunpack.i.h.bf16 %v14241_v18  ;;  %v6780_v1 = vpop.permute.xlu0 %6779 }
 0x8a8   :  { %4553 = vmatpush.msra.mxu1 %v3050_v5  ;;  %4130 = vmatmul.f32.gmra.mxu2 %v11788_v60  ;;  %v2634_v11 = vsel %vm721_vm13, %v14296_v34, %v14295_v3  ;;  %v11802_v5 = vpop.permute.xlu1 %6754  ;;  %v3827_v3 = vadd.f32 %v3826_v59, %v3783_v44  ;;  %v14299_v34 = vld [vmem:[#allocation7_spill] sm:$0xff]  ;;  %v3048_v44 = vsel %vm3047_vm4, %v6736_v37, %v13418_v21  ;;  %v13424_v59 = vunpack.i.h.bf16 %v11718_v0  ;;  %vm14302_vm13 = vmmov %vm14285_vm5 }
 0x8a9   :  { %4422 = vmatpush.msra.mxu0 %v3053_v50  ;;  %4511 = vmatpush.msra.mxu3 %v2634_v11  ;;  %v3052_v56 = vsel %vm3047_vm4, %v14297_v24, %v6736_v37  ;;  %v6746_v50 = vunpack.i.l.bf16 %v11718_v0  ;;  %v14300_v11 = vunpack.i.h.bf16 %v14299_v34  ;;  %v11828_v24 = vpop.permute.xlu2 %6769  ;;  %v14304_v37 = vunpack.i.l.bf16 %v11332_v52  ;;  %vm14341_vm5 = vmmov %vm14340_vm2 }
 0x8aa   :  { %4554 = vmatpush.msra.mxu1 %v3049_v13  ;;  %4174 = vmatmul.f32.gmra.mxu3 %v11814_v23  ;;  %v13423_v21 = vunpack.i.h.bf16 %v11802_v5  ;;  %v2922_v7 = vsel %vm2918_vm15, %v6751_v63, %v13425_v15  ;;  %v6771_v39 = vunpack.i.l.bf16 %v11828_v24 }
 0x8ab   :  { %4423 = vmatpush.msra.mxu0 %v3052_v56  ;;  %v2509_v13 = vsel %vm886_vm8, %v14301_v22, %v14300_v11  ;;  %v6756_v56 = vunpack.i.l.bf16 %v11802_v5  ;;  %v2926_v11 = vsel %vm2918_vm15, %v14304_v37, %v6751_v63  ;;  %v14305_v22 = vunpack.i.l.bf16 %v14299_v34  ;;  %v14308_v34 = vld [vmem:[#allocation31_spill] sm:$0xff]  ;;  %5054 = vrot.lane.b32.xlu2 %v3827_v3, %s6839_s9 }
 0x8ac   :  { %4512 = vmatpush.msra.mxu3 %v2509_v13  ;;  %4555 = vmatpush.msra.mxu1 %v3048_v44  ;;  %v14306_v13 = vunpack.i.l.bf16 %v14241_v18  ;;  %v14307_v37 = vunpack.i.h.bf16 %v11332_v52  ;;  %v14309_v62 = vunpack.i.h.bf16 %v14308_v34  ;;  %v13422_v63 = vunpack.i.h.bf16 %v11828_v24 }
 0x8ad   :  { %5547 = vmatmul.msk.f32.gmra.mxu0 %vm14302_vm13, %v11834_v38  ;;  %5556 = vmatmul.msk.f32.gmra.mxu1 %vm14303_vm10, %v11834_v38  ;;  %v2921_v52 = vsel %vm2918_vm15, %v6746_v50, %v13424_v59  ;;  %vm14343_vm13 = vmmov %vm14340_vm2 }
 0x8ae   :  { %v2508_v44 = vsel %vm886_vm8, %v14306_v13, %v14305_v22  ;;  %4424 = vmatpush.msra.mxu0 %v2926_v11  ;;  %4556 = vmatpush.msra.mxu1 %v2922_v7  ;;  %v2925_v18 = vsel %vm2918_vm15, %v14307_v37, %v6746_v50  ;;  %v14310_v22 = vunpack.i.h.bf16 %v14249_v2  ;;  %v3744_v13 = vpop.f32.mrf.mxu0  ;;  %v11872_v7 = vpop.f32.mrf.mxu1  ;;  %v14312_v37 = vunpack.i.l.bf16 %v14308_v34  ;;  %vm14344_vm10 = vmmov %vm14340_vm2 }
 0x8af   :  { %4513 = vmatpush.msra.mxu3 %v2508_v44  ;;  %v11877_v44 = vld [vmem:[%s13052_s13 + $0x48] sm:$0xff] }
 0x8b0   :  { %v2507_v11 = vsel %vm886_vm8, %v14310_v22, %v14309_v62  ;;  %4425 = vmatpush.msra.mxu0 %v2925_v18  ;;  %4557 = vmatpush.msra.mxu1 %v2921_v52  ;;  %v14311_v62 = vunpack.i.l.bf16 %v11374_v16  ;;  %v14313_v18 = vunpack.i.l.bf16 %v14249_v2  ;;  %v2920_v22 = vsel %vm2918_vm15, %v6756_v56, %v13423_v21  ;;  %v11897_v52 = vld [vmem:[%s13052_s13 + $0x50] sm:$0xff] }
 0x8b1   :  { %4514 = vmatpush.msra.mxu3 %v2507_v11  ;;  %4133 = vmatmul.f32.gmra.mxu2 %v11877_v44  ;;  %v3788_v11 = vpop.f32.mrf.mxu2  ;;  %v14314_v2 = vunpack.i.h.bf16 %v11374_v16  ;;  %v11917_v16 = vld [vmem:[%s13052_s13 + $0x58] sm:$0xff] }
 0x8b2   :  { %v2924_v3 = vsel %vm2918_vm15, %v14311_v62, %v6756_v56  ;;  %v2506_v50 = vsel %vm886_vm8, %v14313_v18, %v14312_v37  ;;  %4558 = vmatpush.msra.mxu1 %v2920_v22  ;;  %4177 = vmatmul.f32.gmra.mxu3 %v11897_v52  ;;  %v14315_v62 = vld [vmem:[#allocation32_spill] sm:$0xff]  ;;  %v14317_v37 = vunpack.i.h.bf16 %v14256_v49  ;;  %vm14318_vm8 = vcmp.lt.s32.totalorder %v7376_v12, 80  ;;  %v3832_v22 = vpop.f32.mrf.mxu3 }
 0x8b3   :  { %4426 = vmatpush.msra.mxu0 %v2924_v3  ;;  %4515 = vmatpush.msra.mxu3 %v2506_v50  ;;  %v2923_v34 = vsel %vm2918_vm15, %v14314_v2, %v6771_v39  ;;  %v14316_v3 = vunpack.i.h.bf16 %v14315_v62  ;;  %v3789_v18 = vadd.f32 %v3788_v11, %v3744_v13  ;;  %v2919_v50 = vsel %vm2918_vm15, %v6771_v39, %v13422_v63  ;;  %v14321_v13 = vld [vmem:[#allocation50_spill] sm:$0xff]  ;;  %vm14324_vm14 = vmmov %vm14318_vm8 }
 0x8b4   :  { %4559 = vmatpush.msra.mxu1 %v2919_v50  ;;  %v14322_v11 = vunpack.i.l.bf16 %v14315_v62  ;;  %v14323_v39 = vunpack.i.l.bf16 %v14256_v49  ;;  %vm14330_vm6 = vmmov %vm14318_vm8  ;;  %v14331_v49 = vld [vmem:[#allocation43_spill] sm:$0xff] }
 0x8b5   :  { %v2381_v56 = vsel %vm14318_vm8, %v14317_v37, %v14316_v3  ;;  %4427 = vmatpush.msra.mxu0 %v2923_v34  ;;  %v3833_v2 = vadd.f32 %v3832_v22, %v3789_v18  ;;  %5557 = vmatmul.msk.f32.gmra.mxu1 %vm14320_vm12, %v11917_v16  ;;  %v14325_v3 = vld [vmem:[#allocation29_spill] sm:$0xff]  ;;  %v14326_v37 = vld [vmem:[#allocation39_spill] sm:$0xff]  ;;  %v14329_v18 = vunpack.i.h.bf16 %v14259_v32  ;;  %vm14335_vm1 = vmmov %vm14330_vm6 }
 0x8b6   :  { %4516 = vmatpush.msra.mxu3 %v2381_v56  ;;  %5548 = vmatmul.msk.f32.gmra.mxu0 %vm14319_vm11, %v11917_v16  ;;  %v2380_v34 = vsel %vm14324_vm14, %v14323_v39, %v14322_v11  ;;  %v14327_v56 = vld [vmem:[#allocation26_spill] sm:$0xff]  ;;  %v11940_v62 = vpop.f32.mrf.mxu1  ;;  %v11945_v11 = vld [vmem:[%s13052_s13 + $0x60] sm:$0xff]  ;;  %v14332_v39 = vld [vmem:[#allocation19_spill] sm:$0xff] }
 0x8b7   :  { %4428 = vmatpush.msra.mxu0 %v14321_v13  ;;  %4560 = vmatpush.msra.mxu1 %v14325_v3  ;;  %v14328_v50 = vunpack.i.h.bf16 %v14327_v56  ;;  %v3747_v13 = vpop.f32.mrf.mxu0  ;;  %v14334_v3 = vunpack.i.l.bf16 %v14259_v32  ;;  %v11967_v32 = vld [vmem:[%s13052_s13 + $0x70] sm:$0xff]  ;;  %vm14345_vm8 = vmmov %vm14340_vm2 }
 0x8b8   :  { %4517 = vmatpush.msra.mxu3 %v2380_v34  ;;  %5167 = vrot.lane.b32.xlu0 %v3833_v2, %s6868_s4  ;;  %v14333_v34 = vunpack.i.l.bf16 %v14327_v56  ;;  %vm14346_vm11 = vmmov %vm14340_vm2 }
 0x8b9   :  { %4429 = vmatpush.msra.mxu0 %v14326_v37  ;;  %v2379_v22 = vsel %vm14330_vm6, %v14329_v18, %v14328_v50  ;;  %4561 = vmatpush.msra.mxu1 %v14331_v49  ;;  %v3791_v37 = vpop.f32.mrf.mxu2  ;;  %v14336_v50 = vld [vmem:[#allocation58_spill] sm:$0xff]  ;;  %v14337_v49 = vld [vmem:[#allocation64_spill] sm:$0xff]  ;;  %vm14347_vm12 = vmmov %vm14340_vm2  ;;  %vm14352_vm6 = vcmp.lt.s32.totalorder %v7376_v12, 20 }
 0x8ba   :  { %4518 = vmatpush.msra.mxu3 %v2379_v22  ;;  %4136 = vmatmul.f32.gmra.mxu2 %v11945_v11  ;;  %v2378_v2 = vsel %vm14335_vm1, %v14334_v3, %v14333_v34  ;;  %v3792_v18 = vadd.f32 %v3791_v37, %v3747_v13  ;;  %v11959_v22 = vld [vmem:[%s13052_s13 + $0x68] sm:$0xff]  ;;  %v3835_v56 = vpop.f32.mrf.mxu3  ;;  %vm14348_vm14 = vmmov %vm14340_vm2 }
 0x8bb   :  { %4430 = vmatpush.msra.mxu0 %v14332_v39  ;;  %4562 = vmatpush.msra.mxu1 %v14336_v50  ;;  %v14338_v39 = vld [vmem:[#allocation63_spill] sm:$0xff]  ;;  %vm14353_vm1 = vmmov %vm14340_vm2 }
 0x8bc   :  { %4519 = vmatpush.msra.mxu3 %v2378_v2  ;;  %v3836_v13 = vadd.f32 %v3835_v56, %v3792_v18  ;;  %v11979_v2 = vld [vmem:[%s13052_s13 + $0x78] sm:$0xff]  ;;  %v11985_v18 = vld [vmem:[%s13052_s13 + $0x80] sm:$0xff]  ;;  %v11991_v56 = vld [vmem:[%s13052_s13 + $0x88] sm:$0xff] }
 0x8bd   :  { %4180 = vmatmul.f32.gmra.mxu3 %v11959_v22  ;;  %4431 = vmatpush.msra.mxu0 %v14337_v49 }
 0x8be   :  { %4563 = vmatpush.msra.mxu1 %v14338_v39  ;;  %5549 = vmatmul.msk.f32.gmra.mxu0 %vm14339_vm3, %v11967_v32  ;;  %vm14357_vm3 = vmmov %vm14352_vm6 }
 0x8bf   :  { %5558 = vmatmul.msk.f32.gmra.mxu1 %vm14340_vm2, %v11967_v32  ;;  %5237 = vrot.lane.b32.xlu1 %v3836_v13, %s6869_s12  ;;  %v3750_v34 = vpop.f32.mrf.mxu0  ;;  %v11974_v3 = vpop.f32.mrf.mxu1  ;;  %vm14365_vm2 = vmmov %vm14357_vm3 }
 0x8c1   :  { %v3794_v37 = vpop.f32.mrf.mxu2 }
 0x8c2   :  { %4139 = vmatmul.f32.gmra.mxu2 %v11979_v2  ;;  %v3795_v50 = vadd.f32 %v3794_v37, %v3750_v34  ;;  %v3838_v49 = vpop.f32.mrf.mxu3  ;;  %v12003_v37 = vld [vmem:[%s13052_s13 + $0x90] sm:$0xff] }
 0x8c4   :  { %v3839_v39 = vadd.f32 %v3838_v49, %v3795_v50  ;;  %v12009_v50 = vld [vmem:[%s13052_s13 + $0x98] sm:$0xff] }
 0x8c5   :  { %4183 = vmatmul.f32.gmra.mxu3 %v11985_v18 }
 0x8c6   :  { %5550 = vmatmul.msk.f32.gmra.mxu0 %vm14341_vm5, %v11991_v56  ;;  %5307 = vrot.lane.b32.xlu2 %v3839_v39, %s6870_s19  ;;  %v12015_v39 = vld [vmem:[%s13052_s13 + $0xa0] sm:$0xff]  ;;  %vm14375_vm5 = vmmov %vm14365_vm2 }
 0x8c7   :  { %5559 = vmatmul.msk.f32.gmra.mxu1 %vm14342_vm9, %v11991_v56  ;;  %v3753_v13 = vpop.f32.mrf.mxu0  ;;  %vm14389_vm9 = vmmov %vm14353_vm1 }
 0x8c8   :  { %v11998_v34 = vpop.f32.mrf.mxu1 }
 0x8c9   :  { %v3797_v63 = vpop.f32.mrf.mxu2 }
 0x8ca   :  { %4142 = vmatmul.f32.gmra.mxu2 %v12003_v37  ;;  %v3798_v21 = vadd.f32 %v3797_v63, %v3753_v13  ;;  %v3841_v49 = vpop.f32.mrf.mxu3 }
 0x8cc   :  { %v3842_v59 = vadd.f32 %v3841_v49, %v3798_v21 }
 0x8cd   :  { %4186 = vmatmul.f32.gmra.mxu3 %v12009_v50 }
 0x8ce   :  { %5551 = vmatmul.msk.f32.gmra.mxu0 %vm14343_vm13, %v12015_v39  ;;  %5377 = vrot.lane.b32.xlu0 %v3842_v59, %s6871_s22  ;;  %v12033_v59 = vld [vmem:[%s13052_s13 + $0xb8] sm:$0xff] }
 0x8cf   :  { %5560 = vmatmul.msk.f32.gmra.mxu1 %vm14344_vm10, %v12015_v39  ;;  %v3905_v63 = vpop.f32.mrf.mxu0 }
 0x8d0   :  { %v3906_v13 = vadd.f32 %v3905_v63, %v11567_v27  ;;  %v4037_v15 = vpop.f32.mrf.mxu1 }
 0x8d1   :  { %v3949_v19 = vpop.f32.mrf.mxu2 }
 0x8d2   :  { %4145 = vmatmul.f32.gmra.mxu2 %v11059_v55  ;;  %v3950_v57 = vadd.f32 %v3949_v19, %v3906_v13 }
 0x8d3   :  { %v3993_v21 = vpop.f32.mrf.mxu3 }
 0x8d4   :  { %4850 = vrot.lane.b32.xlu1 %v3950_v57, %s6840_s29  ;;  %v12038_v55 = vadd.f32 %v4037_v15, %v3993_v21  ;;  %v6775_v15 = vpop.permute.xlu1 %6774 }
 0x8d5   :  { %4189 = vmatmul.f32.gmra.mxu3 %v12027_v17 }
 0x8d6   :  { %5552 = vmatmul.msk.f32.gmra.mxu0 %vm14345_vm8, %v12033_v59 }
 0x8d7   :  { %5561 = vmatmul.msk.f32.gmra.mxu1 %vm14346_vm11, %v12033_v59  ;;  %v3908_v19 = vpop.f32.mrf.mxu0 }
 0x8d8   :  { %v3909_v27 = vadd.f32 %v3908_v19, %v11579_v40  ;;  %v4040_v49 = vpop.f32.mrf.mxu1  ;;  %v6776_v19 = vunpack.i.l.bf16 %v6775_v15 }
 0x8d9   :  { %v3952_v63 = vpop.f32.mrf.mxu2 }
 0x8da   :  { %4148 = vmatmul.f32.gmra.mxu2 %v11152_v35  ;;  %v3953_v13 = vadd.f32 %v3952_v63, %v3909_v27  ;;  %v14349_v35 = vld [vmem:[#allocation75_spill] sm:$0xff] }
 0x8db   :  { %v3996_v48 = vpop.f32.mrf.mxu3  ;;  %v14350_v27 = vunpack.i.l.bf16 %v14349_v35 }
 0x8dc   :  { %4918 = vrot.lane.b32.xlu2 %v3953_v13, %s6843_s17  ;;  %v12048_v57 = vadd.f32 %v4040_v49, %v3996_v48  ;;  %v6777_v49 = vunpack.i.h.bf16 %v6775_v15 }
 0x8dd   :  { %4192 = vmatmul.f32.gmra.mxu3 %v11105_v9  ;;  %v14351_v9 = vunpack.i.l.bf16 %v11564_v54  ;;  %v14361_v54 = vunpack.i.l.bf16 %v11573_v33 }
 0x8de   :  { %5553 = vmatmul.msk.f32.gmra.mxu0 %vm14347_vm12, %v11128_v43 }
 0x8df   :  { %5562 = vmatmul.msk.f32.gmra.mxu1 %vm14348_vm14, %v11128_v43  ;;  %v3911_v40 = vpop.f32.mrf.mxu0  ;;  %v2761_v63 = vsel %vm14352_vm6, %v14351_v9, %v14350_v27  ;;  %v14354_v43 = vld [vmem:[#allocation46_spill] sm:$0xff]  ;;  %v14360_v27 = vunpack.i.h.bf16 %v11517_v26 }
 0x8e0   :  { %v4043_v21 = vpop.f32.mrf.mxu1  ;;  %v3912_v13 = vadd.f32 %v3911_v40, %v11594_v36  ;;  %v14355_v25 = vunpack.i.h.bf16 %v14354_v43 }
 0x8e1   :  { %v3955_v48 = vpop.f32.mrf.mxu2 }
 0x8e2   :  { %4300 = vmatmul.f32.vlgmr.msra.gmra.mxu2 %v11620_v42  ;;  %v2760_v35 = vsel %vm14357_vm3, %v14356_v58, %v14355_v25  ;;  %v14359_v42 = vunpack.i.l.bf16 %v14358_v6  ;;  %v3956_v9 = vadd.f32 %v3955_v48, %v3912_v13  ;;  %v3309_v6 = vsel %vm3305_vm0, %v14361_v54, %v6776_v19  ;;  %v14362_v58 = vld [vmem:[#allocation9_spill] sm:$0xff] }
 0x8e3   :  { %4636 = vmatpush.msra.mxu2 %v2761_v63  ;;  %v3999_v40 = vpop.f32.mrf.mxu3  ;;  %v14363_v26 = vunpack.i.l.bf16 %v14362_v58  ;;  %v14364_v25 = vunpack.i.l.bf16 %v11561_v41  ;;  %v6781_v63 = vunpack.i.l.bf16 %v6780_v1  ;;  %v14368_v48 = vunpack.i.h.bf16 %v11521_v20 }
 0x8e4   :  { %v3208_v36 = vsel %vm3176_vm7, %v14360_v27, %v14359_v42  ;;  %v12074_v15 = vadd.f32 %v4043_v21, %v3999_v40  ;;  %v14366_v21 = vld [vmem:[#allocation48_spill] sm:$0xff]  ;;  %v14371_v40 = vunpack.i.h.bf16 %v11573_v33  ;;  %4987 = vrot.lane.b32.xlu0 %v3956_v9, %s6841_s30 }
 0x8e5   :  { %5563 = vmatmul.msk.f32.vlgmr.msrb.gmra.mxu3 %vm14353_vm1, %v11642_v51  ;;  %4637 = vmatpush.msra.mxu2 %v2760_v35  ;;  %v2759_v42 = vsel %vm14365_vm2, %v14364_v25, %v14363_v26  ;;  %v14367_v13 = vunpack.i.l.bf16 %v14366_v21  ;;  %v14369_v35 = vld [vmem:[#allocation89_spill] sm:$0xff]  ;;  %v14374_v26 = vunpack.i.h.bf16 %v11561_v41  ;;  %v14376_v21 = vld [vmem:[#allocation20_spill] sm:$0xff] }
 0x8e6   :  { %4680 = vmatpush.msrb.mxu3 %v3208_v36  ;;  %4256 = vmatmul.f32.vlgmr.msrb.gmra.mxu0 %v11602_v46  ;;  %v14370_v27 = vunpack.i.l.bf16 %v14369_v35  ;;  %v3308_v54 = vsel %vm3305_vm0, %v14371_v40, %v6777_v49  ;;  %v14382_v40 = vld [vmem:[#allocation87_spill] sm:$0xff]  ;;  %v14383_v9 = vld [vmem:[#allocation68_spill] sm:$0xff] }
 0x8e7   :  { %4388 = vmatmul.f32.vlgmr.msrb.gmra.mxu1 %v11602_v46  ;;  %4604 = vmatpush.msrb.mxu0 %v3309_v6  ;;  %v3207_v43 = vsel %vm3176_vm7, %v14368_v48, %v14367_v13  ;;  %v14372_v6 = vld [vmem:[#allocation44_spill] sm:$0xff]  ;;  %v3914_v25 = vpop.f32.mrf.mxu0  ;;  %v14378_v13 = vunpack.i.h.bf16 %v11576_v4  ;;  %v14381_v4 = vunpack.i.l.bf16 %v11590_v61 }
 0x8e8   :  { %4638 = vmatpush.msra.mxu2 %v2759_v42  ;;  %v3337_v36 = vsel %vm3305_vm0, %v6776_v19, %v14370_v27  ;;  %4681 = vmatpush.msrb.mxu3 %v3207_v43  ;;  %v14373_v58 = vunpack.i.h.bf16 %v14372_v6  ;;  %v6782_v42 = vunpack.i.h.bf16 %v6780_v1  ;;  %v14377_v19 = vunpack.i.l.bf16 %v14376_v21  ;;  %v14379_v43 = vld [vmem:[#allocation90_spill] sm:$0xff] }
 0x8e9   :  { %4736 = vmatpush.msrb.mxu1 %v3337_v36  ;;  %4605 = vmatpush.msrb.mxu0 %v3308_v54  ;;  %v4046_v48 = vpop.f32.mrf.mxu1  ;;  %v14380_v41 = vunpack.i.l.bf16 %v14379_v43  ;;  %v3915_v1 = vadd.f32 %v3914_v25, %v11674_v53  ;;  %v3958_v27 = vpop.f32.mrf.mxu2  ;;  %v3307_v36 = vsel %vm3305_vm0, %v14381_v4, %v6781_v63  ;;  %v14384_v54 = vunpack.i.l.bf16 %v14383_v9  ;;  %v14386_v53 = vld [vmem:[#allocation84_spill] sm:$0xff]  ;;  %v14396_v4 = vld [vmem:[#allocation14_spill] sm:$0xff] }
 0x8ea   :  { %v2758_v20 = vsel %vm14375_vm5, %v14374_v26, %v14373_v58  ;;  %v3206_v33 = vsel %vm3176_vm7, %v14378_v13, %v14377_v19  ;;  %4303 = vmatmul.f32.gmra.mxu2 %v11724_v45  ;;  %v14385_v6 = vunpack.i.h.bf16 %v11464_v29  ;;  %v14387_v58 = vunpack.i.l.bf16 %v14386_v53  ;;  %v14390_v29 = vld [vmem:[#allocation79_spill] sm:$0xff]  ;;  %v14403_v53 = vld [vmem:[#allocation36_spill] sm:$0xff] }
 0x8eb   :  { %4639 = vmatpush.msra.mxu2 %v2758_v20  ;;  %4682 = vmatpush.msrb.mxu3 %v3206_v33  ;;  %v3336_v35 = vsel %vm3305_vm0, %v6777_v49, %v14380_v41  ;;  %v4002_v20 = vpop.f32.mrf.mxu3  ;;  %v14388_v25 = vunpack.i.h.bf16 %v11590_v61  ;;  %v14391_v13 = vunpack.i.l.bf16 %v14390_v29  ;;  %v14392_v33 = vunpack.i.h.bf16 %v11613_v30  ;;  %v14393_v41 = vld [vmem:[#allocation88_spill] sm:$0xff]  ;;  %v14394_v61 = vld [vmem:[#allocation94_spill] sm:$0xff] }
 0x8ec   :  { %4737 = vmatpush.msrb.mxu1 %v3336_v35  ;;  %4606 = vmatpush.msrb.mxu0 %v3307_v36  ;;  %v3205_v49 = vsel %vm3176_vm7, %v14385_v6, %v14384_v54  ;;  %v3335_v26 = vsel %vm3305_vm0, %v6781_v63, %v14387_v58  ;;  %v12140_v19 = vadd.f32 %v4046_v48, %v4002_v20  ;;  %v14395_v35 = vunpack.i.l.bf16 %v14394_v61  ;;  %v14404_v58 = vld [vmem:[#allocation80_spill] sm:$0xff]  ;;  %vm14408_vm7 = vmmov %vm14353_vm1 }
 0x8ed   :  { %4640 = vmatpush.msra.mxu2 %v14382_v40  ;;  %4683 = vmatpush.msrb.mxu3 %v3205_v49  ;;  %v3306_v21 = vsel %vm3305_vm0, %v14388_v25, %v6782_v42  ;;  %v3079_v63 = vsel %vm3047_vm4, %v14392_v33, %v14391_v13  ;;  %v3959_v43 = vadd.f32 %v3958_v27, %v3915_v1  ;;  %v14397_v36 = vunpack.i.l.bf16 %v14396_v4  ;;  %v14399_v1 = vld [vmem:[#allocation47_spill] sm:$0xff]  ;;  %v14409_v29 = vld [vmem:[#allocation76_spill] sm:$0xff]  ;;  %v14416_v4 = vld [vmem:[#allocation53_spill] sm:$0xff] }
 0x8ee   :  { %4738 = vmatpush.msrb.mxu1 %v3335_v26  ;;  %5564 = vmatmul.msk.f32.gmra.mxu3 %vm14389_vm9, %v11741_v10  ;;  %v3334_v48 = vsel %vm3305_vm0, %v6782_v42, %v14395_v35  ;;  %v14398_v40 = vunpack.i.h.bf16 %v11596_v47  ;;  %v14400_v42 = vld [vmem:[#allocation65_spill] sm:$0xff]  ;;  %v14402_v6 = vunpack.i.h.bf16 %v11559_v28  ;;  %v14405_v26 = vunpack.i.l.bf16 %v14404_v58  ;;  %vm14434_vm0 = vmmov %vm14353_vm1 }
 0x8ef   :  { %4607 = vmatpush.msrb.mxu0 %v3306_v21  ;;  %4641 = vmatpush.msra.mxu2 %v14393_v41  ;;  %v14401_v54 = vunpack.i.l.bf16 %v14400_v42  ;;  %v14406_v20 = vunpack.i.h.bf16 %v11581_v31  ;;  %v14407_v21 = vld [vmem:[#allocation82_spill] sm:$0xff]  ;;  %v14410_v13 = vunpack.i.l.bf16 %v14409_v29  ;;  %v14411_v33 = vunpack.i.h.bf16 %v11699_v8  ;;  %v14413_v31 = vld [vmem:[#allocation85_spill] sm:$0xff]  ;;  %vm14435_vm13 = vmmov %vm14434_vm0 }
 0x8f0   :  { %4684 = vmatpush.msrb.mxu3 %v3079_v63  ;;  %4739 = vmatpush.msrb.mxu1 %v3334_v48  ;;  %v3078_v30 = vsel %vm3047_vm4, %v14398_v40, %v14397_v36  ;;  %v12162_v9 = vpop.f32.mrf.mxu0  ;;  %v14414_v41 = vunpack.i.l.bf16 %v14413_v31  ;;  %v14415_v61 = vunpack.i.h.bf16 %v11718_v0  ;;  %v14417_v40 = vld [vmem:[#allocation86_spill] sm:$0xff]  ;;  %v14430_v31 = vld [vmem:[#allocation17_spill] sm:$0xff]  ;;  %vm14436_vm10 = vmmov %vm14434_vm0 }
 0x8f1   :  { %4259 = vmatmul.f32.gmra.mxu0 %v11711_v14  ;;  %4642 = vmatpush.msra.mxu2 %v14399_v1  ;;  %v12165_v27 = vpop.f32.mrf.mxu1  ;;  %v3077_v49 = vsel %vm3047_vm4, %v14402_v6, %v14401_v54  ;;  %v12175_v47 = vpop.f32.mrf.mxu2  ;;  %v3076_v25 = vsel %vm3047_vm4, %v14406_v20, %v14405_v26  ;;  %v2950_v63 = vsel %vm2918_vm15, %v14411_v33, %v14410_v13  ;;  %v14419_v1 = vunpack.i.h.bf16 %v11802_v5  ;;  %v14420_v54 = vld [vmem:[#allocation42_spill] sm:$0xff]  ;;  %v14424_v26 = vld [vmem:[#allocation73_spill] sm:$0xff]  ;;  %vm14425_vm4 = vmmov %vm14353_vm1 }
 0x8f2   :  { %4685 = vmatpush.msrb.mxu3 %v3078_v30  ;;  %5056 = vrot.lane.b32.xlu1 %v3959_v43, %s6839_s9  ;;  %v14412_v43 = vld [vmem:[#allocation83_spill] sm:$0xff]  ;;  %v2949_v35 = vsel %vm2918_vm15, %v14415_v61, %v14414_v41  ;;  %v14418_v30 = vunpack.i.l.bf16 %v14417_v40  ;;  %v14428_v29 = vld [vmem:[#allocation54_spill] sm:$0xff]  ;;  %vm14437_vm8 = vmmov %vm14434_vm0 }
 0x8f3   :  { %4391 = vmatmul.f32.gmra.mxu1 %v11711_v14  ;;  %4643 = vmatpush.msra.mxu2 %v14403_v53  ;;  %v12185_v28 = vpop.f32.mrf.mxu3  ;;  %v14429_v13 = vld [vmem:[#allocation55_spill] sm:$0xff]  ;;  %vm14438_vm11 = vmmov %vm14434_vm0 }
 0x8f4   :  { %4686 = vmatpush.msrb.mxu3 %v3077_v49  ;;  %4306 = vmatmul.f32.gmra.mxu2 %v11814_v23  ;;  %v2948_v42 = vsel %vm2918_vm15, %v14419_v1, %v14418_v30  ;;  %v14421_v49 = vld [vmem:[#allocation78_spill] sm:$0xff]  ;;  %v14431_v41 = vld [vmem:[#allocation11_spill] sm:$0xff]  ;;  %vm14440_vm12 = vmmov %vm14434_vm0 }
 0x8f5   :  { %4644 = vmatpush.msra.mxu2 %v14407_v21  ;;  %v14422_v53 = vunpack.i.l.bf16 %v14421_v49  ;;  %v14427_v21 = vld [vmem:[#allocation45_spill] sm:$0xff]  ;;  %vm14441_vm14 = vmmov %vm14434_vm0 }
 0x8f6   :  { %4687 = vmatpush.msrb.mxu3 %v3076_v25  ;;  %v14426_v25 = vld [vmem:[#allocation74_spill] sm:$0xff]  ;;  %vm14442_vm6 = vmmov %vm14434_vm0 }
 0x8f7   :  { %5565 = vmatmul.msk.f32.gmra.mxu3 %vm14408_vm7, %v11834_v38  ;;  %4645 = vmatpush.msra.mxu2 %v14412_v43  ;;  %vm14444_vm3 = vmmov %vm14434_vm0 }
 0x8f8   :  { %4688 = vmatpush.msrb.mxu3 %v2950_v63  ;;  %v3920_v48 = vpop.f32.mrf.mxu0  ;;  %vm14445_vm2 = vmmov %vm14434_vm0 }
 0x8f9   :  { %4262 = vmatmul.f32.gmra.mxu0 %v11788_v60  ;;  %4646 = vmatpush.msra.mxu2 %v14416_v4  ;;  %v3921_v8 = vadd.f32 %v3920_v48, %v11872_v7  ;;  %v4052_v36 = vpop.f32.mrf.mxu1  ;;  %v3964_v0 = vpop.f32.mrf.mxu2  ;;  %v14423_v7 = vunpack.i.h.bf16 %v11828_v24  ;;  %v14432_v48 = vld [vmem:[#allocation30_spill] sm:$0xff]  ;;  %vm14447_vm5 = vmmov %vm14434_vm0 }
 0x8fa   :  { %4689 = vmatpush.msrb.mxu3 %v2949_v35  ;;  %vm14448_vm9 = vmmov %vm14434_vm0 }
 0x8fb   :  { %4394 = vmatmul.f32.gmra.mxu1 %v11788_v60  ;;  %4647 = vmatpush.msra.mxu2 %v14420_v54  ;;  %v3965_v6 = vadd.f32 %v3964_v0, %v3921_v8  ;;  %v2947_v58 = vsel %vm2918_vm15, %v14423_v7, %v14422_v53  ;;  %v4008_v5 = vpop.f32.mrf.mxu3  ;;  %vm14433_vm15 = vmmov %vm14353_vm1 }
 0x8fc   :  { %4690 = vmatpush.msrb.mxu3 %v2948_v42  ;;  %4309 = vmatmul.f32.gmra.mxu2 %v11897_v52  ;;  %v12222_v20 = vadd.f32 %v4052_v36, %v4008_v5  ;;  %vm14443_vm1 = vmmov %vm14434_vm0 }
 0x8fd   :  { %4648 = vmatpush.msra.mxu2 %v14424_v26  ;;  %5169 = vrot.lane.b32.xlu2 %v3965_v6, %s6868_s4  ;;  %vm14451_vm7 = vmmov %vm14434_vm0 }
 0x8fe   :  { %4691 = vmatpush.msrb.mxu3 %v2947_v58 }
 0x8ff   :  { %5566 = vmatmul.msk.f32.gmra.mxu3 %vm14425_vm4, %v11917_v16  ;;  %4649 = vmatpush.msra.mxu2 %v14426_v25  ;;  %vm14453_vm4 = vmmov %vm14434_vm0 }
 0x900   :  { %4692 = vmatpush.msrb.mxu3 %v14427_v21  ;;  %v3923_v24 = vpop.f32.mrf.mxu0 }
 0x901   :  { %4265 = vmatmul.f32.gmra.mxu0 %v11877_v44  ;;  %4650 = vmatpush.msra.mxu2 %v14428_v29  ;;  %v3924_v33 = vadd.f32 %v3923_v24, %v11940_v62  ;;  %v4055_v63 = vpop.f32.mrf.mxu1  ;;  %v3967_v43 = vpop.f32.mrf.mxu2  ;;  %v12271_v29 = vld [vmem:[%s13052_s13 + $0xa8] sm:$0xff] }
 0x902   :  { %4693 = vmatpush.msrb.mxu3 %v14429_v13 }
 0x903   :  { %4397 = vmatmul.f32.gmra.mxu1 %v11877_v44  ;;  %4651 = vmatpush.msra.mxu2 %v14430_v31  ;;  %v3968_v61 = vadd.f32 %v3967_v43, %v3924_v33  ;;  %v4011_v35 = vpop.f32.mrf.mxu3 }
 0x904   :  { %4694 = vmatpush.msrb.mxu3 %v14431_v41  ;;  %4312 = vmatmul.f32.gmra.mxu2 %v11959_v22  ;;  %v12239_v4 = vadd.f32 %v4055_v63, %v4011_v35  ;;  %v12280_v63 = vld [vmem:[%s13052_s13 + $0xc8] sm:$0xff]  ;;  %v12287_v41 = vld [vmem:[%s13052_s13 + $0xd0] sm:$0xff] }
 0x905   :  { %5239 = vrot.lane.b32.xlu0 %v3968_v61, %s6869_s12  ;;  %v12294_v61 = vld [vmem:[%s13052_s13 + $0xc0] sm:$0xff] }
 0x906   :  { %4695 = vmatpush.msrb.mxu3 %v14432_v48 }
 0x907   :  { %5567 = vmatmul.msk.f32.gmra.mxu3 %vm14433_vm15, %v11967_v32  ;;  %vm14454_vm15 = vmmov %vm14434_vm0 }
 0x908   :  { %v3926_v62 = vpop.f32.mrf.mxu0 }
 0x909   :  { %4268 = vmatmul.f32.gmra.mxu0 %v11945_v11  ;;  %v3927_v8 = vadd.f32 %v3926_v62, %v11974_v3  ;;  %v4058_v36 = vpop.f32.mrf.mxu1  ;;  %v3970_v40 = vpop.f32.mrf.mxu2 }
 0x90b   :  { %4400 = vmatmul.f32.gmra.mxu1 %v11945_v11  ;;  %v3971_v30 = vadd.f32 %v3970_v40, %v3927_v8  ;;  %v4014_v1 = vpop.f32.mrf.mxu3 }
 0x90c   :  { %4315 = vmatmul.f32.gmra.mxu2 %v11985_v18  ;;  %v12248_v42 = vadd.f32 %v4058_v36, %v4014_v1  ;;  %v14439_v1 = vld [vmem:[#allocation52_spill] sm:$0xff] }
 0x90d   :  { %5309 = vrot.lane.b32.xlu1 %v3971_v30, %s6870_s19 }
 0x90f   :  { %5568 = vmatmul.msk.f32.gmra.mxu3 %vm14434_vm0, %v11991_v56 }
 0x910   :  { %v3929_v0 = vpop.f32.mrf.mxu0 }
 0x911   :  { %4271 = vmatmul.f32.gmra.mxu0 %v11979_v2  ;;  %v3930_v3 = vadd.f32 %v3929_v0, %v11998_v34  ;;  %v4061_v54 = vpop.f32.mrf.mxu1  ;;  %v3973_v6 = vpop.f32.mrf.mxu2 }
 0x913   :  { %4403 = vmatmul.f32.gmra.mxu1 %v11979_v2  ;;  %v3974_v49 = vadd.f32 %v3973_v6, %v3930_v3  ;;  %v4017_v53 = vpop.f32.mrf.mxu3 }
 0x914   :  { %4318 = vmatmul.f32.gmra.mxu2 %v12009_v50  ;;  %v12257_v7 = vadd.f32 %v4061_v54, %v4017_v53 }
 0x915   :  { %5379 = vrot.lane.b32.xlu2 %v3974_v49, %s6871_s22 }
 0x917   :  { %5569 = vmatmul.msk.f32.gmra.mxu3 %vm14435_vm13, %v12015_v39  ;;  %vm14455_vm13 = vmmov %vm14434_vm0 }
 0x918   :  { %v4081_v58 = vpop.f32.mrf.mxu0 }
 0x919   :  { %4274 = vmatmul.f32.gmra.mxu0 %v12003_v37  ;;  %v4082_v34 = vadd.f32 %v4081_v58, %v12038_v55  ;;  %v4213_v5 = vpop.f32.mrf.mxu1  ;;  %v4125_v26 = vpop.f32.mrf.mxu2 }
 0x91b   :  { %4406 = vmatmul.f32.gmra.mxu1 %v12003_v37  ;;  %4852 = vrot.lane.b32.xlu0 %v4082_v34, %s6840_s29  ;;  %v4169_v25 = vpop.f32.mrf.mxu3 }
 0x91c   :  { %4321 = vmatmul.f32.gmra.mxu2 %v12027_v17  ;;  %v4170_v21 = vadd.f32 %v4169_v25, %v4125_v26 }
 0x91e   :  { %v4214_v24 = vadd.f32 %v4213_v5, %v4170_v21 }
 0x91f   :  { %5570 = vmatmul.msk.f32.gmra.mxu3 %vm14436_vm10, %v12033_v59  ;;  %vm14456_vm10 = vcmp.lt.s32.totalorder %v7376_v12, 2 }
 0x920   :  { %4854 = vrot.lane.b32.xlu2 %v4214_v24, %s6840_s29 }
 0x921   :  { %4277 = vmatmul.f32.gmra.mxu0 %v12271_v29  ;;  %v4084_v55 = vpop.f32.mrf.mxu0  ;;  %v4216_v33 = vpop.f32.mrf.mxu1 }
 0x922   :  { %v4085_v13 = vadd.f32 %v4084_v55, %v12048_v57 }
 0x923   :  { %4409 = vmatmul.f32.gmra.mxu1 %v12271_v29  ;;  %v4128_v43 = vpop.f32.mrf.mxu2 }
 0x924   :  { %4324 = vmatmul.f32.gmra.mxu2 %v12280_v63  ;;  %4920 = vrot.lane.b32.xlu1 %v4085_v13, %s6843_s17 }
 0x925   :  { %v4172_v31 = vpop.f32.mrf.mxu3 }
 0x926   :  { %v4173_v57 = vadd.f32 %v4172_v31, %v4128_v43 }
 0x927   :  { %5571 = vmatmul.msk.f32.gmra.mxu3 %vm14437_vm8, %v12287_v41  ;;  %vm14457_vm8 = vmmov %vm14434_vm0 }
 0x928   :  { %v4217_v35 = vadd.f32 %v4216_v33, %v4173_v57 }
 0x929   :  { %4280 = vmatmul.f32.gmra.mxu0 %v12294_v61 }
 0x92a   :  { %v4087_v48 = vpop.f32.mrf.mxu0  ;;  %4922 = vrot.lane.b32.xlu0 %v4217_v35, %s6843_s17  ;;  %v4219_v62 = vpop.f32.mrf.mxu1 }
 0x92b   :  { %4412 = vmatmul.f32.gmra.mxu1 %v12294_v61  ;;  %v4088_v8 = vadd.f32 %v4087_v48, %v12074_v15  ;;  %v4131_v36 = vpop.f32.mrf.mxu2 }
 0x92c   :  { %5572 = vmatmul.msk.f32.vlgmr.msrb.gmra.mxu2 %vm14438_vm11, %v11642_v51  ;;  %vm14458_vm11 = vmmov %vm14434_vm0 }
 0x92d   :  { %4989 = vrot.lane.b32.xlu2 %v4088_v8, %s6841_s30  ;;  %v4175_v40 = vpop.f32.mrf.mxu3 }
 0x92e   :  { %v4176_v30 = vadd.f32 %v4175_v40, %v4131_v36 }
 0x92f   :  { %4520 = vmatmul.f32.vlgmr.msra.gmra.mxu3 %v11602_v46 }
 0x930   :  { %v4220_v0 = vadd.f32 %v4219_v62, %v4176_v30  ;;  %v12336_v62 = vpop.permute.xlu2 %4848 }
 0x931   :  { %4432 = vmatmul.f32.vlgmr.msra.gmra.mxu0 %v14439_v1 }
 0x932   :  { %4991 = vrot.lane.b32.xlu1 %v4220_v0, %s6841_s30  ;;  %v4222_v15 = vpop.f32.mrf.mxu1 }
 0x933   :  { %v4090_v3 = vpop.f32.mrf.mxu0  ;;  %4564 = vmatmul.f32.vlgmr.msra.gmra.mxu1 %v14439_v1 }
 0x934   :  { %v4091_v54 = vadd.f32 %v4090_v3, %v12140_v19  ;;  %5573 = vmatmul.msk.f32.gmra.mxu2 %vm14440_vm12, %v11741_v10  ;;  %v4134_v6 = vpop.f32.mrf.mxu2  ;;  %vm14459_vm12 = vmmov %vm14434_vm0 }
 0x935   :  { %v4178_v46 = vpop.f32.mrf.mxu3 }
 0x936   :  { %5058 = vrot.lane.b32.xlu0 %v4091_v54, %s6839_s9  ;;  %v4179_v49 = vadd.f32 %v4178_v46, %v4134_v6 }
 0x937   :  { %4523 = vmatmul.f32.gmra.mxu3 %v11711_v14 }
 0x938   :  { %v4223_v53 = vadd.f32 %v4222_v15, %v4179_v49  ;;  %v12346_v3 = vpop.permute.xlu2 %5054 }
 0x939   :  { %4435 = vmatmul.f32.gmra.mxu0 %v11724_v45 }
 0x93a   :  { %5060 = vrot.lane.b32.xlu2 %v4223_v53, %s6839_s9 }
 0x93b   :  { %v12313_v58 = vpop.f32.mrf.mxu0  ;;  %4567 = vmatmul.f32.gmra.mxu1 %v11724_v45 }
 0x93c   :  { %v4225_v19 = vpop.f32.mrf.mxu1  ;;  %5574 = vmatmul.msk.f32.gmra.mxu2 %vm14441_vm14, %v11834_v38  ;;  %vm14460_vm14 = vcmp.lt.s32.totalorder %v7376_v12, 4 }
 0x93d   :  { %v4137_v34 = vpop.f32.mrf.mxu2 }
 0x93f   :  { %4526 = vmatmul.f32.gmra.mxu3 %v11788_v60 }
 0x940   :  { %v4181_v5 = vpop.f32.mrf.mxu3 }
 0x941   :  { %4438 = vmatmul.f32.gmra.mxu0 %v11814_v23  ;;  %v4182_v26 = vadd.f32 %v4181_v5, %v4137_v34 }
 0x943   :  { %v12321_v25 = vadd.f32 %v4225_v19, %v4182_v26  ;;  %v4096_v21 = vpop.f32.mrf.mxu0  ;;  %4570 = vmatmul.f32.gmra.mxu1 %v11814_v23  ;;  %v12356_v19 = vpop.permute.xlu2 %5307 }
 0x944   :  { %v4097_v24 = vadd.f32 %v4096_v21, %v12222_v20  ;;  %v4228_v55 = vpop.f32.mrf.mxu1  ;;  %5575 = vmatmul.msk.f32.gmra.mxu2 %vm14442_vm6, %v11917_v16  ;;  %14446 = vst [vmem:[#allocation57_spill] sm:$0xff] %v12356_v19  ;;  %vm14461_vm6 = vcmp.lt.s32.totalorder %v7376_v12, 3 }
 0x945   :  { %v4140_v13 = vpop.f32.mrf.mxu2 }
 0x946   :  { %5171 = vrot.lane.b32.xlu1 %v4097_v24, %s6868_s4 }
 0x947   :  { %4529 = vmatmul.f32.gmra.mxu3 %v11877_v44 }
 0x948   :  { %v4184_v33 = vpop.f32.mrf.mxu3 }
 0x949   :  { %4441 = vmatmul.f32.gmra.mxu0 %v11897_v52  ;;  %v4185_v43 = vadd.f32 %v4184_v33, %v4140_v13 }
 0x94b   :  { %v4229_v31 = vadd.f32 %v4228_v55, %v4185_v43  ;;  %v4099_v57 = vpop.f32.mrf.mxu0  ;;  %4573 = vmatmul.f32.gmra.mxu1 %v11897_v52  ;;  %v12366_v55 = vpop.permute.xlu2 %4918 }
 0x94c   :  { %v4100_v35 = vadd.f32 %v4099_v57, %v12239_v4  ;;  %v4231_v20 = vpop.f32.mrf.mxu1  ;;  %5576 = vmatmul.msk.f32.gmra.mxu2 %vm14443_vm1, %v11967_v32  ;;  %v12376_v57 = vpop.permute.xlu1 %4985  ;;  %vm14462_vm1 = vmmov %vm14434_vm0 }
 0x94d   :  { %5173 = vrot.lane.b32.xlu0 %v4229_v31, %s6868_s4  ;;  %v4143_v48 = vpop.f32.mrf.mxu2  ;;  %v12370_v31 = vpop.permute.xlu0 %4916 }
 0x94e   :  { %5241 = vrot.lane.b32.xlu2 %v4100_v35, %s6869_s12 }
 0x94f   :  { %4532 = vmatmul.f32.gmra.mxu3 %v11945_v11 }
 0x950   :  { %v4187_v8 = vpop.f32.mrf.mxu3 }
 0x951   :  { %4444 = vmatmul.f32.gmra.mxu0 %v11959_v22  ;;  %v4188_v36 = vadd.f32 %v4187_v8, %v4143_v48 }
 0x953   :  { %v4232_v40 = vadd.f32 %v4231_v20, %v4188_v36  ;;  %v4102_v30 = vpop.f32.mrf.mxu0  ;;  %4576 = vmatmul.f32.gmra.mxu1 %v11959_v22 }
 0x954   :  { %v4103_v4 = vadd.f32 %v4102_v30, %v12248_v42  ;;  %v4234_v1 = vpop.f32.mrf.mxu1  ;;  %5577 = vmatmul.msk.f32.gmra.mxu2 %vm14444_vm3, %v11991_v56  ;;  %vm14463_vm3 = vmmov %vm14434_vm0 }
 0x955   :  { %5243 = vrot.lane.b32.xlu1 %v4232_v40, %s6869_s12  ;;  %v4146_v0 = vpop.f32.mrf.mxu2  ;;  %v12384_v30 = vpop.permute.xlu0 %5167 }
 0x956   :  { %5311 = vrot.lane.b32.xlu0 %v4103_v4, %s6870_s19  ;;  %14449 = vst [vmem:[#allocation56_spill] sm:$0xff] %v12384_v30 }
 0x957   :  { %4535 = vmatmul.f32.gmra.mxu3 %v11979_v2  ;;  %v12378_v20 = vpop.permute.xlu2 %5169 }
 0x958   :  { %v4190_v54 = vpop.f32.mrf.mxu3 }
 0x959   :  { %4447 = vmatmul.f32.gmra.mxu0 %v11985_v18  ;;  %v4191_v15 = vadd.f32 %v4190_v54, %v4146_v0  ;;  %v12391_v54 = vpop.permute.xlu1 %5237 }
 0x95a   :  { %14450 = vst [vmem:[#allocation61_spill] sm:$0xff] %v12391_v54 }
 0x95b   :  { %v4235_v6 = vadd.f32 %v4234_v1, %v4191_v15  ;;  %v4105_v46 = vpop.f32.mrf.mxu0  ;;  %4579 = vmatmul.f32.gmra.mxu1 %v11985_v18  ;;  %v6834_v1 = vld [vmem:[%s13052_s13] sm:$0xff] }
 0x95c   :  { %v4106_v42 = vadd.f32 %v4105_v46, %v12257_v7  ;;  %v4237_v49 = vpop.f32.mrf.mxu1  ;;  %5578 = vmatmul.msk.f32.gmra.mxu2 %vm14445_vm2, %v12015_v39  ;;  %vm14464_vm2 = vmmov %vm14460_vm14 }
 0x95d   :  { %5313 = vrot.lane.b32.xlu2 %v4235_v6, %s6870_s19  ;;  %v4149_v53 = vpop.f32.mrf.mxu2  ;;  %v6835_v6 = vld [vmem:[%s13052_s13 + $0x8] sm:$0xff] }
 0x95e   :  { %5381 = vrot.lane.b32.xlu1 %v4106_v42, %s6871_s22 }
 0x95f   :  { %4538 = vmatmul.f32.gmra.mxu3 %v12003_v37 }
 0x960   :  { %v4193_v34 = vpop.f32.mrf.mxu3 }
 0x961   :  { %4450 = vmatmul.f32.gmra.mxu0 %v12009_v50  ;;  %v4194_v5 = vadd.f32 %v4193_v34, %v4149_v53  ;;  %v12402_v34 = vpop.permute.xlu0 %5377 }
 0x962   :  { %14452 = vst [vmem:[#allocation28_spill] sm:$0xff] %v12402_v34 }
 0x963   :  { %v4238_v26 = vadd.f32 %v4237_v49, %v4194_v5  ;;  %4582 = vmatmul.f32.gmra.mxu1 %v12009_v50  ;;  %v4257_v7 = vpop.f32.mrf.mxu0 }
 0x964   :  { %5579 = vmatmul.msk.f32.gmra.mxu2 %vm14447_vm5, %v12033_v59  ;;  %v12364_v24 = vpop.f32.mrf.mxu1  ;;  %vm14465_vm5 = vmmov %vm14461_vm6 }
 0x965   :  { %5383 = vrot.lane.b32.xlu0 %v4238_v26, %s6871_s22  ;;  %v4301_v21 = vpop.f32.mrf.mxu2  ;;  %v6836_v26 = vld [vmem:[%s13052_s13 + $0x10] sm:$0xff] }
 0x966   :  { %v4302_v13 = vadd.f32 %v4301_v21, %v4257_v7  ;;  %v12410_v21 = vpop.permute.xlu1 %4850 }
 0x967   :  { %4541 = vmatmul.f32.gmra.mxu3 %v12271_v29 }
 0x968   :  { %v4345_v33 = vpop.f32.mrf.mxu3 }
 0x969   :  { %4453 = vmatmul.f32.gmra.mxu0 %v12027_v17  ;;  %v4346_v43 = vadd.f32 %v4345_v33, %v4302_v13 }
 0x96b   :  { %4856 = vrot.lane.b32.xlu1 %v4346_v43, %s6840_s29  ;;  %4585 = vmatmul.f32.gmra.mxu1 %v12027_v17 }
 0x96c   :  { %5580 = vmatmul.msk.f32.gmra.mxu2 %vm14448_vm9, %v12287_v41  ;;  %vm14466_vm9 = vmmov %vm14434_vm0 }
 0x96d   :  { %v4304_v48 = vpop.f32.mrf.mxu2 }
 0x96e   :  { %v4260_v35 = vpop.f32.mrf.mxu0 }
 0x96f   :  { %4544 = vmatmul.f32.gmra.mxu3 %v12294_v61  ;;  %v4305_v8 = vadd.f32 %v4304_v48, %v4260_v35  ;;  %v12393_v15 = vpop.permute.xlu2 %5379  ;;  %v12419_v48 = vpop.permute.xlu0 %4987 }
 0x970   :  { %v12381_v36 = vpop.f32.mrf.mxu1 }
 0x971   :  { %4456 = vmatmul.f32.gmra.mxu0 %v12280_v63  ;;  %v4348_v40 = vpop.f32.mrf.mxu3 }
 0x972   :  { %v4349_v4 = vadd.f32 %v4348_v40, %v4305_v8 }
 0x973   :  { %4588 = vmatmul.f32.gmra.mxu1 %v12280_v63 }
 0x974   :  { %4924 = vrot.lane.b32.xlu2 %v4349_v4, %s6843_s17  ;;  %4652 = vmatmul.f32.vlgmr.msra.gmra.mxu2 %v6834_v1 }
 0x976   :  { %v4263_v0 = vpop.f32.mrf.mxu0 }
 0x977   :  { %4696 = vmatmul.f32.vlgmr.msrb.gmra.mxu3 %v6835_v6  ;;  %v4307_v46 = vpop.f32.mrf.mxu2  ;;  %v12438_v6 = vpop.permute.xlu0 %5239 }
 0x978   :  { %v12398_v42 = vpop.f32.mrf.mxu1  ;;  %v4308_v49 = vadd.f32 %v4307_v46, %v4263_v0 }
 0x979   :  { %5581 = vmatmul.msk.f32.vlgmr.msrb.gmra.mxu0 %vm14451_vm7, %v11642_v51  ;;  %vm14467_vm7 = vmmov %vm14434_vm0 }
 0x97a   :  { %v4351_v53 = vpop.f32.mrf.mxu3  ;;  %v12413_v51 = vpop.permute.xlu2 %4854 }
 0x97b   :  { %v4352_v5 = vadd.f32 %v4351_v53, %v4308_v49  ;;  %5590 = vmatmul.msk.f32.vlgmr.msrb.gmra.mxu1 %vm14453_vm4, %v6836_v26  ;;  %v5599_v49 = vld [vmem:[%s13051_s14 + $0x1] ss:$8 sm:$0xf]  ;;  %v4872_v26 = vld [vmem:[%s13051_s14] ss:$8 sm:$0xf]  ;;  %vm14468_vm4 = vmmov %vm14456_vm10 }
 0x97c   :  { %4655 = vmatmul.f32.gmra.mxu2 %v11711_v14  ;;  %v5600_v53 = vld [vmem:[%s13051_s14 + $0x1] ss:$8 sm:$0xf0] }
 0x97d   :  { %4993 = vrot.lane.b32.xlu0 %v4352_v5, %s6841_s30 }
 0x97e   :  { %v4266_v7 = vpop.f32.mrf.mxu0 }
 0x97f   :  { %4699 = vmatmul.f32.gmra.mxu3 %v11724_v45  ;;  %v4310_v13 = vpop.f32.mrf.mxu2  ;;  %v12425_v45 = vpop.permute.xlu1 %5056 }
 0x980   :  { %v12415_v33 = vpop.f32.mrf.mxu1  ;;  %v4311_v43 = vadd.f32 %v4310_v13, %v4266_v7 }
 0x981   :  { %5582 = vmatmul.msk.f32.gmra.mxu0 %vm14454_vm15, %v11741_v10  ;;  %vm5253_vm15 = vcmp.lt.s32.totalorder %v7376_v12, 126 }
 0x982   :  { %v4354_v35 = vpop.f32.mrf.mxu3 }
 0x983   :  { %v4355_v8 = vadd.f32 %v4354_v35, %v4311_v43  ;;  %5591 = vmatmul.msk.f32.gmra.mxu1 %vm14434_vm0, %v11741_v10  ;;  %v5601_v43 = vld [vmem:[%s13051_s14 + $0x2] ss:$8 sm:$0xf] }
 0x984   :  { %4658 = vmatmul.f32.gmra.mxu2 %v11788_v60 }
 0x985   :  { %5062 = vrot.lane.b32.xlu1 %v4355_v8, %s6839_s9  ;;  %v12470_v8 = vor.u32 %v5600_v53, %v5599_v49 }
 0x986   :  { %v4269_v14 = vpop.f32.mrf.mxu0 }
 0x987   :  { %4702 = vmatmul.f32.gmra.mxu3 %v11814_v23  ;;  %v4313_v40 = vpop.f32.mrf.mxu2  ;;  %v12428_v4 = vpop.permute.xlu2 %4989  ;;  %v4948_v30 = vperm.slane %v12470_v8, 3 }
 0x988   :  { %v4314_v1 = vadd.f32 %v4313_v40, %v4269_v14  ;;  %v5006_v10 = vsel %vm14456_vm10, %v12419_v48, %v12428_v4  ;;  %v12436_v0 = vpop.f32.mrf.mxu1  ;;  %v12451_v5 = vpop.permute.xlu1 %5309 }
 0x989   :  { %5583 = vmatmul.msk.f32.gmra.mxu0 %vm14455_vm13, %v11834_v38  ;;  %vm14469_vm13 = vcmp.lt.s32.totalorder %v7376_v12, 1 }
 0x98a   :  { %v4357_v60 = vpop.f32.mrf.mxu3  ;;  %vm14470_vm10 = vmmov %vm14469_vm13 }
 0x98b   :  { %v12440_v46 = vadd.f32 %v4357_v60, %v4314_v1  ;;  %5592 = vmatmul.msk.f32.gmra.mxu1 %vm14457_vm8, %v11834_v38  ;;  %v4873_v38 = vld [vmem:[%s13051_s14] ss:$8 sm:$0xf0]  ;;  %vm14471_vm8 = vmmov %vm14464_vm2 }
 0x98c   :  { %4661 = vmatmul.f32.gmra.mxu2 %v11877_v44  ;;  %v12472_v14 = vor.u32 %v4873_v38, %v4872_v26 }
 0x98d   :  { %v4853_v1 = vpop.permute.xlu0 %4852 }
 0x98e   :  { %v4272_v23 = vpop.f32.mrf.mxu0  ;;  %v4869_v49 = vsel %vm14460_vm14, %v12410_v21, %v4853_v1  ;;  %vm14474_vm14 = vmmov %vm14468_vm4 }
 0x98f   :  { %4705 = vmatmul.f32.gmra.mxu3 %v11897_v52  ;;  %v4316_v44 = vpop.f32.mrf.mxu2  ;;  %v5602_v52 = vld [vmem:[%s13051_s14 + $0x2] ss:$8 sm:$0xf0] }
 0x990   :  { %v4317_v7 = vadd.f32 %v4316_v44, %v4272_v23  ;;  %v12462_v13 = vpop.f32.mrf.mxu1  ;;  %v12476_v60 = vor.u32 %v5602_v52, %v5601_v43  ;;  %v4878_v23 = vperm.slane %v12472_v14, 2  ;;  %v4947_v44 = vperm.slane %v12470_v8, 2 }
 0x991   :  { %5584 = vmatmul.msk.f32.gmra.mxu0 %vm14458_vm11, %v11917_v16  ;;  %vm14472_vm11 = vmmov %vm14434_vm0 }
 0x992   :  { %v4360_v35 = vpop.f32.mrf.mxu3  ;;  %v5016_v26 = vperm.slane %v12476_v60, 2  ;;  %v4894_v43 = vmul.f32 %v4878_v23, %v4869_v49  ;;  %v4868_v23 = vsel %vm14464_vm2, %v4853_v1, %v12413_v51  ;;  %v5603_v1 = vld [vmem:[%s13051_s14 + $0x3] ss:$8 sm:$0xf]  ;;  %vm5183_vm2 = vcmp.lt.s32.totalorder %v7376_v12, 127 }
 0x993   :  { %v4361_v40 = vadd.f32 %v4360_v35, %v4317_v7  ;;  %5593 = vmatmul.msk.f32.gmra.mxu1 %vm14459_vm12, %v11917_v16  ;;  %vm14473_vm12 = vmmov %vm14465_vm5 }
 0x994   :  { %4664 = vmatmul.f32.gmra.mxu2 %v11945_v11  ;;  %v5032_v34 = vmul.f32 %v5016_v26, %v5006_v10 }
 0x995   :  { %5175 = vrot.lane.b32.xlu2 %v4361_v40, %s6868_s4  ;;  %v4879_v40 = vperm.slane %v12472_v14, 3 }
 0x996   :  { %v4275_v53 = vpop.f32.mrf.mxu0  ;;  %v4921_v16 = vpop.permute.xlu1 %4920 }
 0x997   :  { %4708 = vmatmul.f32.gmra.mxu3 %v11959_v22  ;;  %v4319_v38 = vpop.f32.mrf.mxu2  ;;  %v4937_v7 = vsel %vm14461_vm6, %v12366_v55, %v4921_v16  ;;  %v4895_v10 = vmul.f32 %v4879_v40, %v4868_v23  ;;  %v4877_v23 = vperm.slane %v12472_v14, 1  ;;  %vm14475_vm6 = vmmov %vm14470_vm10 }
 0x998   :  { %v4320_v52 = vadd.f32 %v4319_v38, %v4275_v53  ;;  %v4963_v11 = vmul.f32 %v4947_v44, %v4937_v7  ;;  %v12492_v35 = vpop.f32.mrf.mxu1  ;;  %v12517_v38 = vpop.permute.xlu2 %5060 }
 0x999   :  { %5585 = vmatmul.msk.f32.gmra.mxu0 %vm14462_vm1, %v11967_v32  ;;  %vm14477_vm1 = vmmov %vm14434_vm0 }
 0x99a   :  { %v4363_v19 = vpop.f32.mrf.mxu3  ;;  %v4971_v22 = vadd.f32 %v4963_v11, %v4894_v43  ;;  %v5017_v43 = vperm.slane %v12476_v60, 3 }
 0x99b   :  { %v4364_v54 = vadd.f32 %v4363_v19, %v4320_v52  ;;  %5594 = vmatmul.msk.f32.gmra.mxu1 %vm14463_vm3, %v11967_v32  ;;  %vm14478_vm3 = vmmov %vm14434_vm0 }
 0x99c   :  { %4667 = vmatmul.f32.gmra.mxu2 %v11979_v2  ;;  %v12503_v44 = vpop.permute.xlu0 %4922  ;;  %v5040_v49 = vadd.f32 %v5032_v34, %v4971_v22  ;;  %v5604_v2 = vld [vmem:[%s13051_s14 + $0x3] ss:$8 sm:$0xf0] }
 0x99d   :  { %5245 = vrot.lane.b32.xlu0 %v4364_v54, %s6869_s12  ;;  %v4936_v19 = vsel %vm14465_vm5, %v4921_v16, %v12503_v44  ;;  %v12523_v7 = vor.u32 %v5604_v2, %v5603_v1  ;;  %vm14479_vm5 = vmmov %vm14434_vm0 }
 0x99e   :  { %v4278_v53 = vpop.f32.mrf.mxu0  ;;  %v4964_v32 = vmul.f32 %v4948_v30, %v4936_v19 }
 0x99f   :  { %4711 = vmatmul.f32.gmra.mxu3 %v11985_v18  ;;  %v4322_v26 = vpop.f32.mrf.mxu2  ;;  %v5085_v40 = vperm.slane %v12523_v7, 2  ;;  %v5086_v22 = vperm.slane %v12523_v7, 3 }
 0x9a0   :  { %v4323_v54 = vadd.f32 %v4322_v26, %v4278_v53  ;;  %v4972_v34 = vadd.f32 %v4964_v32, %v4895_v10  ;;  %v12519_v16 = vpop.f32.mrf.mxu1 }
 0x9a1   :  { %5586 = vmatmul.msk.f32.gmra.mxu0 %vm14466_vm9, %v11991_v56  ;;  %vm14480_vm9 = vmmov %vm14434_vm0 }
 0x9a2   :  { %v4366_v18 = vpop.f32.mrf.mxu3 }
 0x9a3   :  { %v4367_v30 = vadd.f32 %v4366_v18, %v4323_v54  ;;  %5595 = vmatmul.msk.f32.gmra.mxu1 %vm14467_vm7, %v11991_v56  ;;  %vm5323_vm7 = vcmp.lt.s32.totalorder %v7376_v12, 125 }
 0x9a4   :  { %4670 = vmatmul.f32.gmra.mxu2 %v12003_v37  ;;  %v12528_v11 = vpop.permute.xlu1 %4991 }
 0x9a5   :  { %5315 = vrot.lane.b32.xlu1 %v4367_v30, %s6870_s19  ;;  %v5005_v56 = vsel %vm14468_vm4, %v12428_v4, %v12528_v11  ;;  %vm5393_vm4 = vcmp.lt.s32.totalorder %v7376_v12, 124 }
 0x9a6   :  { %v4281_v52 = vpop.f32.mrf.mxu0  ;;  %v5033_v19 = vmul.f32 %v5017_v43, %v5005_v56  ;;  %v4870_v43 = vsel %vm14471_vm8, %v12336_v62, %v12410_v21  ;;  %v5007_v21 = vsel %vm14474_vm14, %v12376_v57, %v12419_v48  ;;  %v5076_v48 = vsel %vm14475_vm6, %v12346_v3, %v12425_v45 }
 0x9a7   :  { %4714 = vmatmul.f32.gmra.mxu3 %v12009_v50  ;;  %v4325_v53 = vpop.f32.mrf.mxu2 }
 0x9a8   :  { %v5059_v10 = vpop.permute.xlu0 %5058  ;;  %v4326_v37 = vadd.f32 %v4325_v53, %v4281_v52  ;;  %v12547_v4 = vpop.permute.xlu2 %5241  ;;  %v5041_v1 = vadd.f32 %v5033_v19, %v4972_v34  ;;  %v4946_v34 = vperm.slane %v12470_v8, 1  ;;  %v4938_v53 = vsel %vm14473_vm12, %v12370_v31, %v12366_v55  ;;  %v5606_v55 = vld [vmem:[%s13051_s14 + $0x4] ss:$8 sm:$0xf0] }
 0x9a9   :  { %5587 = vmatmul.msk.f32.gmra.mxu0 %vm14434_vm0, %v12015_v39  ;;  %v5074_v50 = vsel %vm14469_vm13, %v5059_v10, %v12517_v38  ;;  %v5075_v32 = vsel %vm14470_vm10, %v12425_v45, %v5059_v10  ;;  %v12549_v26 = vpop.f32.mrf.mxu1  ;;  %v12555_v30 = vsel %vm5253_vm15, %v12438_v6, %v12547_v4  ;;  %v5605_v10 = vld [vmem:[%s13051_s14 + $0x4] ss:$8 sm:$0xf]  ;;  %vm14481_vm0 = vmmov %vm14473_vm12 }
 0x9aa   :  { %v4369_v2 = vpop.f32.mrf.mxu3  ;;  %v5101_v54 = vmul.f32 %v5085_v40, %v5075_v32  ;;  %v5102_v18 = vmul.f32 %v5086_v22, %v5074_v50  ;;  %v5015_v40 = vperm.slane %v12476_v60, 1  ;;  %v4962_v50 = vmul.f32 %v4946_v34, %v4938_v53  ;;  %v5610_v34 = vld [vmem:[%s13051_s14 + $0x6] ss:$8 sm:$0xf0]  ;;  %vm14482_vm13 = vmmov %vm14471_vm8 }
 0x9ab   :  { %v4370_v52 = vadd.f32 %v4369_v2, %v4326_v37  ;;  %5596 = vmatmul.msk.f32.gmra.mxu1 %vm14472_vm11, %v12015_v39  ;;  %v4893_v39 = vmul.f32 %v4877_v23, %v4870_v43  ;;  %v5607_v2 = vld [vmem:[%s13051_s14 + $0x5] ss:$8 sm:$0xf]  ;;  %vm14483_vm10 = vmmov %vm14474_vm14 }
 0x9ac   :  { %v12565_v22 = vadd.f32 %v5101_v54, %v5040_v49  ;;  %v12567_v56 = vadd.f32 %v5102_v18, %v5041_v1  ;;  %4673 = vmatmul.f32.gmra.mxu2 %v12271_v29  ;;  %v5084_v49 = vperm.slane %v12523_v7, 1  ;;  %v14476_v29 = vld [vmem:[#allocation21_spill] sm:$0xff]  ;;  %v5031_v32 = vmul.f32 %v5015_v40, %v5007_v21  ;;  %vm14484_vm8 = vmmov %vm14475_vm6 }
 0x9ad   :  { %5385 = vrot.lane.b32.xlu2 %v4370_v52, %s6871_s22  ;;  %v3918_v23 = vadd.f32 %v12162_v9, %v14476_v29  ;;  %v5608_v54 = vld [vmem:[%s13051_s14 + $0x5] ss:$8 sm:$0xf0]  ;;  %v4970_v45 = vadd.f32 %v4962_v50, %v4893_v39  ;;  %v5609_v52 = vld [vmem:[%s13051_s14 + $0x6] ss:$8 sm:$0xf]  ;;  %vm14485_vm11 = vmmov %vm14481_vm0 }
 0x9ae   :  { %v4433_v19 = vpop.f32.mrf.mxu0  ;;  %v5100_v9 = vmul.f32 %v5084_v49, %v5076_v48  ;;  %v12617_v49 = vor.u32 %v5608_v54, %v5607_v2  ;;  %vm14486_vm12 = vmmov %vm14482_vm13 }
 0x9af   :  { %v4434_v37 = vadd.f32 %v4433_v19, %v12364_v24  ;;  %4717 = vmatmul.f32.gmra.mxu3 %v12027_v17  ;;  %v4477_v1 = vpop.f32.mrf.mxu2  ;;  %v12602_v17 = vor.u32 %v5606_v55, %v5605_v10  ;;  %v3962_v53 = vadd.f32 %v12175_v47, %v3918_v23  ;;  %v5039_v39 = vadd.f32 %v5031_v32, %v4970_v45  ;;  %vm14487_vm14 = vmmov %vm14483_vm10 }
 0x9b0   :  { %v12620_v10 = vor.u32 %v5610_v34, %v5609_v52  ;;  %v5198_v48 = vperm.slane %v12617_v49, 1 }
 0x9b1   :  { %v4478_v18 = vadd.f32 %v4477_v1, %v4434_v37  ;;  %5588 = vmatmul.msk.f32.gmra.mxu0 %vm14477_vm1, %v12033_v59  ;;  %v4565_v24 = vpop.f32.mrf.mxu1  ;;  %v5128_v21 = vperm.slane %v12602_v17, 1  ;;  %v5108_v19 = vadd.f32 %v5100_v9, %v5039_v39  ;;  %v5130_v45 = vperm.slane %v12602_v17, 3  ;;  %vm14492_vm1 = vmmov %vm14486_vm12 }
 0x9b2   :  { %v4521_v43 = vpop.f32.mrf.mxu3  ;;  %v5268_v47 = vperm.slane %v12620_v10, 1  ;;  %v5199_v9 = vperm.slane %v12617_v49, 2 }
 0x9b3   :  { %4858 = vrot.lane.b32.xlu0 %v4478_v18, %s6840_s29  ;;  %v12611_v40 = vadd.f32 %v4565_v24, %v4521_v43  ;;  %5597 = vmatmul.msk.f32.gmra.mxu1 %vm14478_vm3, %v12033_v59  ;;  %v5144_v59 = vmul.f32 %v5128_v21, %v3962_v53  ;;  %v5129_v18 = vperm.slane %v12602_v17, 2  ;;  %vm14493_vm3 = vmmov %vm14492_vm1 }
 0x9b4   :  { %4676 = vmatmul.f32.gmra.mxu2 %v12294_v61  ;;  %v4050_v61 = vadd.f32 %v12165_v27, %v12185_v28  ;;  %v5284_v27 = vmul.f32 %v5268_v47, %v12555_v30  ;;  %v5611_v30 = vld [vmem:[%s13051_s14 + $0x7] ss:$8 sm:$0xf] }
 0x9b5   :  { %v5152_v1 = vadd.f32 %v5144_v59, %v5108_v19  ;;  %v5612_v19 = vld [vmem:[%s13051_s14 + $0x7] ss:$8 sm:$0xf0] }
 0x9b6   :  { %v4436_v55 = vpop.f32.mrf.mxu0  ;;  %v4094_v54 = vadd.f32 %v12313_v58, %v4050_v61  ;;  %v5269_v61 = vperm.slane %v12620_v10, 2 }
 0x9b7   :  { %v4437_v37 = vadd.f32 %v4436_v55, %v12381_v36  ;;  %4720 = vmatmul.f32.gmra.mxu3 %v12280_v63  ;;  %v4480_v29 = vpop.f32.mrf.mxu2 }
 0x9b8   :  { %v5172_v23 = vpop.permute.xlu1 %5171  ;;  %v5145_v34 = vmul.f32 %v5129_v18, %v4094_v54  ;;  %v5613_v18 = vld [vmem:[%s13051_s14 + $0x40] ss:$8 sm:$0xf] }
 0x9b9   :  { %v4481_v50 = vadd.f32 %v4480_v29, %v4437_v37  ;;  %5589 = vmatmul.msk.f32.gmra.mxu0 %vm14479_vm5, %v12287_v41  ;;  %v5189_v36 = vsel %vm5183_vm2, %v12378_v20, %v5172_v23  ;;  %v4568_v32 = vpop.f32.mrf.mxu1  ;;  %vm14494_vm5 = vmmov %vm14481_vm0 }
 0x9ba   :  { %v4524_v63 = vpop.f32.mrf.mxu3  ;;  %v5214_v2 = vmul.f32 %v5198_v48, %v5189_v36 }
 0x9bb   :  { %4926 = vrot.lane.b32.xlu1 %v4481_v50, %s6843_s17  ;;  %v12637_v24 = vadd.f32 %v4568_v32, %v4524_v63  ;;  %5598 = vmatmul.msk.f32.gmra.mxu1 %vm14480_vm9, %v12287_v41  ;;  %v5146_v41 = vmul.f32 %v5130_v45, %v12321_v25  ;;  %v12670_v63 = vpop.permute.xlu2 %5313  ;;  %vm14495_vm9 = vmmov %vm14481_vm0 }
 0x9bc   :  { %v5222_v28 = vadd.f32 %v5214_v2, %v5152_v1 }
 0x9bd   :  { %v12662_v25 = vadd.f32 %v5146_v41, %v12567_v56 }
 0x9be   :  { %v4439_v43 = vpop.f32.mrf.mxu0  ;;  %v5292_v52 = vadd.f32 %v5284_v27, %v5222_v28 }
 0x9bf   :  { %v4440_v58 = vadd.f32 %v4439_v43, %v12398_v42  ;;  %v12645_v53 = vpop.permute.xlu0 %5173  ;;  %v4483_v21 = vpop.f32.mrf.mxu2  ;;  %v5153_v42 = vadd.f32 %v5145_v34, %v12565_v22 }
 0x9c0   :  { %v5188_v39 = vsel %vm5183_vm2, %v5172_v23, %v12645_v53  ;;  %v12664_v23 = vor.u32 %v5612_v19, %v5611_v30 }
 0x9c1   :  { %v4484_v55 = vadd.f32 %v4483_v21, %v4440_v58  ;;  %v5215_v48 = vmul.f32 %v5199_v9, %v5188_v39  ;;  %v4571_v37 = vpop.f32.mrf.mxu1 }
 0x9c2   :  { %v4527_v59 = vpop.f32.mrf.mxu3  ;;  %v5338_v36 = vperm.slane %v12664_v23, 1  ;;  %v5339_v22 = vperm.slane %v12664_v23, 2 }
 0x9c3   :  { %v5223_v47 = vadd.f32 %v5215_v48, %v5153_v42  ;;  %4995 = vrot.lane.b32.xlu2 %v4484_v55, %s6841_s30  ;;  %v12659_v29 = vadd.f32 %v4571_v37, %v4527_v59 }
 0x9c6   :  { %v4442_v50 = vpop.f32.mrf.mxu0 }
 0x9c7   :  { %v4443_v32 = vadd.f32 %v4442_v50, %v12415_v33  ;;  %v12672_v1 = vpop.permute.xlu1 %5243  ;;  %v4486_v2 = vpop.f32.mrf.mxu2  ;;  %v5614_v33 = vld [vmem:[%s13051_s14 + $0x40] ss:$8 sm:$0xf0] }
 0x9c8   :  { %v5258_v56 = vsel %vm5253_vm15, %v12547_v4, %v12672_v1  ;;  %v5312_v54 = vpop.permute.xlu0 %5311  ;;  %v12694_v41 = vor.u32 %v5614_v33, %v5613_v18 }
 0x9c9   :  { %v4487_v27 = vadd.f32 %v4486_v2, %v4443_v32  ;;  %v5285_v28 = vmul.f32 %v5269_v61, %v5258_v56  ;;  %v5328_v45 = vsel %vm5323_vm7, %v5312_v54, %v12670_v63  ;;  %v5329_v9 = vsel %vm5323_vm7, %v12451_v5, %v5312_v54  ;;  %v4574_v4 = vpop.f32.mrf.mxu1 }
 0x9ca   :  { %v4530_v43 = vpop.f32.mrf.mxu3  ;;  %v5354_v34 = vmul.f32 %v5338_v36, %v5329_v9  ;;  %v5355_v58 = vmul.f32 %v5339_v22, %v5328_v45  ;;  %v5408_v42 = vperm.slane %v12694_v41, 1  ;;  %v5409_v56 = vperm.slane %v12694_v41, 2 }
 0x9cb   :  { %v5293_v21 = vadd.f32 %v5285_v28, %v5223_v47  ;;  %5064 = vrot.lane.b32.xlu0 %v4487_v27, %s6839_s9  ;;  %v12692_v39 = vadd.f32 %v4574_v4, %v4530_v43 }
 0x9cc   :  { %v5362_v30 = vadd.f32 %v5354_v34, %v5292_v52 }
 0x9cd   :  { %v5363_v19 = vadd.f32 %v5355_v58, %v5293_v21 }
 0x9ce   :  { %v4445_v55 = vpop.f32.mrf.mxu0  ;;  %v12698_v37 = vpop.permute.xlu2 %4924 }
 0x9cf   :  { %v4446_v48 = vadd.f32 %v4445_v55, %v12436_v0  ;;  %v4935_v59 = vsel %vm14481_vm0, %v12503_v44, %v12698_v37  ;;  %v4489_v47 = vpop.f32.mrf.mxu2  ;;  %vm14496_vm0 = vmmov %vm14483_vm10 }
 0x9d0   :  { %v5382_v61 = vpop.permute.xlu1 %5381 }
 0x9d1   :  { %v12705_v50 = vadd.f32 %v4489_v47, %v4446_v48  ;;  %v5399_v52 = vsel %vm5393_vm4, %v12393_v15, %v5382_v61  ;;  %v4577_v36 = vpop.f32.mrf.mxu1 }
 0x9d2   :  { %v4533_v22 = vpop.f32.mrf.mxu3  ;;  %v5424_v0 = vmul.f32 %v5408_v42, %v5399_v52 }
 0x9d3   :  { %v12710_v32 = vadd.f32 %v4577_v36, %v4533_v22 }
 0x9d4   :  { %v12712_v2 = vadd.f32 %v5424_v0, %v5362_v30 }
 0x9d6   :  { %v4448_v54 = vpop.f32.mrf.mxu0 }
 0x9d7   :  { %v4449_v44 = vadd.f32 %v4448_v54, %v12462_v13  ;;  %v12716_v18 = vpop.permute.xlu0 %5383  ;;  %v4492_v33 = vpop.f32.mrf.mxu2 }
 0x9d8   :  { %v5398_v27 = vsel %vm5393_vm4, %v5382_v61, %v12716_v18 }
 0x9d9   :  { %v4493_v28 = vadd.f32 %v4492_v33, %v4449_v44  ;;  %v5425_v45 = vmul.f32 %v5409_v56, %v5398_v27  ;;  %v4580_v9 = vpop.f32.mrf.mxu1  ;;  %v5200_v56 = vperm.slane %v12617_v49, 3  ;;  %v4880_v44 = vperm.slane %v12472_v14, 4 }
 0x9da   :  { %v4536_v4 = vpop.f32.mrf.mxu3 }
 0x9db   :  { %v12721_v43 = vadd.f32 %v5425_v45, %v5363_v19  ;;  %5177 = vrot.lane.b32.xlu1 %v4493_v28, %s6868_s4  ;;  %v12724_v34 = vadd.f32 %v4580_v9, %v4536_v4  ;;  %v4949_v4 = vperm.slane %v12470_v8, 4 }
 0x9de   :  { %v4451_v58 = vpop.f32.mrf.mxu0 }
 0x9df   :  { %v4452_v13 = vadd.f32 %v4451_v58, %v12492_v35  ;;  %v4495_v21 = vpop.f32.mrf.mxu2  ;;  %v12734_v35 = vpop.permute.xlu1 %4856  ;;  %v5018_v58 = vperm.slane %v12476_v60, 4 }
 0x9e0   :  { %v4867_v28 = vsel %vm14482_vm13, %v12413_v51, %v12734_v35  ;;  %vm14497_vm13 = vmmov %vm14494_vm5 }
 0x9e1   :  { %v4496_v30 = vadd.f32 %v4495_v21, %v4452_v13  ;;  %v4583_v55 = vpop.f32.mrf.mxu1  ;;  %v4896_v51 = vmul.f32 %v4880_v44, %v4867_v28 }
 0x9e2   :  { %v4539_v42 = vpop.f32.mrf.mxu3 }
 0x9e3   :  { %5247 = vrot.lane.b32.xlu2 %v4496_v30, %s6869_s12  ;;  %v12728_v48 = vadd.f32 %v4583_v55, %v4539_v42 }
 0x9e6   :  { %v4454_v47 = vpop.f32.mrf.mxu0 }
 0x9e7   :  { %v4455_v61 = vadd.f32 %v4454_v47, %v12519_v16  ;;  %v4498_v19 = vpop.f32.mrf.mxu2  ;;  %v4965_v47 = vmul.f32 %v4949_v4, %v4935_v59 }
 0x9e9   :  { %v4499_v52 = vadd.f32 %v4498_v19, %v4455_v61  ;;  %v4586_v36 = vpop.f32.mrf.mxu1  ;;  %v5087_v19 = vperm.slane %v12523_v7, 4 }
 0x9ea   :  { %v4542_v22 = vpop.f32.mrf.mxu3 }
 0x9eb   :  { %5317 = vrot.lane.b32.xlu0 %v4499_v52, %s6870_s19  ;;  %v12732_v0 = vadd.f32 %v4586_v36, %v4542_v22  ;;  %v4973_v36 = vadd.f32 %v4965_v47, %v4896_v51  ;;  %v5131_v47 = vperm.slane %v12602_v17, 4 }
 0x9ee   :  { %v4457_v54 = vpop.f32.mrf.mxu0 }
 0x9ef   :  { %v4458_v33 = vadd.f32 %v4457_v54, %v12549_v26  ;;  %v12739_v27 = vpop.permute.xlu0 %4993  ;;  %v12741_v16 = vpop.permute.xlu2 %5175 }
 0x9f0   :  { %v5187_v45 = vsel %vm5183_vm2, %v12645_v53, %v12741_v16  ;;  %v4501_v9 = vpop.f32.mrf.mxu2  ;;  %v5004_v30 = vsel %vm14483_vm10, %v12528_v11, %v12739_v27  ;;  %vm14498_vm10 = vmmov %vm14496_vm0 }
 0x9f1   :  { %v5216_v26 = vmul.f32 %v5200_v56, %v5187_v45  ;;  %v4502_v13 = vadd.f32 %v4501_v9, %v4458_v33  ;;  %v4589_v21 = vpop.f32.mrf.mxu1  ;;  %v5034_v61 = vmul.f32 %v5018_v58, %v5004_v30 }
 0x9f2   :  { %v4545_v55 = vpop.f32.mrf.mxu3 }
 0x9f3   :  { %v12758_v42 = vadd.f32 %v5216_v26, %v12662_v25  ;;  %5387 = vrot.lane.b32.xlu1 %v4502_v13, %s6871_s22  ;;  %v12761_v53 = vadd.f32 %v4589_v21, %v4545_v55  ;;  %v5042_v54 = vadd.f32 %v5034_v61, %v4973_v36 }
 0x9f6   :  { %v4609_v52 = vpop.f32.mrf.mxu0 }
 0x9f7   :  { %v4610_v22 = vadd.f32 %v4609_v52, %v12611_v40  ;;  %v12765_v56 = vpop.permute.xlu1 %5062  ;;  %v5147_v52 = vmul.f32 %v5131_v47, %v12440_v46 }
 0x9f8   :  { %v5073_v11 = vsel %vm14484_vm8, %v12517_v38, %v12765_v56  ;;  %v4653_v25 = vpop.f32.mrf.mxu2  ;;  %vm14499_vm8 = vmmov %vm14475_vm6 }
 0x9f9   :  { %v5103_v44 = vmul.f32 %v5087_v19, %v5073_v11  ;;  %4860 = vrot.lane.b32.xlu2 %v4610_v22, %s6840_s29  ;;  %v4741_v59 = vpop.f32.mrf.mxu1 }
 0x9fa   :  { %v4697_v33 = vpop.f32.mrf.mxu3 }
 0x9fb   :  { %v5111_v28 = vadd.f32 %v5103_v44, %v5042_v54  ;;  %v4698_v45 = vadd.f32 %v4697_v33, %v4653_v25  ;;  %v5270_v44 = vperm.slane %v12620_v10, 3 }
 0x9fd   :  { %v4742_v9 = vadd.f32 %v4741_v59, %v4698_v45 }
 0x9fe   :  { %v4612_v4 = vpop.f32.mrf.mxu0 }
 0x9ff   :  { %v4613_v40 = vadd.f32 %v4612_v4, %v12637_v24  ;;  %4862 = vrot.lane.b32.xlu1 %v4742_v9, %s6840_s29 }
 0xa00   :  { %v4656_v58 = vpop.f32.mrf.mxu2 }
 0xa01   :  { %4928 = vrot.lane.b32.xlu0 %v4613_v40, %s6843_s17  ;;  %v4744_v26 = vpop.f32.mrf.mxu1 }
 0xa02   :  { %v4700_v38 = vpop.f32.mrf.mxu3 }
 0xa03   :  { %v4701_v13 = vadd.f32 %v4700_v38, %v4656_v58  ;;  %v5410_v58 = vperm.slane %v12694_v41, 3 }
 0xa05   :  { %v4745_v21 = vadd.f32 %v4744_v26, %v4701_v13 }
 0xa06   :  { %v4615_v30 = vpop.f32.mrf.mxu0 }
 0xa07   :  { %v4616_v55 = vadd.f32 %v4615_v30, %v12659_v29  ;;  %4930 = vrot.lane.b32.xlu2 %v4745_v21, %s6843_s17  ;;  %v12784_v29 = vadd.f32 %v5147_v52, %v5111_v28  ;;  %v5340_v28 = vperm.slane %v12664_v23, 3 }
 0xa08   :  { %v4659_v51 = vpop.f32.mrf.mxu2 }
 0xa09   :  { %4997 = vrot.lane.b32.xlu1 %v4616_v55, %s6841_s30  ;;  %v4747_v24 = vpop.f32.mrf.mxu1 }
 0xa0a   :  { %v4703_v61 = vpop.f32.mrf.mxu3 }
 0xa0b   :  { %v4704_v19 = vadd.f32 %v4703_v61, %v4659_v51 }
 0xa0d   :  { %v4748_v36 = vadd.f32 %v4747_v24, %v4704_v19 }
 0xa0e   :  { %v4618_v22 = vpop.f32.mrf.mxu0 }
 0xa0f   :  { %v4619_v11 = vadd.f32 %v4618_v22, %v12692_v39  ;;  %4999 = vrot.lane.b32.xlu0 %v4748_v36, %s6841_s30  ;;  %v12782_v25 = vpop.permute.xlu0 %5245  ;;  %v12792_v39 = vpop.permute.xlu2 %5385 }
 0xa10   :  { %v4662_v54 = vpop.f32.mrf.mxu2  ;;  %v5257_v46 = vsel %vm5253_vm15, %v12672_v1, %v12782_v25  ;;  %v5397_v1 = vsel %vm5393_vm4, %v12716_v18, %v12792_v39 }
 0xa11   :  { %5066 = vrot.lane.b32.xlu2 %v4619_v11, %s6839_s9  ;;  %v4750_v59 = vpop.f32.mrf.mxu1  ;;  %v5286_v9 = vmul.f32 %v5270_v44, %v5257_v46  ;;  %v5426_v47 = vmul.f32 %v5410_v58, %v5397_v1 }
 0xa12   :  { %v4706_v33 = vpop.f32.mrf.mxu3 }
 0xa13   :  { %v4707_v45 = vadd.f32 %v4706_v33, %v4662_v54  ;;  %v5294_v30 = vadd.f32 %v5286_v9, %v12758_v42 }
 0xa15   :  { %v4751_v4 = vadd.f32 %v4750_v59, %v4707_v45 }
 0xa16   :  { %v4621_v40 = vpop.f32.mrf.mxu0 }
 0xa17   :  { %v12797_v26 = vadd.f32 %v4621_v40, %v12710_v32  ;;  %5068 = vrot.lane.b32.xlu1 %v4751_v4, %s6839_s9  ;;  %v12800_v38 = vpop.permute.xlu1 %5315 }
 0xa18   :  { %v5327_v13 = vsel %vm5323_vm7, %v12670_v63, %v12800_v38  ;;  %v4665_v21 = vpop.f32.mrf.mxu2 }
 0xa19   :  { %v5356_v55 = vmul.f32 %v5340_v28, %v5327_v13  ;;  %v4753_v32 = vpop.f32.mrf.mxu1 }
 0xa1a   :  { %v4709_v51 = vpop.f32.mrf.mxu3 }
 0xa1b   :  { %v5364_v24 = vadd.f32 %v5356_v55, %v5294_v30  ;;  %v4710_v61 = vadd.f32 %v4709_v51, %v4665_v21  ;;  %v4950_v21 = vperm.slane %v12470_v8, 5 }
 0xa1d   :  { %v12811_v19 = vadd.f32 %v5426_v47, %v5364_v24  ;;  %v12813_v52 = vadd.f32 %v4753_v32, %v4710_v61  ;;  %v12837_v24 = vpop.permute.xlu2 %4995 }
 0xa1e   :  { %v4624_v36 = vpop.f32.mrf.mxu0 }
 0xa1f   :  { %v4625_v18 = vadd.f32 %v4624_v36, %v12724_v34 }
 0xa20   :  { %v4668_v22 = vpop.f32.mrf.mxu2 }
 0xa21   :  { %5179 = vrot.lane.b32.xlu0 %v4625_v18, %s6868_s4  ;;  %v4756_v63 = vpop.f32.mrf.mxu1 }
 0xa22   :  { %v4712_v11 = vpop.f32.mrf.mxu3 }
 0xa23   :  { %v4713_v54 = vadd.f32 %v4712_v11, %v4668_v22  ;;  %v5019_v22 = vperm.slane %v12476_v60, 5 }
 0xa25   :  { %v4757_v42 = vadd.f32 %v4756_v63, %v4713_v54  ;;  %v12825_v13 = vpop.permute.xlu0 %4858  ;;  %v5003_v63 = vsel %vm14487_vm14, %v12739_v27, %v12837_v24  ;;  %vm14502_vm14 = vmmov %vm14475_vm6 }
 0xa26   :  { %v4627_v44 = vpop.f32.mrf.mxu0  ;;  %v4866_v51 = vsel %vm14486_vm12, %v12734_v35, %v12825_v13  ;;  %vm14501_vm12 = vmmov %vm14496_vm0 }
 0xa27   :  { %v4628_v59 = vadd.f32 %v4627_v44, %v12728_v48  ;;  %5181 = vrot.lane.b32.xlu2 %v4757_v42, %s6868_s4  ;;  %v5088_v44 = vperm.slane %v12523_v7, 5 }
 0xa28   :  { %v4671_v46 = vpop.f32.mrf.mxu2 }
 0xa29   :  { %5249 = vrot.lane.b32.xlu1 %v4628_v59, %s6869_s12  ;;  %v4759_v33 = vpop.f32.mrf.mxu1  ;;  %v5035_v59 = vmul.f32 %v5019_v22, %v5003_v63 }
 0xa2a   :  { %v4715_v45 = vpop.f32.mrf.mxu3 }
 0xa2b   :  { %v4716_v9 = vadd.f32 %v4715_v45, %v4671_v46 }
 0xa2d   :  { %v4760_v4 = vadd.f32 %v4759_v33, %v4716_v9  ;;  %v12822_v58 = vpop.permute.xlu1 %4926 }
 0xa2e   :  { %v4630_v34 = vpop.f32.mrf.mxu0  ;;  %v4934_v55 = vsel %vm14485_vm11, %v12698_v37, %v12822_v58  ;;  %vm14500_vm11 = vmmov %vm14492_vm1 }
 0xa2f   :  { %v4631_v28 = vadd.f32 %v4630_v34, %v12732_v0  ;;  %5251 = vrot.lane.b32.xlu0 %v4760_v4, %s6869_s12  ;;  %v4881_v0 = vperm.slane %v12472_v14, 5  ;;  %v4966_v61 = vmul.f32 %v4950_v21, %v4934_v55  ;;  %v5201_v34 = vperm.slane %v12617_v49, 4 }
 0xa30   :  { %v4674_v40 = vpop.f32.mrf.mxu2 }
 0xa31   :  { %5319 = vrot.lane.b32.xlu2 %v4631_v28, %s6870_s19  ;;  %v4762_v48 = vpop.f32.mrf.mxu1  ;;  %v4897_v37 = vmul.f32 %v4881_v0, %v4866_v51  ;;  %v5271_v0 = vperm.slane %v12620_v10, 4 }
 0xa32   :  { %v4718_v1 = vpop.f32.mrf.mxu3 }
 0xa33   :  { %v4719_v30 = vadd.f32 %v4718_v1, %v4674_v40  ;;  %v4974_v54 = vadd.f32 %v4966_v61, %v4897_v37 }
 0xa35   :  { %v4763_v32 = vadd.f32 %v4762_v48, %v4719_v30  ;;  %v5043_v27 = vadd.f32 %v5035_v59, %v4974_v54  ;;  %v5132_v48 = vperm.slane %v12602_v17, 5 }
 0xa36   :  { %v4633_v47 = vpop.f32.mrf.mxu0 }
 0xa37   :  { %v4634_v36 = vadd.f32 %v4633_v47, %v12761_v53  ;;  %5321 = vrot.lane.b32.xlu1 %v4763_v32, %s6870_s19  ;;  %v5439_v53 = vld [vmem:[%s13053_s15] sm:$0x7]  ;;  %v5148_v21 = vmul.f32 %v5132_v48, %v12705_v50  ;;  %v14491_v48 = vld [vmem:[#allocation56_spill] sm:$0xff] }
 0xa38   :  { %v4677_v18 = vpop.f32.mrf.mxu2 }
 0xa39   :  { %5389 = vrot.lane.b32.xlu0 %v4634_v36, %s6871_s22  ;;  %v4765_v11 = vpop.f32.mrf.mxu1 }
 0xa3a   :  { %v4721_v35 = vpop.f32.mrf.mxu3 }
 0xa3b   :  { %v4722_v42 = vadd.f32 %v4721_v35, %v4677_v18  ;;  %v5411_v18 = vperm.slane %v12694_v41, 4 }
 0xa3d   :  { %v4766_v46 = vadd.f32 %v4765_v11, %v4722_v42  ;;  %v12851_v33 = vpop.permute.xlu0 %5064  ;;  %v12870_v55 = vpop.permute.xlu2 %5247 }
 0xa3e   :  { %v5072_v45 = vsel %vm14475_vm6, %v12765_v56, %v12851_v33  ;;  %v5256_v32 = vsel %vm5253_vm15, %v12782_v25, %v12870_v55 }
 0xa3f   :  { %v5104_v9 = vmul.f32 %v5088_v44, %v5072_v45  ;;  %5391 = vrot.lane.b32.xlu2 %v4766_v46, %s6871_s22  ;;  %5442 = vperm.xlu1 %6141, %v5439_v53   ;;  %v5287_v51 = vmul.f32 %v5271_v0, %v5256_v32  ;;  %v14489_v44 = vld [vmem:[#allocation5_spill] sm:$0xff]  ;;  %v14490_v46 = vld [vmem:[#allocation24_spill] sm:$0xff]  ;;  %v4951_v0 = vperm.slane %v12470_v8, 6 }
 0xa41   :  { %v5112_v4 = vadd.f32 %v5104_v9, %v5043_v27  ;;  %v5127_v27 = vperm.slane %v12602_v17, 0 }
 0xa43   :  { %v12868_v30 = vadd.f32 %v5148_v21, %v5112_v4 }
 0xa4d   :  { %v12859_v28 = vpop.permute.xlu1 %5177 }
 0xa4e   :  { %v5186_v40 = vsel %vm5183_vm2, %v12741_v16, %v12859_v28  ;;  %v5341_v16 = vperm.slane %v12664_v23, 4 }
 0xa4f   :  { %v5217_v1 = vmul.f32 %v5201_v34, %v5186_v40  ;;  %v4876_v40 = vperm.slane %v12472_v14, 0 }
 0xa51   :  { %v5225_v56 = vadd.f32 %v5217_v1, %v12784_v29  ;;  %v5190_v1 = vsel %vm5183_vm2, %v14491_v48, %v12378_v20  ;;  %v5014_v20 = vperm.slane %v12476_v60, 0 }
 0xa53   :  { %v5295_v29 = vadd.f32 %v5287_v51, %v5225_v56  ;;  %v4861_v35 = vpop.permute.xlu2 %4860  ;;  %v4882_v56 = vperm.slane %v12472_v14, 6 }
 0xa54   :  { %v4865_v32 = vsel %vm14493_vm3, %v12825_v13, %v4861_v35 }
 0xa5d   :  { %v12878_v47 = vpop.permute.xlu0 %5317 }
 0xa5e   :  { %v5326_v50 = vsel %vm5323_vm7, %v12800_v38, %v12878_v47  ;;  %v14488_v38 = vld [vmem:[#allocation8_spill] sm:$0xff] }
 0xa5f   :  { %v5357_v61 = vmul.f32 %v5341_v16, %v5326_v50  ;;  %v3786_v53 = vadd.f32 %v14489_v44, %v14488_v38  ;;  %v4945_v16 = vperm.slane %v12470_v8, 0  ;;  %v5021_v38 = vperm.slane %v12476_v60, 7 }
 0xa61   :  { %v5365_v36 = vadd.f32 %v5357_v61, %v5295_v29  ;;  %v4931_v54 = vpop.permute.xlu2 %4930  ;;  %v3830_v45 = vadd.f32 %v14490_v46, %v3786_v53  ;;  %v5020_v61 = vperm.slane %v12476_v60, 6  ;;  %v4898_v53 = vmul.f32 %v4882_v56, %v4865_v32 }
 0xa62   :  { %v4939_v29 = vsel %vm14495_vm9, %v4931_v54, %v12370_v31  ;;  %v4883_v31 = vperm.slane %v12472_v14, 7  ;;  %v5090_v14 = vperm.slane %v12523_v7, 7  ;;  %v5407_v60 = vperm.slane %v12694_v41, 0 }
 0xa63   :  { %v12897_v34 = vmul.f32 %v5127_v27, %v3830_v45  ;;  %v4961_v44 = vmul.f32 %v4945_v16, %v4939_v29 }
 0xa65   :  { %v12885_v22 = vpop.permute.xlu1 %5387 }
 0xa66   :  { %v5396_v25 = vsel %vm5393_vm4, %v12792_v39, %v12885_v22  ;;  %v5197_v39 = vperm.slane %v12617_v49, 0 }
 0xa67   :  { %v5427_v37 = vmul.f32 %v5411_v18, %v5396_v25 }
 0xa69   :  { %v12891_v63 = vadd.f32 %v5427_v37, %v5365_v36  ;;  %v5083_v37 = vperm.slane %v12523_v7, 0 }
 0xa6b   :  { %v5067_v9 = vpop.permute.xlu2 %5066 }
 0xa6c   :  { %v5071_v56 = vsel %vm14475_vm6, %v12851_v33, %v5067_v9  ;;  %v5202_v33 = vperm.slane %v12617_v49, 5 }
 0xa71   :  { %v4863_v11 = vpop.permute.xlu1 %4862 }
 0xa72   :  { %v4871_v21 = vsel %vm14492_vm1, %v4863_v11, %v12336_v62  ;;  %v4952_v62 = vperm.slane %v12470_v8, 7 }
 0xa73   :  { %v4929_v42 = vpop.permute.xlu0 %4928  ;;  %v4892_v36 = vmul.f32 %v4876_v40, %v4871_v21 }
 0xa74   :  { %v4933_v51 = vsel %vm14494_vm5, %v12822_v58, %v4929_v42  ;;  %v4932_v18 = vsel %vm14497_vm13, %v4929_v42, %v4931_v54  ;;  %v4864_v54 = vsel %vm14500_vm11, %v4861_v35, %v4863_v11 }
 0xa75   :  { %v4967_v8 = vmul.f32 %v4951_v0, %v4933_v51  ;;  %v4968_v46 = vmul.f32 %v4952_v62, %v4932_v18  ;;  %v4969_v40 = vadd.f32 %v4961_v44, %v4892_v36  ;;  %v5089_v0 = vperm.slane %v12523_v7, 6  ;;  %v14503_v51 = vld [vmem:[#allocation61_spill] sm:$0xff]  ;;  %v14504_v7 = vld [vmem:[#allocation28_spill] sm:$0xff] }
 0xa76   :  { %v4899_v35 = vmul.f32 %v4883_v31, %v4864_v54  ;;  %v5134_v36 = vperm.slane %v12602_v17, 7  ;;  %v5133_v31 = vperm.slane %v12602_v17, 6  ;;  %v5203_v44 = vperm.slane %v12617_v49, 6 }
 0xa77   :  { %v4975_v11 = vadd.f32 %v4967_v8, %v4898_v53  ;;  %v5105_v18 = vmul.f32 %v5089_v0, %v5071_v56  ;;  %v5272_v8 = vperm.slane %v12620_v10, 5  ;;  %v5344_v56 = vperm.slane %v12664_v23, 7 }
 0xa7b   :  { %v4998_v59 = vpop.permute.xlu1 %4997 }
 0xa7c   :  { %v5002_v58 = vsel %vm14498_vm10, %v12837_v24, %v4998_v59 }
 0xa7d   :  { %v5036_v45 = vmul.f32 %v5020_v61, %v5002_v58 }
 0xa7f   :  { %v5044_v29 = vadd.f32 %v5036_v45, %v4975_v11  ;;  %v5150_v45 = vmul.f32 %v5134_v36, %v12813_v52 }
 0xa81   :  { %v5000_v4 = vpop.permute.xlu0 %4999  ;;  %v5182_v25 = vpop.permute.xlu2 %5181 }
 0xa82   :  { %v5008_v13 = vsel %vm14496_vm0, %v5000_v4, %v12376_v57  ;;  %v5001_v42 = vsel %vm14501_vm12, %v4998_v59, %v5000_v4  ;;  %v5213_v59 = vmul.f32 %v5197_v39, %v5190_v1  ;;  %v5267_v4 = vperm.slane %v12620_v10, 0 }
 0xa83   :  { %v5030_v24 = vmul.f32 %v5014_v20, %v5008_v13  ;;  %v5037_v16 = vmul.f32 %v5021_v38, %v5001_v42  ;;  %v5260_v20 = vsel %vm5253_vm15, %v14503_v51, %v12438_v6  ;;  %v12958_v39 = vsel %vm5393_vm4, %v14504_v7, %v12393_v15 }
 0xa84   :  { %v5337_v1 = vperm.slane %v12664_v23, 0  ;;  %v5204_v15 = vperm.slane %v12617_v49, 7  ;;  %v5113_v38 = vadd.f32 %v5105_v18, %v5044_v29 }
 0xa85   :  { %v5038_v32 = vadd.f32 %v5030_v24, %v4969_v40  ;;  %v5149_v40 = vmul.f32 %v5133_v31, %v12797_v26  ;;  %v5343_v26 = vperm.slane %v12664_v23, 6 }
 0xa87   :  { %v5157_v0 = vadd.f32 %v5149_v40, %v5113_v38 }
 0xa89   :  { %v5069_v50 = vpop.permute.xlu1 %5068 }
 0xa8a   :  { %v5077_v57 = vsel %vm14499_vm8, %v5069_v50, %v12346_v3  ;;  %v5070_v3 = vsel %vm14502_vm14, %v5067_v9, %v5069_v50  ;;  %v4976_v50 = vadd.f32 %v4968_v46, %v4899_v35  ;;  %v14505_v46 = vld [vmem:[#allocation57_spill] sm:$0xff] }
 0xa8b   :  { %v5099_v21 = vmul.f32 %v5083_v37, %v5077_v57  ;;  %v5106_v62 = vmul.f32 %v5090_v14, %v5070_v3  ;;  %v5320_v13 = vpop.permute.xlu2 %5319  ;;  %v5283_v37 = vmul.f32 %v5267_v4, %v5260_v20  ;;  %v5330_v49 = vsel %vm5323_vm7, %v14505_v46, %v12451_v5 }
 0xa8c   :  { %v5045_v6 = vadd.f32 %v5037_v16, %v4976_v50  ;;  %v5274_v14 = vperm.slane %v12620_v10, 7  ;;  %v5342_v5 = vperm.slane %v12664_v23, 5  ;;  %v5325_v11 = vsel %vm5323_vm7, %v12878_v47, %v5320_v13 }
 0xa8d   :  { %v5107_v61 = vadd.f32 %v5099_v21, %v5038_v32  ;;  %v5353_v32 = vmul.f32 %v5337_v1, %v5330_v49 }
 0xa8e   :  { %v5114_v57 = vadd.f32 %v5106_v62, %v5045_v6 }
 0xa8f   :  { %v5151_v24 = vadd.f32 %v12897_v34, %v5107_v61  ;;  %v5413_v61 = vperm.slane %v12694_v41, 6 }
 0xa90   :  { %v5158_v3 = vadd.f32 %v5150_v45, %v5114_v57 }
 0xa91   :  { %v5221_v52 = vadd.f32 %v5213_v59, %v5151_v24  ;;  %v5412_v59 = vperm.slane %v12694_v41, 5 }
 0xa93   :  { %v5180_v27 = vpop.permute.xlu0 %5179  ;;  %v5291_v47 = vadd.f32 %v5283_v37, %v5221_v52 }
 0xa94   :  { %v5185_v58 = vsel %vm5183_vm2, %v12859_v28, %v5180_v27  ;;  %v5191_v28 = vsel %vm5183_vm2, %v5182_v25, %v14491_v48  ;;  %v5184_v17 = vsel %vm5183_vm2, %v5180_v27, %v5182_v25 }
 0xa95   :  { %v5218_v53 = vmul.f32 %v5202_v33, %v5185_v58  ;;  %v5220_v27 = vmul.f32 %v5204_v15, %v5191_v28  ;;  %v5219_v21 = vmul.f32 %v5203_v44, %v5184_v17  ;;  %v5358_v33 = vmul.f32 %v5342_v5, %v5325_v11 }
 0xa96   :  { %v5361_v44 = vadd.f32 %v5353_v32, %v5291_v47  ;;  %v5423_v28 = vmul.f32 %v5407_v60, %v12958_v39 }
 0xa97   :  { %v5226_v35 = vadd.f32 %v5218_v53, %v12868_v30  ;;  %v5227_v50 = vadd.f32 %v5219_v21, %v5157_v0  ;;  %v5228_v29 = vadd.f32 %v5220_v27, %v5158_v3 }
 0xa98   :  { %v5431_v53 = vadd.f32 %v5423_v28, %v5361_v44 }
 0xa9b   :  { %v5250_v9 = vpop.permute.xlu1 %5249 }
 0xa9c   :  { %v5255_v54 = vsel %vm5253_vm15, %v12870_v55, %v5250_v9  ;;  %v5273_v55 = vperm.slane %v12620_v10, 6  ;;  %v5392_v10 = vpop.permute.xlu2 %5391 }
 0xa9d   :  { %v5288_v48 = vmul.f32 %v5272_v8, %v5255_v54  ;;  %v5401_v30 = vsel %vm5393_vm4, %v5392_v10, %v14504_v7 }
 0xa9f   :  { %v5296_v20 = vadd.f32 %v5288_v48, %v5226_v35 }
 0xaa1   :  { %v5252_v42 = vpop.permute.xlu0 %5251  ;;  %v5366_v7 = vadd.f32 %v5358_v33, %v5296_v20 }
 0xaa2   :  { %v5254_v34 = vsel %vm5253_vm15, %v5250_v9, %v5252_v42  ;;  %v5261_v25 = vsel %vm5253_vm15, %v5252_v42, %v14503_v51  ;;  %v5414_v51 = vperm.slane %v12694_v41, 7  ;;  %vm14506_vm15 = vcmask 1043456  }
 0xaa3   :  { %v5289_v16 = vmul.f32 %v5273_v55, %v5254_v34  ;;  %v5290_v4 = vmul.f32 %v5274_v14, %v5261_v25  ;;  %vm14507_vm2 = vmmov %vm14506_vm15 }
 0xaa4   :  { %v5430_v31 = vmul.f32 %v5414_v51, %v5401_v30 }
 0xaa5   :  { %v5297_v9 = vadd.f32 %v5289_v16, %v5227_v50  ;;  %v5298_v36 = vadd.f32 %v5290_v4, %v5228_v29 }
 0xaa9   :  { %v5322_v62 = vpop.permute.xlu1 %5321 }
 0xaaa   :  { %v5324_v23 = vsel %vm5323_vm7, %v5320_v13, %v5322_v62  ;;  %v5331_v1 = vsel %vm5323_vm7, %v5322_v62, %v14505_v46  ;;  %vm14508_vm7 = vmmov %vm14507_vm2 }
 0xaab   :  { %v5359_v18 = vmul.f32 %v5343_v26, %v5324_v23  ;;  %v5360_v6 = vmul.f32 %v5344_v56, %v5331_v1  ;;  %v5390_v58 = vpop.permute.xlu0 %5389 }
 0xaac   :  { %v5394_v15 = vsel %vm5393_vm4, %v5390_v58, %v5392_v10  ;;  %v5395_v37 = vsel %vm5393_vm4, %v12885_v22, %v5390_v58  ;;  %vm14509_vm4 = vmmov %vm14507_vm2 }
 0xaad   :  { %v5367_v8 = vadd.f32 %v5359_v18, %v5297_v9  ;;  %v5368_v13 = vadd.f32 %v5360_v6, %v5298_v36  ;;  %v5428_v38 = vmul.f32 %v5412_v59, %v5395_v37  ;;  %v5429_v57 = vmul.f32 %v5413_v61, %v5394_v15 }
 0xaaf   :  { %v5438_v54 = vadd.f32 %v5430_v31, %v5368_v13  ;;  %v5436_v42 = vadd.f32 %v5428_v38, %v5366_v7  ;;  %v5437_v24 = vadd.f32 %v5429_v57, %v5367_v8 }
 0xab1   :  { %v5443_v17 = vpop.permute.xlu1 %5442 }
 0xab2   :  { %v5446_v46 = vadd.f32 %v5443_v17, %v12712_v2  ;;  %v5448_v49 = vadd.f32 %v5443_v17, %v12811_v19  ;;  %v5450_v12 = vadd.f32 %v5443_v17, %v5436_v42  ;;  %v5452_v22 = vadd.f32 %v5443_v17, %v5438_v54 }
 0xab3   :  { %v5445_v45 = vadd.f32 %v5443_v17, %v5431_v53  ;;  %v5447_v55 = vadd.f32 %v5443_v17, %v12721_v43  ;;  %v5449_v48 = vadd.f32 %v5443_v17, %v12891_v63  ;;  %v5451_v34 = vadd.f32 %v5443_v17, %v5437_v24 }
 0xab4   :  { %v5457_v14 = vrot.slane %v5446_v46, 4  ;;  %v5458_v40 = vrot.slane %v5448_v49, 4  ;;  %v5469_v25 = vrot.slane %v5450_v12, 4  ;;  %v5470_v41 = vrot.slane %v5452_v22, 4 }
 0xab6   :  { %v5459_v60 = vsel %vm14506_vm15, %v5445_v45, %v5457_v14  ;;  %v5460_v39 = vsel %vm14507_vm2, %v5447_v55, %v5458_v40  ;;  %v5471_v2 = vsel %vm14508_vm7, %v5449_v48, %v5469_v25  ;;  %v5472_v19 = vsel %vm14509_vm4, %v5451_v34, %v5470_v41 }
 0xab7   :  { %5463 = vst [vmem:[%s13054_s16] sm:$0x77] %v5459_v60 }
 0xab8   :  { %5464 = vst [vmem:[%s13054_s16 + $0x8] sm:$0x77] %v5460_v39 }
 0xab9   :  { %5615 = vst [vmem:[%s13054_s16 + $0x10] sm:$0x77] %v5471_v2 }
 0xaba   :  { %5616 = vst [vmem:[%s13054_s16 + $0x18] sm:$0x77] %v5472_v19 }

</bundles_post_ra>
